<compile_context>
chip_gen: v5e
topology: v5e:2x2
jax: 0.10.0
libtpu: 0.0.40
codegen_flags: <defaults>
</compile_context>

<pallas_src>
import jax
import jax.numpy as jnp
from jax.experimental import pallas as pl
from jax.experimental.pallas import tpu as pltpu

LN_EPS = 1e-5


def _layer_norm_f32(x, gamma, beta):
    """One-pass LayerNorm over the last axis (f32 in, f32 out)."""
    mu = jnp.mean(x, axis=-1, keepdims=True)
    ex2 = jnp.mean(x * x, axis=-1, keepdims=True)
    var = jnp.maximum(ex2 - mu * mu, 0.0)
    return (x - mu) * jax.lax.rsqrt(var + LN_EPS) * gamma + beta


def _make_kernel(d_ff, ff_chunk):
    n_chunks = -(-d_ff // ff_chunk)  # static ceil-div

    def kernel(src_ref, w1_ref, b1_ref, w2_ref, vec_ref, out_ref):
        # vec_ref rows: [b2, gamma1, beta1, gamma2, beta2]
        x = src_ref[...].astype(jnp.float32)

        # src = src + dropout1(src)   (dropout == identity at eval)
        x = x + x

        # LayerNorm1 (f32, one-pass statistics)
        y = _layer_norm_f32(x, vec_ref[1:2, :], vec_ref[2:3, :])
        y_bf = y.astype(jnp.bfloat16)

        # FFN: relu(y @ W1 + b1) @ W2 + b2, chunked over d_ff to bound VMEM scratch.
        # bf16 operands into the MXU, f32 accumulation.
        s2 = jnp.zeros(y.shape, jnp.float32)
        for c in range(n_chunks):
            lo = c * ff_chunk
            hi = min(lo + ff_chunk, d_ff)
            h = jnp.dot(y_bf, w1_ref[:, lo:hi],
                        preferred_element_type=jnp.float32) + b1_ref[:, lo:hi]
            h = jnp.maximum(h, 0.0)
            s2 = s2 + jnp.dot(h.astype(jnp.bfloat16), w2_ref[lo:hi, :],
                              preferred_element_type=jnp.float32)
        s2 = s2 + vec_ref[0:1, :]

        # Residual + LayerNorm2 (f32)
        o = _layer_norm_f32(y + s2, vec_ref[3:4, :], vec_ref[4:5, :])
        out_ref[...] = o.astype(out_ref.dtype)

    return kernel


def _tpu_vmem_and_cores():
    """Returns (per-core VMEM bytes, TensorCores per chip); conservative fallbacks."""
    vmem = 128 * 1024 * 1024
    try:
        vmem = int(pltpu.get_tpu_info().vmem_capacity_bytes)
    except Exception:
        pass
    # v7x: 64 MiB VMEM per TC, 2 TCs/chip.  v5e/v6e: 128 MiB, 1 TC.
    num_cores = 2 if vmem <= 80 * 1024 * 1024 else 1
    return vmem, num_cores


def _choose_tm(n_tokens, requested, num_cores):
    """Largest multiple-of-8 divisor of N, <= requested, keeping >= 2 grid steps/TC."""
    min_steps = 2 * num_cores
    cap = n_tokens // min_steps if n_tokens >= 8 * min_steps else n_tokens
    tm = max(8, min(requested, cap))
    tm = (tm // 8) * 8
    while n_tokens % tm:
        tm -= 8
    return max(tm, 8)


def _vmem_limit_bytes(tm, d_model, d_ff, ff_chunk, io_bytes, vmem_cap):
    """Explicit scoped-VMEM budget, capped below the physical per-core capacity."""
    f32, bf16 = 4, 2
    tiles = 2 * 2 * tm * d_model * io_bytes           # src + out tiles, double-buffered
    weights = 2 * d_model * d_ff * bf16               # W1 + W2, single-buffered
    vectors = 8 * d_ff * f32 + 8 * d_model * f32      # b1 + packed vecs (sublane-padded)
    acts = tm * d_model * (6 * f32 + bf16)            # x/y/s2/z/o f32 + bf16 copy of y
    ffn = tm * ff_chunk * (f32 + bf16)                # h (f32) + its bf16 copy
    need = tiles + weights + vectors + acts + ffn + (4 << 20)
    cap = max(16 << 20, int(vmem_cap) - (16 << 20))   # leave compiler-scratch headroom
    return int(min(max(need, 16 << 20), cap))


def attention_layer_forward(src, tar, params, *, tm=None, ff_chunk=2048):
    """Pallas equivalent of attentionLayer.forward(src, tar) in eval mode.

    src, tar: (N, d_model). `tar` is unused by the reference forward pass.
    Output dtype follows src.dtype (pass bf16 src for halved residual HBM traffic).
    For best store throughput d_model should be a multiple of 128 (lane-dense).
    """
    del tar  # reference forward never uses `tar`
    N, d_model = src.shape
    assert N % 8 == 0, "token count must be a multiple of 8 (f32 sublane)"

    w1, b1, w2 = params["w1"], params["b1"], params["w2"]
    d_ff = w1.shape[1]
    ff_chunk = min(ff_chunk, d_ff)

    # Pack the five (1, d_model) vectors: [b2, gamma1, beta1, gamma2, beta2]
    vecs = jnp.concatenate(
        [params["b2"], params["gamma1"], params["beta1"],
         params["gamma2"], params["beta2"]], axis=0).astype(jnp.float32)

    vmem_cap, num_cores = _tpu_vmem_and_cores()
    if tm is None:
        tm = 512 if vmem_cap > 96 * 1024 * 1024 else 256   # bigger tiles on v5e/v6e
    tm = _choose_tm(N, tm, num_cores)
    grid = (N // tm,)

    io_bytes = jnp.dtype(src.dtype).itemsize
    vmem_limit = _vmem_limit_bytes(tm, d_model, d_ff, ff_chunk, io_bytes, vmem_cap)

    kernel = _make_kernel(d_ff, ff_chunk)

    def build_and_call(single_buffer_consts):
        def const_spec(shape):
            kw = {}
            if single_buffer_consts and hasattr(pl, "Buffered"):
                # Grid-invariant operand: one resident buffer is enough.
                kw["pipeline_mode"] = pl.Buffered(1)
            return pl.BlockSpec(shape, lambda i: (0, 0), **kw)

        return pl.pallas_call(
            kernel,
            out_shape=jax.ShapeDtypeStruct((N, d_model), src.dtype),
            grid_spec=pltpu.PrefetchScalarGridSpec(
                num_scalar_prefetch=0,
                grid=grid,
                in_specs=[
                    pl.BlockSpec((tm, d_model), lambda i: (i, 0)),  # src tile
                    const_spec((d_model, d_ff)),                    # W1 (in, out), bf16
                    const_spec((1, d_ff)),                          # b1 (f32)
                    const_spec((d_ff, d_model)),                    # W2 (in, out), bf16
                    const_spec((5, d_model)),                       # [b2, g1, be1, g2, be2]
                ],
                out_specs=pl.BlockSpec((tm, d_model), lambda i: (i, 0)),
            ),
            compiler_params=pltpu.CompilerParams(
                dimension_semantics=("parallel",),
                vmem_limit_bytes=vmem_limit),
        )(src, w1, b1, w2, vecs)

    try:
        return build_and_call(True)
    except Exception:
        # Fallback: default (double-buffered) specs if Buffered(1) is unsupported.
        return build_and_call(False)


def init_params(key, d_model):
    """Deterministic synthetic parameters (shapes match nn.Module __init__)."""
    d_ff = 4 * d_model
    k1, k2, k3, k4 = jax.random.split(key, 4)
    s1 = 1.0 / jnp.sqrt(d_model)
    s2 = 1.0 / jnp.sqrt(d_ff)
    return {
        # stored as (in, out): transpose of PyTorch's (out, in) Linear weight; bf16 for MXU
        "w1": jax.random.uniform(k1, (d_model, d_ff), jnp.float32, -s1, s1).astype(jnp.bfloat16),
        "b1": jax.random.uniform(k2, (1, d_ff), jnp.float32, -s1, s1),
        "w2": jax.random.uniform(k3, (d_ff, d_model), jnp.float32, -s2, s2).astype(jnp.bfloat16),
        "b2": jax.random.uniform(k4, (1, d_model), jnp.float32, -s2, s2),
        "gamma1": jnp.ones((1, d_model), jnp.float32),
        "beta1": jnp.zeros((1, d_model), jnp.float32),
        "gamma2": jnp.ones((1, d_model), jnp.float32),
        "beta2": jnp.zeros((1, d_model), jnp.float32),
    }


def _reference(src, params):
    """Pure-JAX reference with matching numerics (f32 math, bf16 MXU casts, I/O dtype)."""
    x = src.astype(jnp.float32)
    x = x + x
    mu = x.mean(-1, keepdims=True)
    var = ((x - mu) ** 2).mean(-1, keepdims=True)
    y = (x - mu) / jnp.sqrt(var + LN_EPS) * params["gamma1"] + params["beta1"]
    h = jnp.dot(y.astype(jnp.bfloat16), params["w1"],
                preferred_element_type=jnp.float32) + params["b1"]
    h = jnp.maximum(h, 0.0)
    s2 = jnp.dot(h.astype(jnp.bfloat16), params["w2"],
                 preferred_element_type=jnp.float32) + params["b2"]
    z = y + s2
    mu2 = z.mean(-1, keepdims=True)
    var2 = ((z - mu2) ** 2).mean(-1, keepdims=True)
    o = (z - mu2) / jnp.sqrt(var2 + LN_EPS) * params["gamma2"] + params["beta2"]
    return o.astype(src.dtype)


if __name__ == "__main__":
    # d_model a multiple of 128 keeps every load/store lane-dense; d_ff = 4*d_model as
    # in the nn.Module.  bf16 residual I/O halves HBM traffic for this mem-bound kernel;
    # all LayerNorm math stays f32 in-kernel.  nhead is irrelevant: this forward variant
    # never invokes attention.
    d_model, N = 128, 512
    key = jax.random.PRNGKey(0)
    k_src, k_tar, k_par = jax.random.split(key, 3)

    src = jax.random.normal(k_src, (N, d_model), jnp.float32).astype(jnp.bfloat16)
    tar = jax.random.normal(k_tar, (N, d_model), jnp.float32).astype(jnp.bfloat16)  # unused
    params = init_params(k_par, d_model)

    out = attention_layer_forward(src, tar, params)
    out = jax.block_until_ready(out)

    ref = _reference(src, params)
    assert out.shape == (N, d_model) and out.dtype == src.dtype
    o32 = out.astype(jnp.float32)
    r32 = ref.astype(jnp.float32)
    assert jnp.allclose(o32, r32, atol=3e-2, rtol=3e-2), float(jnp.max(jnp.abs(o32 - r32)))

    print("KERNEL_OK")
</pallas_src>

<mosaic_0001>
module attributes {stable_mosaic.version = 11 : i64} {
  func.func @kernel(%arg0: i32, %arg1: memref<256x128xbf16, #tpu.memory_space<vmem>>, %arg2: memref<128x512xbf16, #tpu.memory_space<vmem>>, %arg3: memref<1x512xf32, #tpu.memory_space<vmem>>, %arg4: memref<512x128xbf16, #tpu.memory_space<vmem>>, %arg5: memref<5x128xf32, #tpu.memory_space<vmem>>, %arg6: memref<256x128xbf16, #tpu.memory_space<vmem>>) attributes {dimension_semantics = [#tpu.dimension_semantics<parallel>], iteration_bounds = array<i64: 2>, scalar_prefetch = 0 : i64, scratch_operands = 0 : i64, tpu.core_type = #tpu.core_type<tc>, window_params = [{transform_indices = @transform_0, window_bounds = array<i64: 256, 128>}, {pipeline_mode = #tpu.pipeline_mode<synchronous>, transform_indices = @transform_1, window_bounds = array<i64: 128, 512>}, {pipeline_mode = #tpu.pipeline_mode<synchronous>, transform_indices = @transform_2, window_bounds = array<i64: 1, 512>}, {pipeline_mode = #tpu.pipeline_mode<synchronous>, transform_indices = @transform_3, window_bounds = array<i64: 512, 128>}, {pipeline_mode = #tpu.pipeline_mode<synchronous>, transform_indices = @transform_4, window_bounds = array<i64: 5, 128>}, {transform_indices = @transform_5, window_bounds = array<i64: 256, 128>}]} {
    %c0 = arith.constant 0 : index
    %c0_0 = arith.constant 0 : index
    %0 = vector.load %arg1[%c0, %c0_0] : memref<256x128xbf16, #tpu.memory_space<vmem>>, vector<256x128xbf16>
    %1 = arith.extf %0 : vector<256x128xbf16> to vector<256x128xf32>
    %2 = arith.addf %1, %1 : vector<256x128xf32>
    %c1 = arith.constant 1 : index
    %c0_1 = arith.constant 0 : index
    %3 = vector.load %arg5[%c1, %c0_1] : memref<5x128xf32, #tpu.memory_space<vmem>>, vector<1x128xf32>
    %c2 = arith.constant 2 : index
    %c0_2 = arith.constant 0 : index
    %4 = vector.load %arg5[%c2, %c0_2] : memref<5x128xf32, #tpu.memory_space<vmem>>, vector<1x128xf32>
    %cst = arith.constant dense<0.000000e+00> : vector<256xf32>
    %5 = vector.multi_reduction <add>, %2, %cst [1] : vector<256x128xf32> to vector<256xf32>
    %6 = vector.shape_cast %5 : vector<256xf32> to vector<256x1xf32>
    %cst_3 = arith.constant 1.280000e+02 : f32
    %7 = vector.broadcast %cst_3 : f32 to vector<256x1xf32>
    %8 = arith.divf %6, %7 : vector<256x1xf32>
    %9 = arith.mulf %2, %2 : vector<256x128xf32>
    %cst_4 = arith.constant dense<0.000000e+00> : vector<256xf32>
    %10 = vector.multi_reduction <add>, %9, %cst_4 [1] : vector<256x128xf32> to vector<256xf32>
    %11 = vector.shape_cast %10 : vector<256xf32> to vector<256x1xf32>
    %cst_5 = arith.constant 1.280000e+02 : f32
    %12 = vector.broadcast %cst_5 : f32 to vector<256x1xf32>
    %13 = arith.divf %11, %12 : vector<256x1xf32>
    %14 = arith.mulf %8, %8 : vector<256x1xf32>
    %15 = arith.subf %13, %14 : vector<256x1xf32>
    %cst_6 = arith.constant 0.000000e+00 : f32
    %16 = vector.broadcast %cst_6 : f32 to vector<256x1xf32>
    %17 = arith.maximumf %15, %16 : vector<256x1xf32>
    %18 = vector.broadcast %8 : vector<256x1xf32> to vector<256x128xf32>
    %19 = arith.subf %2, %18 : vector<256x128xf32>
    %cst_7 = arith.constant 9.99999974E-6 : f32
    %20 = vector.broadcast %cst_7 : f32 to vector<256x1xf32>
    %21 = arith.addf %17, %20 : vector<256x1xf32>
    %22 = math.rsqrt %21 : vector<256x1xf32>
    %23 = vector.broadcast %22 : vector<256x1xf32> to vector<256x128xf32>
    %24 = arith.mulf %19, %23 : vector<256x128xf32>
    %25 = vector.broadcast %3 : vector<1x128xf32> to vector<256x128xf32>
    %26 = arith.mulf %24, %25 : vector<256x128xf32>
    %27 = vector.broadcast %4 : vector<1x128xf32> to vector<256x128xf32>
    %28 = arith.addf %26, %27 : vector<256x128xf32>
    %29 = arith.truncf %28 : vector<256x128xf32> to vector<256x128xbf16>
    %cst_8 = arith.constant 0.000000e+00 : f32
    %30 = vector.broadcast %cst_8 : f32 to vector<256x128xf32>
    %c0_9 = arith.constant 0 : index
    %c0_10 = arith.constant 0 : index
    %31 = vector.load %arg2[%c0_9, %c0_10] : memref<128x512xbf16, #tpu.memory_space<vmem>>, vector<128x512xbf16>
    %cst_11 = arith.constant dense<0.000000e+00> : vector<256x512xf32>
    %32 = tpu.matmul %29, %31, %cst_11 {dimension_numbers = #tpu.dot_dimension_numbers<[1], [0], [0], [1], [0, 0, 1, 1], [], []>} : vector<256x128xbf16>, vector<128x512xbf16>, vector<256x512xf32> -> vector<256x512xf32>
    %c0_12 = arith.constant 0 : index
    %c0_13 = arith.constant 0 : index
    %33 = vector.load %arg3[%c0_12, %c0_13] : memref<1x512xf32, #tpu.memory_space<vmem>>, vector<1x512xf32>
    %34 = vector.broadcast %33 : vector<1x512xf32> to vector<256x512xf32>
    %35 = arith.addf %32, %34 : vector<256x512xf32>
    %cst_14 = arith.constant 0.000000e+00 : f32
    %36 = vector.broadcast %cst_14 : f32 to vector<256x512xf32>
    %37 = arith.maximumf %35, %36 : vector<256x512xf32>
    %38 = arith.truncf %37 : vector<256x512xf32> to vector<256x512xbf16>
    %c0_15 = arith.constant 0 : index
    %c0_16 = arith.constant 0 : index
    %39 = vector.load %arg4[%c0_15, %c0_16] : memref<512x128xbf16, #tpu.memory_space<vmem>>, vector<512x128xbf16>
    %cst_17 = arith.constant dense<0.000000e+00> : vector<256x128xf32>
    %40 = tpu.matmul %38, %39, %cst_17 {dimension_numbers = #tpu.dot_dimension_numbers<[1], [0], [0], [1], [0, 0, 1, 1], [], []>} : vector<256x512xbf16>, vector<512x128xbf16>, vector<256x128xf32> -> vector<256x128xf32>
    %41 = arith.addf %30, %40 : vector<256x128xf32>
    %c0_18 = arith.constant 0 : index
    %c0_19 = arith.constant 0 : index
    %42 = vector.load %arg5[%c0_18, %c0_19] : memref<5x128xf32, #tpu.memory_space<vmem>>, vector<1x128xf32>
    %43 = vector.broadcast %42 : vector<1x128xf32> to vector<256x128xf32>
    %44 = arith.addf %41, %43 : vector<256x128xf32>
    %45 = arith.addf %28, %44 : vector<256x128xf32>
    %c3 = arith.constant 3 : index
    %c0_20 = arith.constant 0 : index
    %46 = vector.load %arg5[%c3, %c0_20] : memref<5x128xf32, #tpu.memory_space<vmem>>, vector<1x128xf32>
    %c4 = arith.constant 4 : index
    %c0_21 = arith.constant 0 : index
    %47 = vector.load %arg5[%c4, %c0_21] : memref<5x128xf32, #tpu.memory_space<vmem>>, vector<1x128xf32>
    %cst_22 = arith.constant dense<0.000000e+00> : vector<256xf32>
    %48 = vector.multi_reduction <add>, %45, %cst_22 [1] : vector<256x128xf32> to vector<256xf32>
    %49 = vector.shape_cast %48 : vector<256xf32> to vector<256x1xf32>
    %cst_23 = arith.constant 1.280000e+02 : f32
    %50 = vector.broadcast %cst_23 : f32 to vector<256x1xf32>
    %51 = arith.divf %49, %50 : vector<256x1xf32>
    %52 = arith.mulf %45, %45 : vector<256x128xf32>
    %cst_24 = arith.constant dense<0.000000e+00> : vector<256xf32>
    %53 = vector.multi_reduction <add>, %52, %cst_24 [1] : vector<256x128xf32> to vector<256xf32>
    %54 = vector.shape_cast %53 : vector<256xf32> to vector<256x1xf32>
    %cst_25 = arith.constant 1.280000e+02 : f32
    %55 = vector.broadcast %cst_25 : f32 to vector<256x1xf32>
    %56 = arith.divf %54, %55 : vector<256x1xf32>
    %57 = arith.mulf %51, %51 : vector<256x1xf32>
    %58 = arith.subf %56, %57 : vector<256x1xf32>
    %cst_26 = arith.constant 0.000000e+00 : f32
    %59 = vector.broadcast %cst_26 : f32 to vector<256x1xf32>
    %60 = arith.maximumf %58, %59 : vector<256x1xf32>
    %61 = vector.broadcast %51 : vector<256x1xf32> to vector<256x128xf32>
    %62 = arith.subf %45, %61 : vector<256x128xf32>
    %cst_27 = arith.constant 9.99999974E-6 : f32
    %63 = vector.broadcast %cst_27 : f32 to vector<256x1xf32>
    %64 = arith.addf %60, %63 : vector<256x1xf32>
    %65 = math.rsqrt %64 : vector<256x1xf32>
    %66 = vector.broadcast %65 : vector<256x1xf32> to vector<256x128xf32>
    %67 = arith.mulf %62, %66 : vector<256x128xf32>
    %68 = vector.broadcast %46 : vector<1x128xf32> to vector<256x128xf32>
    %69 = arith.mulf %67, %68 : vector<256x128xf32>
    %70 = vector.broadcast %47 : vector<1x128xf32> to vector<256x128xf32>
    %71 = arith.addf %69, %70 : vector<256x128xf32>
    %72 = arith.truncf %71 : vector<256x128xf32> to vector<256x128xbf16>
    %c0_28 = arith.constant 0 : index
    %c0_29 = arith.constant 0 : index
    %73 = vector.load %arg6[%c0_28, %c0_29] : memref<256x128xbf16, #tpu.memory_space<vmem>>, vector<256x128xbf16>
    tpu.vector_store %arg6[%c0_28, %c0_29], %72 {strides = array<i32>} : memref<256x128xbf16, #tpu.memory_space<vmem>>, vector<256x128xbf16>,
    return
  }
  func.func @transform_0(%arg0: i32) -> (i32, i32) {
    %c0_i32 = arith.constant 0 : i32
    %c0_i32_0 = arith.constant 0 : i32
    return %arg0, %c0_i32 : i32, i32
  }
  func.func @transform_1(%arg0: i32) -> (i32, i32) {
    %c0_i32 = arith.constant 0 : i32
    %c0_i32_0 = arith.constant 0 : i32
    %c0_i32_1 = arith.constant 0 : i32
    return %c0_i32, %c0_i32_0 : i32, i32
  }
  func.func @transform_2(%arg0: i32) -> (i32, i32) {
    %c0_i32 = arith.constant 0 : i32
    %c0_i32_0 = arith.constant 0 : i32
    %c0_i32_1 = arith.constant 0 : i32
    return %c0_i32, %c0_i32_0 : i32, i32
  }
  func.func @transform_3(%arg0: i32) -> (i32, i32) {
    %c0_i32 = arith.constant 0 : i32
    %c0_i32_0 = arith.constant 0 : i32
    %c0_i32_1 = arith.constant 0 : i32
    return %c0_i32, %c0_i32_0 : i32, i32
  }
  func.func @transform_4(%arg0: i32) -> (i32, i32) {
    %c0_i32 = arith.constant 0 : i32
    %c0_i32_0 = arith.constant 0 : i32
    %c0_i32_1 = arith.constant 0 : i32
    return %c0_i32, %c0_i32_0 : i32, i32
  }
  func.func @transform_5(%arg0: i32) -> (i32, i32) {
    %c0_i32 = arith.constant 0 : i32
    %c0_i32_0 = arith.constant 0 : i32
    return %arg0, %c0_i32 : i32, i32
  }
}

module attributes {stable_mosaic.version = 11 : i64} {
  func.func @kernel(%arg0: i32, %arg1: memref<256x128xbf16, #tpu.memory_space<vmem>>, %arg2: memref<128x512xbf16, #tpu.memory_space<vmem>>, %arg3: memref<1x512xf32, #tpu.memory_space<vmem>>, %arg4: memref<512x128xbf16, #tpu.memory_space<vmem>>, %arg5: memref<5x128xf32, #tpu.memory_space<vmem>>, %arg6: memref<256x128xbf16, #tpu.memory_space<vmem>>) attributes {dimension_semantics = [#tpu.dimension_semantics<parallel>], iteration_bounds = array<i64: 2>, scalar_prefetch = 0 : i64, scratch_operands = 0 : i64, tpu.core_type = #tpu.core_type<tc>, window_params = [{transform_indices = @transform_0, window_bounds = array<i64: 256, 128>}, {pipeline_mode = #tpu.pipeline_mode<synchronous>, transform_indices = @transform_1, window_bounds = array<i64: 128, 512>}, {pipeline_mode = #tpu.pipeline_mode<synchronous>, transform_indices = @transform_2, window_bounds = array<i64: 1, 512>}, {pipeline_mode = #tpu.pipeline_mode<synchronous>, transform_indices = @transform_3, window_bounds = array<i64: 512, 128>}, {pipeline_mode = #tpu.pipeline_mode<synchronous>, transform_indices = @transform_4, window_bounds = array<i64: 5, 128>}, {transform_indices = @transform_5, window_bounds = array<i64: 256, 128>}]} {
    %c0 = arith.constant 0 : index
    %c0_0 = arith.constant 0 : index
    %0 = vector.load %arg1[%c0, %c0_0] : memref<256x128xbf16, #tpu.memory_space<vmem>>, vector<256x128xbf16>
    %1 = arith.extf %0 : vector<256x128xbf16> to vector<256x128xf32>
    %2 = arith.addf %1, %1 : vector<256x128xf32>
    %c1 = arith.constant 1 : index
    %c0_1 = arith.constant 0 : index
    %3 = vector.load %arg5[%c1, %c0_1] : memref<5x128xf32, #tpu.memory_space<vmem>>, vector<1x128xf32>
    %c2 = arith.constant 2 : index
    %c0_2 = arith.constant 0 : index
    %4 = vector.load %arg5[%c2, %c0_2] : memref<5x128xf32, #tpu.memory_space<vmem>>, vector<1x128xf32>
    %cst = arith.constant dense<0.000000e+00> : vector<256xf32>
    %5 = vector.multi_reduction <add>, %2, %cst [1] : vector<256x128xf32> to vector<256xf32>
    %6 = vector.shape_cast %5 : vector<256xf32> to vector<256x1xf32>
    %cst_3 = arith.constant 1.280000e+02 : f32
    %7 = vector.broadcast %cst_3 : f32 to vector<256x1xf32>
    %8 = arith.divf %6, %7 : vector<256x1xf32>
    %9 = arith.mulf %2, %2 : vector<256x128xf32>
    %cst_4 = arith.constant dense<0.000000e+00> : vector<256xf32>
    %10 = vector.multi_reduction <add>, %9, %cst_4 [1] : vector<256x128xf32> to vector<256xf32>
    %11 = vector.shape_cast %10 : vector<256xf32> to vector<256x1xf32>
    %cst_5 = arith.constant 1.280000e+02 : f32
    %12 = vector.broadcast %cst_5 : f32 to vector<256x1xf32>
    %13 = arith.divf %11, %12 : vector<256x1xf32>
    %14 = arith.mulf %8, %8 : vector<256x1xf32>
    %15 = arith.subf %13, %14 : vector<256x1xf32>
    %cst_6 = arith.constant 0.000000e+00 : f32
    %16 = vector.broadcast %cst_6 : f32 to vector<256x1xf32>
    %17 = arith.maximumf %15, %16 : vector<256x1xf32>
    %18 = vector.broadcast %8 : vector<256x1xf32> to vector<256x128xf32>
    %19 = arith.subf %2, %18 : vector<256x128xf32>
    %cst_7 = arith.constant 9.99999974E-6 : f32
    %20 = vector.broadcast %cst_7 : f32 to vector<256x1xf32>
    %21 = arith.addf %17, %20 : vector<256x1xf32>
    %22 = math.rsqrt %21 : vector<256x1xf32>
    %23 = vector.broadcast %22 : vector<256x1xf32> to vector<256x128xf32>
    %24 = arith.mulf %19, %23 : vector<256x128xf32>
    %25 = vector.broadcast %3 : vector<1x128xf32> to vector<256x128xf32>
    %26 = arith.mulf %24, %25 : vector<256x128xf32>
    %27 = vector.broadcast %4 : vector<1x128xf32> to vector<256x128xf32>
    %28 = arith.addf %26, %27 : vector<256x128xf32>
    %29 = arith.truncf %28 : vector<256x128xf32> to vector<256x128xbf16>
    %cst_8 = arith.constant 0.000000e+00 : f32
    %30 = vector.broadcast %cst_8 : f32 to vector<256x128xf32>
    %c0_9 = arith.constant 0 : index
    %c0_10 = arith.constant 0 : index
    %31 = vector.load %arg2[%c0_9, %c0_10] : memref<128x512xbf16, #tpu.memory_space<vmem>>, vector<128x512xbf16>
    %cst_11 = arith.constant dense<0.000000e+00> : vector<256x512xf32>
    %32 = tpu.matmul %29, %31, %cst_11 {dimension_numbers = #tpu.dot_dimension_numbers<[1], [0], [0], [1], [0, 0, 1, 1], [], []>} : vector<256x128xbf16>, vector<128x512xbf16>, vector<256x512xf32> -> vector<256x512xf32>
    %c0_12 = arith.constant 0 : index
    %c0_13 = arith.constant 0 : index
    %33 = vector.load %arg3[%c0_12, %c0_13] : memref<1x512xf32, #tpu.memory_space<vmem>>, vector<1x512xf32>
    %34 = vector.broadcast %33 : vector<1x512xf32> to vector<256x512xf32>
    %35 = arith.addf %32, %34 : vector<256x512xf32>
    %cst_14 = arith.constant 0.000000e+00 : f32
    %36 = vector.broadcast %cst_14 : f32 to vector<256x512xf32>
    %37 = arith.maximumf %35, %36 : vector<256x512xf32>
    %38 = arith.truncf %37 : vector<256x512xf32> to vector<256x512xbf16>
    %c0_15 = arith.constant 0 : index
    %c0_16 = arith.constant 0 : index
    %39 = vector.load %arg4[%c0_15, %c0_16] : memref<512x128xbf16, #tpu.memory_space<vmem>>, vector<512x128xbf16>
    %cst_17 = arith.constant dense<0.000000e+00> : vector<256x128xf32>
    %40 = tpu.matmul %38, %39, %cst_17 {dimension_numbers = #tpu.dot_dimension_numbers<[1], [0], [0], [1], [0, 0, 1, 1], [], []>} : vector<256x512xbf16>, vector<512x128xbf16>, vector<256x128xf32> -> vector<256x128xf32>
    %41 = arith.addf %30, %40 : vector<256x128xf32>
    %c0_18 = arith.constant 0 : index
    %c0_19 = arith.constant 0 : index
    %42 = vector.load %arg5[%c0_18, %c0_19] : memref<5x128xf32, #tpu.memory_space<vmem>>, vector<1x128xf32>
    %43 = vector.broadcast %42 : vector<1x128xf32> to vector<256x128xf32>
    %44 = arith.addf %41, %43 : vector<256x128xf32>
    %45 = arith.addf %28, %44 : vector<256x128xf32>
    %c3 = arith.constant 3 : index
    %c0_20 = arith.constant 0 : index
    %46 = vector.load %arg5[%c3, %c0_20] : memref<5x128xf32, #tpu.memory_space<vmem>>, vector<1x128xf32>
    %c4 = arith.constant 4 : index
    %c0_21 = arith.constant 0 : index
    %47 = vector.load %arg5[%c4, %c0_21] : memref<5x128xf32, #tpu.memory_space<vmem>>, vector<1x128xf32>
    %cst_22 = arith.constant dense<0.000000e+00> : vector<256xf32>
    %48 = vector.multi_reduction <add>, %45, %cst_22 [1] : vector<256x128xf32> to vector<256xf32>
    %49 = vector.shape_cast %48 : vector<256xf32> to vector<256x1xf32>
    %cst_23 = arith.constant 1.280000e+02 : f32
    %50 = vector.broadcast %cst_23 : f32 to vector<256x1xf32>
    %51 = arith.divf %49, %50 : vector<256x1xf32>
    %52 = arith.mulf %45, %45 : vector<256x128xf32>
    %cst_24 = arith.constant dense<0.000000e+00> : vector<256xf32>
    %53 = vector.multi_reduction <add>, %52, %cst_24 [1] : vector<256x128xf32> to vector<256xf32>
    %54 = vector.shape_cast %53 : vector<256xf32> to vector<256x1xf32>
    %cst_25 = arith.constant 1.280000e+02 : f32
    %55 = vector.broadcast %cst_25 : f32 to vector<256x1xf32>
    %56 = arith.divf %54, %55 : vector<256x1xf32>
    %57 = arith.mulf %51, %51 : vector<256x1xf32>
    %58 = arith.subf %56, %57 : vector<256x1xf32>
    %cst_26 = arith.constant 0.000000e+00 : f32
    %59 = vector.broadcast %cst_26 : f32 to vector<256x1xf32>
    %60 = arith.maximumf %58, %59 : vector<256x1xf32>
    %61 = vector.broadcast %51 : vector<256x1xf32> to vector<256x128xf32>
    %62 = arith.subf %45, %61 : vector<256x128xf32>
    %cst_27 = arith.constant 9.99999974E-6 : f32
    %63 = vector.broadcast %cst_27 : f32 to vector<256x1xf32>
    %64 = arith.addf %60, %63 : vector<256x1xf32>
    %65 = math.rsqrt %64 : vector<256x1xf32>
    %66 = vector.broadcast %65 : vector<256x1xf32> to vector<256x128xf32>
    %67 = arith.mulf %62, %66 : vector<256x128xf32>
    %68 = vector.broadcast %46 : vector<1x128xf32> to vector<256x128xf32>
    %69 = arith.mulf %67, %68 : vector<256x128xf32>
    %70 = vector.broadcast %47 : vector<1x128xf32> to vector<256x128xf32>
    %71 = arith.addf %69, %70 : vector<256x128xf32>
    %72 = arith.truncf %71 : vector<256x128xf32> to vector<256x128xbf16>
    %c0_28 = arith.constant 0 : index
    %c0_29 = arith.constant 0 : index
    %73 = vector.load %arg6[%c0_28, %c0_29] : memref<256x128xbf16, #tpu.memory_space<vmem>>, vector<256x128xbf16>
    tpu.vector_store %arg6[%c0_28, %c0_29], %72 {strides = array<i32>} : memref<256x128xbf16, #tpu.memory_space<vmem>>, vector<256x128xbf16>,
    return
  }
  func.func @transform_0(%arg0: i32) -> (i32, i32) {
    %c0_i32 = arith.constant 0 : i32
    %c0_i32_0 = arith.constant 0 : i32
    return %arg0, %c0_i32 : i32, i32
  }
  func.func @transform_1(%arg0: i32) -> (i32, i32) {
    %c0_i32 = arith.constant 0 : i32
    %c0_i32_0 = arith.constant 0 : i32
    %c0_i32_1 = arith.constant 0 : i32
    return %c0_i32, %c0_i32_0 : i32, i32
  }
  func.func @transform_2(%arg0: i32) -> (i32, i32) {
    %c0_i32 = arith.constant 0 : i32
    %c0_i32_0 = arith.constant 0 : i32
    %c0_i32_1 = arith.constant 0 : i32
    return %c0_i32, %c0_i32_0 : i32, i32
  }
  func.func @transform_3(%arg0: i32) -> (i32, i32) {
    %c0_i32 = arith.constant 0 : i32
    %c0_i32_0 = arith.constant 0 : i32
    %c0_i32_1 = arith.constant 0 : i32
    return %c0_i32, %c0_i32_0 : i32, i32
  }
  func.func @transform_4(%arg0: i32) -> (i32, i32) {
    %c0_i32 = arith.constant 0 : i32
    %c0_i32_0 = arith.constant 0 : i32
    %c0_i32_1 = arith.constant 0 : i32
    return %c0_i32, %c0_i32_0 : i32, i32
  }
  func.func @transform_5(%arg0: i32) -> (i32, i32) {
    %c0_i32 = arith.constant 0 : i32
    %c0_i32_0 = arith.constant 0 : i32
    return %arg0, %c0_i32 : i32, i32
  }
}

</mosaic_0001>

<bundles_post_ra>
// kernel: tpu_custom_call.1
= control target key start
LH: loop header
LB: loop body
LE: loop exit
PB: predicated region body
PF: predicated region fallthrough
CT: control target
= control target key end

     0   :  { %10 = vsyncpa [#allocation3], 0  ;;  %s7121_s0 = inlined_call_operand.hbm [shape: bf16[512,128], index: 0, kind: input, shape index: {}]   ;;  %s7122_s1 = inlined_call_operand.hbm [shape: bf16[128,512], index: 1, kind: input, shape index: {}]   ;;  %s7123_s2 = inlined_call_operand.hbm [shape: f32[1,512], index: 2, kind: input, shape index: {}]   ;;  %s7124_s3 = inlined_call_operand.hbm [shape: bf16[512,128], index: 3, kind: input, shape index: {}]   ;;  %s7125_s4 = inlined_call_operand.hbm [shape: f32[5,128], index: 4, kind: input, shape index: {}]   ;;  %s7126_s5 = inlined_call_operand.hbm [shape: bf16[512,128], index: 5, kind: output, shape index: {}]  }
   0x1   :  { %12 = vsyncpa [#allocation3 + $0x1], 0 }
   0x2   :  { %13 = vsyncpa [#allocation6], 0 }
   0x3   :  { %14 = vsyncpa [#allocation9], 0 }
   0x4   :  { %15 = vsyncpa [#allocation4], 0 }
   0x5   :  { %17 = vsyncpa [#allocation4 + $0x1], 0  ;;  %s4642_s18 = smov 0   ;;  %s4644_s19 = smov 0  }
   0x6   :  { %s4646_s20 = smov 0   ;;  %s4648_s21 = smov 0  }
   0x7 LB: > { %s4663_s22 = sadd.s32 4294967295, %s4599_s21   ;;  %s3623_s23 = sadd.s32 4294967294, %s4599_s21   ;;  %s4599_s21 = sphi %s4648_s21, %s7283_s21   ;;  %s4595_s20 = sphi %s4646_s20, %s7282_s20   ;;  %s4591_s19 = sphi %s4644_s19, %s7281_s19   ;;  %s4587_s18 = sphi %s4642_s18, %s7280_s18  }
   0x8   : > { %p43_p0 = scmp.ne.s32.totalorder %s4591_s19, %s4587_s18  ;;  %p44_p1 = scmp.eq.s32.totalorder %s4663_s22, 0 }
   0x9   : > { %p151_p2 = scmp.eq.s32.totalorder %s4663_s22, 1  ;;  %p157_p3 = scmp.eq.s32.totalorder %s3623_s23, 1 }
   0xa   : > { %p4672_p4 = por %p44_p1, %p43_p0  ;;  %p3624_p5 = scmp.ge.s32.totalorder %s4599_s21, 1 }
   0xb   : > { %p4677_p6 = por %p157_p3, %p43_p0  ;;  %p164_p7 = scmp.lt.s32.totalorder %s4599_s21, 3 }
   0xc   : > { %s175_s28 = sshll.u32 %s7122_s1, 4  ;;  %s4601_s30 = smov [#allocation5]   ;;  %s176_s28 = int_to_ptr.hbm [resolvable:$true] %s175_s28 }
   0xd   : > { %p4685_p8 = pnand %p3624_p5, %p164_p7  ;;  %s177_s6 = sshll.u32 %s4601_s30, 4  ;;  %s178_s6 = int_to_ptr.vmem [resolvable:$true] %s177_s6 }
   0xe   : > { %s201_s10 = sshll.u32 %s7124_s3, 4  ;;  %s4602_s11 = smov 256   ;;  %s202_s10 = int_to_ptr.hbm [resolvable:$true] %s201_s10 }
   0xf   : > { %p4161_p9 = pneg %p4685_p8  ;;  %s4603_s12 = smov 16  }
  0x10   : > { %s4604_s13 = smov [#allocation8]   ;;  %s7127_s15 = smov 64  }
  0x11   : > { %p4693_p10 = pnand %p4161_p9, %p44_p1  ;;  %s203_s14 = sshll.u32 %s4604_s13, 4  ;;  %s204_s14 = int_to_ptr.vmem [resolvable:$true] %s203_s14 }
  0x12   : > { %s4606_s16 = smov 4   ;;  %s190_s26 = sshll.u32 %s7123_s2, 4  ;;  %s191_s26 = int_to_ptr.hbm [resolvable:$true] %s190_s26 }
  0x13   : > { %4164 = dma.hbm_to_vmem [thread:$0]  (!%p4693_p10), %s176_s28, 4096, %s178_s6, [#allocation6], %s4602_s11, %s4602_s11, %s4603_s12  }
  0x14   : > { %4170 = dma.hbm_to_vmem [thread:$0]  (!%p4693_p10), %s202_s10, 4096, %s204_s14, [#allocation9], %s7127_s15, %s7127_s15, %s4606_s16  }
  0x15   : > { %s4607_s27 = smov [#allocation7]   ;;  %s216_s8 = sshll.u32 %s7125_s4, 4  ;;  %s217_s8 = int_to_ptr.hbm [resolvable:$true] %s216_s8 }
  0x16   : > { %s192_s28 = sshll.u32 %s4607_s27, 4  ;;  %s4608_s9 = smov [#allocation10]   ;;  %s193_s28 = int_to_ptr.vmem [resolvable:$true] %s192_s28 }
  0x17   : > { %4167 = dma.hbm_to_vmem [thread:$0]  (!%p4693_p10), %s191_s26, 64, %s193_s28, [#allocation6]  }
  0x18   : > { %s218_s10 = sshll.u32 %s4608_s9, 4  ;;  %s4719_s11 = sadd.s32 1, %s4599_s21   ;;  %s219_s10 = int_to_ptr.vmem [resolvable:$true] %s218_s10 }
  0x19   : > { %4173 = dma.hbm_to_vmem [thread:$0]  (!%p4693_p10), %s217_s8, 128, %s219_s10, [#allocation9]  }
  0x1a   : > { %s30_s12 = sadd.s32 1, %s4595_s20  ;;  %s27_s13 = ssub.s32 %s4599_s21, %s4719_s11 }
  0x1b   : > { %p37_p12 = scmp.ne.s32.totalorder %s4595_s20, %s4591_s19  ;;  %p28_p13 = scmp.eq.s32.totalorder %s27_s13, 0 }
  0x1c   : > { %p38_p0 = scmp.eq.s32.totalorder %s4599_s21, 0  ;;  %p4186_p5 = scmp.lt.s32.totalorder %s4599_s21, 2 }
  0x1d   : > { %p4729_p3 = por %p151_p2, %p37_p12  ;;  %s229_s23 = sand.u32 1, %s4595_s20  }
  0x1e   : > { %s4735_s17 = scalar_select %p28_p13, %s4595_s20, %s30_s12  }
  0x1f   : > { %p39_p7 = por %p38_p0, %p37_p12  ;;  %s3630_s7 = sshll.u32 %s229_s23, 7 }
  0x20   : > { %s3901_s26 = sshll.u32 %s4599_s21, 7  ;;  %s233_s6 = scalar_lea.vmem [#allocation2], %s3630_s7 }
  0x21   : > { %s238_s30 = scalar_lea.hbm %s7121_s0, %s3901_s26  ;;  %s241_s8 = sshll.u32 %s233_s6, 4  ;;  %s242_s8 = int_to_ptr.vmem [resolvable:$true] %s241_s8 }
  0x22   : > { %s239_s9 = sshll.u32 %s238_s30, 4  ;;  %p4742_p2 = pnand %p4186_p5, %p39_p7  ;;  %s240_s9 = int_to_ptr.hbm [resolvable:$true] %s239_s9 }
  0x23   : > { %s230_s12 = scalar_lea.sflag [#allocation3], %s229_s23  ;;  %s4495_s13 = sshra.s32 %s240_s9, 4  ;;  %s4496_s13 = int_to_ptr.hbm [resolvable:$true] %s4495_s13 }
  0x24   : > { %s4497_s15 = scalar_lea.hbm %s4496_s13, 128  ;;  %p4499_p10 = pneg %p4742_p2 }
  0x25   : > { %p4498_p9 = scmp.ne.s32.totalorder %s4496_s13, %s4497_s15  ;;  %s4502_s27 = scalar_lea.hbm %s7121_s0, 256 }
  0x26   : > { %p4503_p0 = scmp.lt.s32.totalorder %s4496_s13, %s7121_s0  ;;  %p4504_p5 = scmp.lt.s32.totalorder %s4502_s27, %s4497_s15 }
  0x27   : > { %p4500_p12 = pnand %p4499_p10, %p4498_p9 }
  0x28   : > { %p4505_p7 = por %p4504_p5, %p4503_p0 }
  0x29   : > { %p4501_p13 = pneg %p4500_p12 }
  0x2b   : > { %p4506_p11 = pnand %p4505_p7, %p4501_p13 }
  0x2d   : > { %4509 = shalt.err (!%p4506_p11)
}
  0x2e   : > { %s7156_s23 = smov 64   ;;  %253 = sbr.rel (%p4685_p8) target bundleno = 1029 (0x405), region = 40 }
  0x2f   : > { %4177 = dma.hbm_to_vmem [thread:$0]  (!%p4742_p2), %s240_s9, 2048, %s242_s8, %s230_s12, %s7156_s23, %s7156_s23, %s4606_s16  }
  0x33   : > { %s4762_s6 = sand.u32 1, %s4591_s19  }
  0x34   : > { %s3634_s15 = sshll.u32 %s4762_s6, 7  ;;  %s256_s13 = scalar_lea.sflag [#allocation3], %s4762_s6 }
  0x35   : > { %s4768_s26 = scalar_lea.vmem [#allocation2], %s3634_s15 }
  0x36   : > { %4570 = dma.done.wait (%p4672_p4), %s256_s13, 2048  }
  0x37   : > { %4572 = vsyncadd (%p4672_p4), %s256_s13, 4294965248 }
  0x38   : > { %4574 = dma.done.wait (%p44_p1), [#allocation6], 4160  }
  0x39   : > { %4576 = vsyncadd (%p44_p1), [#allocation6], 4294963136 }
  0x3a   : > { %4578 = dma.done.wait (%p44_p1), [#allocation9], 4224  }
  0x3b   : > { %4580 = vsyncadd (%p44_p1), [#allocation9], 4294963072  ;;  %v3968_v0 = vld [vmem:[%s4768_s26] sm:$0xff]   ;;  %v4111_v1 = vld [vmem:[%s4768_s26 + $0x8] sm:$0xff]   ;;  %s6577_s24 = scalar_lea.vmem [#allocation11], %s3634_s15  ;;  %s3966_s29 = sshll.u32 %s4663_s22, 7 }
  0x3c   : > { %v3969_v2 = vunpack.c.l.bf16 %v3968_v0  ;;  %v3973_v3 = vunpack.c.l.bf16 %v4111_v1  ;;  %v3970_v6 = vunpack.c.h.bf16 %v3968_v0  ;;  %v3974_v8 = vunpack.c.h.bf16 %v4111_v1  ;;  %v4112_v11 = vld [vmem:[%s4768_s26 + $0x10] sm:$0xff]   ;;  %v4113_v19 = vld [vmem:[%s4768_s26 + $0x18] sm:$0xff]   ;;  %v4114_v27 = vld [vmem:[%s4768_s26 + $0x20] sm:$0xff]   ;;  %s3508_s9 = scalar_lea.hbm %s7126_s5, %s3966_s29  ;;  %s3509_s22 = sshll.u32 %s6577_s24, 4  ;;  %s3510_s22 = int_to_ptr.vmem [resolvable:$true] %s3509_s22 }
  0x3d   : > { %v3977_v13 = vunpack.c.l.bf16 %v4112_v11  ;;  %v3978_v16 = vunpack.c.h.bf16 %v4112_v11  ;;  %v3981_v21 = vunpack.c.l.bf16 %v4113_v19  ;;  %v3982_v24 = vunpack.c.h.bf16 %v4113_v19  ;;  %v4115_v32 = vld [vmem:[%s4768_s26 + $0x28] sm:$0xff]   ;;  %v4116_v40 = vld [vmem:[%s4768_s26 + $0x30] sm:$0xff]   ;;  %v4117_v48 = vld [vmem:[%s4768_s26 + $0x38] sm:$0xff]   ;;  %s3511_s10 = sshll.u32 %s3508_s9, 4  ;;  %s3497_s12 = scalar_lea.sflag [#allocation4], %s4762_s6  ;;  %s3512_s10 = int_to_ptr.hbm [resolvable:$true] %s3511_s10 }
  0x3e   : > { %v4784_v4 = vadd.f32 %v3969_v2, %v3969_v2  ;;  %v4786_v5 = vadd.f32 %v3973_v3, %v3973_v3  ;;  %v4792_v9 = vadd.f32 %v3970_v6, %v3970_v6  ;;  %v4794_v10 = vadd.f32 %v3974_v8, %v3974_v8  ;;  %v4118_v53 = vld [vmem:[%s4768_s26 + $0x40] sm:$0xff]   ;;  %v4119_v61 = vld [vmem:[%s4768_s26 + $0x48] sm:$0xff]   ;;  %v3933_v19 = vld [vmem:[#allocation5 + $0xf4] sm:$0xf0]  ;;  %s4539_s7 = sshra.s32 %s3512_s10, 4  ;;  %s4545_s23 = scalar_lea.hbm %s7126_s5, 256  ;;  %s4540_s7 = int_to_ptr.hbm [resolvable:$true] %s4539_s7 }
  0x3f   : > { %v4803_v15 = vadd.f32 %v3977_v13, %v3977_v13  ;;  %v4808_v18 = vadd.f32 %v3978_v16, %v3978_v16  ;;  %v4816_v23 = vadd.f32 %v3981_v21, %v3981_v21  ;;  %v4820_v26 = vadd.f32 %v3982_v24, %v3982_v24  ;;  %v3754_v11 = vld [vmem:[#allocation5 + $0xe0] sm:$0xf]  ;;  %v3930_v13 = vld [vmem:[#allocation5 + $0xe4] sm:$0xf]  ;;  %v3756_v16 = vld [vmem:[#allocation5 + $0xf0] sm:$0xf0]  ;;  %p4546_p11 = scmp.lt.s32.totalorder %s4540_s7, %s7126_s5 }
  0x40   : > { %407 = vadd.xlane.f32.xlu0 %v4784_v4  ;;  %411 = vadd.xlane.f32.xlu2 %v4786_v5  ;;  %v510_v7 = vmul.f32 %v4784_v4, %v4784_v4  ;;  %v511_v12 = vmul.f32 %v4792_v9, %v4792_v9  ;;  %v512_v14 = vmul.f32 %v4786_v5, %v4786_v5  ;;  %v3986_v28 = vunpack.c.h.bf16 %v4114_v27  ;;  %v3931_v24 = vld [vmem:[#allocation5 + $0xec] sm:$0xf]  ;;  %s4541_s27 = scalar_lea.hbm %s4540_s7, 128 }
  0x41   : > { %v513_v17 = vmul.f32 %v4794_v10, %v4794_v10  ;;  %v515_v20 = vmul.f32 %v4808_v18, %v4808_v18  ;;  %v514_v22 = vmul.f32 %v4803_v15, %v4803_v15  ;;  %v516_v25 = vmul.f32 %v4816_v23, %v4816_v23  ;;  %p4542_p1 = scmp.ne.s32.totalorder %s4540_s7, %s4541_s27  ;;  %p4547_p2 = scmp.lt.s32.totalorder %s4545_s23, %s4541_s27 }
  0x42   : > { %542 = vadd.xlane.f32.xlu1 %v510_v7  ;;  %v3985_v29 = vunpack.c.l.bf16 %v4114_v27  ;;  %v517_v30 = vmul.f32 %v4820_v26, %v4820_v26  ;;  %v4827_v31 = vadd.f32 %v3986_v28, %v3986_v28  ;;  %v3989_v34 = vunpack.c.l.bf16 %v4115_v32  ;;  %v4120_v27 = vld [vmem:[%s4768_s26 + $0x50] sm:$0xff]  }
  0x43   : > { %v3990_v37 = vunpack.c.h.bf16 %v4115_v32  ;;  %v3993_v43 = vunpack.c.l.bf16 %v4116_v40  ;;  %v3994_v45 = vunpack.c.h.bf16 %v4116_v40  ;;  %v3998_v49 = vunpack.c.h.bf16 %v4117_v48  ;;  %v3928_v32 = vld [vmem:[#allocation5 + $0xcc] sm:$0xf0]  ;;  %v3746_v40 = vld [vmem:[#allocation5 + $0xc8] sm:$0xf]  ;;  %p4543_p4 = pnand %p4542_p1, %p4729_p3  ;;  %p4548_p9 = por %p4547_p2, %p4546_p11 }
  0x44   : > { %v4830_v33 = vadd.f32 %v3985_v29, %v3985_v29  ;;  %v4836_v36 = vadd.f32 %v3989_v34, %v3989_v34  ;;  %v519_v38 = vmul.f32 %v4827_v31, %v4827_v31  ;;  %v3997_v50 = vunpack.c.l.bf16 %v4117_v48  ;;  %v3926_v34 = vld [vmem:[#allocation5 + $0xc4] sm:$0xf]  ;;  %v3748_v48 = vld [vmem:[#allocation5 + $0xd8] sm:$0xf0] }
  0x45   : > { %v4841_v39 = vadd.f32 %v3990_v37, %v3990_v37  ;;  %v4849_v44 = vadd.f32 %v3993_v43, %v3993_v43  ;;  %v4853_v47 = vadd.f32 %v3994_v45, %v3994_v45  ;;  %v4860_v52 = vadd.f32 %v3998_v49, %v3998_v49  ;;  %p4544_p8 = pneg %p4543_p4 }
  0x46   : > { %v518_v35 = vmul.f32 %v4830_v33, %v4830_v33  ;;  %v520_v42 = vmul.f32 %v4836_v36, %v4836_v36  ;;  %v4863_v54 = vadd.f32 %v3997_v50, %v3997_v50  ;;  %v4001_v55 = vunpack.c.l.bf16 %v4118_v53 }
  0x47   : > { %v521_v41 = vmul.f32 %v4841_v39, %v4841_v39  ;;  %v522_v46 = vmul.f32 %v4849_v44, %v4849_v44  ;;  %v523_v51 = vmul.f32 %v4853_v47, %v4853_v47  ;;  %v4002_v58 = vunpack.c.h.bf16 %v4118_v53  ;;  %v3924_v53 = vld [vmem:[#allocation5 + $0xac] sm:$0xf0]  ;;  %p4549_p10 = pnand %p4548_p9, %p4544_p8 }
  0x48   : > { %409 = vadd.xlane.f32.xlu0 %v4792_v9  ;;  %413 = vadd.xlane.f32.xlu2 %v4794_v10  ;;  %v524_v56 = vmul.f32 %v4863_v54, %v4863_v54  ;;  %v4869_v57 = vadd.f32 %v4001_v55, %v4001_v55  ;;  %v525_v59 = vmul.f32 %v4860_v52, %v4860_v52  ;;  %v4005_v0 = vunpack.c.l.bf16 %v4119_v61  ;;  %v3922_v55 = vld [vmem:[#allocation5 + $0xa4] sm:$0xf] }
  0x49   : > { %v4874_v60 = vadd.f32 %v4002_v58, %v4002_v58  ;;  %v4609_v1 = vmov 128.0   ;;  %v4006_v3 = vunpack.c.h.bf16 %v4119_v61  ;;  %v3759_v21 = vor.u32 %v3930_v13, %v3756_v16  ;;  %v3730_v61 = vld [vmem:[#allocation5 + $0xa8] sm:$0xf]  ;;  %v3706_v13 = vld [vmem:[#allocation5 + $0x80] sm:$0xf] }
  0x4a   : > { %544 = vadd.xlane.f32.xlu1 %v511_v12  ;;  %v526_v63 = vmul.f32 %v4869_v57, %v4869_v57  ;;  %4240 = vrcp.f32 %v4609_v1  ;;  %v4882_v2 = vadd.f32 %v4005_v0, %v4005_v0  ;;  %v3932_v12 = vld [vmem:[#allocation5 + $0xec] sm:$0xf0]  ;;  %v4009_v29 = vunpack.c.l.bf16 %v4120_v27  ;;  %v3918_v16 = vld [vmem:[#allocation5 + $0x84] sm:$0xf] }
  0x4b   : > { %v527_v62 = vmul.f32 %v4874_v60, %v4874_v60  ;;  %v4888_v8 = vadd.f32 %v4006_v3, %v4006_v3  ;;  %1523 = vmatpush.bf16.msra.mxu1 %v3759_v21  ;;  %v3923_v3 = vld [vmem:[#allocation5 + $0xac] sm:$0xf]  ;;  %v3714_v21 = vld [vmem:[#allocation5 + $0x88] sm:$0xf] }
  0x4c   : > { %v528_v6 = vmul.f32 %v4882_v2, %v4882_v2  ;;  %v4896_v49 = vadd.f32 %v4009_v29, %v4009_v29  ;;  %v3716_v29 = vld [vmem:[#allocation5 + $0x98] sm:$0xf0] }
  0x50   : > { %546 = vadd.xlane.f32.xlu0 %v512_v14  ;;  %415 = vadd.xlane.f32.xlu2 %v4803_v15  ;;  %v4886_v7 = vpop.eup %4240  ;;  %v3755_v14 = vor.u32 %v3932_v12, %v3754_v11 }
  0x51   : > { %vm476_vm0 = vweird.f32 %v4886_v7 }
  0x52   : > { %548 = vadd.xlane.f32.xlu1 %v513_v17  ;;  %v3762_v17 = vld [vmem:[#allocation5 + $0xe8] sm:$0xf]  ;;  %1434 = vmatpush.bf16.msra.mxu0 %v3755_v14  ;;  %v3920_v14 = vld [vmem:[#allocation5 + $0x8c] sm:$0xf0] }
  0x58   : > { %417 = vadd.xlane.f32.xlu0 %v4808_v18  ;;  %552 = vadd.xlane.f32.xlu2 %v515_v20  ;;  %v472_v20 = vmul.f32 128.0, %v4886_v7 }
  0x5a   : > { %550 = vadd.xlane.f32.xlu1 %v514_v22  ;;  %v3763_v22 = vor.u32 %v3933_v19, %v3762_v17  ;;  %v530_v17 = vmul.f32 %v4896_v49, %v4896_v49  ;;  %v3707_v19 = vor.u32 %v3920_v14, %v3706_v13  ;;  %v3911_v14 = vld [vmem:[#allocation5 + $0x4c] sm:$0xf] }
  0x5c   : > { %1612 = vmatpush.bf16.msra.mxu2 %v3763_v22  ;;  %v3921_v22 = vld [vmem:[#allocation5 + $0x94] sm:$0xf0] }
  0x60   : > { %419 = vadd.xlane.f32.xlu0 %v4816_v23  ;;  %554 = vadd.xlane.f32.xlu2 %v516_v25  ;;  %v3764_v25 = vld [vmem:[#allocation5 + $0xf8] sm:$0xf0] }
  0x61   : > { %v3767_v28 = vor.u32 %v3931_v24, %v3764_v25 }
  0x62   : > { %421 = vadd.xlane.f32.xlu1 %v4820_v26 }
  0x63   : > { %1701 = vmatpush.bf16.msra.mxu3 %v3767_v28  ;;  %v3919_v28 = vld [vmem:[#allocation5 + $0x8c] sm:$0xf] }
  0x68   : > { %556 = vadd.xlane.f32.xlu0 %v517_v30  ;;  %425 = vadd.xlane.f32.xlu2 %v4827_v31  ;;  %v3738_v30 = vld [vmem:[#allocation5 + $0xc0] sm:$0xf] }
  0x69   : > { %v3739_v37 = vor.u32 %v3928_v32, %v3738_v30  ;;  %v3719_v32 = vor.u32 %v3919_v28, %v3716_v29 }
  0x6a   : > { %423 = vadd.xlane.f32.xlu1 %v4830_v33 }
  0x6b   : > { %1435 = vmatpush.bf16.msra.mxu0 %v3739_v37  ;;  %v3914_v37 = vld [vmem:[#allocation5 + $0x64] sm:$0xf] }
  0x70   : > { %558 = vadd.xlane.f32.xlu0 %v518_v35  ;;  %427 = vadd.xlane.f32.xlu2 %v4836_v36  ;;  %v529_v35 = vmul.f32 %v4888_v8, %v4888_v8 }
  0x72   : > { %560 = vadd.xlane.f32.xlu1 %v519_v38  ;;  %v3740_v38 = vld [vmem:[#allocation5 + $0xd0] sm:$0xf0] }
  0x73   : > { %v3743_v43 = vor.u32 %v3926_v34, %v3740_v38  ;;  %v3690_v34 = vld [vmem:[#allocation5 + $0x60] sm:$0xf] }
  0x75   : > { %1524 = vmatpush.bf16.msra.mxu1 %v3743_v43 }
  0x78   : > { %429 = vadd.xlane.f32.xlu0 %v4841_v39  ;;  %564 = vadd.xlane.f32.xlu2 %v521_v41  ;;  %v3929_v41 = vld [vmem:[#allocation5 + $0xd4] sm:$0xf0] }
  0x79   : > { %v3747_v45 = vor.u32 %v3929_v41, %v3746_v40  ;;  %v3692_v40 = vld [vmem:[#allocation5 + $0x70] sm:$0xf0]  ;;  %v3698_v41 = vld [vmem:[#allocation5 + $0x68] sm:$0xf] }
  0x7a   : > { %562 = vadd.xlane.f32.xlu1 %v520_v42  ;;  %v473_v42 = vsub.f32 1.0, %v472_v20  ;;  %v3708_v20 = vld [vmem:[#allocation5 + $0x90] sm:$0xf0] }
  0x7b   : > { %1613 = vmatpush.bf16.msra.mxu2 %v3747_v45  ;;  %v3711_v25 = vor.u32 %v3918_v16, %v3708_v20  ;;  %v3695_v45 = vor.u32 %v3914_v37, %v3692_v40  ;;  %v3684_v16 = vld [vmem:[#allocation5 + $0x58] sm:$0xf0] }
  0x80   : > { %431 = vadd.xlane.f32.xlu0 %v4849_v44  ;;  %566 = vadd.xlane.f32.xlu2 %v522_v46  ;;  %v3927_v46 = vld [vmem:[#allocation5 + $0xcc] sm:$0xf] }
  0x81   : > { %v3751_v50 = vor.u32 %v3927_v46, %v3748_v48  ;;  %v3915_v48 = vld [vmem:[#allocation5 + $0x6c] sm:$0xf] }
  0x82   : > { %433 = vadd.xlane.f32.xlu1 %v4853_v47 }
  0x83   : > { %1702 = vmatpush.bf16.msra.mxu3 %v3751_v50  ;;  %v3700_v50 = vld [vmem:[#allocation5 + $0x78] sm:$0xf0] }
  0x88   : > { %568 = vadd.xlane.f32.xlu0 %v523_v51  ;;  %437 = vadd.xlane.f32.xlu2 %v4860_v52  ;;  %v3722_v51 = vld [vmem:[#allocation5 + $0xa0] sm:$0xf] }
  0x89   : > { %v3723_v58 = vor.u32 %v3924_v53, %v3722_v51  ;;  %v4121_v51 = vld [vmem:[%s4768_s26 + $0x58] sm:$0xff]   ;;  %v3703_v53 = vor.u32 %v3915_v48, %v3700_v50 }
  0x8a   : > { %435 = vadd.xlane.f32.xlu1 %v4863_v54  ;;  %v4014_v28 = vunpack.c.h.bf16 %v4121_v51 }
  0x8b   : > { %1436 = vmatpush.bf16.msra.mxu0 %v3723_v58 }
  0x8f   : > { %1437 = vmatpush.bf16.msra.mxu0 %v3707_v19 }
  0x90   : > { %570 = vadd.xlane.f32.xlu0 %v524_v56  ;;  %439 = vadd.xlane.f32.xlu2 %v4869_v57  ;;  %v4010_v56 = vunpack.c.h.bf16 %v4120_v27  ;;  %v3715_v27 = vor.u32 %v3921_v22, %v3714_v21  ;;  %v3687_v21 = vor.u32 %v3911_v14, %v3684_v16  ;;  %v3905_v14 = vld [vmem:[#allocation5 + $0x14] sm:$0xf0]  ;;  %v3903_v16 = vld [vmem:[#allocation5 + $0xc] sm:$0xf] }
  0x92   : > { %572 = vadd.xlane.f32.xlu1 %v525_v59  ;;  %v3724_v59 = vld [vmem:[#allocation5 + $0xb0] sm:$0xf0]  ;;  %v4899_v11 = vadd.f32 %v4010_v56, %v4010_v56 }
  0x93   : > { %v3727_v0 = vor.u32 %v3922_v55, %v3724_v59  ;;  %v4013_v55 = vunpack.c.l.bf16 %v4121_v51 }
  0x94   : > { %v531_v30 = vmul.f32 %v4899_v11, %v4899_v11 }
  0x95   : > { %1525 = vmatpush.bf16.msra.mxu1 %v3727_v0 }
  0x98   : > { %441 = vadd.xlane.f32.xlu0 %v4874_v60  ;;  %576 = vadd.xlane.f32.xlu2 %v527_v62  ;;  %v3925_v62 = vld [vmem:[#allocation5 + $0xb4] sm:$0xf0] }
  0x99   : > { %v3731_v1 = vor.u32 %v3925_v62, %v3730_v61  ;;  %1526 = vmatpush.bf16.msra.mxu1 %v3711_v25  ;;  %v4916_v61 = vadd.f32 %v4013_v55, %v4013_v55  ;;  %v3912_v62 = vld [vmem:[#allocation5 + $0x4c] sm:$0xf0] }
  0x9a   : > { %574 = vadd.xlane.f32.xlu1 %v526_v63  ;;  %v474_v63 = vmul.f32 %v4886_v7, %v473_v42  ;;  %v3917_v42 = vld [vmem:[#allocation5 + $0x74] sm:$0xf0]  ;;  %v3908_v25 = vld [vmem:[#allocation5 + $0x2c] sm:$0xf0] }
  0x9b   : > { %1614 = vmatpush.bf16.msra.mxu2 %v3731_v1  ;;  %v3699_v46 = vor.u32 %v3917_v42, %v3698_v41  ;;  %v3907_v42 = vld [vmem:[#allocation5 + $0x2c] sm:$0xf] }
  0x9c   : > { %v475_v24 = vadd.f32 %v4886_v7, %v474_v63  ;;  %v3910_v63 = vld [vmem:[#allocation5 + $0x44] sm:$0xf] }
  0x9d   : > { %1527 = vmatpush.bf16.msra.mxu1 %v3695_v45  ;;  %v3668_v45 = vld [vmem:[#allocation5 + $0x38] sm:$0xf0] }
  0x9e   : > { %v4910_v43 = vsel %vm476_vm0, %v4886_v7, %v475_v24  ;;  %v3674_v7 = vld [vmem:[#allocation5 + $0x40] sm:$0xf]  ;;  %v3671_v50 = vor.u32 %v3907_v42, %v3668_v45 }
  0x9f   : > { %1615 = vmatpush.bf16.msra.mxu2 %v3715_v27  ;;  %v3675_v1 = vor.u32 %v3912_v62, %v3674_v7  ;;  %v3658_v24 = vld [vmem:[#allocation5 + $0x20] sm:$0xf]  ;;  %v3906_v27 = vld [vmem:[#allocation5 + $0x24] sm:$0xf]  ;;  %v3904_v62 = vld [vmem:[#allocation5 + $0xc] sm:$0xf0] }
  0xa0   : > { %443 = vadd.xlane.f32.xlu0 %v4882_v2  ;;  %578 = vadd.xlane.f32.xlu2 %v528_v6  ;;  %v3732_v6 = vld [vmem:[#allocation5 + $0xb8] sm:$0xf0]  ;;  %v3659_v29 = vor.u32 %v3908_v25, %v3658_v24  ;;  %v3642_v7 = vld [vmem:[#allocation5] sm:$0xf] }
  0xa1   : > { %v3735_v12 = vor.u32 %v3923_v3, %v3732_v6  ;;  %v3676_v3 = vld [vmem:[#allocation5 + $0x50] sm:$0xf0]  ;;  %v3682_v6 = vld [vmem:[#allocation5 + $0x48] sm:$0xf] }
  0xa2   : > { %445 = vadd.xlane.f32.xlu1 %v4888_v8  ;;  %v3679_v19 = vor.u32 %v3910_v63, %v3676_v3  ;;  %v3644_v3 = vld [vmem:[#allocation5 + $0x10] sm:$0xf0] }
  0xa3   : > { %1703 = vmatpush.bf16.msra.mxu3 %v3735_v12  ;;  %1616 = vmatpush.bf16.msra.mxu2 %v3699_v46  ;;  %v3913_v12 = vld [vmem:[#allocation5 + $0x54] sm:$0xf0]  ;;  %v4922_v46 = vadd.f32 %v4014_v28, %v4014_v28 }
  0xa4   : > { %v3683_v20 = vor.u32 %v3913_v12, %v3682_v6  ;;  %1528 = vmatpush.bf16.msra.mxu1 %v3679_v19  ;;  %v3650_v6 = vld [vmem:[#allocation5 + $0x8] sm:$0xf] }
  0xa5   : > { %v533_v55 = vmul.f32 %v4922_v46, %v4922_v46  ;;  %v3651_v19 = vor.u32 %v3905_v14, %v3650_v6 }
  0xa7   : > { %1704 = vmatpush.bf16.msra.mxu3 %v3719_v32  ;;  %1617 = vmatpush.bf16.msra.mxu2 %v3683_v20  ;;  %v3666_v32 = vld [vmem:[#allocation5 + $0x28] sm:$0xf] }
  0xa8   : > { %580 = vadd.xlane.f32.xlu0 %v529_v35  ;;  %449 = vadd.xlane.f32.xlu2 %v4899_v11  ;;  %v3916_v35 = vld [vmem:[#allocation5 + $0x6c] sm:$0xf0] }
  0xa9   : > { %v3691_v38 = vor.u32 %v3916_v35, %v3690_v34  ;;  %v3909_v34 = vld [vmem:[#allocation5 + $0x34] sm:$0xf0] }
  0xaa   : > { %447 = vadd.xlane.f32.xlu1 %v4896_v49  ;;  %v3667_v41 = vor.u32 %v3909_v34, %v3666_v32 }
  0xab   : > { %1438 = vmatpush.bf16.msra.mxu0 %v3691_v38  ;;  %1705 = vmatpush.bf16.msra.mxu3 %v3703_v53 }
  0xac   : > { %1618 = vmatpush.bf16.msra.mxu2 %v3667_v41 }
  0xaf   : > { %1439 = vmatpush.bf16.msra.mxu0 %v3675_v1  ;;  %1706 = vmatpush.bf16.msra.mxu3 %v3687_v21  ;;  %v3902_v1 = vld [vmem:[#allocation5 + $0x4] sm:$0xf] }
  0xb0   : > { %582 = vadd.xlane.f32.xlu0 %v530_v17  ;;  %451 = vadd.xlane.f32.xlu2 %v4916_v61 }
  0xb1   : > { %1619 = vmatpush.bf16.msra.mxu2 %v3651_v19 }
  0xb2   : > { %584 = vadd.xlane.f32.xlu1 %v531_v30  ;;  %v3660_v30 = vld [vmem:[#allocation5 + $0x30] sm:$0xf0] }
  0xb3   : > { %v408_v56 = vpop.xlane.xlu0 %407  ;;  %v412_v58 = vpop.xlane.xlu2 %411  ;;  %v3663_v40 = vor.u32 %v3906_v27, %v3660_v30  ;;  %1440 = vmatpush.bf16.msra.mxu0 %v3659_v29  ;;  %1707 = vmatpush.bf16.msra.mxu3 %v3671_v50 }
  0xb4   : > { %v4914_v59 = vmul.f32 %v4910_v43, %v408_v56  ;;  %v532_v56 = vmul.f32 %v4916_v61, %v4916_v61  ;;  %v4934_v63 = vmul.f32 %v4910_v43, %v412_v58  ;;  %v3647_v58 = vor.u32 %v3902_v1, %v3644_v3 }
  0xb5   : > { %v543_v0 = vpop.xlane.xlu1 %542  ;;  %1529 = vmatpush.bf16.msra.mxu1 %v3663_v40 }
  0xb6   : > { %v638_v13 = vmul.f32 %v4914_v59, %v4914_v59  ;;  %v606_v17 = vmul.f32 %v543_v0, %v4910_v43  ;;  %v640_v24 = vmul.f32 %v4934_v63, %v4934_v63 }
  0xb8   : > { %v670_v22 = vsub.f32 %v606_v17, %v638_v13  ;;  %453 = vadd.xlane.f32.xlu0 %v4922_v46  ;;  %588 = vadd.xlane.f32.xlu2 %v533_v55  ;;  %v3643_v13 = vor.u32 %v3904_v62, %v3642_v7  ;;  %v3652_v17 = vld [vmem:[#allocation5 + $0x18] sm:$0xf0] }
  0xb9   : > { %v3655_v20 = vor.u32 %v3903_v16, %v3652_v17  ;;  %1530 = vmatpush.bf16.msra.mxu1 %v3647_v58 }
  0xba   : > { %v702_v35 = vmax.f32 %v670_v22, 0.0  ;;  %586 = vadd.xlane.f32.xlu1 %v532_v56  ;;  %1441 = vmatpush.bf16.msra.mxu0 %v3643_v13 }
  0xbb   : > { %v410_v37 = vpop.xlane.xlu0 %409  ;;  %v414_v38 = vpop.xlane.xlu2 %413  ;;  %1708 = vmatpush.bf16.msra.mxu3 %v3655_v20 }
  0xbc   : > { %v4925_v48 = vmul.f32 %v4910_v43, %v410_v37  ;;  %v4927_v51 = vadd.f32 1e-05, %v702_v35  ;;  %v4942_v21 = vmul.f32 %v4910_v43, %v414_v38  ;;  %v4122_v37 = vld [vmem:[%s4768_s26 + $0x60] sm:$0xff]  }
  0xbd   : > { %v545_v53 = vpop.xlane.xlu1 %544  ;;  %v4018_v19 = vunpack.c.h.bf16 %v4122_v37 }
  0xbe   : > { %v639_v0 = vmul.f32 %v4925_v48, %v4925_v48  ;;  %4242 = vrsqrt.f32 %v4927_v51  ;;  %v607_v12 = vmul.f32 %v545_v53, %v4910_v43  ;;  %v641_v32 = vmul.f32 %v4942_v21, %v4942_v21 }
  0xbf   : > { %v4017_v53 = vunpack.c.l.bf16 %v4122_v37  ;;  %vm804_vm2 = vweird.f32 %v4927_v51 }
  0xc0   : > { %v671_v22 = vsub.f32 %v607_v12, %v639_v0 }
  0xc1   : > { %v4964_v62 = vadd.f32 %v4017_v53, %v4017_v53 }
  0xc2   : > { %v703_v25 = vmax.f32 %v671_v22, 0.0 }
  0xc3   : > { %v547_v27 = vpop.xlane.xlu0 %546  ;;  %v416_v28 = vpop.xlane.xlu2 %415  ;;  %455 = vadd.xlane.f32.xlu0 %v4964_v62 }
  0xc4   : > { %v608_v29 = vmul.f32 %v547_v27, %v4910_v43  ;;  %v4947_v30 = vpop.eup %4242  ;;  %v4951_v34 = vadd.f32 1e-05, %v703_v25  ;;  %v4960_v50 = vmul.f32 %v4910_v43, %v416_v28  ;;  %v4981_v28 = vadd.f32 %v4018_v19, %v4018_v19 }
  0xc5   : > { %v549_v35 = vpop.xlane.xlu1 %548  ;;  %v799_v38 = vmul.f32 %v4947_v30, %v4927_v51  ;;  %vm805_vm1 = vweird.f32 %v4947_v30 }
  0xc6   : > { %v672_v40 = vsub.f32 %v608_v29, %v640_v24  ;;  %4244 = vrsqrt.f32 %v4951_v34  ;;  %v609_v41 = vmul.f32 %v549_v35, %v4910_v43  ;;  %v642_v6 = vmul.f32 %v4960_v50, %v4960_v50  ;;  %457 = vadd.xlane.f32.xlu1 %v4981_v28  ;;  %vm4997_vm3 = vmor %vm804_vm2, %vm805_vm1 }
  0xc7   : > { %v800_v42 = vmul.f32 %v4947_v30, %v799_v38  ;;  %v534_v35 = vmul.f32 %v4964_v62, %v4964_v62  ;;  %vm814_vm5 = vweird.f32 %v4951_v34 }
  0xc8   : > { %v704_v45 = vmax.f32 %v672_v40, 0.0  ;;  %v673_v55 = vsub.f32 %v609_v41, %v641_v32  ;;  %v535_v41 = vmul.f32 %v4981_v28, %v4981_v28 }
  0xc9   : > { %v801_v56 = vmul.f32 0.5, %v800_v42  ;;  %590 = vadd.xlane.f32.xlu2 %v534_v35 }
  0xca   : > { %v4962_v7 = vadd.f32 1e-05, %v704_v45  ;;  %v705_v0 = vmax.f32 %v673_v55, 0.0  ;;  %v734_v55 = vsub.f32 %v4784_v4, %v4914_v59 }
  0xcb   : > { %v418_v1 = vpop.xlane.xlu0 %417  ;;  %v553_v3 = vpop.xlane.xlu2 %552  ;;  %v802_v14 = vsub.f32 1.5, %v801_v56  ;;  %592 = vadd.xlane.f32.xlu0 %v535_v41 }
  0xcc   : > { %4246 = vrsqrt.f32 %v4962_v7  ;;  %v4970_v12 = vmul.f32 %v4910_v43, %v418_v1  ;;  %v4245_v13 = vpop.eup %4244  ;;  %v4973_v16 = vadd.f32 1e-05, %v705_v0  ;;  %v611_v17 = vmul.f32 %v553_v3, %v4910_v43 }
  0xcd   : > { %v551_v58 = vpop.xlane.xlu1 %550  ;;  %v809_v20 = vmul.f32 %v4245_v13, %v4951_v34  ;;  %v803_v29 = vmul.f32 %v4947_v30, %v802_v14  ;;  %vm815_vm4 = vweird.f32 %v4245_v13  ;;  %vm824_vm10 = vweird.f32 %v4962_v7 }
  0xce   : > { %v643_v22 = vmul.f32 %v4970_v12, %v4970_v12  ;;  %4248 = vrsqrt.f32 %v4973_v16  ;;  %v610_v24 = vmul.f32 %v551_v58, %v4910_v43  ;;  %vm816_vm6 = vmor %vm814_vm5, %vm815_vm4  ;;  %vm834_vm7 = vweird.f32 %v4973_v16 }
  0xcf   : > { %v810_v25 = vmul.f32 %v4245_v13, %v809_v20  ;;  %v807_v51 = vsel %vm4997_vm3, %v4947_v30, %v803_v29  ;;  %v735_v30 = vsub.f32 %v4792_v9, %v4925_v48  ;;  %v5029_v9 = vld [vmem:[#allocation10 + $0x1] ss:$0 sm:$0xff] }
  0xd0   : > { %v675_v27 = vsub.f32 %v611_v17, %v643_v22  ;;  %v674_v32 = vsub.f32 %v610_v24, %v642_v6  ;;  %v1118_v34 = vmul.f32 %v807_v51, %v734_v55  ;;  %v3957_v24 = vld [vmem:[#allocation8 + $0xb8] sm:$0xff] }
  0xd1   : > { %v811_v38 = vmul.f32 0.5, %v810_v25  ;;  %v3941_v25 = vld [vmem:[#allocation8 + $0x38] sm:$0xff]  ;;  %2418 = vmatpush.bf16.msrb.mxu2 %v3957_v24 }
  0xd2   : > { %v4987_v37 = vpop.eup %4246  ;;  %v707_v40 = vmax.f32 %v675_v27, 0.0  ;;  %v706_v45 = vmax.f32 %v674_v32, 0.0  ;;  %v3965_v27 = vld [vmem:[#allocation8 + $0xf8] sm:$0xff]  ;;  %2240 = vmatpush.bf16.msrb.mxu0 %v3941_v25 }
  0xd3   : > { %v819_v42 = vmul.f32 %v4987_v37, %v4962_v7  ;;  %v420_v53 = vpop.xlane.xlu0 %419  ;;  %v812_v0 = vsub.f32 1.5, %v811_v38  ;;  %v555_v19 = vpop.xlane.xlu2 %554  ;;  %2507 = vmatpush.bf16.msrb.mxu3 %v3965_v27  ;;  %vm825_vm9 = vweird.f32 %v4987_v37 }
  0xd4   : > { %v5001_v1 = vadd.f32 1e-05, %v707_v40  ;;  %v5003_v3 = vpop.eup %4248  ;;  %v5009_v6 = vadd.f32 1e-05, %v706_v45  ;;  %v5012_v4 = vmul.f32 %v4910_v43, %v420_v53  ;;  %v612_v35 = vmul.f32 %v555_v19, %v4910_v43  ;;  %vm5079_vm12 = vmor %vm824_vm10, %vm825_vm9 }
  0xd5   : > { %v422_v59 = vpop.xlane.xlu1 %421  ;;  %v813_v14 = vmul.f32 %v4245_v13, %v812_v0  ;;  %v820_v17 = vmul.f32 %v4987_v37, %v819_v42  ;;  %v829_v58 = vmul.f32 %v5003_v3, %v4973_v16  ;;  %vm835_vm8 = vweird.f32 %v5003_v3 }
  0xd6   : > { %4250 = vrsqrt.f32 %v5001_v1  ;;  %v644_v32 = vmul.f32 %v5012_v4, %v5012_v4  ;;  %v5027_v38 = vmul.f32 %v4910_v43, %v422_v59  ;;  %v1151_v59 = vmul.f32 %v5029_v9, %v1118_v34  ;;  %vm5060_vm11 = vmor %vm834_vm7, %vm835_vm8 }
  0xd7   : > { %4252 = vrsqrt.f32 %v5009_v6  ;;  %v817_v20 = vsel %vm816_vm6, %v4245_v13, %v813_v14  ;;  %v830_v22 = vmul.f32 %v5003_v3, %v829_v58  ;;  %v821_v48 = vmul.f32 0.5, %v820_v17  ;;  %v5040_v14 = vld [vmem:[#allocation10 + $0x2] ss:$0 sm:$0xff] }
  0xd8   : > { %v1119_v29 = vmul.f32 %v817_v20, %v735_v30  ;;  %v645_v13 = vmul.f32 %v5027_v38, %v5027_v38  ;;  %v676_v0 = vsub.f32 %v612_v35, %v644_v32  ;;  %v3949_v20 = vld [vmem:[#allocation8 + $0x78] sm:$0xff]  ;;  %v5053_v27 = vadd.f32 %v5040_v14, %v1151_v59  ;;  %v4124_v35 = vld [vmem:[%s4768_s26 + $0x70] sm:$0xff]  }
  0xd9   : > { %v831_v40 = vmul.f32 0.5, %v830_v22  ;;  %v822_v17 = vsub.f32 1.5, %v821_v48  ;;  %2329 = vmatpush.bf16.msrb.mxu1 %v3949_v20  ;;  %vm854_vm13 = vweird.f32 %v5001_v1  ;;  %vm844_vm15 = vweird.f32 %v5009_v6 }
  0xda   : > { %v1152_v42 = vmul.f32 %v5029_v9, %v1119_v29  ;;  %v708_v25 = vmax.f32 %v676_v0, 0.0  ;;  %7160 = vst [vmem:[#allocation17_spill] sm:$0xff] %v5053_v27 }
  0xdb   : > { %v557_v41 = vpop.xlane.xlu0 %556  ;;  %v832_v53 = vsub.f32 1.5, %v831_v40  ;;  %v426_v58 = vpop.xlane.xlu2 %425  ;;  %v823_v29 = vmul.f32 %v4987_v37, %v822_v17  ;;  %v736_v17 = vsub.f32 %v4786_v5, %v4934_v63 }
  0xdc   : > { %v5034_v45 = vpop.eup %4250  ;;  %v613_v55 = vmul.f32 %v557_v41, %v4910_v43  ;;  %v5044_v30 = vadd.f32 %v5040_v14, %v1152_v42  ;;  %v5065_v48 = vmul.f32 %v4910_v43, %v426_v58  ;;  %v5083_v0 = vadd.f32 1e-05, %v708_v25 }
  0xdd   : > { %v5037_v56 = vpop.eup %4252  ;;  %v424_v51 = vpop.xlane.xlu1 %423  ;;  %v833_v22 = vmul.f32 %v5003_v3, %v832_v53  ;;  %v849_v24 = vmul.f32 %v5034_v45, %v5001_v1  ;;  %v737_v53 = vsub.f32 %v4794_v10, %v4942_v21  ;;  %v827_v58 = vsel %vm5079_vm12, %v4987_v37, %v823_v29 }
  0xde   : > { %v677_v19 = vsub.f32 %v613_v55, %v645_v13  ;;  %7159 = vst [vmem:[#allocation16_spill] sm:$0xff] %v5044_v30  ;;  %v839_v34 = vmul.f32 %v5037_v56, %v5009_v6  ;;  %v1216_v40 = vpack.c.bf16 %v5044_v30, %v5053_v27  ;;  %v4123_v13 = vld [vmem:[%s4768_s26 + $0x68] sm:$0xff]   ;;  %v5086_v59 = vmul.f32 %v4910_v43, %v424_v51 }
  0xdf   : > { %v837_v41 = vsel %vm5060_vm11, %v5003_v3, %v833_v22  ;;  %v850_v42 = vmul.f32 %v5034_v45, %v849_v24  ;;  %v4021_v21 = vunpack.c.l.bf16 %v4123_v13  ;;  %v647_v51 = vmul.f32 %v5065_v48, %v5065_v48 }
  0xe0   : > { %v709_v32 = vmax.f32 %v677_v19, 0.0  ;;  %v840_v7 = vmul.f32 %v5037_v56, %v839_v34  ;;  %1442 = vmatmul.bf16.vlgmr.msra.gmra.mxu0 %v1216_v40  ;;  %1531 = vmatmul.bf16.vlgmr.msra.gmra.mxu1 %v1216_v40  ;;  %v4022_v19 = vunpack.c.h.bf16 %v4123_v13  ;;  %v1121_v20 = vmul.f32 %v837_v41, %v737_v53 }
  0xe1   : > { %1620 = vmatmul.bf16.vlgmr.msra.gmra.mxu2 %v1216_v40  ;;  %1709 = vmatmul.bf16.vlgmr.msra.gmra.mxu3 %v1216_v40  ;;  %v851_v24 = vmul.f32 0.5, %v850_v42  ;;  %v1120_v34 = vmul.f32 %v827_v58, %v736_v17  ;;  %v646_v37 = vmul.f32 %v5086_v59, %v5086_v59  ;;  %v5101_v29 = vadd.f32 %v4021_v21, %v4021_v21 }
  0xe2   : > { %v5075_v16 = vadd.f32 1e-05, %v709_v32  ;;  %v841_v5 = vmul.f32 0.5, %v840_v7  ;;  %v5103_v32 = vadd.f32 %v4022_v19, %v4022_v19  ;;  %v1154_v13 = vmul.f32 %v5029_v9, %v1121_v20 }
  0xe3   : > { %v559_v10 = vpop.xlane.xlu0 %558  ;;  %v428_v63 = vpop.xlane.xlu2 %427  ;;  %v852_v41 = vsub.f32 1.5, %v851_v24  ;;  %459 = vadd.xlane.f32.xlu1 %v5101_v29  ;;  %v536_v7 = vmul.f32 %v5101_v29, %v5101_v29  ;;  %v4025_v17 = vunpack.c.l.bf16 %v4124_v35  ;;  %vm855_vm14 = vweird.f32 %v5034_v45 }
  0xe4   : > { %4254 = vrsqrt.f32 %v5075_v16  ;;  %v614_v25 = vmul.f32 %v559_v10, %v4910_v43  ;;  %v842_v42 = vsub.f32 1.5, %v841_v5  ;;  %461 = vadd.xlane.f32.xlu2 %v5103_v32  ;;  %vm845_vm0 = vweird.f32 %v5037_v56  ;;  %vm5129_vm1 = vmor %vm854_vm13, %vm855_vm14 }
  0xe5   : > { %v561_v3 = vpop.xlane.xlu1 %560  ;;  %4256 = vrsqrt.f32 %v5083_v0  ;;  %594 = vadd.xlane.f32.xlu0 %v536_v7  ;;  %v5121_v19 = vadd.f32 %v5040_v14, %v1154_v13  ;;  %v853_v20 = vmul.f32 %v5034_v45, %v852_v41  ;;  %v5144_v13 = vmul.f32 %v4910_v43, %v428_v63  ;;  %vm5154_vm2 = vmor %vm844_vm15, %vm845_vm0 }
  0xe6   : > { %v615_v22 = vmul.f32 %v561_v3, %v4910_v43  ;;  %v678_v55 = vsub.f32 %v614_v25, %v646_v37  ;;  %v1153_v3 = vmul.f32 %v5029_v9, %v1120_v34  ;;  %v5139_v25 = vadd.f32 %v4025_v17, %v4025_v17 }
  0xe7   : > { %7165 = vst [vmem:[#allocation18_spill] sm:$0xff] %v5121_v19  ;;  %v738_v7 = vsub.f32 %v4803_v15, %v4960_v50  ;;  %v857_v15 = vsel %vm5129_vm1, %v5034_v45, %v853_v20  ;;  %vm874_vm3 = vweird.f32 %v5075_v16  ;;  %vm864_vm5 = vweird.f32 %v5083_v0 }
  0xe8   : > { %v679_v40 = vsub.f32 %v615_v22, %v647_v51  ;;  %v843_v51 = vmul.f32 %v5037_v56, %v842_v42  ;;  %v537_v22 = vmul.f32 %v5103_v32, %v5103_v32  ;;  %v710_v5 = vmax.f32 %v678_v55, 0.0 }
  0xe9   : > { %v5137_v37 = vadd.f32 %v5040_v14, %v1153_v3  ;;  %v4026_v42 = vunpack.c.h.bf16 %v4124_v35  ;;  %v739_v55 = vsub.f32 %v4808_v18, %v4970_v12 }
  0xea   : > { %v5111_v53 = vpop.eup %4254  ;;  %v711_v21 = vmax.f32 %v679_v40, 0.0  ;;  %v847_v18 = vsel %vm5154_vm2, %v5037_v56, %v843_v51  ;;  %v5170_v12 = vadd.f32 1e-05, %v710_v5  ;;  %v648_v56 = vmul.f32 %v5144_v13, %v5144_v13  ;;  %v3956_v51 = vld [vmem:[#allocation8 + $0xb0] sm:$0xff] }
  0xeb   : > { %v430_v58 = vpop.xlane.xlu0 %429  ;;  %v5116_v10 = vpop.eup %4256  ;;  %v869_v1 = vmul.f32 %v5111_v53, %v5075_v16  ;;  %7168 = vst [vmem:[#allocation19_spill] sm:$0xff] %v5137_v37  ;;  %v1217_v35 = vpack.c.bf16 %v5121_v19, %v5137_v37  ;;  %596 = vadd.xlane.f32.xlu1 %v537_v22  ;;  %v3964_v22 = vld [vmem:[#allocation8 + $0xf0] sm:$0xff]  ;;  %v1123_v24 = vmul.f32 %v857_v15, %v739_v55  ;;  %vm875_vm4 = vweird.f32 %v5111_v53 }
  0xec   : > { %v5134_v34 = vmul.f32 %v4910_v43, %v430_v58  ;;  %v859_v40 = vmul.f32 %v5116_v10, %v5083_v0  ;;  %v565_v41 = vpop.xlane.xlu2 %564  ;;  %v5158_v17 = vadd.f32 1e-05, %v711_v21  ;;  %463 = vadd.xlane.f32.xlu2 %v5139_v25  ;;  %v5175_v21 = vadd.f32 %v4026_v42, %v4026_v42  ;;  %2419 = vmatpush.bf16.msrb.mxu2 %v3956_v51  ;;  %vm5207_vm7 = vmor %vm874_vm3, %vm875_vm4 }
  0xed   : > { %v563_v63 = vpop.xlane.xlu1 %562  ;;  %v870_v50 = vmul.f32 %v5111_v53, %v869_v1  ;;  %v617_v58 = vmul.f32 %v565_v41, %v4910_v43  ;;  %v3940_v1 = vld [vmem:[#allocation8 + $0x30] sm:$0xff]  ;;  %v1122_v5 = vmul.f32 %v847_v18, %v738_v7  ;;  %2508 = vmatpush.bf16.msrb.mxu3 %v3964_v22  ;;  %v538_v7 = vmul.f32 %v5139_v25, %v5139_v25 }
  0xee   : > { %v649_v6 = vmul.f32 %v5134_v34, %v5134_v34  ;;  %v860_v45 = vmul.f32 %v5116_v10, %v859_v40  ;;  %v616_v20 = vmul.f32 %v563_v63, %v4910_v43  ;;  %4258 = vrsqrt.f32 %v5158_v17  ;;  %v3948_v41 = vld [vmem:[#allocation8 + $0x70] sm:$0xff]  ;;  %465 = vadd.xlane.f32.xlu0 %v5175_v21  ;;  %2241 = vmatpush.bf16.msrb.mxu0 %v3940_v1 }
  0xef   : > { %v871_v42 = vmul.f32 0.5, %v870_v50  ;;  %4260 = vrsqrt.f32 %v5170_v12  ;;  %2330 = vmatpush.bf16.msrb.mxu1 %v3948_v41  ;;  %v539_v55 = vmul.f32 %v5175_v21, %v5175_v21  ;;  %v1155_v15 = vmul.f32 %v5029_v9, %v1122_v5 }
  0xf0   : > { %1447 = vmatmul.bf16.gmra.mxu0 %v1217_v35  ;;  %1536 = vmatmul.bf16.gmra.mxu1 %v1217_v35  ;;  %v681_v40 = vsub.f32 %v617_v58, %v649_v6  ;;  %v861_v3 = vmul.f32 0.5, %v860_v45  ;;  %v680_v63 = vsub.f32 %v616_v20, %v648_v56  ;;  %v1156_v18 = vmul.f32 %v5029_v9, %v1123_v24 }
  0xf1   : > { %1625 = vmatmul.bf16.gmra.mxu2 %v1217_v35  ;;  %1714 = vmatmul.bf16.gmra.mxu3 %v1217_v35  ;;  %v872_v50 = vsub.f32 1.5, %v871_v42  ;;  %v5197_v20 = vadd.f32 %v5040_v14, %v1155_v15  ;;  %vm865_vm6 = vweird.f32 %v5116_v10  ;;  %vm894_vm9 = vweird.f32 %v5158_v17 }
  0xf2   : > { %v713_v6 = vmax.f32 %v681_v40, 0.0  ;;  %v862_v58 = vsub.f32 1.5, %v861_v3  ;;  %v712_v45 = vmax.f32 %v680_v63, 0.0  ;;  %v5200_v1 = vadd.f32 %v5040_v14, %v1156_v18  ;;  %vm5222_vm8 = vmor %vm864_vm5, %vm865_vm6 }
  0xf3   : > { %v432_v35 = vpop.xlane.xlu0 %431  ;;  %598 = vadd.xlane.f32.xlu1 %v538_v7  ;;  %7171 = vst [vmem:[#allocation20_spill] sm:$0xff] %v5197_v20  ;;  %v873_v22 = vmul.f32 %v5111_v53, %v872_v50  ;;  %v741_v18 = vsub.f32 %v4820_v26, %v5027_v38  ;;  %v740_v26 = vsub.f32 %v4816_v23, %v5012_v4  ;;  %vm884_vm11 = vweird.f32 %v5170_v12 }
  0xf4   : > { %600 = vadd.xlane.f32.xlu2 %v539_v55  ;;  %v5190_v51 = vpop.eup %4258  ;;  %7172 = vst [vmem:[#allocation21_spill] sm:$0xff] %v5200_v1  ;;  %v5211_v41 = vadd.f32 1e-05, %v713_v6  ;;  %v5214_v42 = vmul.f32 %v4910_v43, %v432_v35  ;;  %v863_v40 = vmul.f32 %v5116_v10, %v862_v58  ;;  %v5219_v3 = vadd.f32 1e-05, %v712_v45  ;;  %v567_v63 = vpop.xlane.xlu2 %566  ;;  %v4125_v55 = vld [vmem:[%s4768_s26 + $0x78] sm:$0xff]  }
  0xf5   : > { %v5194_v56 = vpop.eup %4260  ;;  %v889_v16 = vmul.f32 %v5190_v51, %v5158_v17  ;;  %v434_v24 = vpop.xlane.xlu1 %433  ;;  %v1218_v35 = vpack.c.bf16 %v5200_v1, %v5197_v20  ;;  %v877_v50 = vsel %vm5207_vm7, %v5111_v53, %v873_v22  ;;  %v4029_v1 = vunpack.c.l.bf16 %v4125_v55 }
  0xf6   : > { %v879_v0 = vmul.f32 %v5194_v56, %v5170_v12  ;;  %v5227_v15 = vmul.f32 %v4910_v43, %v434_v24  ;;  %4262 = vrsqrt.f32 %v5211_v41  ;;  %v650_v45 = vmul.f32 %v5214_v42, %v5214_v42 }
  0xf7   : > { %v890_v6 = vmul.f32 %v5190_v51, %v889_v16  ;;  %v618_v24 = vmul.f32 %v567_v63, %v4910_v43  ;;  %v867_v38 = vsel %vm5222_vm8, %v5116_v10, %v863_v40  ;;  %4264 = vrsqrt.f32 %v5219_v3  ;;  %v3955_v10 = vld [vmem:[#allocation8 + $0xa8] sm:$0xff] }
  0xf8   : > { %v880_v53 = vmul.f32 %v5194_v56, %v879_v0  ;;  %v1125_v22 = vmul.f32 %v877_v50, %v741_v18  ;;  %v651_v16 = vmul.f32 %v5227_v15, %v5227_v15  ;;  %v5251_v63 = vadd.f32 %v4029_v1, %v4029_v1  ;;  %v3939_v40 = vld [vmem:[#allocation8 + $0x28] sm:$0xff]  ;;  %2420 = vmatpush.bf16.msrb.mxu2 %v3955_v10 }
  0xf9   : > { %v891_v20 = vmul.f32 0.5, %v890_v6  ;;  %v1124_v23 = vmul.f32 %v867_v38, %v740_v26  ;;  %v682_v4 = vsub.f32 %v618_v24, %v650_v45  ;;  %v3963_v0 = vld [vmem:[#allocation8 + $0xe8] sm:$0xff]  ;;  %v4030_v37 = vunpack.c.h.bf16 %v4125_v55  ;;  %2242 = vmatpush.bf16.msrb.mxu0 %v3939_v40 }
  0xfa   : > { %467 = vadd.xlane.f32.xlu0 %v5251_v63  ;;  %v881_v7 = vmul.f32 0.5, %v880_v53  ;;  %v3947_v18 = vld [vmem:[#allocation8 + $0x68] sm:$0xff]  ;;  %v1158_v1 = vmul.f32 %v5029_v9, %v1125_v22  ;;  %2509 = vmatpush.bf16.msrb.mxu3 %v3963_v0  ;;  %vm895_vm10 = vweird.f32 %v5190_v51  ;;  %vm885_vm12 = vweird.f32 %v5194_v56 }
  0xfb   : > { %v569_v58 = vpop.xlane.xlu0 %568  ;;  %v892_v45 = vsub.f32 1.5, %v891_v20  ;;  %v5261_v24 = vadd.f32 %v4030_v37, %v4030_v37  ;;  %v714_v26 = vmax.f32 %v682_v4, 0.0  ;;  %v1157_v55 = vmul.f32 %v5029_v9, %v1124_v23  ;;  %2331 = vmatpush.bf16.msrb.mxu1 %v3947_v18  ;;  %vm5279_vm13 = vmor %vm894_vm9, %vm895_vm10 }
  0xfc   : > { %v619_v5 = vmul.f32 %v569_v58, %v4910_v43  ;;  %v5256_v50 = vpop.eup %4262  ;;  %v882_v38 = vsub.f32 1.5, %v881_v7  ;;  %v438_v20 = vpop.xlane.xlu2 %437  ;;  %v5271_v22 = vadd.f32 %v5040_v14, %v1158_v1  ;;  %v743_v18 = vsub.f32 %v4827_v31, %v5065_v48  ;;  %vm5299_vm14 = vmor %vm884_vm11, %vm885_vm12 }
  0xfd   : > { %v436_v19 = vpop.xlane.xlu1 %435  ;;  %v5259_v6 = vpop.eup %4264  ;;  %469 = vadd.xlane.f32.xlu1 %v5261_v24  ;;  %v541_v53 = vmul.f32 %v5261_v24, %v5261_v24  ;;  %v909_v17 = vmul.f32 %v5256_v50, %v5211_v41  ;;  %v5283_v4 = vadd.f32 1e-05, %v714_v26  ;;  %v5289_v40 = vadd.f32 %v5040_v14, %v1157_v55 }
  0xfe   : > { %v683_v58 = vsub.f32 %v619_v5, %v651_v16  ;;  %7177 = vst [vmem:[#allocation22_spill] sm:$0xff] %v5271_v22  ;;  %v893_v16 = vmul.f32 %v5190_v51, %v892_v45  ;;  %v899_v5 = vmul.f32 %v5259_v6, %v5219_v3  ;;  %v5286_v10 = vmul.f32 %v4910_v43, %v436_v19 }
  0xff   : > { %7180 = vst [vmem:[#allocation23_spill] sm:$0xff] %v5289_v40  ;;  %v883_v0 = vmul.f32 %v5194_v56, %v882_v38  ;;  %v5293_v7 = vmul.f32 %v4910_v43, %v438_v20  ;;  %v1219_v45 = vpack.c.bf16 %v5271_v22, %v5289_v40  ;;  %v910_v55 = vmul.f32 %v5256_v50, %v909_v17 }
 0x100   : > { %1452 = vmatmul.bf16.gmra.mxu0 %v1218_v35  ;;  %1541 = vmatmul.bf16.gmra.mxu1 %v1218_v35  ;;  %v715_v37 = vmax.f32 %v683_v58, 0.0  ;;  %v897_v26 = vsel %vm5279_vm13, %v5190_v51, %v893_v16  ;;  %v900_v31 = vmul.f32 %v5259_v6, %v899_v5  ;;  %4266 = vrsqrt.f32 %v5283_v4 }
 0x101   : > { %1630 = vmatmul.bf16.gmra.mxu2 %v1218_v35  ;;  %1719 = vmatmul.bf16.gmra.mxu3 %v1218_v35  ;;  %v540_v35 = vmul.f32 %v5251_v63, %v5251_v63  ;;  %v652_v48 = vmul.f32 %v5286_v10, %v5286_v10  ;;  %v887_v38 = vsel %vm5299_vm14, %v5194_v56, %v883_v0  ;;  %v911_v16 = vmul.f32 0.5, %v910_v55 }
 0x102   : > { %604 = vadd.xlane.f32.xlu0 %v541_v53  ;;  %v5303_v19 = vadd.f32 1e-05, %v715_v37  ;;  %v653_v51 = vmul.f32 %v5293_v7, %v5293_v7  ;;  %v742_v37 = vsub.f32 %v4830_v33, %v5086_v59  ;;  %v1127_v20 = vmul.f32 %v897_v26, %v743_v18 }
 0x103   : > { %602 = vadd.xlane.f32.xlu2 %v540_v35  ;;  %v571_v35 = vpop.xlane.xlu0 %570  ;;  %v901_v17 = vmul.f32 0.5, %v900_v31  ;;  %v912_v22 = vsub.f32 1.5, %v911_v16  ;;  %vm914_vm15 = vweird.f32 %v5211_v41  ;;  %vm915_vm0 = vweird.f32 %v5256_v50 }
 0x104   : > { %v620_v12 = vmul.f32 %v571_v35, %v4910_v43  ;;  %4268 = vrsqrt.f32 %v5303_v19  ;;  %v1126_v5 = vmul.f32 %v887_v38, %v742_v37  ;;  %v440_v58 = vpop.xlane.xlu2 %439  ;;  %v1160_v0 = vmul.f32 %v5029_v9, %v1127_v20  ;;  %vm5341_vm3 = vmor %vm914_vm15, %vm915_vm0 }
 0x105   : > { %v573_v1 = vpop.xlane.xlu1 %572  ;;  %vm904_vm1 = vweird.f32 %v5219_v3  ;;  %vm905_vm2 = vweird.f32 %v5259_v6  ;;  %v913_v31 = vmul.f32 %v5256_v50, %v912_v22  ;;  %v744_v16 = vsub.f32 %v4836_v36, %v5144_v13 }
 0x106   : > { %v621_v53 = vmul.f32 %v573_v1, %v4910_v43  ;;  %v684_v23 = vsub.f32 %v620_v12, %v652_v48  ;;  %v5325_v56 = vpop.eup %4266  ;;  %v902_v1 = vsub.f32 1.5, %v901_v17  ;;  %v1159_v59 = vmul.f32 %v5029_v9, %v1126_v5  ;;  %vm5348_vm4 = vmor %vm904_vm1, %vm905_vm2 }
 0x107   : > { %v919_v18 = vmul.f32 %v5325_v56, %v5283_v4  ;;  %v5338_v55 = vadd.f32 %v5040_v14, %v1160_v0  ;;  %v745_v17 = vsub.f32 %v4841_v39, %v5134_v34  ;;  %vm924_vm5 = vweird.f32 %v5283_v4 }
 0x108   : > { %v685_v35 = vsub.f32 %v621_v53, %v653_v51  ;;  %v716_v33 = vmax.f32 %v684_v23, 0.0  ;;  %v903_v48 = vmul.f32 %v5259_v6, %v902_v1  ;;  %v5355_v51 = vmul.f32 %v4910_v43, %v440_v58  ;;  %v3938_v1 = vld [vmem:[#allocation8 + $0x20] sm:$0xff] }
 0x109   : > { %7183 = vst [vmem:[#allocation24_spill] sm:$0xff] %v5338_v55  ;;  %v5358_v22 = vadd.f32 %v5040_v14, %v1159_v59  ;;  %v920_v53 = vmul.f32 %v5325_v56, %v919_v18  ;;  %2243 = vmatpush.bf16.msrb.mxu0 %v3938_v1  ;;  %vm925_vm6 = vweird.f32 %v5325_v56  ;;  %vm934_vm7 = vweird.f32 %v5303_v19 }
 0x10a   : > { %v5328_v40 = vpop.eup %4268  ;;  %v5352_v38 = vadd.f32 1e-05, %v716_v33  ;;  %v907_v58 = vsel %vm5348_vm4, %v5259_v6, %v903_v48  ;;  %v654_v39 = vmul.f32 %v5355_v51, %v5355_v51  ;;  %v3962_v6 = vld [vmem:[#allocation8 + $0xe0] sm:$0xff]  ;;  %vm5403_vm9 = vmor %vm924_vm5, %vm925_vm6 }
 0x10b   : > { %v442_v26 = vpop.xlane.xlu0 %441  ;;  %v929_v3 = vmul.f32 %v5328_v40, %v5303_v19  ;;  %7188 = vst [vmem:[#allocation25_spill] sm:$0xff] %v5358_v22  ;;  %v1220_v23 = vpack.c.bf16 %v5338_v55, %v5358_v22  ;;  %v921_v13 = vmul.f32 0.5, %v920_v53  ;;  %v1128_v59 = vmul.f32 %v907_v58, %v744_v16  ;;  %2510 = vmatpush.bf16.msrb.mxu3 %v3962_v6 }
 0x10c   : > { %v5368_v5 = vmul.f32 %v4910_v43, %v442_v26  ;;  %v577_v36 = vpop.xlane.xlu2 %576  ;;  %4270 = vrsqrt.f32 %v5352_v38  ;;  %vm935_vm8 = vweird.f32 %v5328_v40  ;;  %vm944_vm11 = vweird.f32 %v5352_v38 }
 0x10d   : > { %v575_v20 = vpop.xlane.xlu1 %574  ;;  %v930_v0 = vmul.f32 %v5328_v40, %v929_v3  ;;  %v922_v3 = vsub.f32 1.5, %v921_v13  ;;  %vm5423_vm10 = vmor %vm934_vm7, %vm935_vm8 }
 0x10e   : > { %v622_v34 = vmul.f32 %v575_v20, %v4910_v43  ;;  %v655_v18 = vmul.f32 %v5368_v5, %v5368_v5  ;;  %v1161_v20 = vmul.f32 %v5029_v9, %v1128_v59 }
 0x10f   : > { %v931_v41 = vmul.f32 0.5, %v930_v0  ;;  %v923_v0 = vmul.f32 %v5325_v56, %v922_v3 }
 0x110   : > { %1457 = vmatmul.bf16.gmra.mxu0 %v1219_v45  ;;  %1546 = vmatmul.bf16.gmra.mxu1 %v1219_v45  ;;  %v686_v48 = vsub.f32 %v622_v34, %v654_v39  ;;  %v5410_v1 = vadd.f32 %v5040_v14, %v1161_v20 }
 0x111   : > { %1635 = vmatmul.bf16.gmra.mxu2 %v1219_v45  ;;  %1724 = vmatmul.bf16.gmra.mxu3 %v1219_v45  ;;  %v717_v45 = vmax.f32 %v685_v35, 0.0  ;;  %v917_v35 = vsel %vm5341_vm3, %v5256_v50, %v913_v31  ;;  %v3954_v50 = vld [vmem:[#allocation8 + $0xa0] sm:$0xff] }
 0x112   : > { %v1129_v33 = vmul.f32 %v917_v35, %v745_v17  ;;  %v3946_v31 = vld [vmem:[#allocation8 + $0x60] sm:$0xff]  ;;  %2421 = vmatpush.bf16.msrb.mxu2 %v3954_v50  ;;  %v5387_v12 = vpop.eup %4270  ;;  %v718_v35 = vmax.f32 %v686_v48, 0.0  ;;  %7191 = vst [vmem:[#allocation26_spill] sm:$0xff] %v5410_v1  ;;  %v927_v48 = vsel %vm5403_vm9, %v5325_v56, %v923_v0 }
 0x113   : > { %v5361_v37 = vadd.f32 1e-05, %v717_v45  ;;  %v623_v45 = vmul.f32 %v577_v36, %v4910_v43  ;;  %v444_v26 = vpop.xlane.xlu0 %443  ;;  %2332 = vmatpush.bf16.msrb.mxu1 %v3946_v31  ;;  %v939_v36 = vmul.f32 %v5387_v12, %v5352_v38  ;;  %vm945_vm12 = vweird.f32 %v5387_v12 }
 0x114   : > { %v1162_v16 = vmul.f32 %v5029_v9, %v1129_v33  ;;  %v5401_v39 = vmul.f32 %v4910_v43, %v444_v26  ;;  %v579_v50 = vpop.xlane.xlu2 %578  ;;  %v5427_v26 = vadd.f32 1e-05, %v718_v35  ;;  %vm5476_vm15 = vmor %vm944_vm11, %vm945_vm12 }
 0x115   : > { %4272 = vrsqrt.f32 %v5361_v37  ;;  %v687_v53 = vsub.f32 %v623_v45, %v655_v18  ;;  %v446_v58 = vpop.xlane.xlu1 %445  ;;  %v746_v18 = vsub.f32 %v4849_v44, %v5214_v42  ;;  %v624_v44 = vmul.f32 %v579_v50, %v4910_v43 }
 0x116   : > { %v5413_v6 = vadd.f32 %v5040_v14, %v1162_v16  ;;  %v5417_v59 = vmul.f32 %v4910_v43, %v446_v58  ;;  %v656_v3 = vmul.f32 %v5401_v39, %v5401_v39  ;;  %v940_v42 = vmul.f32 %v5387_v12, %v939_v36 }
 0x117   : > { %v719_v13 = vmax.f32 %v687_v53, 0.0  ;;  %4274 = vrsqrt.f32 %v5427_v26  ;;  %v1130_v16 = vmul.f32 %v927_v48, %v746_v18  ;;  %vm954_vm13 = vweird.f32 %v5361_v37 }
 0x118   : > { %7192 = vst [vmem:[#allocation27_spill] sm:$0xff] %v5413_v6  ;;  %v1221_v20 = vpack.c.bf16 %v5413_v6, %v5410_v1  ;;  %v941_v58 = vmul.f32 0.5, %v940_v42  ;;  %vm964_vm1 = vweird.f32 %v5427_v26  ;;  %v3936_v6 = vld [vmem:[#allocation8 + $0x10] sm:$0xff] }
 0x119   : > { %v5439_v53 = vadd.f32 1e-05, %v719_v13  ;;  %v3960_v1 = vld [vmem:[#allocation8 + $0xd0] sm:$0xff] }
 0x11a   : > { %v942_v13 = vsub.f32 1.5, %v941_v58 }
 0x11b   : > { %v5391_v17 = vpop.eup %4272  ;;  %v581_v31 = vpop.xlane.xlu0 %580  ;;  %4276 = vrsqrt.f32 %v5439_v53  ;;  %vm974_vm3 = vweird.f32 %v5439_v53 }
 0x11c   : > { %v949_v4 = vmul.f32 %v5391_v17, %v5361_v37  ;;  %v625_v56 = vmul.f32 %v581_v31, %v4910_v43  ;;  %vm955_vm14 = vweird.f32 %v5391_v17 }
 0x11d   : > { %vm5487_vm0 = vmor %vm954_vm13, %vm955_vm14 }
 0x11e   : > { %v950_v19 = vmul.f32 %v5391_v17, %v949_v4  ;;  %v5451_v4 = vpop.eup %4274 }
 0x11f   : > { %vm965_vm2 = vweird.f32 %v5451_v4 }
 0x120   : > { %1462 = vmatmul.bf16.gmra.mxu0 %v1220_v23  ;;  %1551 = vmatmul.bf16.gmra.mxu1 %v1220_v23  ;;  %v951_v0 = vmul.f32 0.5, %v950_v19  ;;  %v943_v19 = vmul.f32 %v5387_v12, %v942_v13  ;;  %vm5551_vm5 = vmor %vm964_vm1, %vm965_vm2 }
 0x121   : > { %1640 = vmatmul.bf16.gmra.mxu2 %v1220_v23  ;;  %1729 = vmatmul.bf16.gmra.mxu3 %v1220_v23  ;;  %v932_v23 = vsub.f32 1.5, %v931_v41  ;;  %v747_v41 = vsub.f32 %v4853_v47, %v5227_v15  ;;  %v657_v15 = vmul.f32 %v5417_v59, %v5417_v59  ;;  %v5458_v48 = vpop.eup %4276 }
 0x122   : > { %v952_v50 = vsub.f32 1.5, %v951_v0  ;;  %v969_v37 = vmul.f32 %v5458_v48, %v5439_v53  ;;  %v748_v0 = vsub.f32 %v4863_v54, %v5286_v10  ;;  %v947_v13 = vsel %vm5476_vm15, %v5387_v12, %v943_v19 }
 0x123   : > { %v933_v33 = vmul.f32 %v5328_v40, %v932_v23  ;;  %v688_v23 = vsub.f32 %v624_v44, %v656_v3  ;;  %v689_v36 = vsub.f32 %v625_v56, %v657_v15  ;;  %v583_v3 = vpop.xlane.xlu0 %582  ;;  %v959_v44 = vmul.f32 %v5451_v4, %v5427_v26 }
 0x124   : > { %v970_v54 = vmul.f32 %v5458_v48, %v969_v37  ;;  %v1132_v12 = vmul.f32 %v947_v13, %v748_v0  ;;  %vm975_vm4 = vweird.f32 %v5458_v48  ;;  %v750_v26 = vsub.f32 %v4869_v57, %v5355_v51 }
 0x125   : > { %v937_v47 = vsel %vm5423_vm10, %v5328_v40, %v933_v33  ;;  %v448_v40 = vpop.xlane.xlu1 %447  ;;  %v720_v34 = vmax.f32 %v688_v23, 0.0  ;;  %v1163_v33 = vmul.f32 %v5029_v9, %v1130_v16  ;;  %v721_v18 = vmax.f32 %v689_v36, 0.0  ;;  %vm5556_vm6 = vmor %vm974_vm3, %vm975_vm4 }
 0x126   : > { %v1131_v35 = vmul.f32 %v937_v47, %v747_v41  ;;  %v5456_v31 = vmul.f32 %v4910_v43, %v448_v40  ;;  %v450_v41 = vpop.xlane.xlu2 %449  ;;  %v626_v23 = vmul.f32 %v583_v3, %v4910_v43  ;;  %v960_v36 = vmul.f32 %v5451_v4, %v959_v44  ;;  %v3937_v3 = vld [vmem:[#allocation8 + $0x18] sm:$0xff] }
 0x127   : > { %v5466_v42 = vadd.f32 1e-05, %v720_v34  ;;  %v5471_v47 = vadd.f32 %v5040_v14, %v1163_v33  ;;  %v5482_v56 = vadd.f32 1e-05, %v721_v18  ;;  %v5492_v58 = vmul.f32 %v4910_v43, %v450_v41  ;;  %v3953_v41 = vld [vmem:[#allocation8 + $0x98] sm:$0xff]  ;;  %2244 = vmatpush.bf16.msrb.mxu0 %v3937_v3 }
 0x128   : > { %v1164_v45 = vmul.f32 %v5029_v9, %v1131_v35  ;;  %v658_v16 = vmul.f32 %v5456_v31, %v5456_v31  ;;  %v749_v34 = vsub.f32 %v4860_v52, %v5293_v7  ;;  %v961_v18 = vmul.f32 0.5, %v960_v36  ;;  %2422 = vmatpush.bf16.msrb.mxu2 %v3953_v41 }
 0x129   : > { %7195 = vst [vmem:[#allocation28_spill] sm:$0xff] %v5471_v47  ;;  %4278 = vrsqrt.f32 %v5466_v42  ;;  %v659_v52 = vmul.f32 %v5492_v58, %v5492_v58  ;;  %v1165_v0 = vmul.f32 %v5029_v9, %v1132_v12  ;;  %vm984_vm7 = vweird.f32 %v5466_v42 }
 0x12a   : > { %v5474_v38 = vadd.f32 %v5040_v14, %v1164_v45  ;;  %4280 = vrsqrt.f32 %v5482_v56  ;;  %v690_v10 = vsub.f32 %v626_v23, %v658_v16  ;;  %v962_v23 = vsub.f32 1.5, %v961_v18 }
 0x12b   : > { %v454_v35 = vpop.xlane.xlu0 %453  ;;  %v5537_v18 = vadd.f32 %v5040_v14, %v1165_v0  ;;  %vm994_vm9 = vweird.f32 %v5482_v56  ;;  %2245 = vmatpush.bf16.msrb.mxu0 %v3936_v6 }
 0x12c   : > { %7196 = vst [vmem:[#allocation29_spill] sm:$0xff] %v5474_v38  ;;  %v722_v15 = vmax.f32 %v690_v10, 0.0 }
 0x12d   : > { %v585_v40 = vpop.xlane.xlu1 %584  ;;  %7201 = vst [vmem:[#allocation30_spill] sm:$0xff] %v5537_v18 }
 0x12e   : > { %v452_v45 = vpop.xlane.xlu2 %451  ;;  %v627_v7 = vmul.f32 %v585_v40, %v4910_v43 }
 0x12f   : > { %v5513_v19 = vpop.eup %4278  ;;  %v5521_v40 = vmul.f32 %v4910_v43, %v452_v45  ;;  %v963_v45 = vmul.f32 %v5451_v4, %v962_v23 }
 0x130   : > { %1467 = vmatmul.bf16.gmra.mxu0 %v1221_v20  ;;  %1556 = vmatmul.bf16.gmra.mxu1 %v1221_v20  ;;  %v691_v37 = vsub.f32 %v627_v7, %v659_v52  ;;  %v5515_v16 = vpop.eup %4280  ;;  %v979_v36 = vmul.f32 %v5513_v19, %v5466_v42  ;;  %v5531_v7 = vmul.f32 %v4910_v43, %v454_v35  ;;  %vm985_vm8 = vweird.f32 %v5513_v19 }
 0x131   : > { %1645 = vmatmul.bf16.gmra.mxu2 %v1221_v20  ;;  %1734 = vmatmul.bf16.gmra.mxu3 %v1221_v20  ;;  %v953_v20 = vmul.f32 %v5391_v17, %v952_v50  ;;  %v1222_v50 = vpack.c.bf16 %v5474_v38, %v5471_v47  ;;  %v989_v10 = vmul.f32 %v5515_v16, %v5482_v56  ;;  %vm995_vm10 = vweird.f32 %v5515_v16  ;;  %vm5594_vm11 = vmor %vm984_vm7, %vm985_vm8  ;;  %v3952_v47 = vld [vmem:[#allocation8 + $0x90] sm:$0xff] }
 0x132   : > { %v723_v52 = vmax.f32 %v691_v37, 0.0  ;;  %v980_v41 = vmul.f32 %v5513_v19, %v979_v36  ;;  %v660_v3 = vmul.f32 %v5521_v40, %v5521_v40  ;;  %v661_v35 = vmul.f32 %v5531_v7, %v5531_v7  ;;  %vm5609_vm12 = vmor %vm994_vm9, %vm995_vm10  ;;  %2423 = vmatpush.bf16.msrb.mxu2 %v3952_v47 }
 0x133   : > { %v957_v33 = vsel %vm5487_vm0, %v5391_v17, %v953_v20  ;;  %v3961_v17 = vld [vmem:[#allocation8 + $0xd8] sm:$0xff]  ;;  %v971_v20 = vmul.f32 0.5, %v970_v54  ;;  %v990_v37 = vmul.f32 %v5515_v16, %v989_v10  ;;  %v751_v36 = vsub.f32 %v4874_v60, %v5368_v5 }
 0x134   : > { %v1133_v44 = vmul.f32 %v957_v33, %v749_v34  ;;  %2511 = vmatpush.bf16.msrb.mxu3 %v3961_v17  ;;  %v3945_v54 = vld [vmem:[#allocation8 + $0x58] sm:$0xff]  ;;  %v5561_v23 = vadd.f32 1e-05, %v723_v52  ;;  %v753_v56 = vsub.f32 %v4888_v8, %v5417_v59 }
 0x135   : > { %v972_v13 = vsub.f32 1.5, %v971_v20  ;;  %v587_v33 = vpop.xlane.xlu1 %586  ;;  %2333 = vmatpush.bf16.msrb.mxu1 %v3945_v54  ;;  %v991_v52 = vmul.f32 0.5, %v990_v37 }
 0x136   : > { %v1166_v34 = vmul.f32 %v5029_v9, %v1133_v44  ;;  %v589_v12 = vpop.xlane.xlu2 %588  ;;  %v628_v17 = vmul.f32 %v587_v33, %v4910_v43  ;;  %v456_v60 = vpop.xlane.xlu0 %455  ;;  %vm1014_vm14 = vweird.f32 %v5561_v23 }
 0x137   : > { %v973_v53 = vmul.f32 %v5458_v48, %v972_v13  ;;  %v629_v0 = vmul.f32 %v589_v12, %v4910_v43  ;;  %v981_v13 = vmul.f32 0.5, %v980_v41 }
 0x138   : > { %v5544_v44 = vadd.f32 %v5040_v14, %v1166_v34  ;;  %v967_v34 = vsel %vm5551_vm5, %v5451_v4, %v963_v45  ;;  %v692_v33 = vsub.f32 %v628_v17, %v660_v3  ;;  %2512 = vmatpush.bf16.msrb.mxu3 %v3960_v1 }
 0x139   : > { %v977_v10 = vsel %vm5556_vm6, %v5458_v48, %v973_v53  ;;  %v693_v57 = vsub.f32 %v629_v0, %v661_v35  ;;  %v1134_v5 = vmul.f32 %v967_v34, %v750_v26  ;;  %v982_v45 = vsub.f32 1.5, %v981_v13 }
 0x13a   : > { %7202 = vst [vmem:[#allocation31_spill] sm:$0xff] %v5544_v44  ;;  %v1223_v54 = vpack.c.bf16 %v5544_v44, %v5537_v18  ;;  %v1135_v4 = vmul.f32 %v977_v10, %v751_v36  ;;  %v724_v12 = vmax.f32 %v692_v33, 0.0  ;;  %v992_v48 = vsub.f32 1.5, %v991_v52 }
 0x13b   : > { %v725_v3 = vmax.f32 %v693_v57, 0.0  ;;  %v1167_v17 = vmul.f32 %v5029_v9, %v1134_v5  ;;  %v983_v20 = vmul.f32 %v5513_v19, %v982_v45  ;;  %v5599_v0 = vmul.f32 %v4910_v43, %v456_v60 }
 0x13c   : > { %v1168_v37 = vmul.f32 %v5029_v9, %v1135_v4  ;;  %v993_v26 = vmul.f32 %v5515_v16, %v992_v48  ;;  %v752_v33 = vsub.f32 %v4882_v2, %v5401_v39 }
 0x13d   : > { %v458_v42 = vpop.xlane.xlu1 %457  ;;  %v5603_v34 = vadd.f32 1e-05, %v725_v3  ;;  %v987_v52 = vsel %vm5594_vm11, %v5513_v19, %v983_v20  ;;  %v5623_v2 = vadd.f32 %v5040_v14, %v1167_v17  ;;  %v662_v60 = vmul.f32 %v5599_v0, %v5599_v0 }
 0x13e   : > { %v591_v13 = vpop.xlane.xlu2 %590  ;;  %v5616_v10 = vmul.f32 %v4910_v43, %v458_v42  ;;  %v593_v57 = vpop.xlane.xlu0 %592  ;;  %v5626_v39 = vadd.f32 %v5040_v14, %v1168_v37  ;;  %v997_v19 = vsel %vm5609_vm12, %v5515_v16, %v993_v26  ;;  %v1136_v45 = vmul.f32 %v987_v52, %v752_v33  ;;  %v1264_v14 = vld [vmem:[#allocation7] sm:$0xf]  ;;  %v5649_v33 = vld [vmem:[#allocation10 + $0x1] ss:$0 sm:$0xff] }
 0x13f   : > { %7211 = vst [vmem:[#allocation32_spill] sm:$0xff] %v5623_v2  ;;  %v630_v5 = vmul.f32 %v591_v13, %v4910_v43  ;;  %v631_v59 = vmul.f32 %v593_v57, %v4910_v43  ;;  %v1137_v17 = vmul.f32 %v997_v19, %v753_v56  ;;  %v5645_v37 = vperm.slane %v1264_v14, 0 }
 0x140   : > { %1472 = vmatmul.bf16.gmra.mxu0 %v1222_v50  ;;  %1561 = vmatmul.bf16.gmra.mxu1 %v1222_v50  ;;  %7212 = vst [vmem:[#allocation33_spill] sm:$0xff] %v5626_v39  ;;  %v663_v8 = vmul.f32 %v5616_v10, %v5616_v10  ;;  %v1224_v3 = vpack.c.bf16 %v5626_v39, %v5623_v2  ;;  %v5647_v35 = vperm.slane %v1264_v14, 1  ;;  %v5668_v39 = vld [vmem:[#allocation10 + $0x2] ss:$0 sm:$0xff]  ;;  %v5683_v18 = vperm.slane %v1264_v14, 3 }
 0x141   : > { %1650 = vmatmul.bf16.gmra.mxu2 %v1222_v50  ;;  %1739 = vmatmul.bf16.gmra.mxu3 %v1222_v50  ;;  %v5525_v50 = vadd.f32 1e-05, %v722_v15  ;;  %v5591_v15 = vadd.f32 1e-05, %v724_v12  ;;  %v694_v20 = vsub.f32 %v630_v5, %v662_v60  ;;  %v1169_v9 = vmul.f32 %v5649_v33, %v1136_v45 }
 0x142   : > { %v695_v13 = vsub.f32 %v631_v59, %v663_v8  ;;  %v1170_v56 = vmul.f32 %v5649_v33, %v1137_v17  ;;  %vm1034_vm4 = vweird.f32 %v5603_v34 }
 0x143   : > { %4282 = vrsqrt.f32 %v5525_v50  ;;  %vm1004_vm13 = vweird.f32 %v5525_v50  ;;  %v726_v57 = vmax.f32 %v694_v20, 0.0  ;;  %v5671_v17 = vadd.f32 %v5668_v39, %v1169_v9 }
 0x144   : > { %4284 = vrsqrt.f32 %v5561_v23  ;;  %v727_v59 = vmax.f32 %v695_v13, 0.0  ;;  %v5686_v9 = vadd.f32 %v5668_v39, %v1170_v56  ;;  %vm1024_vm3 = vweird.f32 %v5591_v15 }
 0x145   : > { %4286 = vrsqrt.f32 %v5591_v15  ;;  %7213 = vst [vmem:[#allocation34_spill] sm:$0xff] %v5671_v17  ;;  %v5681_v13 = vadd.f32 1e-05, %v726_v57 }
 0x146   : > { %4288 = vrsqrt.f32 %v5603_v34  ;;  %7214 = vst [vmem:[#allocation35_spill] sm:$0xff] %v5686_v9  ;;  %v5698_v56 = vadd.f32 1e-05, %v727_v59  ;;  %v1225_v47 = vpack.c.bf16 %v5686_v9, %v5671_v17 }
 0x147   : > { %4290 = vrsqrt.f32 %v5681_v13  ;;  %vm1044_vm9 = vweird.f32 %v5681_v13 }
 0x148   : > { %4292 = vrsqrt.f32 %v5698_v56  ;;  %vm1054_vm10 = vweird.f32 %v5698_v56 }
 0x149   : > { %v5579_v51 = vpop.eup %4282 }
 0x14a   : > { %v999_v41 = vmul.f32 %v5579_v51, %v5525_v50  ;;  %v5587_v53 = vpop.eup %4284  ;;  %vm1005_vm15 = vweird.f32 %v5579_v51 }
 0x14b   : > { %v5643_v16 = vpop.eup %4286  ;;  %vm1015_vm0 = vweird.f32 %v5587_v53  ;;  %vm5692_vm1 = vmor %vm1004_vm13, %vm1005_vm15 }
 0x14c   : > { %v1000_v36 = vmul.f32 %v5579_v51, %v999_v41  ;;  %v1019_v52 = vmul.f32 %v5643_v16, %v5591_v15  ;;  %vm5718_vm2 = vmor %vm1014_vm14, %vm1015_vm0  ;;  %vm1025_vm5 = vweird.f32 %v5643_v16 }
 0x14d   : > { %vm5766_vm7 = vmor %vm1024_vm3, %vm1025_vm5 }
 0x14e   : > { %v1001_v4 = vmul.f32 0.5, %v1000_v36  ;;  %v1020_v44 = vmul.f32 %v5643_v16, %v1019_v52 }
 0x150   : > { %1477 = vmatmul.bf16.gmra.mxu0 %v1223_v54  ;;  %1566 = vmatmul.bf16.gmra.mxu1 %v1223_v54  ;;  %v1002_v42 = vsub.f32 1.5, %v1001_v4  ;;  %v1021_v1 = vmul.f32 0.5, %v1020_v44 }
 0x151   : > { %1655 = vmatmul.bf16.gmra.mxu2 %v1223_v54  ;;  %1744 = vmatmul.bf16.gmra.mxu3 %v1223_v54  ;;  %v1009_v54 = vmul.f32 %v5587_v53, %v5561_v23 }
 0x152   : > { %v5661_v60 = vmul.f32 %v5579_v51, %v1002_v42  ;;  %v5673_v42 = vperm.slane %v1264_v14, 2 }
 0x153   : > { %v1010_v12 = vmul.f32 %v5587_v53, %v1009_v54  ;;  %v5652_v54 = vpop.eup %4288 }
 0x154   : > { %v1029_v8 = vmul.f32 %v5652_v54, %v5603_v34  ;;  %vm1035_vm6 = vweird.f32 %v5652_v54 }
 0x155   : > { %v1011_v36 = vmul.f32 0.5, %v1010_v12  ;;  %vm5783_vm8 = vmor %vm1034_vm4, %vm1035_vm6 }
 0x156   : > { %v460_v26 = vpop.xlane.xlu1 %459  ;;  %v1030_v57 = vmul.f32 %v5652_v54, %v1029_v8  ;;  %v755_v8 = vsub.f32 %v4899_v11, %v5492_v58 }
 0x157   : > { %v1012_v12 = vsub.f32 1.5, %v1011_v36  ;;  %v5678_v2 = vmul.f32 %v4910_v43, %v460_v26  ;;  %v462_v36 = vpop.xlane.xlu2 %461  ;;  %v3944_v26 = vld [vmem:[#allocation8 + $0x50] sm:$0xff] }
 0x158   : > { %v595_v38 = vpop.xlane.xlu0 %594  ;;  %2334 = vmatpush.bf16.msrb.mxu1 %v3944_v26 }
 0x159   : > { %v1013_v14 = vmul.f32 %v5587_v53, %v1012_v12  ;;  %v664_v50 = vmul.f32 %v5678_v2, %v5678_v2  ;;  %v754_v12 = vsub.f32 %v4896_v49, %v5456_v31  ;;  %v1007_v49 = vsel %vm5692_vm1, %v5579_v51, %v5661_v60 }
 0x15a   : > { %v1031_v51 = vmul.f32 0.5, %v1030_v57 }
 0x15b   : > { %v1017_v44 = vsel %vm5718_vm2, %v5587_v53, %v1013_v14  ;;  %v1138_v52 = vmul.f32 %v1007_v49, %v754_v12  ;;  %v5744_v53 = vpop.eup %4290 }
 0x15c   : > { %v1139_v14 = vmul.f32 %v1017_v44, %v755_v8  ;;  %v1032_v57 = vsub.f32 1.5, %v1031_v51  ;;  %v5747_v12 = vpop.eup %4292  ;;  %vm1045_vm11 = vweird.f32 %v5744_v53 }
 0x15d   : > { %v1443_v48 = vpop.f32.mrf.mxu0  ;;  %v1532_v41 = vpop.f32.mrf.mxu1  ;;  %v1049_v51 = vmul.f32 %v5747_v12, %v5698_v56  ;;  %vm1055_vm12 = vweird.f32 %v5747_v12  ;;  %vm5860_vm13 = vmor %vm1044_vm9, %vm1045_vm11 }
 0x15e   : > { %v1444_v5 = vadd.f32 %v1443_v48, %v5645_v37  ;;  %v1533_v19 = vadd.f32 %v1532_v41, %v5647_v35  ;;  %v597_v30 = vpop.xlane.xlu1 %596  ;;  %vm5874_vm14 = vmor %vm1054_vm10, %vm1055_vm12 }
 0x15f   : > { %v633_v59 = vmul.f32 %v597_v30, %v4910_v43 }
 0x160   : > { %1482 = vmatmul.bf16.gmra.mxu0 %v1224_v3  ;;  %1571 = vmatmul.bf16.gmra.mxu1 %v1224_v3  ;;  %v1791_v55 = vmax.f32 %v1533_v19, 0.0 }
 0x161   : > { %1660 = vmatmul.bf16.gmra.mxu2 %v1224_v3  ;;  %1749 = vmatmul.bf16.gmra.mxu3 %v1224_v3 }
 0x164   : > { %v1621_v4 = vpop.f32.mrf.mxu2  ;;  %v1710_v45 = vpop.f32.mrf.mxu3 }
 0x165   : > { %v1445_v3 = vpop.f32.mrf.mxu0  ;;  %v1534_v20 = vpop.f32.mrf.mxu1  ;;  %v1711_v6 = vadd.f32 %v1710_v45, %v5683_v18 }
 0x166   : > { %v1446_v48 = vadd.f32 %v1445_v3, %v5645_v37  ;;  %v1535_v41 = vadd.f32 %v1534_v20, %v5647_v35  ;;  %v1790_v3 = vmax.f32 %v1444_v5, 0.0  ;;  %v5701_v5 = vmul.f32 %v4910_v43, %v462_v36 }
 0x168   : > { %v1794_v20 = vmax.f32 %v1446_v48, 0.0  ;;  %v1795_v22 = vmax.f32 %v1535_v41, 0.0  ;;  %v632_v41 = vmul.f32 %v595_v38, %v4910_v43  ;;  %v665_v23 = vmul.f32 %v5701_v5, %v5701_v5 }
 0x16a   : > { %v5703_v19 = vpack.c.bf16 %v1794_v20, %v1790_v3  ;;  %v5705_v48 = vpack.c.bf16 %v1795_v22, %v1791_v55  ;;  %v1622_v22 = vadd.f32 %v1621_v4, %v5673_v42  ;;  %v696_v60 = vsub.f32 %v632_v41, %v664_v50  ;;  %v466_v41 = vpop.xlane.xlu0 %465 }
 0x16b   : > { %v1793_v3 = vmax.f32 %v1711_v6, 0.0  ;;  %v697_v17 = vsub.f32 %v633_v59, %v665_v23  ;;  %v1033_v23 = vmul.f32 %v5652_v54, %v1032_v57 }
 0x16c   : > { %v1623_v11 = vpop.f32.mrf.mxu2  ;;  %v1712_v31 = vpop.f32.mrf.mxu3  ;;  %v1792_v36 = vmax.f32 %v1622_v22, 0.0  ;;  %v728_v50 = vmax.f32 %v696_v60, 0.0 }
 0x16d   : > { %v1624_v38 = vadd.f32 %v1623_v11, %v5673_v42  ;;  %v1713_v58 = vadd.f32 %v1712_v31, %v5683_v18  ;;  %v1448_v4 = vpop.f32.mrf.mxu0  ;;  %v1537_v45 = vpop.f32.mrf.mxu1  ;;  %v1022_v31 = vsub.f32 1.5, %v1021_v1  ;;  %v729_v1 = vmax.f32 %v697_v17, 0.0 }
 0x16e   : > { %v464_v11 = vpop.xlane.xlu2 %463  ;;  %v1449_v55 = vadd.f32 %v1448_v4, %v5645_v37  ;;  %v1538_v22 = vadd.f32 %v1537_v45, %v5647_v35  ;;  %v1172_v45 = vmul.f32 %v5649_v33, %v1139_v14  ;;  %v1039_v17 = vmul.f32 %v5744_v53, %v5681_v13 }
 0x16f   : > { %v1796_v20 = vmax.f32 %v1624_v38, 0.0  ;;  %v1797_v26 = vmax.f32 %v1713_v58, 0.0  ;;  %v1023_v8 = vmul.f32 %v5643_v16, %v1022_v31  ;;  %v1171_v58 = vmul.f32 %v5649_v33, %v1138_v52 }
 0x170   : > { %1487 = vmatmul.bf16.gmra.mxu0 %v1225_v47  ;;  %1576 = vmatmul.bf16.gmra.mxu1 %v1225_v47  ;;  %v5774_v60 = vadd.f32 1e-05, %v728_v50  ;;  %v756_v31 = vsub.f32 %v4916_v61, %v5521_v40  ;;  %v757_v14 = vsub.f32 %v4922_v46, %v5531_v7  ;;  %v5791_v57 = vadd.f32 1e-05, %v729_v1 }
 0x171   : > { %v5740_v9 = vpack.c.bf16 %v1796_v20, %v1792_v36  ;;  %v5742_v30 = vpack.c.bf16 %v1797_v26, %v1793_v3  ;;  %1665 = vmatmul.bf16.gmra.mxu2 %v1225_v47  ;;  %1754 = vmatmul.bf16.gmra.mxu3 %v1225_v47  ;;  %v5777_v36 = vmul.f32 %v4910_v43, %v466_v41  ;;  %v1798_v3 = vmax.f32 %v1449_v55, 0.0 }
 0x172   : > { %v1799_v20 = vmax.f32 %v1538_v22, 0.0  ;;  %v5794_v41 = vadd.f32 %v5668_v39, %v1171_v58  ;;  %v5797_v34 = vadd.f32 %v5668_v39, %v1172_v45  ;;  %v1037_v61 = vsel %vm5783_vm8, %v5652_v54, %v1033_v23  ;;  %v599_v22 = vpop.xlane.xlu1 %598 }
 0x173   : > { %v1027_v46 = vsel %vm5766_vm7, %v5643_v16, %v1023_v8  ;;  %v1040_v40 = vmul.f32 %v5744_v53, %v1039_v17  ;;  %v5811_v7 = vmul.f32 %v4910_v43, %v464_v11  ;;  %v1050_v1 = vmul.f32 %v5747_v12, %v1049_v51 }
 0x174   : > { %v1626_v6 = vpop.f32.mrf.mxu2  ;;  %v5753_v49 = vpop.f32.mrf.mxu3  ;;  %7223 = vst [vmem:[#allocation36_spill] sm:$0xff] %v5794_v41  ;;  %4294 = vrsqrt.f32 %v5774_v60  ;;  %v1140_v45 = vmul.f32 %v1027_v46, %v756_v31  ;;  %v1226_v44 = vpack.c.bf16 %v5797_v34, %v5794_v41  ;;  %v3951_v31 = vld [vmem:[#allocation8 + $0x88] sm:$0xff]  ;;  %vm1064_vm15 = vweird.f32 %v5774_v60 }
 0x175   : > { %v1450_v47 = vpop.f32.mrf.mxu0  ;;  %v1539_v38 = vpop.f32.mrf.mxu1  ;;  %7224 = vst [vmem:[#allocation37_spill] sm:$0xff] %v5797_v34  ;;  %4296 = vrsqrt.f32 %v5791_v57  ;;  %v1627_v54 = vadd.f32 %v1626_v6, %v5673_v42  ;;  %v1041_v17 = vmul.f32 0.5, %v1040_v40  ;;  %v666_v51 = vmul.f32 %v5811_v7, %v5811_v7  ;;  %2424 = vmatpush.bf16.msrb.mxu2 %v3951_v31 }
 0x176   : > { %v1451_v59 = vadd.f32 %v1450_v47, %v5645_v37  ;;  %v1540_v4 = vadd.f32 %v1539_v38, %v5647_v35  ;;  %v601_v50 = vpop.xlane.xlu2 %600  ;;  %v1051_v6 = vmul.f32 0.5, %v1050_v1  ;;  %v1173_v46 = vmul.f32 %v5649_v33, %v1140_v45 }
 0x177   : > { %v635_v11 = vmul.f32 %v601_v50, %v4910_v43  ;;  %v3959_v50 = vld [vmem:[#allocation8 + $0xc8] sm:$0xff]  ;;  %v1042_v1 = vsub.f32 1.5, %v1041_v17  ;;  %vm1074_vm1 = vweird.f32 %v5791_v57 }
 0x178   : > { %v1802_v26 = vmax.f32 %v1451_v59, 0.0  ;;  %v1803_v52 = vmax.f32 %v1540_v4, 0.0  ;;  %v667_v59 = vmul.f32 %v5777_v36, %v5777_v36  ;;  %v1141_v4 = vmul.f32 %v1037_v61, %v757_v14  ;;  %v3935_v14 = vld [vmem:[#allocation8 + $0x8] sm:$0xff]  ;;  %2513 = vmatpush.bf16.msrb.mxu3 %v3959_v50 }
 0x179   : > { %2246 = vmatpush.bf16.msrb.mxu0 %v3935_v14  ;;  %v1043_v14 = vmul.f32 %v5744_v53, %v1042_v1 }
 0x17a   : > { %v5799_v47 = vpack.c.bf16 %v1802_v26, %v1798_v3  ;;  %v5801_v55 = vpack.c.bf16 %v1803_v52, %v1799_v20  ;;  %v634_v3 = vmul.f32 %v599_v22, %v4910_v43  ;;  %v1800_v20 = vmax.f32 %v1627_v54, 0.0  ;;  %v5827_v61 = vpop.eup %4294 }
 0x17b   : > { %v699_v52 = vsub.f32 %v635_v11, %v667_v59  ;;  %v1174_v40 = vmul.f32 %v5649_v33, %v1141_v4  ;;  %v5833_v22 = vpop.eup %4296  ;;  %v468_v59 = vpop.xlane.xlu0 %467  ;;  %vm1065_vm0 = vweird.f32 %v5827_v61 }
 0x17c   : > { %v1628_v38 = vpop.f32.mrf.mxu2  ;;  %v1717_v58 = vpop.f32.mrf.mxu3  ;;  %vm1075_vm2 = vweird.f32 %v5833_v22  ;;  %vm5941_vm3 = vmor %vm1064_vm15, %vm1065_vm0 }
 0x17d   : > { %v1629_v16 = vadd.f32 %v1628_v38, %v5673_v42  ;;  %v1453_v8 = vpop.f32.mrf.mxu0  ;;  %v1542_v23 = vpop.f32.mrf.mxu1  ;;  %v1718_v26 = vadd.f32 %v1717_v58, %v5683_v18  ;;  %v1716_v38 = vadd.f32 %v5753_v49, %v5683_v18  ;;  %v698_v58 = vsub.f32 %v634_v3, %v666_v51  ;;  %vm5945_vm4 = vmor %vm1074_vm1, %vm1075_vm2 }
 0x17e   : > { %v1543_v11 = vadd.f32 %v1542_v23, %v5647_v35  ;;  %v1059_v49 = vmul.f32 %v5827_v61, %v5774_v60  ;;  %v731_v51 = vmax.f32 %v699_v52, 0.0  ;;  %v5850_v23 = vadd.f32 %v5668_v39, %v1173_v46 }
 0x17f   : > { %v1804_v15 = vmax.f32 %v1629_v16, 0.0  ;;  %v1454_v16 = vadd.f32 %v1453_v8, %v5645_v37  ;;  %v1805_v17 = vmax.f32 %v1718_v26, 0.0  ;;  %v730_v50 = vmax.f32 %v698_v58, 0.0  ;;  %v3943_v26 = vld [vmem:[#allocation8 + $0x48] sm:$0xff] }
 0x180   : > { %1492 = vmatmul.bf16.gmra.mxu0 %v1226_v44  ;;  %1581 = vmatmul.bf16.gmra.mxu1 %v1226_v44  ;;  %v5854_v34 = vadd.f32 %v5668_v39, %v1174_v40  ;;  %v1807_v41 = vmax.f32 %v1543_v11, 0.0  ;;  %v1060_v1 = vmul.f32 %v5827_v61, %v1059_v49  ;;  %v470_v40 = vpop.xlane.xlu1 %469  ;;  %v5880_v11 = vmul.f32 %v4910_v43, %v468_v59 }
 0x181   : > { %1670 = vmatmul.bf16.gmra.mxu2 %v1226_v44  ;;  %1759 = vmatmul.bf16.gmra.mxu3 %v1226_v44  ;;  %v5837_v54 = vpack.c.bf16 %v1804_v15, %v1800_v20  ;;  %v1052_v44 = vsub.f32 1.5, %v1051_v6  ;;  %v1069_v20 = vmul.f32 %v5833_v22, %v5791_v57  ;;  %v1801_v6 = vmax.f32 %v1716_v38, 0.0 }
 0x182   : > { %v1806_v52 = vmax.f32 %v1454_v16, 0.0  ;;  %v5866_v38 = vadd.f32 1e-05, %v731_v51  ;;  %2335 = vmatpush.bf16.msrb.mxu1 %v3943_v26  ;;  %v759_v51 = vsub.f32 %v4981_v28, %v5616_v10  ;;  %v1047_v59 = vsel %vm5860_vm13, %v5744_v53, %v1043_v14 }
 0x183   : > { %7225 = vst [vmem:[#allocation38_spill] sm:$0xff] %v5837_v54  ;;  %v1053_v46 = vmul.f32 %v5747_v12, %v1052_v44  ;;  %v5868_v58 = vpack.c.bf16 %v1805_v17, %v1801_v6  ;;  %v1070_v16 = vmul.f32 %v5833_v22, %v1069_v20  ;;  %v758_v17 = vsub.f32 %v4964_v62, %v5599_v0 }
 0x184   : > { %v1631_v4 = vpop.f32.mrf.mxu2  ;;  %v1720_v45 = vpop.f32.mrf.mxu3  ;;  %v5895_v20 = vadd.f32 1e-05, %v730_v50  ;;  %v1227_v62 = vpack.c.bf16 %v5854_v34, %v5850_v23  ;;  %v1061_v0 = vmul.f32 0.5, %v1060_v1  ;;  %4298 = vrsqrt.f32 %v5866_v38 }
 0x185   : > { %v1455_v3 = vpop.f32.mrf.mxu0  ;;  %v1544_v15 = vpop.f32.mrf.mxu1  ;;  %v1632_v56 = vadd.f32 %v1631_v4, %v5673_v42  ;;  %v1057_v28 = vsel %vm5874_vm14, %v5747_v12, %v1053_v46  ;;  %v668_v14 = vmul.f32 %v5880_v11, %v5880_v11  ;;  %v1142_v46 = vmul.f32 %v1047_v59, %v758_v17 }
 0x186   : > { %v1456_v31 = vadd.f32 %v1455_v3, %v5645_v37  ;;  %v1545_v8 = vadd.f32 %v1544_v15, %v5647_v35  ;;  %v1721_v15 = vadd.f32 %v1720_v45, %v5683_v18  ;;  %v605_v50 = vpop.xlane.xlu0 %604  ;;  %v1143_v1 = vmul.f32 %v1057_v28, %v759_v51 }
 0x187   : > { %v1808_v26 = vmax.f32 %v1632_v56, 0.0  ;;  %4300 = vrsqrt.f32 %v5895_v20  ;;  %v637_v13 = vmul.f32 %v605_v50, %v4910_v43  ;;  %v1062_v56 = vsub.f32 1.5, %v1061_v0 }
 0x188   : > { %v1810_v27 = vmax.f32 %v1456_v31, 0.0  ;;  %v1811_v54 = vmax.f32 %v1545_v8, 0.0  ;;  %v603_v31 = vpop.xlane.xlu2 %602  ;;  %v1071_v8 = vmul.f32 0.5, %v1070_v16  ;;  %v1175_v50 = vmul.f32 %v5649_v33, %v1142_v46 }
 0x189   : > { %v636_v6 = vmul.f32 %v603_v31, %v4910_v43  ;;  %v1176_v0 = vmul.f32 %v5649_v33, %v1143_v1  ;;  %vm1094_vm5 = vweird.f32 %v5866_v38  ;;  %vm1084_vm7 = vweird.f32 %v5895_v20 }
 0x18a   : > { %v5882_v44 = vpack.c.bf16 %v1810_v27, %v1806_v52  ;;  %v5884_v49 = vpack.c.bf16 %v1811_v54, %v1807_v41  ;;  %v5898_v54 = vmul.f32 %v4910_v43, %v470_v40  ;;  %v1809_v52 = vmax.f32 %v1721_v15, 0.0  ;;  %v5919_v17 = vpop.eup %4298 }
 0x18b   : > { %v1072_v15 = vsub.f32 1.5, %v1071_v8  ;;  %v5955_v60 = vadd.f32 %v5668_v39, %v1176_v0  ;;  %vm1095_vm6 = vweird.f32 %v5919_v17 }
 0x18c   : > { %v1633_v27 = vpop.f32.mrf.mxu2  ;;  %v1722_v41 = vpop.f32.mrf.mxu3  ;;  %v669_v40 = vmul.f32 %v5898_v54, %v5898_v54  ;;  %vm6011_vm9 = vmor %vm1094_vm5, %vm1095_vm6 }
 0x18d   : > { %v1634_v10 = vadd.f32 %v1633_v27, %v5673_v42  ;;  %v1723_v4 = vadd.f32 %v1722_v41, %v5683_v18  ;;  %v1458_v53 = vpop.f32.mrf.mxu0  ;;  %v1547_v45 = vpop.f32.mrf.mxu1  ;;  %v700_v27 = vsub.f32 %v636_v6, %v668_v14  ;;  %v1063_v14 = vmul.f32 %v5827_v61, %v1062_v56 }
 0x18e   : > { %v1459_v51 = vadd.f32 %v1458_v53, %v5645_v37  ;;  %v1548_v59 = vadd.f32 %v1547_v45, %v5647_v35  ;;  %v5927_v8 = vpop.eup %4300  ;;  %v1073_v6 = vmul.f32 %v5833_v22, %v1072_v15  ;;  %v5952_v15 = vadd.f32 %v5668_v39, %v1175_v50 }
 0x18f   : > { %v1812_v3 = vmax.f32 %v1634_v10, 0.0  ;;  %v1813_v12 = vmax.f32 %v1723_v4, 0.0  ;;  %v1067_v50 = vsel %vm5941_vm3, %v5827_v61, %v1063_v14  ;;  %vm1085_vm8 = vweird.f32 %v5927_v8 }
 0x190   : > { %1497 = vmatmul.bf16.gmra.mxu0 %v1227_v62  ;;  %1586 = vmatmul.bf16.gmra.mxu1 %v1227_v62  ;;  %v1077_v0 = vsel %vm5945_vm4, %v5833_v22, %v1073_v6  ;;  %v1228_v14 = vpack.c.bf16 %v5955_v60, %v5952_v15  ;;  %vm6027_vm10 = vmor %vm1084_vm7, %vm1085_vm8 }
 0x191   : > { %1675 = vmatmul.bf16.gmra.mxu2 %v1227_v62  ;;  %1764 = vmatmul.bf16.gmra.mxu3 %v1227_v62  ;;  %v5915_v16 = vpack.c.bf16 %v1812_v3, %v1808_v26  ;;  %v5917_v31 = vpack.c.bf16 %v1813_v12, %v1809_v52  ;;  %v701_v62 = vsub.f32 %v637_v13, %v669_v40  ;;  %v732_v52 = vmax.f32 %v700_v27, 0.0  ;;  %v3950_v40 = vld [vmem:[#allocation8 + $0x80] sm:$0xff] }
 0x192   : > { %v1089_v26 = vmul.f32 %v5919_v17, %v5866_v38  ;;  %v1814_v3 = vmax.f32 %v1459_v51, 0.0  ;;  %v1815_v12 = vmax.f32 %v1548_v59, 0.0  ;;  %v1079_v13 = vmul.f32 %v5927_v8, %v5895_v20  ;;  %2425 = vmatpush.bf16.msrb.mxu2 %v3950_v40 }
 0x193   : > { %v733_v56 = vmax.f32 %v701_v62, 0.0  ;;  %v760_v59 = vsub.f32 %v5101_v29, %v5678_v2 }
 0x194   : > { %v1636_v41 = vpop.f32.mrf.mxu2  ;;  %v1725_v28 = vpop.f32.mrf.mxu3 }
 0x195   : > { %v1460_v10 = vpop.f32.mrf.mxu0  ;;  %v1549_v4 = vpop.f32.mrf.mxu1  ;;  %v1726_v62 = vadd.f32 %v1725_v28, %v5683_v18 }
 0x196   : > { %v1461_v53 = vadd.f32 %v1460_v10, %v5645_v37  ;;  %v1550_v45 = vadd.f32 %v1549_v4, %v5647_v35  ;;  %v761_v10 = vsub.f32 %v5103_v32, %v5701_v5  ;;  %v1637_v4 = vadd.f32 %v1636_v41, %v5673_v42 }
 0x197   : > { %v1080_v32 = vmul.f32 %v5927_v8, %v1079_v13  ;;  %v5977_v5 = vadd.f32 1e-05, %v733_v56  ;;  %v1817_v6 = vmax.f32 %v1726_v62, 0.0  ;;  %v3934_v13 = vld [vmem:[#allocation8] sm:$0xff] }
 0x198   : > { %v1818_v46 = vmax.f32 %v1461_v53, 0.0  ;;  %v1819_v1 = vmax.f32 %v1550_v45, 0.0  ;;  %v1090_v53 = vmul.f32 %v5919_v17, %v1089_v26  ;;  %v5974_v45 = vadd.f32 1e-05, %v732_v52  ;;  %v3958_v56 = vld [vmem:[#allocation8 + $0xc0] sm:$0xff]  ;;  %2247 = vmatpush.bf16.msrb.mxu0 %v3934_v13 }
 0x199   : > { %v1816_v22 = vmax.f32 %v1637_v4, 0.0  ;;  %2514 = vmatpush.bf16.msrb.mxu3 %v3958_v56  ;;  %vm1114_vm13 = vweird.f32 %v5977_v5 }
 0x19a   : > { %v5957_v27 = vpack.c.bf16 %v1818_v46, %v1814_v3  ;;  %v5959_v51 = vpack.c.bf16 %v1819_v1, %v1815_v12  ;;  %v1144_v3 = vmul.f32 %v1067_v50, %v760_v59  ;;  %v1145_v12 = vmul.f32 %v1077_v0, %v761_v10 }
 0x19b   : > { %v1091_v46 = vmul.f32 0.5, %v1090_v53  ;;  %4302 = vrsqrt.f32 %v5974_v45  ;;  %v1081_v1 = vmul.f32 0.5, %v1080_v32  ;;  %vm1104_vm11 = vweird.f32 %v5974_v45 }
 0x19c   : > { %v1638_v29 = vpop.f32.mrf.mxu2  ;;  %v1727_v2 = vpop.f32.mrf.mxu3  ;;  %4304 = vrsqrt.f32 %v5977_v5 }
 0x19d   : > { %v1639_v41 = vadd.f32 %v1638_v29, %v5673_v42  ;;  %v1728_v28 = vadd.f32 %v1727_v2, %v5683_v18  ;;  %v1463_v57 = vpop.f32.mrf.mxu0  ;;  %v1552_v61 = vpop.f32.mrf.mxu1  ;;  %v1092_v0 = vsub.f32 1.5, %v1091_v46  ;;  %v1082_v53 = vsub.f32 1.5, %v1081_v1 }
 0x19e   : > { %v1464_v59 = vadd.f32 %v1463_v57, %v5645_v37  ;;  %v1553_v10 = vadd.f32 %v1552_v61, %v5647_v35  ;;  %v3942_v61 = vld [vmem:[#allocation8 + $0x40] sm:$0xff] }
 0x19f   : > { %v1820_v26 = vmax.f32 %v1639_v41, 0.0  ;;  %v1821_v52 = vmax.f32 %v1728_v28, 0.0  ;;  %v1177_v41 = vmul.f32 %v5649_v33, %v1144_v3  ;;  %v1178_v28 = vmul.f32 %v5649_v33, %v1145_v12  ;;  %2336 = vmatpush.bf16.msrb.mxu1 %v3942_v61 }
 0x1a0   : > { %1502 = vmatmul.bf16.gmra.mxu0 %v1228_v14  ;;  %1591 = vmatmul.bf16.gmra.mxu1 %v1228_v14  ;;  %v1093_v46 = vmul.f32 %v5919_v17, %v1092_v0  ;;  %v1083_v1 = vmul.f32 %v5927_v8, %v1082_v53 }
 0x1a1   : > { %1680 = vmatmul.bf16.gmra.mxu2 %v1228_v14  ;;  %1769 = vmatmul.bf16.gmra.mxu3 %v1228_v14  ;;  %v5985_v29 = vpack.c.bf16 %v1820_v26, %v1816_v22  ;;  %v5987_v4 = vpack.c.bf16 %v1821_v52, %v1817_v6  ;;  %v5993_v14 = vpop.eup %4302  ;;  %v1822_v26 = vmax.f32 %v1464_v59, 0.0  ;;  %v1823_v52 = vmax.f32 %v1553_v10, 0.0 }
 0x1a2   : > { %v5997_v57 = vpop.eup %4304  ;;  %v6006_v40 = vadd.f32 %v5668_v39, %v1177_v41  ;;  %v6009_v38 = vadd.f32 %v5668_v39, %v1178_v28  ;;  %v1099_v56 = vmul.f32 %v5993_v14, %v5974_v45  ;;  %v763_v41 = vsub.f32 %v5175_v21, %v5777_v36 }
 0x1a3   : > { %v1109_v59 = vmul.f32 %v5997_v57, %v5977_v5  ;;  %v1097_v20 = vsel %vm6011_vm9, %v5919_v17, %v1093_v46  ;;  %vm1105_vm12 = vweird.f32 %v5993_v14  ;;  %vm1115_vm14 = vweird.f32 %v5997_v57 }
 0x1a4   : > { %v1641_v62 = vpop.f32.mrf.mxu2  ;;  %v1730_v50 = vpop.f32.mrf.mxu3  ;;  %v1100_v21 = vmul.f32 %v5993_v14, %v1099_v56  ;;  %v1147_v46 = vmul.f32 %v1097_v20, %v763_v41  ;;  %vm6070_vm15 = vmor %vm1104_vm11, %vm1105_vm12 }
 0x1a5   : > { %v1465_v2 = vpop.f32.mrf.mxu0  ;;  %v1554_v32 = vpop.f32.mrf.mxu1  ;;  %v1110_v36 = vmul.f32 %v5997_v57, %v1109_v59  ;;  %vm6079_vm0 = vmor %vm1114_vm13, %vm1115_vm14 }
 0x1a6   : > { %v1466_v22 = vadd.f32 %v1465_v2, %v5645_v37  ;;  %v1555_v6 = vadd.f32 %v1554_v32, %v5647_v35  ;;  %v1642_v2 = vadd.f32 %v1641_v62, %v5673_v42  ;;  %v1731_v32 = vadd.f32 %v1730_v50, %v5683_v18 }
 0x1a7   : > { %v1087_v50 = vsel %vm6027_vm10, %v5927_v8, %v1083_v1  ;;  %v1101_v1 = vmul.f32 0.5, %v1100_v21  ;;  %v1111_v56 = vmul.f32 0.5, %v1110_v36 }
 0x1a8   : > { %v1826_v3 = vmax.f32 %v1466_v22, 0.0  ;;  %v1827_v12 = vmax.f32 %v1555_v6, 0.0  ;;  %v762_v6 = vsub.f32 %v5139_v25, %v5811_v7  ;;  %v1229_v25 = vpack.c.bf16 %v6009_v38, %v6006_v40 }
 0x1a9   : > { %v1824_v7 = vmax.f32 %v1642_v2, 0.0  ;;  %v1102_v20 = vsub.f32 1.5, %v1101_v1 }
 0x1aa   : > { %v6019_v10 = vpack.c.bf16 %v1826_v3, %v1822_v26  ;;  %v6021_v0 = vpack.c.bf16 %v1827_v12, %v1823_v52  ;;  %v1825_v3 = vmax.f32 %v1731_v32, 0.0  ;;  %v1146_v13 = vmul.f32 %v1087_v50, %v762_v6 }
 0x1ab   : > { %v1180_v6 = vmul.f32 %v5649_v33, %v1147_v46 }
 0x1ac   : > { %v1643_v28 = vpop.f32.mrf.mxu2  ;;  %v1732_v22 = vpop.f32.mrf.mxu3  ;;  %v1179_v41 = vmul.f32 %v5649_v33, %v1146_v13 }
 0x1ad   : > { %v1644_v61 = vadd.f32 %v1643_v28, %v5673_v42  ;;  %v1733_v26 = vadd.f32 %v1732_v22, %v5683_v18  ;;  %v1468_v52 = vpop.f32.mrf.mxu0  ;;  %v1557_v62 = vpop.f32.mrf.mxu1 }
 0x1ae   : > { %v1469_v59 = vadd.f32 %v1468_v52, %v5645_v37  ;;  %v1558_v53 = vadd.f32 %v1557_v62, %v5647_v35 }
 0x1af   : > { %v1828_v17 = vmax.f32 %v1644_v61, 0.0  ;;  %v1829_v12 = vmax.f32 %v1733_v26, 0.0  ;;  %v1112_v26 = vsub.f32 1.5, %v1111_v56 }
 0x1b0   : > { %1507 = vmatmul.bf16.gmra.mxu0 %v1229_v25  ;;  %1596 = vmatmul.bf16.gmra.mxu1 %v1229_v25  ;;  %v1830_v52 = vmax.f32 %v1469_v59, 0.0  ;;  %v1831_v62 = vmax.f32 %v1558_v53, 0.0 }
 0x1b1   : > { %1685 = vmatmul.bf16.gmra.mxu2 %v1229_v25  ;;  %1774 = vmatmul.bf16.gmra.mxu3 %v1229_v25  ;;  %v6049_v28 = vpack.c.bf16 %v1828_v17, %v1824_v7  ;;  %v6051_v8 = vpack.c.bf16 %v1829_v12, %v1825_v3  ;;  %v6064_v7 = vadd.f32 %v5668_v39, %v1179_v41 }
 0x1b2   : > { %v6067_v3 = vadd.f32 %v5668_v39, %v1180_v6  ;;  %v1103_v17 = vmul.f32 %v5993_v14, %v1102_v20  ;;  %v1113_v5 = vmul.f32 %v5997_v57, %v1112_v26  ;;  %v765_v26 = vsub.f32 %v5261_v24, %v5898_v54 }
 0x1b4   : > { %v1646_v2 = vpop.f32.mrf.mxu2  ;;  %v1735_v32 = vpop.f32.mrf.mxu3 }
 0x1b5   : > { %v1470_v22 = vpop.f32.mrf.mxu0  ;;  %v1559_v61 = vpop.f32.mrf.mxu1  ;;  %v1647_v1 = vadd.f32 %v1646_v2, %v5673_v42  ;;  %v1736_v56 = vadd.f32 %v1735_v32, %v5683_v18  ;;  %v1107_v2 = vsel %vm6070_vm15, %v5993_v14, %v1103_v17  ;;  %v1117_v32 = vsel %vm6079_vm0, %v5997_v57, %v1113_v5 }
 0x1b6   : > { %v1471_v50 = vadd.f32 %v1470_v22, %v5645_v37  ;;  %v1560_v25 = vadd.f32 %v1559_v61, %v5647_v35  ;;  %v764_v22 = vsub.f32 %v5251_v63, %v5880_v11  ;;  %v1230_v63 = vpack.c.bf16 %v6067_v3, %v6064_v7 }
 0x1b7   : > { %v1832_v11 = vmax.f32 %v1647_v1, 0.0 }
 0x1b8   : > { %v1834_v21 = vmax.f32 %v1471_v50, 0.0  ;;  %v1835_v36 = vmax.f32 %v1560_v25, 0.0  ;;  %v1833_v50 = vmax.f32 %v1736_v56, 0.0  ;;  %v1148_v14 = vmul.f32 %v1107_v2, %v764_v22 }
 0x1ba   : > { %v6075_v12 = vpack.c.bf16 %v1834_v21, %v1830_v52  ;;  %v6077_v46 = vpack.c.bf16 %v1835_v36, %v1831_v62  ;;  %v1149_v62 = vmul.f32 %v1117_v32, %v765_v26  ;;  %v1181_v56 = vmul.f32 %v5649_v33, %v1148_v14 }
 0x1bc   : > { %v1648_v59 = vpop.f32.mrf.mxu2  ;;  %v1737_v53 = vpop.f32.mrf.mxu3 }
 0x1bd   : > { %v1649_v61 = vadd.f32 %v1648_v59, %v5673_v42  ;;  %v1738_v41 = vadd.f32 %v1737_v53, %v5683_v18  ;;  %v1473_v6 = vpop.f32.mrf.mxu0  ;;  %v1562_v20 = vpop.f32.mrf.mxu1  ;;  %v1182_v59 = vmul.f32 %v5649_v33, %v1149_v62 }
 0x1be   : > { %v1474_v21 = vadd.f32 %v1473_v6, %v5645_v37  ;;  %v1563_v57 = vadd.f32 %v1562_v20, %v5647_v35  ;;  %v6110_v6 = vadd.f32 %v5668_v39, %v1181_v56 }
 0x1bf   : > { %v1836_v25 = vmax.f32 %v1649_v61, 0.0  ;;  %v1837_v52 = vmax.f32 %v1738_v41, 0.0  ;;  %v6113_v20 = vadd.f32 %v5668_v39, %v1182_v59 }
 0x1c0   : > { %1512 = vmatmul.bf16.gmra.mxu0 %v1230_v63  ;;  %1601 = vmatmul.bf16.gmra.mxu1 %v1230_v63  ;;  %v1838_v53 = vmax.f32 %v1474_v21, 0.0  ;;  %v1839_v61 = vmax.f32 %v1563_v57, 0.0 }
 0x1c1   : > { %1690 = vmatmul.bf16.gmra.mxu2 %v1230_v63  ;;  %1779 = vmatmul.bf16.gmra.mxu3 %v1230_v63  ;;  %v6099_v24 = vpack.c.bf16 %v1836_v25, %v1832_v11  ;;  %v6101_v54 = vpack.c.bf16 %v1837_v52, %v1833_v50  ;;  %v1231_v39 = vpack.c.bf16 %v6113_v20, %v6110_v6 }
 0x1c4   : > { %v1651_v36 = vpop.f32.mrf.mxu2  ;;  %v1740_v17 = vpop.f32.mrf.mxu3 }
 0x1c5   : > { %v1475_v45 = vpop.f32.mrf.mxu0  ;;  %v1564_v5 = vpop.f32.mrf.mxu1  ;;  %v1652_v32 = vadd.f32 %v1651_v36, %v5673_v42  ;;  %v1741_v63 = vadd.f32 %v1740_v17, %v5683_v18 }
 0x1c6   : > { %v1476_v13 = vadd.f32 %v1475_v45, %v5645_v37  ;;  %v1565_v1 = vadd.f32 %v1564_v5, %v5647_v35 }
 0x1c7   : > { %v1840_v62 = vmax.f32 %v1652_v32, 0.0  ;;  %v1841_v21 = vmax.f32 %v1741_v63, 0.0 }
 0x1c8   : > { %v1842_v22 = vmax.f32 %v1476_v13, 0.0  ;;  %v1843_v41 = vmax.f32 %v1565_v1, 0.0 }
 0x1ca   : > { %v6115_v26 = vpack.c.bf16 %v1842_v22, %v1838_v53  ;;  %v6117_v2 = vpack.c.bf16 %v1843_v41, %v1839_v61 }
 0x1cc   : > { %v1653_v11 = vpop.f32.mrf.mxu2  ;;  %v1742_v33 = vpop.f32.mrf.mxu3 }
 0x1cd   : > { %v1654_v50 = vadd.f32 %v1653_v11, %v5673_v42  ;;  %v1743_v25 = vadd.f32 %v1742_v33, %v5683_v18  ;;  %v1478_v52 = vpop.f32.mrf.mxu0  ;;  %v1567_v14 = vpop.f32.mrf.mxu1 }
 0x1ce   : > { %v1479_v5 = vadd.f32 %v1478_v52, %v5645_v37  ;;  %v1568_v13 = vadd.f32 %v1567_v14, %v5647_v35 }
 0x1cf   : > { %v1844_v57 = vmax.f32 %v1654_v50, 0.0  ;;  %v1845_v45 = vmax.f32 %v1743_v25, 0.0 }
 0x1d0   : > { %1517 = vmatmul.bf16.gmra.mxu0 %v1231_v39  ;;  %1606 = vmatmul.bf16.gmra.mxu1 %v1231_v39  ;;  %v1846_v41 = vmax.f32 %v1479_v5, 0.0  ;;  %v1847_v32 = vmax.f32 %v1568_v13, 0.0 }
 0x1d1   : > { %1695 = vmatmul.bf16.gmra.mxu2 %v1231_v39  ;;  %1784 = vmatmul.bf16.gmra.mxu3 %v1231_v39  ;;  %v6125_v36 = vpack.c.bf16 %v1844_v57, %v1840_v62  ;;  %v6127_v17 = vpack.c.bf16 %v1845_v45, %v1841_v21 }
 0x1d4   : > { %v1656_v1 = vpop.f32.mrf.mxu2  ;;  %v1745_v56 = vpop.f32.mrf.mxu3 }
 0x1d5   : > { %v1480_v59 = vpop.f32.mrf.mxu0  ;;  %v1569_v53 = vpop.f32.mrf.mxu1  ;;  %v1657_v25 = vadd.f32 %v1656_v1, %v5673_v42  ;;  %v1746_v52 = vadd.f32 %v1745_v56, %v5683_v18 }
 0x1d6   : > { %v1481_v61 = vadd.f32 %v1480_v59, %v5645_v37  ;;  %v1570_v22 = vadd.f32 %v1569_v53, %v5647_v35 }
 0x1d7   : > { %v1848_v5 = vmax.f32 %v1657_v25, 0.0  ;;  %v1849_v13 = vmax.f32 %v1746_v52, 0.0 }
 0x1d8   : > { %v1850_v63 = vmax.f32 %v1481_v61, 0.0  ;;  %v1851_v11 = vmax.f32 %v1570_v22, 0.0 }
 0x1da   : > { %v6133_v33 = vpack.c.bf16 %v1850_v63, %v1846_v41  ;;  %v6135_v50 = vpack.c.bf16 %v1851_v11, %v1847_v32 }
 0x1dc   : > { %v1658_v14 = vpop.f32.mrf.mxu2  ;;  %v1747_v39 = vpop.f32.mrf.mxu3 }
 0x1dd   : > { %v1659_v62 = vadd.f32 %v1658_v14, %v5673_v42  ;;  %v1748_v21 = vadd.f32 %v1747_v39, %v5683_v18  ;;  %v1483_v57 = vpop.f32.mrf.mxu0  ;;  %v1572_v45 = vpop.f32.mrf.mxu1 }
 0x1de   : > { %v1484_v61 = vadd.f32 %v1483_v57, %v5645_v37  ;;  %v1573_v22 = vadd.f32 %v1572_v45, %v5647_v35 }
 0x1df   : > { %v1852_v59 = vmax.f32 %v1659_v62, 0.0  ;;  %v1853_v53 = vmax.f32 %v1748_v21, 0.0 }
 0x1e0   : > { %2248 = vmatmul.bf16.vlgmr.msrb.gmra.mxu0 %v5703_v19  ;;  %2337 = vmatmul.bf16.vlgmr.msrb.gmra.mxu1 %v5705_v48  ;;  %v1854_v25 = vmax.f32 %v1484_v61, 0.0 }
 0x1e1   : > { %2426 = vmatmul.bf16.vlgmr.msrb.gmra.mxu2 %v5740_v9  ;;  %2515 = vmatmul.bf16.vlgmr.msrb.gmra.mxu3 %v5742_v30  ;;  %v6145_v1 = vpack.c.bf16 %v1852_v59, %v1848_v5  ;;  %v6147_v56 = vpack.c.bf16 %v1853_v53, %v1849_v13  ;;  %v1855_v9 = vmax.f32 %v1573_v22, 0.0 }
 0x1e4   : > { %v1661_v41 = vpop.f32.mrf.mxu2  ;;  %v1750_v32 = vpop.f32.mrf.mxu3 }
 0x1e5   : > { %v1485_v63 = vpop.f32.mrf.mxu0  ;;  %v1574_v11 = vpop.f32.mrf.mxu1  ;;  %v1662_v62 = vadd.f32 %v1661_v41, %v5673_v42  ;;  %v1751_v21 = vadd.f32 %v1750_v32, %v5683_v18 }
 0x1e6   : > { %v1486_v19 = vadd.f32 %v1485_v63, %v5645_v37  ;;  %v1575_v48 = vadd.f32 %v1574_v11, %v5647_v35 }
 0x1e7   : > { %v1856_v61 = vmax.f32 %v1662_v62, 0.0  ;;  %v1857_v22 = vmax.f32 %v1751_v21, 0.0 }
 0x1e8   : > { %v1858_v52 = vmax.f32 %v1486_v19, 0.0  ;;  %v1859_v30 = vmax.f32 %v1575_v48, 0.0  ;;  %v7242_v19 = vld [vmem:[#allocation38_spill] sm:$0xff] }
 0x1ea   : > { %v6153_v14 = vpack.c.bf16 %v1858_v52, %v1854_v25  ;;  %v6155_v39 = vpack.c.bf16 %v1859_v30, %v1855_v9 }
 0x1ec   : > { %v1663_v57 = vpop.f32.mrf.mxu2  ;;  %v1752_v45 = vpop.f32.mrf.mxu3 }
 0x1ed   : > { %v1664_v5 = vadd.f32 %v1663_v57, %v5673_v42  ;;  %v1753_v13 = vadd.f32 %v1752_v45, %v5683_v18  ;;  %v1488_v59 = vpop.f32.mrf.mxu0  ;;  %v1577_v53 = vpop.f32.mrf.mxu1 }
 0x1ee   : > { %v1489_v48 = vadd.f32 %v1488_v59, %v5645_v37  ;;  %v1578_v25 = vadd.f32 %v1577_v53, %v5647_v35 }
 0x1ef   : > { %v1860_v63 = vmax.f32 %v1664_v5, 0.0  ;;  %v1861_v11 = vmax.f32 %v1753_v13, 0.0 }
 0x1f0   : > { %2253 = vmatmul.bf16.gmra.mxu0 %v5799_v47  ;;  %2342 = vmatmul.bf16.gmra.mxu1 %v5801_v55  ;;  %v1862_v21 = vmax.f32 %v1489_v48, 0.0  ;;  %v1863_v57 = vmax.f32 %v1578_v25, 0.0 }
 0x1f1   : > { %2431 = vmatmul.bf16.gmra.mxu2 %v7242_v19  ;;  %2520 = vmatmul.bf16.gmra.mxu3 %v5868_v58  ;;  %v6165_v41 = vpack.c.bf16 %v1860_v63, %v1856_v61  ;;  %v6167_v32 = vpack.c.bf16 %v1861_v11, %v1857_v22 }
 0x1f4   : > { %v1666_v9 = vpop.f32.mrf.mxu2  ;;  %v1755_v52 = vpop.f32.mrf.mxu3 }
 0x1f5   : > { %v1490_v30 = vpop.f32.mrf.mxu0  ;;  %v1579_v62 = vpop.f32.mrf.mxu1  ;;  %v1667_v59 = vadd.f32 %v1666_v9, %v5673_v42  ;;  %v1756_v53 = vadd.f32 %v1755_v52, %v5683_v18 }
 0x1f6   : > { %v1491_v47 = vadd.f32 %v1490_v30, %v5645_v37  ;;  %v1580_v55 = vadd.f32 %v1579_v62, %v5647_v35 }
 0x1f7   : > { %v1864_v48 = vmax.f32 %v1667_v59, 0.0  ;;  %v1865_v25 = vmax.f32 %v1756_v53, 0.0 }
 0x1f8   : > { %v1866_v45 = vmax.f32 %v1491_v47, 0.0  ;;  %v1867_v58 = vmax.f32 %v1580_v55, 0.0 }
 0x1fa   : > { %v6173_v5 = vpack.c.bf16 %v1866_v45, %v1862_v21  ;;  %v6175_v13 = vpack.c.bf16 %v1867_v58, %v1863_v57 }
 0x1fc   : > { %v1668_v61 = vpop.f32.mrf.mxu2  ;;  %v1757_v22 = vpop.f32.mrf.mxu3 }
 0x1fd   : > { %v1669_v63 = vadd.f32 %v1668_v61, %v5673_v42  ;;  %v1758_v11 = vadd.f32 %v1757_v22, %v5683_v18  ;;  %v1493_v19 = vpop.f32.mrf.mxu0  ;;  %v1582_v30 = vpop.f32.mrf.mxu1 }
 0x1fe   : > { %v1494_v55 = vadd.f32 %v1493_v19, %v5645_v37  ;;  %v1583_v21 = vadd.f32 %v1582_v30, %v5647_v35 }
 0x1ff   : > { %v1868_v62 = vmax.f32 %v1669_v63, 0.0  ;;  %v1869_v47 = vmax.f32 %v1758_v11, 0.0 }
 0x200   : > { %2258 = vmatmul.bf16.gmra.mxu0 %v5882_v44  ;;  %2347 = vmatmul.bf16.gmra.mxu1 %v5884_v49  ;;  %v1870_v53 = vmax.f32 %v1494_v55, 0.0 }
 0x201   : > { %2436 = vmatmul.bf16.gmra.mxu2 %v5915_v16  ;;  %2525 = vmatmul.bf16.gmra.mxu3 %v5917_v31  ;;  %v6185_v9 = vpack.c.bf16 %v1868_v62, %v1864_v48  ;;  %v6187_v52 = vpack.c.bf16 %v1869_v47, %v1865_v25  ;;  %v1871_v16 = vmax.f32 %v1583_v21, 0.0 }
 0x204   : > { %v1671_v57 = vpop.f32.mrf.mxu2  ;;  %v1760_v45 = vpop.f32.mrf.mxu3 }
 0x205   : > { %v1495_v58 = vpop.f32.mrf.mxu0  ;;  %v1584_v59 = vpop.f32.mrf.mxu1  ;;  %v1672_v11 = vadd.f32 %v1671_v57, %v5673_v42  ;;  %v1761_v19 = vadd.f32 %v1760_v45, %v5683_v18 }
 0x206   : > { %v1496_v44 = vadd.f32 %v1495_v58, %v5645_v37  ;;  %v1585_v49 = vadd.f32 %v1584_v59, %v5647_v35 }
 0x207   : > { %v1872_v55 = vmax.f32 %v1672_v11, 0.0  ;;  %v1873_v21 = vmax.f32 %v1761_v19, 0.0 }
 0x208   : > { %v1874_v61 = vmax.f32 %v1496_v44, 0.0  ;;  %v1875_v31 = vmax.f32 %v1585_v49, 0.0 }
 0x20a   : > { %v6193_v22 = vpack.c.bf16 %v1874_v61, %v1870_v53  ;;  %v6195_v63 = vpack.c.bf16 %v1875_v31, %v1871_v16 }
 0x20c   : > { %v1673_v30 = vpop.f32.mrf.mxu2  ;;  %v1762_v48 = vpop.f32.mrf.mxu3 }
 0x20d   : > { %v1674_v25 = vadd.f32 %v1673_v30, %v5673_v42  ;;  %v1763_v62 = vadd.f32 %v1762_v48, %v5683_v18  ;;  %v1498_v47 = vpop.f32.mrf.mxu0  ;;  %v1587_v58 = vpop.f32.mrf.mxu1 }
 0x20e   : > { %v1499_v49 = vadd.f32 %v1498_v47, %v5645_v37  ;;  %v1588_v53 = vadd.f32 %v1587_v58, %v5647_v35 }
 0x20f   : > { %v1876_v59 = vmax.f32 %v1674_v25, 0.0  ;;  %v1877_v44 = vmax.f32 %v1763_v62, 0.0 }
 0x210   : > { %2263 = vmatmul.bf16.gmra.mxu0 %v5957_v27  ;;  %2352 = vmatmul.bf16.gmra.mxu1 %v5959_v51  ;;  %v1878_v19 = vmax.f32 %v1499_v49, 0.0 }
 0x211   : > { %2441 = vmatmul.bf16.gmra.mxu2 %v5985_v29  ;;  %2530 = vmatmul.bf16.gmra.mxu3 %v5987_v4  ;;  %v6205_v57 = vpack.c.bf16 %v1876_v59, %v1872_v55  ;;  %v6207_v45 = vpack.c.bf16 %v1877_v44, %v1873_v21  ;;  %v1879_v29 = vmax.f32 %v1588_v53, 0.0 }
 0x214   : > { %v1676_v16 = vpop.f32.mrf.mxu2  ;;  %v1765_v61 = vpop.f32.mrf.mxu3 }
 0x215   : > { %v1500_v31 = vpop.f32.mrf.mxu0  ;;  %v1589_v11 = vpop.f32.mrf.mxu1  ;;  %v1677_v62 = vadd.f32 %v1676_v16, %v5673_v42  ;;  %v1766_v47 = vadd.f32 %v1765_v61, %v5683_v18 }
 0x216   : > { %v1501_v27 = vadd.f32 %v1500_v31, %v5645_v37  ;;  %v1590_v51 = vadd.f32 %v1589_v11, %v5647_v35 }
 0x217   : > { %v1880_v49 = vmax.f32 %v1677_v62, 0.0  ;;  %v1881_v53 = vmax.f32 %v1766_v47, 0.0 }
 0x218   : > { %v1882_v30 = vmax.f32 %v1501_v27, 0.0  ;;  %v1883_v4 = vmax.f32 %v1590_v51, 0.0 }
 0x21a   : > { %v6213_v48 = vpack.c.bf16 %v1882_v30, %v1878_v19  ;;  %v6215_v25 = vpack.c.bf16 %v1883_v4, %v1879_v29 }
 0x21c   : > { %v1678_v58 = vpop.f32.mrf.mxu2  ;;  %v1767_v55 = vpop.f32.mrf.mxu3 }
 0x21d   : > { %v1679_v21 = vadd.f32 %v1678_v58, %v5673_v42  ;;  %v1768_v59 = vadd.f32 %v1767_v55, %v5683_v18  ;;  %v1503_v44 = vpop.f32.mrf.mxu0  ;;  %v1592_v31 = vpop.f32.mrf.mxu1 }
 0x21e   : > { %v1504_v51 = vadd.f32 %v1503_v44, %v5645_v37  ;;  %v1593_v19 = vadd.f32 %v1592_v31, %v5647_v35 }
 0x21f   : > { %v1884_v11 = vmax.f32 %v1679_v21, 0.0  ;;  %v1885_v27 = vmax.f32 %v1768_v59, 0.0 }
 0x220   : > { %2268 = vmatmul.bf16.gmra.mxu0 %v6019_v10  ;;  %2357 = vmatmul.bf16.gmra.mxu1 %v6021_v0  ;;  %v1886_v47 = vmax.f32 %v1504_v51, 0.0 }
 0x221   : > { %2446 = vmatmul.bf16.gmra.mxu2 %v6049_v28  ;;  %2535 = vmatmul.bf16.gmra.mxu3 %v6051_v8  ;;  %v6225_v16 = vpack.c.bf16 %v1884_v11, %v1880_v49  ;;  %v6227_v61 = vpack.c.bf16 %v1885_v27, %v1881_v53  ;;  %v1887_v28 = vmax.f32 %v1593_v19, 0.0 }
 0x224   : > { %v1681_v29 = vpop.f32.mrf.mxu2  ;;  %v1770_v30 = vpop.f32.mrf.mxu3 }
 0x225   : > { %v1505_v4 = vpop.f32.mrf.mxu0  ;;  %v1594_v62 = vpop.f32.mrf.mxu1  ;;  %v1682_v59 = vadd.f32 %v1681_v29, %v5673_v42  ;;  %v1771_v44 = vadd.f32 %v1770_v30, %v5683_v18 }
 0x226   : > { %v1506_v10 = vadd.f32 %v1505_v4, %v5645_v37  ;;  %v1595_v0 = vadd.f32 %v1594_v62, %v5647_v35 }
 0x227   : > { %v1888_v51 = vmax.f32 %v1682_v59, 0.0  ;;  %v1889_v19 = vmax.f32 %v1771_v44, 0.0 }
 0x228   : > { %v1890_v58 = vmax.f32 %v1506_v10, 0.0  ;;  %v1891_v8 = vmax.f32 %v1595_v0, 0.0 }
 0x22a   : > { %v6233_v55 = vpack.c.bf16 %v1890_v58, %v1886_v47  ;;  %v6235_v21 = vpack.c.bf16 %v1891_v8, %v1887_v28 }
 0x22c   : > { %v1683_v31 = vpop.f32.mrf.mxu2  ;;  %v1772_v49 = vpop.f32.mrf.mxu3 }
 0x22d   : > { %v1684_v53 = vadd.f32 %v1683_v31, %v5673_v42  ;;  %v1773_v11 = vadd.f32 %v1772_v49, %v5683_v18  ;;  %v1508_v27 = vpop.f32.mrf.mxu0  ;;  %v1597_v4 = vpop.f32.mrf.mxu1 }
 0x22e   : > { %v1509_v0 = vadd.f32 %v1508_v27, %v5645_v37  ;;  %v1598_v47 = vadd.f32 %v1597_v4, %v5647_v35 }
 0x22f   : > { %v1892_v62 = vmax.f32 %v1684_v53, 0.0  ;;  %v1893_v10 = vmax.f32 %v1773_v11, 0.0 }
 0x230   : > { %2273 = vmatmul.bf16.gmra.mxu0 %v6075_v12  ;;  %2362 = vmatmul.bf16.gmra.mxu1 %v6077_v46  ;;  %v1894_v44 = vmax.f32 %v1509_v0, 0.0 }
 0x231   : > { %2451 = vmatmul.bf16.gmra.mxu2 %v6099_v24  ;;  %2540 = vmatmul.bf16.gmra.mxu3 %v6101_v54  ;;  %v6245_v29 = vpack.c.bf16 %v1892_v62, %v1888_v51  ;;  %v6247_v30 = vpack.c.bf16 %v1893_v10, %v1889_v19  ;;  %v1895_v24 = vmax.f32 %v1598_v47, 0.0 }
 0x234   : > { %v1686_v28 = vpop.f32.mrf.mxu2  ;;  %v1775_v58 = vpop.f32.mrf.mxu3 }
 0x235   : > { %v1510_v8 = vpop.f32.mrf.mxu0  ;;  %v1599_v59 = vpop.f32.mrf.mxu1  ;;  %v1687_v11 = vadd.f32 %v1686_v28, %v5673_v42  ;;  %v1776_v27 = vadd.f32 %v1775_v58, %v5683_v18 }
 0x236   : > { %v1511_v12 = vadd.f32 %v1510_v8, %v5645_v37  ;;  %v1600_v46 = vadd.f32 %v1599_v59, %v5647_v35 }
 0x237   : > { %v1896_v0 = vmax.f32 %v1687_v11, 0.0  ;;  %v1897_v47 = vmax.f32 %v1776_v27, 0.0 }
 0x238   : > { %v1898_v31 = vmax.f32 %v1511_v12, 0.0  ;;  %v1899_v54 = vmax.f32 %v1600_v46, 0.0 }
 0x23a   : > { %v6253_v49 = vpack.c.bf16 %v1898_v31, %v1894_v44  ;;  %v6255_v53 = vpack.c.bf16 %v1899_v54, %v1895_v24 }
 0x23c   : > { %v1688_v4 = vpop.f32.mrf.mxu2  ;;  %v1777_v51 = vpop.f32.mrf.mxu3 }
 0x23d   : > { %v1689_v19 = vadd.f32 %v1688_v4, %v5673_v42  ;;  %v1778_v62 = vadd.f32 %v1777_v51, %v5683_v18  ;;  %v1513_v10 = vpop.f32.mrf.mxu0  ;;  %v1602_v8 = vpop.f32.mrf.mxu1 }
 0x23e   : > { %v1514_v46 = vadd.f32 %v1513_v10, %v5645_v37  ;;  %v1603_v44 = vadd.f32 %v1602_v8, %v5647_v35 }
 0x23f   : > { %v1900_v59 = vmax.f32 %v1689_v19, 0.0  ;;  %v1901_v12 = vmax.f32 %v1778_v62, 0.0 }
 0x240   : > { %2278 = vmatmul.bf16.gmra.mxu0 %v6115_v26  ;;  %2367 = vmatmul.bf16.gmra.mxu1 %v6117_v2  ;;  %v1902_v27 = vmax.f32 %v1514_v46, 0.0 }
 0x241   : > { %2456 = vmatmul.bf16.gmra.mxu2 %v6125_v36  ;;  %2545 = vmatmul.bf16.gmra.mxu3 %v6127_v17  ;;  %v6265_v28 = vpack.c.bf16 %v1900_v59, %v1896_v0  ;;  %v6267_v58 = vpack.c.bf16 %v1901_v12, %v1897_v47  ;;  %v1903_v36 = vmax.f32 %v1603_v44, 0.0 }
 0x244   : > { %v1691_v24 = vpop.f32.mrf.mxu2  ;;  %v1780_v31 = vpop.f32.mrf.mxu3 }
 0x245   : > { %v1515_v54 = vpop.f32.mrf.mxu0  ;;  %v1604_v11 = vpop.f32.mrf.mxu1  ;;  %v1692_v62 = vadd.f32 %v1691_v24, %v5673_v42  ;;  %v1781_v10 = vadd.f32 %v1780_v31, %v5683_v18 }
 0x246   : > { %v1516_v26 = vadd.f32 %v1515_v54, %v5645_v37  ;;  %v1605_v2 = vadd.f32 %v1604_v11, %v5647_v35 }
 0x247   : > { %v1904_v46 = vmax.f32 %v1692_v62, 0.0  ;;  %v1905_v44 = vmax.f32 %v1781_v10, 0.0 }
 0x248   : > { %v1906_v4 = vmax.f32 %v1516_v26, 0.0  ;;  %v1907_v17 = vmax.f32 %v1605_v2, 0.0 }
 0x24a   : > { %v6273_v51 = vpack.c.bf16 %v1906_v4, %v1902_v27  ;;  %v6275_v19 = vpack.c.bf16 %v1907_v17, %v1903_v36 }
 0x24c   : > { %v1693_v8 = vpop.f32.mrf.mxu2  ;;  %v1782_v0 = vpop.f32.mrf.mxu3 }
 0x24d   : > { %v1694_v47 = vadd.f32 %v1693_v8, %v5673_v42  ;;  %v1783_v59 = vadd.f32 %v1782_v0, %v5683_v18  ;;  %v1518_v12 = vpop.f32.mrf.mxu0  ;;  %v1607_v54 = vpop.f32.mrf.mxu1 }
 0x24e   : > { %v1519_v2 = vadd.f32 %v1518_v12, %v5645_v37  ;;  %v1608_v27 = vadd.f32 %v1607_v54, %v5647_v35  ;;  %v6299_v54 = vld [vmem:[#allocation10] ss:$0 sm:$0xff] }
 0x24f   : > { %v1908_v11 = vmax.f32 %v1694_v47, 0.0  ;;  %v1909_v26 = vmax.f32 %v1783_v59, 0.0 }
 0x250   : > { %2283 = vmatmul.bf16.gmra.mxu0 %v6133_v33  ;;  %2372 = vmatmul.bf16.gmra.mxu1 %v6135_v50  ;;  %v1910_v10 = vmax.f32 %v1519_v2, 0.0 }
 0x251   : > { %2461 = vmatmul.bf16.gmra.mxu2 %v6145_v1  ;;  %2550 = vmatmul.bf16.gmra.mxu3 %v6147_v56  ;;  %v6285_v24 = vpack.c.bf16 %v1908_v11, %v1904_v46  ;;  %v6287_v31 = vpack.c.bf16 %v1909_v26, %v1905_v44  ;;  %v1911_v1 = vmax.f32 %v1608_v27, 0.0 }
 0x254   : > { %v1696_v36 = vpop.f32.mrf.mxu2  ;;  %v1785_v4 = vpop.f32.mrf.mxu3 }
 0x255   : > { %v1520_v17 = vpop.f32.mrf.mxu0  ;;  %v1609_v62 = vpop.f32.mrf.mxu1  ;;  %v1697_v0 = vadd.f32 %v1696_v36, %v5673_v42  ;;  %v1786_v12 = vadd.f32 %v1785_v4, %v5683_v18 }
 0x256   : > { %v1521_v33 = vadd.f32 %v1520_v17, %v5645_v37  ;;  %v1610_v50 = vadd.f32 %v1609_v62, %v5647_v35 }
 0x257   : > { %v1912_v2 = vmax.f32 %v1697_v0, 0.0  ;;  %v1913_v27 = vmax.f32 %v1786_v12, 0.0 }
 0x258   : > { %v1914_v8 = vmax.f32 %v1521_v33, 0.0  ;;  %v1915_v56 = vmax.f32 %v1610_v50, 0.0 }
 0x25a   : > { %v6294_v47 = vpack.c.bf16 %v1914_v8, %v1910_v10  ;;  %v6296_v59 = vpack.c.bf16 %v1915_v56, %v1911_v1 }
 0x25c   : > { %v1698_v46 = vpop.f32.mrf.mxu2  ;;  %v1787_v44 = vpop.f32.mrf.mxu3 }
 0x25d   : > { %v1699_v37 = vadd.f32 %v1698_v46, %v5673_v42  ;;  %v1788_v35 = vadd.f32 %v1787_v44, %v5683_v18  ;;  %v2249_v11 = vpop.f32.mrf.mxu0  ;;  %v2338_v26 = vpop.f32.mrf.mxu1 }
 0x25e   : > { %v2250_v62 = vadd.f32 %v6299_v54, %v2249_v11 }
 0x25f   : > { %v1916_v17 = vmax.f32 %v1699_v37, 0.0  ;;  %v1917_v36 = vmax.f32 %v1788_v35, 0.0 }
 0x260   : > { %2288 = vmatmul.bf16.gmra.mxu0 %v6153_v14  ;;  %2377 = vmatmul.bf16.gmra.mxu1 %v6155_v39  ;;  %v2339_v18 = vadd.f32 %v2338_v26, %v2250_v62  ;;  %v7243_v14 = vld [vmem:[#allocation17_spill] sm:$0xff] }
 0x261   : > { %2466 = vmatmul.bf16.gmra.mxu2 %v6165_v41  ;;  %2555 = vmatmul.bf16.gmra.mxu3 %v6167_v32  ;;  %v6308_v4 = vpack.c.bf16 %v1916_v17, %v1912_v2  ;;  %v6310_v42 = vpack.c.bf16 %v1917_v36, %v1913_v27  ;;  %v7244_v2 = vld [vmem:[#allocation16_spill] sm:$0xff] }
 0x264   : > { %v2427_v33 = vpop.f32.mrf.mxu2  ;;  %v2516_v50 = vpop.f32.mrf.mxu3 }
 0x265   : > { %v2428_v10 = vadd.f32 %v2427_v33, %v2339_v18  ;;  %v2251_v1 = vpop.f32.mrf.mxu0  ;;  %v2340_v8 = vpop.f32.mrf.mxu1 }
 0x266   : > { %v2252_v0 = vadd.f32 %v6299_v54, %v2251_v1  ;;  %v7245_v1 = vld [vmem:[#allocation19_spill] sm:$0xff] }
 0x267   : > { %v2517_v56 = vadd.f32 %v2516_v50, %v2428_v10 }
 0x268   : > { %v2341_v39 = vadd.f32 %v2340_v8, %v2252_v0 }
 0x269   : > { %v6314_v12 = vadd.f32 %v2517_v56, %v7243_v14 }
 0x26b   : > { %2630 = vadd.xlane.f32.xlu1 %v6314_v12  ;;  %v2726_v41 = vmul.f32 %v6314_v12, %v6314_v12 }
 0x26c   : > { %v2429_v32 = vpop.f32.mrf.mxu2  ;;  %v2518_v46 = vpop.f32.mrf.mxu3 }
 0x26d   : > { %v2430_v44 = vadd.f32 %v2429_v32, %v2341_v39  ;;  %2758 = vadd.xlane.f32.xlu0 %v2726_v41  ;;  %v2254_v37 = vpop.f32.mrf.mxu0  ;;  %v2343_v35 = vpop.f32.mrf.mxu1 }
 0x26e   : > { %v2255_v26 = vadd.f32 %v6299_v54, %v2254_v37 }
 0x26f   : > { %v2519_v11 = vadd.f32 %v2518_v46, %v2430_v44  ;;  %v7246_v44 = vld [vmem:[#allocation18_spill] sm:$0xff] }
 0x270   : > { %2293 = vmatmul.bf16.gmra.mxu0 %v6173_v5  ;;  %2382 = vmatmul.bf16.gmra.mxu1 %v6175_v13  ;;  %v2344_v17 = vadd.f32 %v2343_v35, %v2255_v26 }
 0x271   : > { %v6323_v27 = vadd.f32 %v2519_v11, %v7244_v2  ;;  %2471 = vmatmul.bf16.gmra.mxu2 %v6185_v9  ;;  %2560 = vmatmul.bf16.gmra.mxu3 %v6187_v52 }
 0x273   : > { %2632 = vadd.xlane.f32.xlu2 %v6323_v27  ;;  %v2727_v36 = vmul.f32 %v6323_v27, %v6323_v27 }
 0x274   : > { %v2432_v62 = vpop.f32.mrf.mxu2  ;;  %v2521_v18 = vpop.f32.mrf.mxu3 }
 0x275   : > { %v2433_v33 = vadd.f32 %v2432_v62, %v2344_v17  ;;  %2760 = vadd.xlane.f32.xlu1 %v2727_v36  ;;  %v2256_v5 = vpop.f32.mrf.mxu0  ;;  %v2345_v50 = vpop.f32.mrf.mxu1 }
 0x276   : > { %v2257_v10 = vadd.f32 %v6299_v54, %v2256_v5 }
 0x277   : > { %v2522_v13 = vadd.f32 %v2521_v18, %v2433_v33  ;;  %v7247_v18 = vld [vmem:[#allocation20_spill] sm:$0xff] }
 0x278   : > { %v2346_v9 = vadd.f32 %v2345_v50, %v2257_v10 }
 0x279   : > { %v6332_v8 = vadd.f32 %v2522_v13, %v7245_v1 }
 0x27b   : > { %2634 = vadd.xlane.f32.xlu0 %v6332_v8  ;;  %v2728_v52 = vmul.f32 %v6332_v8, %v6332_v8 }
 0x27c   : > { %v2434_v56 = vpop.f32.mrf.mxu2  ;;  %v2523_v0 = vpop.f32.mrf.mxu3 }
 0x27d   : > { %v2435_v14 = vadd.f32 %v2434_v56, %v2346_v9  ;;  %2762 = vadd.xlane.f32.xlu2 %v2728_v52  ;;  %v2259_v39 = vpop.f32.mrf.mxu0  ;;  %v2348_v41 = vpop.f32.mrf.mxu1  ;;  %v7248_v56 = vld [vmem:[#allocation21_spill] sm:$0xff] }
 0x27e   : > { %v2260_v46 = vadd.f32 %v6299_v54, %v2259_v39 }
 0x27f   : > { %v2524_v32 = vadd.f32 %v2523_v0, %v2435_v14 }
 0x280   : > { %2298 = vmatmul.bf16.gmra.mxu0 %v6193_v22  ;;  %2387 = vmatmul.bf16.gmra.mxu1 %v6195_v63  ;;  %v2349_v35 = vadd.f32 %v2348_v41, %v2260_v46 }
 0x281   : > { %v6341_v37 = vadd.f32 %v2524_v32, %v7246_v44  ;;  %2476 = vmatmul.bf16.gmra.mxu2 %v6205_v57  ;;  %2565 = vmatmul.bf16.gmra.mxu3 %v6207_v45 }
 0x283   : > { %2636 = vadd.xlane.f32.xlu1 %v6341_v37  ;;  %v2729_v11 = vmul.f32 %v6341_v37, %v6341_v37 }
 0x284   : > { %v2437_v26 = vpop.f32.mrf.mxu2  ;;  %v2526_v2 = vpop.f32.mrf.mxu3 }
 0x285   : > { %v2438_v17 = vadd.f32 %v2437_v26, %v2349_v35  ;;  %2764 = vadd.xlane.f32.xlu0 %v2729_v11  ;;  %v2261_v22 = vpop.f32.mrf.mxu0  ;;  %v2350_v36 = vpop.f32.mrf.mxu1  ;;  %v7249_v11 = vld [vmem:[#allocation23_spill] sm:$0xff] }
 0x286   : > { %v2262_v62 = vadd.f32 %v6299_v54, %v2261_v22 }
 0x287   : > { %v2527_v63 = vadd.f32 %v2526_v2, %v2438_v17 }
 0x288   : > { %v2351_v57 = vadd.f32 %v2350_v36, %v2262_v62 }
 0x289   : > { %v6350_v33 = vadd.f32 %v2527_v63, %v7247_v18 }
 0x28b   : > { %2638 = vadd.xlane.f32.xlu2 %v6350_v33  ;;  %v2730_v45 = vmul.f32 %v6350_v33, %v6350_v33 }
 0x28c   : > { %v2439_v5 = vpop.f32.mrf.mxu2  ;;  %v2528_v50 = vpop.f32.mrf.mxu3 }
 0x28d   : > { %v2440_v13 = vadd.f32 %v2439_v5, %v2351_v57  ;;  %2766 = vadd.xlane.f32.xlu1 %v2730_v45  ;;  %v2264_v10 = vpop.f32.mrf.mxu0  ;;  %v2353_v1 = vpop.f32.mrf.mxu1  ;;  %v7250_v57 = vld [vmem:[#allocation22_spill] sm:$0xff] }
 0x28e   : > { %v2265_v52 = vadd.f32 %v6299_v54, %v2264_v10 }
 0x28f   : > { %v2529_v9 = vadd.f32 %v2528_v50, %v2440_v13 }
 0x290   : > { %2303 = vmatmul.bf16.gmra.mxu0 %v6213_v48  ;;  %2392 = vmatmul.bf16.gmra.mxu1 %v6215_v25  ;;  %v2354_v14 = vadd.f32 %v2353_v1, %v2265_v52 }
 0x291   : > { %v6359_v0 = vadd.f32 %v2529_v9, %v7248_v56  ;;  %2481 = vmatmul.bf16.gmra.mxu2 %v6225_v16  ;;  %2570 = vmatmul.bf16.gmra.mxu3 %v6227_v61  ;;  %v7251_v56 = vld [vmem:[#allocation25_spill] sm:$0xff] }
 0x293   : > { %2640 = vadd.xlane.f32.xlu0 %v6359_v0  ;;  %v2731_v39 = vmul.f32 %v6359_v0, %v6359_v0 }
 0x294   : > { %v2442_v41 = vpop.f32.mrf.mxu2  ;;  %v2531_v32 = vpop.f32.mrf.mxu3 }
 0x295   : > { %v2443_v46 = vadd.f32 %v2442_v41, %v2354_v14  ;;  %2768 = vadd.xlane.f32.xlu2 %v2731_v39  ;;  %v2266_v48 = vpop.f32.mrf.mxu0  ;;  %v2355_v44 = vpop.f32.mrf.mxu1 }
 0x296   : > { %v2267_v35 = vadd.f32 %v6299_v54, %v2266_v48 }
 0x297   : > { %v2532_v25 = vadd.f32 %v2531_v32, %v2443_v46 }
 0x298   : > { %v2356_v16 = vadd.f32 %v2355_v44, %v2267_v35  ;;  %v7252_v35 = vld [vmem:[#allocation24_spill] sm:$0xff] }
 0x299   : > { %v6368_v26 = vadd.f32 %v2532_v25, %v7249_v11 }
 0x29b   : > { %2642 = vadd.xlane.f32.xlu1 %v6368_v26  ;;  %v2732_v61 = vmul.f32 %v6368_v26, %v6368_v26 }
 0x29c   : > { %v2444_v2 = vpop.f32.mrf.mxu2  ;;  %v2533_v17 = vpop.f32.mrf.mxu3 }
 0x29d   : > { %v2445_v22 = vadd.f32 %v2444_v2, %v2356_v16  ;;  %2770 = vadd.xlane.f32.xlu0 %v2732_v61  ;;  %v2269_v36 = vpop.f32.mrf.mxu0  ;;  %v2358_v63 = vpop.f32.mrf.mxu1 }
 0x29e   : > { %v2270_v18 = vadd.f32 %v6299_v54, %v2269_v36 }
 0x29f   : > { %v2534_v62 = vadd.f32 %v2533_v17, %v2445_v22 }
 0x2a0   : > { %2308 = vmatmul.bf16.gmra.mxu0 %v6233_v55  ;;  %2397 = vmatmul.bf16.gmra.mxu1 %v6235_v21  ;;  %v2359_v5 = vadd.f32 %v2358_v63, %v2270_v18 }
 0x2a1   : > { %v6377_v45 = vadd.f32 %v2534_v62, %v7250_v57  ;;  %2486 = vmatmul.bf16.gmra.mxu2 %v6245_v29  ;;  %2575 = vmatmul.bf16.gmra.mxu3 %v6247_v30  ;;  %v7253_v62 = vld [vmem:[#allocation26_spill] sm:$0xff] }
 0x2a3   : > { %2644 = vadd.xlane.f32.xlu2 %v6377_v45  ;;  %v2733_v50 = vmul.f32 %v6377_v45, %v6377_v45 }
 0x2a4   : > { %v2447_v13 = vpop.f32.mrf.mxu2  ;;  %v2536_v10 = vpop.f32.mrf.mxu3 }
 0x2a5   : > { %v2448_v1 = vadd.f32 %v2447_v13, %v2359_v5  ;;  %2772 = vadd.xlane.f32.xlu1 %v2733_v50  ;;  %v2271_v55 = vpop.f32.mrf.mxu0  ;;  %v2360_v9 = vpop.f32.mrf.mxu1 }
 0x2a6   : > { %v2272_v52 = vadd.f32 %v6299_v54, %v2271_v55 }
 0x2a7   : > { %v2537_v21 = vadd.f32 %v2536_v10, %v2448_v1 }
 0x2a8   : > { %v2361_v29 = vadd.f32 %v2360_v9, %v2272_v52  ;;  %v7254_v9 = vld [vmem:[#allocation27_spill] sm:$0xff] }
 0x2a9   : > { %v6386_v14 = vadd.f32 %v2537_v21, %v7251_v56 }
 0x2ab   : > { %2646 = vadd.xlane.f32.xlu0 %v6386_v14  ;;  %v2734_v30 = vmul.f32 %v6386_v14, %v6386_v14 }
 0x2ac   : > { %v2449_v39 = vpop.f32.mrf.mxu2  ;;  %v2538_v41 = vpop.f32.mrf.mxu3 }
 0x2ad   : > { %v2450_v32 = vadd.f32 %v2449_v39, %v2361_v29  ;;  %2774 = vadd.xlane.f32.xlu2 %v2734_v30  ;;  %v2274_v46 = vpop.f32.mrf.mxu0  ;;  %v2363_v48 = vpop.f32.mrf.mxu1 }
 0x2ae   : > { %v2275_v25 = vadd.f32 %v6299_v54, %v2274_v46  ;;  %v7255_v46 = vld [vmem:[#allocation28_spill] sm:$0xff] }
 0x2af   : > { %v2539_v44 = vadd.f32 %v2538_v41, %v2450_v32 }
 0x2b0   : > { %2313 = vmatmul.bf16.gmra.mxu0 %v6253_v49  ;;  %2402 = vmatmul.bf16.gmra.mxu1 %v6255_v53  ;;  %v2364_v16 = vadd.f32 %v2363_v48, %v2275_v25 }
 0x2b1   : > { %v6395_v11 = vadd.f32 %v2539_v44, %v7252_v35  ;;  %2491 = vmatmul.bf16.gmra.mxu2 %v6265_v28  ;;  %2580 = vmatmul.bf16.gmra.mxu3 %v6267_v58 }
 0x2b3   : > { %2648 = vadd.xlane.f32.xlu1 %v6395_v11  ;;  %v2735_v61 = vmul.f32 %v6395_v11, %v6395_v11 }
 0x2b4   : > { %v2452_v2 = vpop.f32.mrf.mxu2  ;;  %v2541_v17 = vpop.f32.mrf.mxu3 }
 0x2b5   : > { %v2453_v22 = vadd.f32 %v2452_v2, %v2364_v16  ;;  %2776 = vadd.xlane.f32.xlu0 %v2735_v61  ;;  %v2276_v49 = vpop.f32.mrf.mxu0  ;;  %v2365_v36 = vpop.f32.mrf.mxu1 }
 0x2b6   : > { %v2277_v63 = vadd.f32 %v6299_v54, %v2276_v49 }
 0x2b7   : > { %v2542_v53 = vadd.f32 %v2541_v17, %v2453_v22  ;;  %v7256_v22 = vld [vmem:[#allocation29_spill] sm:$0xff] }
 0x2b8   : > { %v2366_v28 = vadd.f32 %v2365_v36, %v2277_v63 }
 0x2b9   : > { %v6404_v18 = vadd.f32 %v2542_v53, %v7253_v62 }
 0x2bb   : > { %2650 = vadd.xlane.f32.xlu2 %v6404_v18  ;;  %v2736_v58 = vmul.f32 %v6404_v18, %v6404_v18 }
 0x2bc   : > { %v2454_v57 = vpop.f32.mrf.mxu2  ;;  %v2543_v5 = vpop.f32.mrf.mxu3 }
 0x2bd   : > { %v2455_v50 = vadd.f32 %v2454_v57, %v2366_v28  ;;  %2778 = vadd.xlane.f32.xlu1 %v2736_v58  ;;  %v2279_v13 = vpop.f32.mrf.mxu0  ;;  %v2368_v10 = vpop.f32.mrf.mxu1 }
 0x2be   : > { %v2280_v55 = vadd.f32 %v6299_v54, %v2279_v13 }
 0x2bf   : > { %v2544_v1 = vadd.f32 %v2543_v5, %v2455_v50  ;;  %v7257_v5 = vld [vmem:[#allocation30_spill] sm:$0xff] }
 0x2c0   : > { %2318 = vmatmul.bf16.gmra.mxu0 %v6273_v51  ;;  %2407 = vmatmul.bf16.gmra.mxu1 %v6275_v19  ;;  %v2369_v52 = vadd.f32 %v2368_v10, %v2280_v55 }
 0x2c1   : > { %v6413_v21 = vadd.f32 %v2544_v1, %v7254_v9  ;;  %2496 = vmatmul.bf16.gmra.mxu2 %v6285_v24  ;;  %2585 = vmatmul.bf16.gmra.mxu3 %v6287_v31 }
 0x2c3   : > { %2652 = vadd.xlane.f32.xlu0 %v6413_v21  ;;  %v2737_v56 = vmul.f32 %v6413_v21, %v6413_v21 }
 0x2c4   : > { %v2457_v29 = vpop.f32.mrf.mxu2  ;;  %v2546_v30 = vpop.f32.mrf.mxu3 }
 0x2c5   : > { %v2458_v39 = vadd.f32 %v2457_v29, %v2369_v52  ;;  %2780 = vadd.xlane.f32.xlu2 %v2737_v56  ;;  %v2281_v51 = vpop.f32.mrf.mxu0  ;;  %v2370_v41 = vpop.f32.mrf.mxu1 }
 0x2c6   : > { %v2282_v32 = vadd.f32 %v6299_v54, %v2281_v51  ;;  %v7258_v51 = vld [vmem:[#allocation31_spill] sm:$0xff] }
 0x2c7   : > { %v2547_v19 = vadd.f32 %v2546_v30, %v2458_v39 }
 0x2c8   : > { %v2371_v24 = vadd.f32 %v2370_v41, %v2282_v32 }
 0x2c9   : > { %v6422_v48 = vadd.f32 %v2547_v19, %v7255_v46 }
 0x2cb   : > { %2654 = vadd.xlane.f32.xlu1 %v6422_v48  ;;  %v2738_v31 = vmul.f32 %v6422_v48, %v6422_v48 }
 0x2cc   : > { %v2459_v44 = vpop.f32.mrf.mxu2  ;;  %v2548_v25 = vpop.f32.mrf.mxu3 }
 0x2cd   : > { %v2460_v35 = vadd.f32 %v2459_v44, %v2371_v24  ;;  %2782 = vadd.xlane.f32.xlu0 %v2738_v31  ;;  %v2284_v16 = vpop.f32.mrf.mxu0  ;;  %v2373_v61 = vpop.f32.mrf.mxu1 }
 0x2ce   : > { %v2285_v17 = vadd.f32 %v6299_v54, %v2284_v16 }
 0x2cf   : > { %v2549_v2 = vadd.f32 %v2548_v25, %v2460_v35 }
 0x2d0   : > { %2323 = vmatmul.bf16.gmra.mxu0 %v6294_v47  ;;  %2412 = vmatmul.bf16.gmra.mxu1 %v6296_v59  ;;  %v2374_v36 = vadd.f32 %v2373_v61, %v2285_v17 }
 0x2d1   : > { %v6431_v49 = vadd.f32 %v2549_v2, %v7256_v22  ;;  %2501 = vmatmul.bf16.gmra.mxu2 %v6308_v4  ;;  %2590 = vmatmul.bf16.gmra.mxu3 %v6310_v42 }
 0x2d3   : > { %2656 = vadd.xlane.f32.xlu2 %v6431_v49  ;;  %v2739_v53 = vmul.f32 %v6431_v49, %v6431_v49 }
 0x2d4   : > { %v2462_v63 = vpop.f32.mrf.mxu2  ;;  %v2551_v62 = vpop.f32.mrf.mxu3 }
 0x2d5   : > { %v2463_v28 = vadd.f32 %v2462_v63, %v2374_v36  ;;  %2784 = vadd.xlane.f32.xlu1 %v2739_v53  ;;  %v2286_v47 = vpop.f32.mrf.mxu0  ;;  %v2375_v58 = vpop.f32.mrf.mxu1 }
 0x2d6   : > { %v2287_v57 = vadd.f32 %v6299_v54, %v2286_v47 }
 0x2d7   : > { %v2552_v59 = vadd.f32 %v2551_v62, %v2463_v28  ;;  %v7259_v28 = vld [vmem:[#allocation32_spill] sm:$0xff] }
 0x2d8   : > { %v2376_v4 = vadd.f32 %v2375_v58, %v2287_v57 }
 0x2d9   : > { %v6440_v50 = vadd.f32 %v2552_v59, %v7257_v5 }
 0x2db   : > { %2658 = vadd.xlane.f32.xlu0 %v6440_v50  ;;  %v2740_v42 = vmul.f32 %v6440_v50, %v6440_v50 }
 0x2dc   : > { %v2464_v13 = vpop.f32.mrf.mxu2  ;;  %v2553_v10 = vpop.f32.mrf.mxu3 }
 0x2dd   : > { %v2465_v1 = vadd.f32 %v2464_v13, %v2376_v4  ;;  %2786 = vadd.xlane.f32.xlu2 %v2740_v42  ;;  %v2289_v55 = vpop.f32.mrf.mxu0  ;;  %v2378_v9 = vpop.f32.mrf.mxu1 }
 0x2de   : > { %v2631_v52 = vpop.xlane.xlu1 %2630  ;;  %v2290_v29 = vadd.f32 %v6299_v54, %v2289_v55 }
 0x2df   : > { %v2554_v56 = vadd.f32 %v2553_v10, %v2465_v1  ;;  %v6447_v30 = vmul.f32 %v2631_v52, %v4910_v43 }
 0x2e0   : > { %v2759_v39 = vpop.xlane.xlu0 %2758  ;;  %v2379_v46 = vadd.f32 %v2378_v9, %v2290_v29 }
 0x2e1   : > { %v6450_v41 = vadd.f32 %v2554_v56, %v7258_v51  ;;  %v2854_v19 = vmul.f32 %v6447_v30, %v6447_v30  ;;  %v2822_v32 = vmul.f32 %v2759_v39, %v4910_v43 }
 0x2e3   : > { %v2886_v24 = vsub.f32 %v2822_v32, %v2854_v19  ;;  %2660 = vadd.xlane.f32.xlu1 %v6450_v41  ;;  %v2741_v31 = vmul.f32 %v6450_v41, %v6450_v41 }
 0x2e4   : > { %v2467_v44 = vpop.f32.mrf.mxu2  ;;  %v2556_v25 = vpop.f32.mrf.mxu3 }
 0x2e5   : > { %v2918_v35 = vmax.f32 %v2886_v24, 0.0  ;;  %v2468_v16 = vadd.f32 %v2467_v44, %v2379_v46  ;;  %2788 = vadd.xlane.f32.xlu0 %v2741_v31  ;;  %v2291_v61 = vpop.f32.mrf.mxu0  ;;  %v2380_v2 = vpop.f32.mrf.mxu1  ;;  %v7260_v24 = vld [vmem:[#allocation33_spill] sm:$0xff] }
 0x2e6   : > { %v2633_v17 = vpop.xlane.xlu2 %2632  ;;  %v2292_v53 = vadd.f32 %v6299_v54, %v2291_v61 }
 0x2e7   : > { %v6458_v22 = vadd.f32 1e-05, %v2918_v35  ;;  %v2557_v36 = vadd.f32 %v2556_v25, %v2468_v16  ;;  %v6462_v63 = vmul.f32 %v2633_v17, %v4910_v43 }
 0x2e8   : > { %v2761_v62 = vpop.xlane.xlu1 %2760  ;;  %v2381_v57 = vadd.f32 %v2380_v2, %v2292_v53 }
 0x2e9   : > { %4306 = vrsqrt.f32 %v6458_v22  ;;  %v6466_v47 = vadd.f32 %v2557_v36, %v7259_v28  ;;  %v2855_v58 = vmul.f32 %v6462_v63, %v6462_v63  ;;  %v2823_v59 = vmul.f32 %v2761_v62, %v4910_v43 }
 0x2ea   : > { %vm3020_vm2 = vweird.f32 %v6458_v22 }
 0x2eb   : > { %2662 = vadd.xlane.f32.xlu2 %v6466_v47  ;;  %v2742_v5 = vmul.f32 %v6466_v47, %v6466_v47  ;;  %v2887_v4 = vsub.f32 %v2823_v59, %v2855_v58 }
 0x2ec   : > { %v2469_v42 = vpop.f32.mrf.mxu2  ;;  %v2558_v13 = vpop.f32.mrf.mxu3 }
 0x2ed   : > { %v2470_v10 = vadd.f32 %v2469_v42, %v2381_v57  ;;  %2790 = vadd.xlane.f32.xlu1 %v2742_v5  ;;  %v2294_v1 = vpop.f32.mrf.mxu0  ;;  %v2383_v55 = vpop.f32.mrf.mxu1  ;;  %v2919_v9 = vmax.f32 %v2887_v4, 0.0 }
 0x2ee   : > { %v2635_v52 = vpop.xlane.xlu0 %2634  ;;  %v2295_v39 = vadd.f32 %v6299_v54, %v2294_v1 }
 0x2ef   : > { %v6474_v56 = vpop.eup %4306  ;;  %v2559_v29 = vadd.f32 %v2558_v13, %v2470_v10  ;;  %v6478_v51 = vmul.f32 %v2635_v52, %v4910_v43  ;;  %v6482_v32 = vadd.f32 1e-05, %v2919_v9 }
 0x2f0   : > { %v3015_v19 = vmul.f32 %v6474_v56, %v6458_v22  ;;  %v2763_v46 = vpop.xlane.xlu2 %2762  ;;  %v2384_v16 = vadd.f32 %v2383_v55, %v2295_v39  ;;  %vm3021_vm1 = vweird.f32 %v6474_v56 }
 0x2f1   : > { %v6485_v31 = vadd.f32 %v2559_v29, %v7260_v24  ;;  %v2856_v44 = vmul.f32 %v6478_v51, %v6478_v51  ;;  %v2824_v25 = vmul.f32 %v2763_v46, %v4910_v43  ;;  %4308 = vrsqrt.f32 %v6482_v32  ;;  %v7261_v29 = vld [vmem:[#allocation34_spill] sm:$0xff]  ;;  %vm6512_vm3 = vmor %vm3020_vm2, %vm3021_vm1 }
 0x2f2   : > { %v3016_v35 = vmul.f32 %v6474_v56, %v3015_v19  ;;  %vm3030_vm5 = vweird.f32 %v6482_v32 }
 0x2f3   : > { %v2888_v61 = vsub.f32 %v2824_v25, %v2856_v44  ;;  %2664 = vadd.xlane.f32.xlu0 %v6485_v31  ;;  %v2743_v2 = vmul.f32 %v6485_v31, %v6485_v31 }
 0x2f4   : > { %v3017_v17 = vmul.f32 0.5, %v3016_v35  ;;  %v2472_v36 = vpop.f32.mrf.mxu2  ;;  %v2561_v53 = vpop.f32.mrf.mxu3 }
 0x2f5   : > { %v2920_v62 = vmax.f32 %v2888_v61, 0.0  ;;  %v2473_v28 = vadd.f32 %v2472_v36, %v2384_v16  ;;  %2792 = vadd.xlane.f32.xlu2 %v2743_v2  ;;  %v2296_v58 = vpop.f32.mrf.mxu0  ;;  %v2385_v59 = vpop.f32.mrf.mxu1 }
 0x2f6   : > { %v3018_v57 = vsub.f32 1.5, %v3017_v17  ;;  %v2637_v5 = vpop.xlane.xlu1 %2636  ;;  %v2297_v13 = vadd.f32 %v6299_v54, %v2296_v58 }
 0x2f7   : > { %v6495_v4 = vadd.f32 1e-05, %v2920_v62  ;;  %v2562_v42 = vadd.f32 %v2561_v53, %v2473_v28  ;;  %v6499_v10 = vmul.f32 %v2637_v5, %v4910_v43  ;;  %v4309_v1 = vpop.eup %4308  ;;  %v2950_v28 = vsub.f32 %v6314_v12, %v6447_v30 }
 0x2f8   : > { %v2765_v55 = vpop.xlane.xlu0 %2764  ;;  %v3019_v9 = vmul.f32 %v6474_v56, %v3018_v57  ;;  %v3025_v52 = vmul.f32 %v4309_v1, %v6482_v32  ;;  %v2386_v24 = vadd.f32 %v2385_v59, %v2297_v13  ;;  %vm3031_vm4 = vweird.f32 %v4309_v1 }
 0x2f9   : > { %4310 = vrsqrt.f32 %v6495_v4  ;;  %v6506_v39 = vadd.f32 %v2562_v42, %v7261_v29  ;;  %v2857_v19 = vmul.f32 %v6499_v10, %v6499_v10  ;;  %v2825_v44 = vmul.f32 %v2765_v55, %v4910_v43  ;;  %v6527_v55 = vld [vmem:[#allocation10 + $0x3] ss:$0 sm:$0xff]  ;;  %vm3032_vm6 = vmor %vm3030_vm5, %vm3031_vm4 }
 0x2fa   : > { %v3026_v46 = vmul.f32 %v4309_v1, %v3025_v52  ;;  %v3023_v2 = vsel %vm6512_vm3, %v6474_v56, %v3019_v9  ;;  %vm3040_vm8 = vweird.f32 %v6495_v4 }
 0x2fb   : > { %2666 = vadd.xlane.f32.xlu1 %v6506_v39  ;;  %v2744_v61 = vmul.f32 %v6506_v39, %v6506_v39  ;;  %v2889_v17 = vsub.f32 %v2825_v44, %v2857_v19  ;;  %v3334_v56 = vmul.f32 %v3023_v2, %v2950_v28  ;;  %v7264_v19 = vld [vmem:[#allocation35_spill] sm:$0xff]  ;;  %v2951_v44 = vsub.f32 %v6323_v27, %v6462_v63 }
 0x2fc   : > { %v2474_v35 = vpop.f32.mrf.mxu2  ;;  %v2563_v16 = vpop.f32.mrf.mxu3  ;;  %v3027_v22 = vmul.f32 0.5, %v3026_v46  ;;  %v6551_v2 = vld [vmem:[#allocation10 + $0x4] ss:$0 sm:$0xff] }
 0x2fd   : > { %v2475_v36 = vadd.f32 %v2474_v35, %v2386_v24  ;;  %v2299_v53 = vpop.f32.mrf.mxu0  ;;  %v2388_v62 = vpop.f32.mrf.mxu1  ;;  %2794 = vadd.xlane.f32.xlu0 %v2744_v61  ;;  %v2921_v5 = vmax.f32 %v2889_v17, 0.0  ;;  %v3367_v27 = vmul.f32 %v6527_v55, %v3334_v56 }
 0x2fe   : > { %v2639_v58 = vpop.xlane.xlu2 %2638  ;;  %v3028_v57 = vsub.f32 1.5, %v3027_v22  ;;  %v2300_v13 = vadd.f32 %v6299_v54, %v2299_v53 }
 0x2ff   : > { %v6524_v59 = vpop.eup %4310  ;;  %v2564_v42 = vadd.f32 %v2563_v16, %v2475_v36  ;;  %v6533_v12 = vmul.f32 %v2639_v58, %v4910_v43  ;;  %v6535_v29 = vadd.f32 1e-05, %v2921_v5  ;;  %v3400_v56 = vadd.f32 %v6551_v2, %v3367_v27 }
 0x300   : > { %v3035_v9 = vmul.f32 %v6524_v59, %v6495_v4  ;;  %v2767_v30 = vpop.xlane.xlu1 %2766  ;;  %v3029_v52 = vmul.f32 %v4309_v1, %v3028_v57  ;;  %v2389_v16 = vadd.f32 %v2388_v62, %v2300_v13  ;;  %vm3041_vm7 = vweird.f32 %v6524_v59 }
 0x301   : > { %v6538_v46 = vadd.f32 %v2564_v42, %v7264_v19  ;;  %v2826_v24 = vmul.f32 %v2767_v30, %v4910_v43  ;;  %v2858_v25 = vmul.f32 %v6533_v12, %v6533_v12  ;;  %4312 = vrsqrt.f32 %v6535_v29  ;;  %vm6582_vm9 = vmor %vm3040_vm8, %vm3041_vm7 }
 0x302   : > { %v3036_v32 = vmul.f32 %v6524_v59, %v3035_v9  ;;  %v3033_v35 = vsel %vm3032_vm6, %v4309_v1, %v3029_v52  ;;  %vm3050_vm11 = vweird.f32 %v6535_v29 }
 0x303   : > { %2668 = vadd.xlane.f32.xlu2 %v6538_v46  ;;  %v2745_v61 = vmul.f32 %v6538_v46, %v6538_v46  ;;  %v3335_v63 = vmul.f32 %v3033_v35, %v2951_v44  ;;  %v2890_v17 = vsub.f32 %v2826_v24, %v2858_v25  ;;  %v7265_v25 = vld [vmem:[#allocation36_spill] sm:$0xff] }
 0x304   : > { %v3037_v22 = vmul.f32 0.5, %v3036_v32  ;;  %v2477_v36 = vpop.f32.mrf.mxu2  ;;  %v2566_v53 = vpop.f32.mrf.mxu3 }
 0x305   : > { %v2478_v28 = vadd.f32 %v2477_v36, %v2389_v16  ;;  %2796 = vadd.xlane.f32.xlu1 %v2745_v61  ;;  %v2301_v1 = vpop.f32.mrf.mxu0  ;;  %v2390_v58 = vpop.f32.mrf.mxu1  ;;  %v3368_v62 = vmul.f32 %v6527_v55, %v3335_v63  ;;  %v2922_v5 = vmax.f32 %v2890_v17, 0.0  ;;  %v2953_v36 = vsub.f32 %v6341_v37, %v6499_v10 }
 0x306   : > { %v3038_v57 = vsub.f32 1.5, %v3037_v22  ;;  %v2641_v42 = vpop.xlane.xlu0 %2640  ;;  %v2302_v9 = vadd.f32 %v6299_v54, %v2301_v1 }
 0x307   : > { %v2567_v13 = vadd.f32 %v2566_v53, %v2478_v28  ;;  %v6557_v30 = vmul.f32 %v2641_v42, %v4910_v43  ;;  %v3401_v52 = vadd.f32 %v6551_v2, %v3368_v62  ;;  %v6562_v19 = vadd.f32 1e-05, %v2922_v5  ;;  %v4313_v44 = vpop.eup %4312 }
 0x308   : > { %v2769_v24 = vpop.xlane.xlu2 %2768  ;;  %v3039_v32 = vmul.f32 %v6524_v59, %v3038_v57  ;;  %v3045_v63 = vmul.f32 %v4313_v44, %v6535_v29  ;;  %v2391_v22 = vadd.f32 %v2390_v58, %v2302_v9  ;;  %vm3051_vm10 = vweird.f32 %v4313_v44 }
 0x309   : > { %v6566_v35 = vadd.f32 %v2567_v13, %v7265_v25  ;;  %v2859_v16 = vmul.f32 %v6557_v30, %v6557_v30  ;;  %v2827_v61 = vmul.f32 %v2769_v24, %v4910_v43  ;;  %v4034_v27 = vpack.c.bf16 %v3401_v52, %v3400_v56  ;;  %vm3052_vm12 = vmor %vm3050_vm11, %vm3051_vm10 }
 0x30a   : > { %4314 = vrsqrt.f32 %v6562_v19  ;;  %v3046_v53 = vmul.f32 %v4313_v44, %v3045_v63  ;;  %v3043_v58 = vsel %vm6582_vm9, %v6524_v59, %v3039_v32  ;;  %v2952_v13 = vsub.f32 %v6332_v8, %v6478_v51  ;;  %v7268_v8 = vld [vmem:[#allocation37_spill] sm:$0xff] }
 0x30b   : > { %v2891_v17 = vsub.f32 %v2827_v61, %v2859_v16  ;;  %2670 = vadd.xlane.f32.xlu0 %v6566_v35  ;;  %4035 = vst [vmem:[%s6577_s24] sm:$0xff] %v4034_v27   ;;  %v2746_v1 = vmul.f32 %v6566_v35, %v6566_v35  ;;  %vm3060_vm14 = vweird.f32 %v6562_v19 }
 0x30c   : > { %v2479_v28 = vpop.f32.mrf.mxu2  ;;  %v2568_v4 = vpop.f32.mrf.mxu3  ;;  %v3047_v9 = vmul.f32 0.5, %v3046_v53  ;;  %v3336_v61 = vmul.f32 %v3043_v58, %v2952_v13 }
 0x30d   : > { %v2923_v62 = vmax.f32 %v2891_v17, 0.0  ;;  %v2480_v57 = vadd.f32 %v2479_v28, %v2391_v22  ;;  %v2304_v5 = vpop.f32.mrf.mxu0  ;;  %v2393_v42 = vpop.f32.mrf.mxu1  ;;  %2798 = vadd.xlane.f32.xlu2 %v2746_v1 }
 0x30e   : > { %v2643_v56 = vpop.xlane.xlu1 %2642  ;;  %v2305_v25 = vadd.f32 %v6299_v54, %v2304_v5  ;;  %v3048_v59 = vsub.f32 1.5, %v3047_v9  ;;  %v3369_v1 = vmul.f32 %v6527_v55, %v3336_v61 }
 0x30f   : > { %v6593_v52 = vadd.f32 1e-05, %v2923_v62  ;;  %v2569_v24 = vadd.f32 %v2568_v4, %v2480_v57  ;;  %v6597_v16 = vmul.f32 %v2643_v56, %v4910_v43 }
 0x310   : > { %v2771_v32 = vpop.xlane.xlu0 %2770  ;;  %v6599_v27 = vpop.eup %4314  ;;  %v3049_v22 = vmul.f32 %v4313_v44, %v3048_v59  ;;  %v2394_v53 = vadd.f32 %v2393_v42, %v2305_v25 }
 0x311   : > { %4316 = vrsqrt.f32 %v6593_v52  ;;  %v6603_v51 = vadd.f32 %v2569_v24, %v7268_v8  ;;  %v2860_v63 = vmul.f32 %v6597_v16, %v6597_v16  ;;  %v3055_v17 = vmul.f32 %v6599_v27, %v6562_v19 }
 0x312   : > { %v2828_v28 = vmul.f32 %v2771_v32, %v4910_v43  ;;  %v3053_v58 = vsel %vm3052_vm12, %v4313_v44, %v3049_v22  ;;  %v3402_v8 = vadd.f32 %v6551_v2, %v3369_v1  ;;  %vm3061_vm13 = vweird.f32 %v6599_v27 }
 0x313   : > { %2672 = vadd.xlane.f32.xlu1 %v6603_v51  ;;  %v2747_v4 = vmul.f32 %v6603_v51, %v6603_v51  ;;  %v3056_v29 = vmul.f32 %v6599_v27, %v3055_v17  ;;  %v3337_v5 = vmul.f32 %v3053_v58, %v2953_v36  ;;  %vm6637_vm15 = vmor %vm3060_vm14, %vm3061_vm13  ;;  %vm3070_vm1 = vweird.f32 %v6593_v52 }
 0x314   : > { %v2482_v62 = vpop.f32.mrf.mxu2  ;;  %v2571_v57 = vpop.f32.mrf.mxu3  ;;  %v2892_v13 = vsub.f32 %v2828_v28, %v2860_v63 }
 0x315   : > { %v2483_v9 = vadd.f32 %v2482_v62, %v2394_v53  ;;  %2800 = vadd.xlane.f32.xlu0 %v2747_v4  ;;  %v2306_v37 = vpop.f32.mrf.mxu0  ;;  %v2395_v10 = vpop.f32.mrf.mxu1  ;;  %v3057_v42 = vmul.f32 0.5, %v3056_v29  ;;  %v3370_v59 = vmul.f32 %v6527_v55, %v3337_v5 }
 0x316   : > { %v2307_v56 = vadd.f32 %v6299_v54, %v2306_v37  ;;  %v2645_v24 = vpop.xlane.xlu2 %2644  ;;  %v2924_v32 = vmax.f32 %v2892_v13, 0.0  ;;  %v2954_v13 = vsub.f32 %v6350_v33, %v6533_v12 }
 0x317   : > { %v4317_v25 = vpop.eup %4316  ;;  %v2572_v61 = vadd.f32 %v2571_v57, %v2483_v9  ;;  %v6621_v44 = vmul.f32 %v2645_v24, %v4910_v43  ;;  %v3058_v22 = vsub.f32 1.5, %v3057_v42  ;;  %v3403_v36 = vadd.f32 %v6551_v2, %v3370_v59 }
 0x318   : > { %v3065_v63 = vmul.f32 %v4317_v25, %v6593_v52  ;;  %v2773_v17 = vpop.xlane.xlu1 %2772  ;;  %v6627_v53 = vadd.f32 1e-05, %v2924_v32  ;;  %vm3071_vm0 = vweird.f32 %v4317_v25 }
 0x319   : > { %v6630_v28 = vadd.f32 %v2572_v61, %v5850_v23  ;;  %v2861_v4 = vmul.f32 %v6621_v44, %v6621_v44  ;;  %v3059_v58 = vmul.f32 %v6599_v27, %v3058_v22  ;;  %v2829_v29 = vmul.f32 %v2773_v17, %v4910_v43  ;;  %vm3072_vm2 = vmor %vm3070_vm1, %vm3071_vm0 }
 0x31a   : > { %v3066_v1 = vmul.f32 %v4317_v25, %v3065_v63  ;;  %v4039_v62 = vpack.c.bf16 %v3403_v36, %v3402_v8  ;;  %4318 = vrsqrt.f32 %v6627_v53  ;;  %v2396_v23 = vadd.f32 %v2395_v10, %v2307_v56 }
 0x31b   : > { %2674 = vadd.xlane.f32.xlu2 %v6630_v28  ;;  %v2748_v5 = vmul.f32 %v6630_v28, %v6630_v28  ;;  %v3063_v19 = vsel %vm6637_vm15, %v6599_v27, %v3059_v58  ;;  %v2893_v37 = vsub.f32 %v2829_v29, %v2861_v4  ;;  %v2955_v58 = vsub.f32 %v6359_v0, %v6557_v30 }
 0x31c   : > { %v3067_v9 = vmul.f32 0.5, %v3066_v1  ;;  %v2484_v42 = vpop.f32.mrf.mxu2  ;;  %v2573_v24 = vpop.f32.mrf.mxu3  ;;  %4126 = vst [vmem:[%s6577_s24 + $0x8] sm:$0xff] %v4039_v62   ;;  %v3338_v32 = vmul.f32 %v3063_v19, %v2954_v13  ;;  %vm3080_vm4 = vweird.f32 %v6627_v53 }
 0x31d   : > { %v2485_v59 = vadd.f32 %v2484_v42, %v2396_v23  ;;  %2802 = vadd.xlane.f32.xlu1 %v2748_v5  ;;  %v2309_v10 = vpop.f32.mrf.mxu0  ;;  %v2398_v56 = vpop.f32.mrf.mxu1  ;;  %v2925_v8 = vmax.f32 %v2893_v37, 0.0 }
 0x31e   : > { %v3068_v61 = vsub.f32 1.5, %v3067_v9  ;;  %v2647_v22 = vpop.xlane.xlu0 %2646  ;;  %v2310_v33 = vadd.f32 %v6299_v54, %v2309_v10  ;;  %v3371_v29 = vmul.f32 %v6527_v55, %v3338_v32  ;;  %v6678_v10 = vld [vmem:[#allocation10] ss:$0 sm:$0xff] }
 0x31f   : > { %v2574_v63 = vadd.f32 %v2573_v24, %v2485_v59  ;;  %v6653_v12 = vmul.f32 %v2647_v22, %v4910_v43  ;;  %v6656_v17 = vadd.f32 1e-05, %v2925_v8 }
 0x320   : > { %v3069_v27 = vmul.f32 %v4317_v25, %v3068_v61  ;;  %v2775_v36 = vpop.xlane.xlu2 %2774  ;;  %v6658_v4 = vpop.eup %4318  ;;  %v2399_v23 = vadd.f32 %v2398_v56, %v2310_v33  ;;  %v3404_v24 = vadd.f32 %v6551_v2, %v3371_v29 }
 0x321   : > { %v6663_v1 = vadd.f32 %v2574_v63, %v5854_v34  ;;  %v2862_v54 = vmul.f32 %v6653_v12, %v6653_v12  ;;  %v3075_v52 = vmul.f32 %v6658_v4, %v6627_v53  ;;  %4320 = vrsqrt.f32 %v6656_v17 }
 0x322   : > { %v3073_v62 = vsel %vm3072_vm2, %v4317_v25, %v3069_v27  ;;  %v2830_v5 = vmul.f32 %v2775_v36, %v4910_v43  ;;  %vm3081_vm3 = vweird.f32 %v6658_v4  ;;  %vm3090_vm7 = vweird.f32 %v6656_v17 }
 0x323   : > { %v3339_v57 = vmul.f32 %v3073_v62, %v2955_v58  ;;  %2676 = vadd.xlane.f32.xlu0 %v6663_v1  ;;  %v2749_v34 = vmul.f32 %v6663_v1, %v6663_v1  ;;  %v3076_v0 = vmul.f32 %v6658_v4, %v3075_v52  ;;  %vm6699_vm5 = vmor %vm3080_vm4, %vm3081_vm3 }
 0x324   : > { %v2487_v30 = vpop.f32.mrf.mxu2  ;;  %v2576_v13 = vpop.f32.mrf.mxu3  ;;  %v2894_v19 = vsub.f32 %v2830_v5, %v2862_v54 }
 0x325   : > { %v3372_v25 = vmul.f32 %v6527_v55, %v3339_v57  ;;  %v2488_v9 = vadd.f32 %v2487_v30, %v2399_v23  ;;  %2804 = vadd.xlane.f32.xlu2 %v2749_v34  ;;  %v2311_v37 = vpop.f32.mrf.mxu0  ;;  %v2400_v42 = vpop.f32.mrf.mxu1  ;;  %v3077_v59 = vmul.f32 0.5, %v3076_v0 }
 0x326   : > { %v2312_v56 = vadd.f32 %v6678_v10, %v2311_v37  ;;  %v2649_v32 = vpop.xlane.xlu1 %2648  ;;  %v2926_v8 = vmax.f32 %v2894_v19, 0.0 }
 0x327   : > { %v3405_v61 = vadd.f32 %v6551_v2, %v3372_v25  ;;  %v2577_v22 = vadd.f32 %v2576_v13, %v2488_v9  ;;  %v6683_v63 = vmul.f32 %v2649_v32, %v4910_v43  ;;  %v4321_v33 = vpop.eup %4320  ;;  %v3078_v27 = vsub.f32 1.5, %v3077_v59 }
 0x328   : > { %v2777_v36 = vpop.xlane.xlu0 %2776  ;;  %v3085_v54 = vmul.f32 %v4321_v33, %v6656_v17  ;;  %v6687_v29 = vadd.f32 1e-05, %v2926_v8  ;;  %v2401_v5 = vadd.f32 %v2400_v42, %v2312_v56  ;;  %vm3091_vm6 = vweird.f32 %v4321_v33 }
 0x329   : > { %v4044_v58 = vpack.c.bf16 %v3405_v61, %v3404_v24  ;;  %v3079_v62 = vmul.f32 %v6658_v4, %v3078_v27  ;;  %v6692_v52 = vadd.f32 %v2577_v22, %v5952_v15  ;;  %v2863_v57 = vmul.f32 %v6683_v63, %v6683_v63  ;;  %vm3092_vm8 = vmor %vm3090_vm7, %vm3091_vm6 }
 0x32a   : > { %v3086_v23 = vmul.f32 %v4321_v33, %v3085_v54  ;;  %4322 = vrsqrt.f32 %v6687_v29  ;;  %v2831_v34 = vmul.f32 %v2777_v36, %v4910_v43  ;;  %v2956_v24 = vsub.f32 %v6368_v26, %v6597_v16 }
 0x32b   : > { %4127 = vst [vmem:[%s6577_s24 + $0x10] sm:$0xff] %v4044_v58   ;;  %2678 = vadd.xlane.f32.xlu1 %v6692_v52  ;;  %v2750_v15 = vmul.f32 %v6692_v52, %v6692_v52  ;;  %v3083_v13 = vsel %vm6699_vm5, %v6658_v4, %v3079_v62  ;;  %v2957_v16 = vsub.f32 %v6377_v45, %v6621_v44  ;;  %vm3100_vm10 = vweird.f32 %v6687_v29 }
 0x32c   : > { %v2489_v53 = vpop.f32.mrf.mxu2  ;;  %v2578_v30 = vpop.f32.mrf.mxu3  ;;  %v3087_v25 = vmul.f32 0.5, %v3086_v23  ;;  %v2895_v19 = vsub.f32 %v2831_v34, %v2863_v57  ;;  %v3340_v22 = vmul.f32 %v3083_v13, %v2956_v24 }
 0x32d   : > { %v2490_v9 = vadd.f32 %v2489_v53, %v2401_v5  ;;  %v2314_v37 = vpop.f32.mrf.mxu0  ;;  %v2403_v42 = vpop.f32.mrf.mxu1  ;;  %2806 = vadd.xlane.f32.xlu0 %v2750_v15 }
 0x32e   : > { %v2651_v59 = vpop.xlane.xlu2 %2650  ;;  %v3088_v56 = vsub.f32 1.5, %v3087_v25  ;;  %v2927_v32 = vmax.f32 %v2895_v19, 0.0  ;;  %v2315_v8 = vadd.f32 %v6678_v10, %v2314_v37 }
 0x32f   : > { %v2579_v61 = vadd.f32 %v2578_v30, %v2490_v9  ;;  %v6713_v27 = vmul.f32 %v2651_v59, %v4910_v43 }
 0x330   : > { %v2779_v4 = vpop.xlane.xlu1 %2778  ;;  %v6715_v36 = vpop.eup %4322  ;;  %v3089_v58 = vmul.f32 %v4321_v33, %v3088_v56  ;;  %v6718_v54 = vadd.f32 1e-05, %v2927_v32  ;;  %v2404_v17 = vadd.f32 %v2403_v42, %v2315_v8 }
 0x331   : > { %v6721_v26 = vadd.f32 %v2579_v61, %v5955_v60  ;;  %v3095_v62 = vmul.f32 %v6715_v36, %v6687_v29  ;;  %v2864_v57 = vmul.f32 %v6713_v27, %v6713_v27  ;;  %v2832_v5 = vmul.f32 %v2779_v4, %v4910_v43 }
 0x332   : > { %v3093_v23 = vsel %vm3092_vm8, %v4321_v33, %v3089_v58  ;;  %4324 = vrsqrt.f32 %v6718_v54  ;;  %v3373_v60 = vmul.f32 %v6527_v55, %v3340_v22  ;;  %vm3101_vm9 = vweird.f32 %v6715_v36 }
 0x333   : > { %2680 = vadd.xlane.f32.xlu2 %v6721_v26  ;;  %v3341_v34 = vmul.f32 %v3093_v23, %v2957_v16  ;;  %v3096_v45 = vmul.f32 %v6715_v36, %v3095_v62  ;;  %v2751_v53 = vmul.f32 %v6721_v26, %v6721_v26  ;;  %v2896_v30 = vsub.f32 %v2832_v5, %v2864_v57  ;;  %vm6761_vm11 = vmor %vm3100_vm10, %vm3101_vm9 }
 0x334   : > { %v2492_v44 = vpop.f32.mrf.mxu2  ;;  %v2581_v0 = vpop.f32.mrf.mxu3  ;;  %v3406_v56 = vadd.f32 %v6551_v2, %v3373_v60  ;;  %vm3110_vm13 = vweird.f32 %v6718_v54 }
 0x335   : > { %v2493_v15 = vadd.f32 %v2492_v44, %v2404_v17  ;;  %v2316_v33 = vpop.f32.mrf.mxu0  ;;  %v2405_v13 = vpop.f32.mrf.mxu1  ;;  %v3374_v25 = vmul.f32 %v6527_v55, %v3341_v34  ;;  %v3097_v19 = vmul.f32 0.5, %v3096_v45  ;;  %2808 = vadd.xlane.f32.xlu1 %v2751_v53  ;;  %v2928_v37 = vmax.f32 %v2896_v30, 0.0 }
 0x336   : > { %v2653_v9 = vpop.xlane.xlu0 %2652  ;;  %v2317_v24 = vadd.f32 %v6678_v10, %v2316_v33  ;;  %v2958_v33 = vsub.f32 %v6386_v14, %v6653_v12  ;;  %v2959_v12 = vsub.f32 %v6395_v11, %v6683_v63 }
 0x337   : > { %v2582_v42 = vadd.f32 %v2581_v0, %v2493_v15  ;;  %v6740_v59 = vmul.f32 %v2653_v9, %v4910_v43  ;;  %v3407_v32 = vadd.f32 %v6551_v2, %v3374_v25  ;;  %v3098_v61 = vsub.f32 1.5, %v3097_v19 }
 0x338   : > { %v2781_v8 = vpop.xlane.xlu2 %2780  ;;  %v4325_v22 = vpop.eup %4324  ;;  %v6745_v4 = vadd.f32 1e-05, %v2928_v37  ;;  %v2406_v17 = vadd.f32 %v2405_v13, %v2317_v24 }
 0x339   : > { %v6748_v58 = vadd.f32 %v2582_v42, %v6006_v40  ;;  %v2865_v16 = vmul.f32 %v6740_v59, %v6740_v59  ;;  %v4049_v62 = vpack.c.bf16 %v3407_v32, %v3406_v56  ;;  %v3099_v57 = vmul.f32 %v6715_v36, %v3098_v61 }
 0x33a   : > { %v3105_v23 = vmul.f32 %v4325_v22, %v6718_v54  ;;  %4326 = vrsqrt.f32 %v6745_v4  ;;  %v2833_v5 = vmul.f32 %v2781_v8, %v4910_v43  ;;  %vm3111_vm12 = vweird.f32 %v4325_v22 }
 0x33b   : > { %2682 = vadd.xlane.f32.xlu0 %v6748_v58  ;;  %v2752_v40 = vmul.f32 %v6748_v58, %v6748_v58  ;;  %4128 = vst [vmem:[%s6577_s24 + $0x18] sm:$0xff] %v4049_v62   ;;  %v3103_v44 = vsel %vm6761_vm11, %v6715_v36, %v3099_v57  ;;  %vm3112_vm14 = vmor %vm3110_vm13, %vm3111_vm12  ;;  %vm3120_vm0 = vweird.f32 %v6745_v4 }
 0x33c   : > { %v3106_v34 = vmul.f32 %v4325_v22, %v3105_v23  ;;  %v2494_v45 = vpop.f32.mrf.mxu2  ;;  %v2583_v29 = vpop.f32.mrf.mxu3  ;;  %v2897_v0 = vsub.f32 %v2833_v5, %v2865_v16  ;;  %v3342_v24 = vmul.f32 %v3103_v44, %v2958_v33 }
 0x33d   : > { %v2495_v53 = vadd.f32 %v2494_v45, %v2406_v17  ;;  %2810 = vadd.xlane.f32.xlu2 %v2752_v40  ;;  %v2319_v30 = vpop.f32.mrf.mxu0  ;;  %v2408_v15 = vpop.f32.mrf.mxu1 }
 0x33e   : > { %v3107_v13 = vmul.f32 0.5, %v3106_v34  ;;  %v2655_v25 = vpop.xlane.xlu1 %2654  ;;  %v2929_v19 = vmax.f32 %v2897_v0, 0.0  ;;  %v2320_v37 = vadd.f32 %v6678_v10, %v2319_v30  ;;  %v3375_v17 = vmul.f32 %v6527_v55, %v3342_v24 }
 0x33f   : > { %v2584_v9 = vadd.f32 %v2583_v29, %v2495_v53  ;;  %v6772_v42 = vmul.f32 %v2655_v25, %v4910_v43 }
 0x340   : > { %v3108_v56 = vsub.f32 1.5, %v3107_v13  ;;  %v2783_v36 = vpop.xlane.xlu0 %2782  ;;  %v6774_v32 = vpop.eup %4326  ;;  %v6776_v61 = vadd.f32 1e-05, %v2929_v19  ;;  %v2409_v57 = vadd.f32 %v2408_v15, %v2320_v37  ;;  %v3408_v13 = vadd.f32 %v6551_v2, %v3375_v17 }
 0x341   : > { %v6779_v8 = vadd.f32 %v2584_v9, %v6009_v38  ;;  %v2866_v14 = vmul.f32 %v6772_v42, %v6772_v42  ;;  %v3115_v62 = vmul.f32 %v6774_v32, %v6745_v4  ;;  %v2834_v23 = vmul.f32 %v2783_v36, %v4910_v43 }
 0x342   : > { %v3109_v16 = vmul.f32 %v4325_v22, %v3108_v56  ;;  %4328 = vrsqrt.f32 %v6776_v61  ;;  %vm3121_vm15 = vweird.f32 %v6774_v32  ;;  %vm3130_vm3 = vweird.f32 %v6776_v61 }
 0x343   : > { %2684 = vadd.xlane.f32.xlu1 %v6779_v8  ;;  %v2753_v38 = vmul.f32 %v6779_v8, %v6779_v8  ;;  %v3116_v63 = vmul.f32 %v6774_v32, %v3115_v62  ;;  %v2898_v60 = vsub.f32 %v2834_v23, %v2866_v14  ;;  %vm6818_vm1 = vmor %vm3120_vm0, %vm3121_vm15 }
 0x344   : > { %v3113_v11 = vsel %vm3112_vm14, %v4325_v22, %v3109_v16  ;;  %v2497_v54 = vpop.f32.mrf.mxu2  ;;  %v2586_v5 = vpop.f32.mrf.mxu3 }
 0x345   : > { %v3343_v40 = vmul.f32 %v3113_v11, %v2959_v12  ;;  %v2498_v34 = vadd.f32 %v2497_v54, %v2409_v57  ;;  %2812 = vadd.xlane.f32.xlu0 %v2753_v38  ;;  %v2321_v45 = vpop.f32.mrf.mxu0  ;;  %v3117_v29 = vmul.f32 0.5, %v3116_v63  ;;  %v2410_v0 = vpop.f32.mrf.mxu1  ;;  %v2930_v15 = vmax.f32 %v2898_v60, 0.0 }
 0x346   : > { %v2322_v44 = vadd.f32 %v6678_v10, %v2321_v45  ;;  %v2657_v53 = vpop.xlane.xlu2 %2656 }
 0x347   : > { %v3376_v30 = vmul.f32 %v6527_v55, %v3343_v40  ;;  %v2587_v33 = vadd.f32 %v2586_v5, %v2498_v34  ;;  %v6798_v22 = vmul.f32 %v2657_v53, %v4910_v43  ;;  %v3118_v25 = vsub.f32 1.5, %v3117_v29 }
 0x348   : > { %v2785_v19 = vpop.xlane.xlu1 %2784  ;;  %v4329_v9 = vpop.eup %4328  ;;  %v6803_v24 = vadd.f32 1e-05, %v2930_v15  ;;  %v2411_v62 = vadd.f32 %v2410_v0, %v2322_v44  ;;  %v2960_v40 = vsub.f32 %v6404_v18, %v6713_v27 }
 0x349   : > { %v3409_v37 = vadd.f32 %v6551_v2, %v3376_v30  ;;  %v6806_v56 = vadd.f32 %v2587_v33, %v6064_v7  ;;  %v2867_v36 = vmul.f32 %v6798_v22, %v6798_v22  ;;  %v3119_v14 = vmul.f32 %v6774_v32, %v3118_v25 }
 0x34a   : > { %v3125_v12 = vmul.f32 %v4329_v9, %v6776_v61  ;;  %4330 = vrsqrt.f32 %v6803_v24  ;;  %v2835_v57 = vmul.f32 %v2785_v19, %v4910_v43  ;;  %vm3131_vm2 = vweird.f32 %v4329_v9 }
 0x34b   : > { %v4054_v16 = vpack.c.bf16 %v3409_v37, %v3408_v13  ;;  %2686 = vadd.xlane.f32.xlu2 %v6806_v56  ;;  %v2754_v4 = vmul.f32 %v6806_v56, %v6806_v56  ;;  %v3123_v11 = vsel %vm6818_vm1, %v6774_v32, %v3119_v14  ;;  %v2961_v37 = vsub.f32 %v6413_v21, %v6740_v59  ;;  %vm3132_vm4 = vmor %vm3130_vm3, %vm3131_vm2 }
 0x34c   : > { %v3126_v23 = vmul.f32 %v4329_v9, %v3125_v12  ;;  %v2499_v38 = vpop.f32.mrf.mxu2  ;;  %v2588_v17 = vpop.f32.mrf.mxu3  ;;  %v2899_v63 = vsub.f32 %v2835_v57, %v2867_v36  ;;  %v3344_v53 = vmul.f32 %v3123_v11, %v2960_v40  ;;  %vm3140_vm6 = vweird.f32 %v6803_v24 }
 0x34d   : > { %4129 = vst [vmem:[%s6577_s24 + $0x20] sm:$0xff] %v4054_v16   ;;  %v2500_v54 = vadd.f32 %v2499_v38, %v2411_v62  ;;  %v2324_v5 = vpop.f32.mrf.mxu0  ;;  %2814 = vadd.xlane.f32.xlu1 %v2754_v4  ;;  %v2413_v32 = vpop.f32.mrf.mxu1 }
 0x34e   : > { %v3127_v60 = vmul.f32 0.5, %v3126_v23  ;;  %v2659_v34 = vpop.xlane.xlu0 %2658  ;;  %v2931_v45 = vmax.f32 %v2899_v63, 0.0  ;;  %v2325_v0 = vadd.f32 %v6678_v10, %v2324_v5  ;;  %v3377_v14 = vmul.f32 %v6527_v55, %v3344_v53 }
 0x34f   : > { %v2589_v29 = vadd.f32 %v2588_v17, %v2500_v54  ;;  %v6831_v44 = vmul.f32 %v2659_v34, %v4910_v43 }
 0x350   : > { %v3128_v30 = vsub.f32 1.5, %v3127_v60  ;;  %v2787_v15 = vpop.xlane.xlu2 %2786  ;;  %v6834_v33 = vpop.eup %4330  ;;  %v6836_v13 = vadd.f32 1e-05, %v2931_v45 }
 0x351   : > { %v6839_v18 = vadd.f32 %v2589_v29, %v6067_v3  ;;  %v2868_v27 = vmul.f32 %v6831_v44, %v6831_v44  ;;  %v3135_v19 = vmul.f32 %v6834_v33, %v6803_v24  ;;  %v2836_v36 = vmul.f32 %v2787_v15, %v4910_v43 }
 0x352   : > { %v3129_v25 = vmul.f32 %v4329_v9, %v3128_v30  ;;  %4332 = vrsqrt.f32 %v6836_v13  ;;  %v2414_v3 = vadd.f32 %v2413_v32, %v2325_v0  ;;  %vm3141_vm5 = vweird.f32 %v6834_v33 }
 0x353   : > { %2688 = vadd.xlane.f32.xlu0 %v6839_v18  ;;  %v3136_v16 = vmul.f32 %v6834_v33, %v3135_v19  ;;  %v2900_v7 = vsub.f32 %v2836_v36, %v2868_v27  ;;  %vm6876_vm7 = vmor %vm3140_vm6, %vm3141_vm5  ;;  %vm3150_vm9 = vweird.f32 %v6836_v13 }
 0x354   : > { %v3133_v12 = vsel %vm3132_vm4, %v4329_v9, %v3129_v25  ;;  %v2502_v61 = vpop.f32.mrf.mxu2  ;;  %v2591_v62 = vpop.f32.mrf.mxu3  ;;  %v3410_v9 = vadd.f32 %v6551_v2, %v3377_v14  ;;  %v2962_v14 = vsub.f32 %v6422_v48, %v6772_v42 }
 0x355   : > { %v3345_v57 = vmul.f32 %v3133_v12, %v2961_v37  ;;  %v2503_v23 = vadd.f32 %v2502_v61, %v2414_v3  ;;  %v2326_v38 = vpop.f32.mrf.mxu0  ;;  %v3137_v21 = vmul.f32 0.5, %v3136_v16  ;;  %v2932_v11 = vmax.f32 %v2900_v7, 0.0  ;;  %v2415_v30 = vpop.f32.mrf.mxu1 }
 0x356   : > { %v2661_v59 = vpop.xlane.xlu1 %2660  ;;  %v2327_v17 = vadd.f32 %v6678_v10, %v2326_v38 }
 0x357   : > { %v3378_v4 = vmul.f32 %v6527_v55, %v3345_v57  ;;  %v2592_v63 = vadd.f32 %v2591_v62, %v2503_v23  ;;  %v6856_v54 = vmul.f32 %v2661_v59, %v4910_v43  ;;  %v3138_v5 = vsub.f32 1.5, %v3137_v21 }
 0x358   : > { %v2789_v40 = vpop.xlane.xlu0 %2788  ;;  %v4333_v60 = vpop.eup %4332  ;;  %v6861_v45 = vadd.f32 1e-05, %v2932_v11  ;;  %v2416_v27 = vadd.f32 %v2415_v30, %v2327_v17  ;;  %v2963_v11 = vsub.f32 %v6431_v49, %v6798_v22 }
 0x359   : > { %v3411_v34 = vadd.f32 %v6551_v2, %v3378_v4  ;;  %v6864_v10 = vadd.f32 %v2592_v63, %v6110_v6  ;;  %v2869_v29 = vmul.f32 %v6856_v54, %v6856_v54  ;;  %v3139_v0 = vmul.f32 %v6834_v33, %v3138_v5 }
 0x35a   : > { %v3145_v53 = vmul.f32 %v4333_v60, %v6836_v13  ;;  %4334 = vrsqrt.f32 %v6861_v45  ;;  %v2837_v15 = vmul.f32 %v2789_v40, %v4910_v43  ;;  %vm3151_vm8 = vweird.f32 %v4333_v60 }
 0x35b   : > { %v4059_v32 = vpack.c.bf16 %v3411_v34, %v3410_v9  ;;  %2690 = vadd.xlane.f32.xlu1 %v6864_v10  ;;  %v2756_v24 = vmul.f32 %v6864_v10, %v6864_v10  ;;  %v3143_v37 = vsel %vm6876_vm7, %v6834_v33, %v3139_v0  ;;  %vm3152_vm10 = vmor %vm3150_vm9, %vm3151_vm8  ;;  %vm3160_vm12 = vweird.f32 %v6861_v45 }
 0x35c   : > { %v3146_v25 = vmul.f32 %v4333_v60, %v3145_v53  ;;  %v2504_v19 = vpop.f32.mrf.mxu2  ;;  %v2901_v36 = vsub.f32 %v2837_v15, %v2869_v29  ;;  %v2593_v16 = vpop.f32.mrf.mxu3  ;;  %v3346_v23 = vmul.f32 %v3143_v37, %v2962_v14 }
 0x35d   : > { %4130 = vst [vmem:[%s6577_s24 + $0x28] sm:$0xff] %v4059_v32   ;;  %v2505_v3 = vadd.f32 %v2504_v19, %v2416_v27  ;;  %2818 = vadd.xlane.f32.xlu0 %v2756_v24  ;;  %v2755_v27 = vmul.f32 %v6839_v18, %v6839_v18 }
 0x35e   : > { %v3147_v12 = vmul.f32 0.5, %v3146_v25  ;;  %v2663_v61 = vpop.xlane.xlu2 %2662  ;;  %v2933_v62 = vmax.f32 %v2901_v36, 0.0  ;;  %v3379_v9 = vmul.f32 %v6527_v55, %v3346_v23 }
 0x35f   : > { %v2594_v57 = vadd.f32 %v2593_v16, %v2505_v3  ;;  %v6889_v7 = vmul.f32 %v2663_v61, %v4910_v43  ;;  %v2964_v61 = vsub.f32 %v6440_v50, %v6831_v44 }
 0x360   : > { %v3148_v38 = vsub.f32 1.5, %v3147_v12  ;;  %v2791_v21 = vpop.xlane.xlu1 %2790  ;;  %v4335_v59 = vpop.eup %4334  ;;  %v2997_v33 = vadd.f32 1e-05, %v2933_v62  ;;  %v3412_v30 = vadd.f32 %v6551_v2, %v3379_v9 }
 0x361   : > { %v6892_v17 = vadd.f32 %v2594_v57, %v6113_v20  ;;  %v2870_v48 = vmul.f32 %v6889_v7, %v6889_v7  ;;  %v3155_v4 = vmul.f32 %v4335_v59, %v6861_v45  ;;  %v2838_v63 = vmul.f32 %v2791_v21, %v4910_v43 }
 0x362   : > { %v3149_v42 = vmul.f32 %v4333_v60, %v3148_v38  ;;  %4336 = vrsqrt.f32 %v2997_v33  ;;  %vm3161_vm11 = vweird.f32 %v4335_v59  ;;  %vm3170_vm15 = vweird.f32 %v2997_v33 }
 0x363   : > { %2692 = vadd.xlane.f32.xlu2 %v6892_v17  ;;  %v2757_v20 = vmul.f32 %v6892_v17, %v6892_v17  ;;  %v3156_v40 = vmul.f32 %v4335_v59, %v3155_v4  ;;  %v2902_v13 = vsub.f32 %v2838_v63, %v2870_v48  ;;  %vm3162_vm13 = vmor %vm3160_vm12, %vm3161_vm11 }
 0x364   : > { %v3153_v5 = vsel %vm3152_vm10, %v4333_v60, %v3149_v42 }
 0x365   : > { %v3347_v34 = vmul.f32 %v3153_v5, %v2963_v11  ;;  %2820 = vadd.xlane.f32.xlu1 %v2757_v20  ;;  %v3157_v29 = vmul.f32 0.5, %v3156_v40  ;;  %v2934_v22 = vmax.f32 %v2902_v13, 0.0 }
 0x366   : > { %v2665_v0 = vpop.xlane.xlu0 %2664 }
 0x367   : > { %v3380_v49 = vmul.f32 %v6527_v55, %v3347_v34  ;;  %v6907_v53 = vmul.f32 %v2665_v0, %v4910_v43  ;;  %v3158_v32 = vsub.f32 1.5, %v3157_v29  ;;  %v2998_v25 = vadd.f32 1e-05, %v2934_v22 }
 0x368   : > { %v2793_v15 = vpop.xlane.xlu2 %2792  ;;  %v4337_v60 = vpop.eup %4336 }
 0x369   : > { %v3413_v6 = vadd.f32 %v6551_v2, %v3380_v49  ;;  %v2871_v19 = vmul.f32 %v6907_v53, %v6907_v53  ;;  %v3159_v24 = vmul.f32 %v4335_v59, %v3158_v32  ;;  %v3165_v37 = vmul.f32 %v4337_v60, %v2997_v33 }
 0x36a   : > { %v2839_v36 = vmul.f32 %v2793_v15, %v4910_v43  ;;  %4338 = vrsqrt.f32 %v2998_v25  ;;  %vm3171_vm14 = vweird.f32 %v4337_v60  ;;  %vm3180_vm2 = vweird.f32 %v2998_v25 }
 0x36b   : > { %v4064_v3 = vpack.c.bf16 %v3413_v6, %v3412_v30  ;;  %2816 = vadd.xlane.f32.xlu2 %v2755_v27  ;;  %v3166_v14 = vmul.f32 %v4337_v60, %v3165_v37  ;;  %v3163_v16 = vsel %vm3162_vm13, %v4335_v59, %v3159_v24  ;;  %v2965_v59 = vsub.f32 %v6450_v41, %v6856_v54  ;;  %vm3172_vm0 = vmor %vm3170_vm15, %vm3171_vm14 }
 0x36c   : > { %v2903_v12 = vsub.f32 %v2839_v36, %v2871_v19  ;;  %v3348_v38 = vmul.f32 %v3163_v16, %v2964_v61 }
 0x36d   : > { %4131 = vst [vmem:[%s6577_s24 + $0x30] sm:$0xff] %v4064_v3   ;;  %v3167_v62 = vmul.f32 0.5, %v3166_v14 }
 0x36e   : > { %v2935_v57 = vmax.f32 %v2903_v12, 0.0  ;;  %v2667_v23 = vpop.xlane.xlu1 %2666  ;;  %v3381_v20 = vmul.f32 %v6527_v55, %v3348_v38 }
 0x36f   : > { %v3168_v21 = vsub.f32 1.5, %v3167_v62  ;;  %v6921_v42 = vmul.f32 %v2667_v23, %v4910_v43 }
 0x370   : > { %v2999_v48 = vadd.f32 1e-05, %v2935_v57  ;;  %v4339_v45 = vpop.eup %4338  ;;  %v2795_v4 = vpop.xlane.xlu0 %2794  ;;  %v3414_v54 = vadd.f32 %v6551_v2, %v3381_v20 }
 0x371   : > { %v3169_v11 = vmul.f32 %v4337_v60, %v3168_v21  ;;  %v3175_v63 = vmul.f32 %v4339_v45, %v2998_v25  ;;  %v2872_v50 = vmul.f32 %v6921_v42, %v6921_v42  ;;  %v2840_v44 = vmul.f32 %v2795_v4, %v4910_v43 }
 0x372   : > { %4340 = vrsqrt.f32 %v2999_v48  ;;  %vm3181_vm1 = vweird.f32 %v4339_v45  ;;  %vm3190_vm5 = vweird.f32 %v2999_v48 }
 0x373   : > { %v3173_v9 = vsel %vm3172_vm0, %v4337_v60, %v3169_v11  ;;  %v3176_v5 = vmul.f32 %v4339_v45, %v3175_v63  ;;  %v2904_v34 = vsub.f32 %v2840_v44, %v2872_v50  ;;  %vm3182_vm3 = vmor %vm3180_vm2, %vm3181_vm1  ;;  %v6949_v11 = vld [vmem:[#allocation10 + $0x3] ss:$0 sm:$0xff] }
 0x374   : > { %v3349_v40 = vmul.f32 %v3173_v9, %v2965_v59 }
 0x375   : > { %v3177_v13 = vmul.f32 0.5, %v3176_v5  ;;  %v2936_v0 = vmax.f32 %v2904_v34, 0.0 }
 0x376   : > { %v2669_v29 = vpop.xlane.xlu2 %2668  ;;  %v3382_v33 = vmul.f32 %v6527_v55, %v3349_v40  ;;  %v6956_v40 = vld [vmem:[#allocation10 + $0x4] ss:$0 sm:$0xff] }
 0x377   : > { %v6931_v49 = vmul.f32 %v2669_v29, %v4910_v43  ;;  %v3178_v22 = vsub.f32 1.5, %v3177_v13  ;;  %v3000_v27 = vadd.f32 1e-05, %v2936_v0 }
 0x378   : > { %v4341_v41 = vpop.eup %4340  ;;  %v2797_v30 = vpop.xlane.xlu1 %2796  ;;  %v3415_v32 = vadd.f32 %v6551_v2, %v3382_v33  ;;  %v2966_v2 = vsub.f32 %v6466_v47, %v6889_v7 }
 0x379   : > { %v3185_v15 = vmul.f32 %v4341_v41, %v2999_v48  ;;  %v3179_v60 = vmul.f32 %v4339_v45, %v3178_v22  ;;  %v2873_v6 = vmul.f32 %v6931_v49, %v6931_v49  ;;  %v2841_v55 = vmul.f32 %v2797_v30, %v4910_v43 }
 0x37a   : > { %v4069_v19 = vpack.c.bf16 %v3415_v32, %v3414_v54  ;;  %4342 = vrsqrt.f32 %v3000_v27  ;;  %vm3191_vm4 = vweird.f32 %v4341_v41  ;;  %vm3200_vm8 = vweird.f32 %v3000_v27 }
 0x37b   : > { %v3186_v24 = vmul.f32 %v4341_v41, %v3185_v15  ;;  %v2905_v37 = vsub.f32 %v2841_v55, %v2873_v6  ;;  %v3183_v36 = vsel %vm3182_vm3, %v4339_v45, %v3179_v60  ;;  %v2967_v45 = vsub.f32 %v6485_v31, %v6907_v53  ;;  %vm3192_vm6 = vmor %vm3190_vm5, %vm3191_vm4 }
 0x37c   : > { %4132 = vst [vmem:[%s6577_s24 + $0x38] sm:$0xff] %v4069_v19   ;;  %v3350_v62 = vmul.f32 %v3183_v36, %v2966_v2  ;;  %v2968_v19 = vsub.f32 %v6506_v39, %v6921_v42 }
 0x37d   : > { %v3187_v3 = vmul.f32 0.5, %v3186_v24  ;;  %v2937_v14 = vmax.f32 %v2905_v37, 0.0 }
 0x37e   : > { %v2671_v12 = vpop.xlane.xlu0 %2670  ;;  %v3383_v63 = vmul.f32 %v6949_v11, %v3350_v62 }
 0x37f   : > { %v3188_v16 = vsub.f32 1.5, %v3187_v3  ;;  %v6942_v61 = vmul.f32 %v2671_v12, %v4910_v43  ;;  %v3001_v57 = vadd.f32 1e-05, %v2937_v14 }
 0x380   : > { %v4343_v25 = vpop.eup %4342  ;;  %v2799_v21 = vpop.xlane.xlu2 %2798  ;;  %v3416_v34 = vadd.f32 %v6956_v40, %v3383_v63 }
 0x381   : > { %v3189_v23 = vmul.f32 %v4341_v41, %v3188_v16  ;;  %v2874_v38 = vmul.f32 %v6942_v61, %v6942_v61  ;;  %v3195_v47 = vmul.f32 %v4343_v25, %v3000_v27  ;;  %4344 = vrsqrt.f32 %v3001_v57 }
 0x382   : > { %v2842_v4 = vmul.f32 %v2799_v21, %v4910_v43  ;;  %vm3201_vm7 = vweird.f32 %v4343_v25  ;;  %vm3210_vm11 = vweird.f32 %v3001_v57 }
 0x383   : > { %v3193_v7 = vsel %vm3192_vm6, %v4341_v41, %v3189_v23  ;;  %v3196_v50 = vmul.f32 %v4343_v25, %v3195_v47  ;;  %vm3202_vm9 = vmor %vm3200_vm8, %vm3201_vm7 }
 0x384   : > { %v3351_v59 = vmul.f32 %v3193_v7, %v2967_v45  ;;  %v2906_v48 = vsub.f32 %v2842_v4, %v2874_v38 }
 0x385   : > { %v3197_v20 = vmul.f32 0.5, %v3196_v50 }
 0x386   : > { %v3384_v44 = vmul.f32 %v6949_v11, %v3351_v59  ;;  %v2673_v9 = vpop.xlane.xlu1 %2672  ;;  %v2938_v5 = vmax.f32 %v2906_v48, 0.0 }
 0x387   : > { %v6954_v31 = vmul.f32 %v2673_v9, %v4910_v43  ;;  %v4345_v53 = vpop.eup %4344  ;;  %v3198_v29 = vsub.f32 1.5, %v3197_v20 }
 0x388   : > { %v3417_v13 = vadd.f32 %v6956_v40, %v3384_v44  ;;  %v2801_v33 = vpop.xlane.xlu0 %2800  ;;  %v3205_v0 = vmul.f32 %v4345_v53, %v3001_v57  ;;  %v3002_v41 = vadd.f32 1e-05, %v2938_v5  ;;  %vm3211_vm10 = vweird.f32 %v4345_v53 }
 0x389   : > { %v2875_v54 = vmul.f32 %v6954_v31, %v6954_v31  ;;  %v3199_v30 = vmul.f32 %v4343_v25, %v3198_v29  ;;  %v2843_v32 = vmul.f32 %v2801_v33, %v4910_v43  ;;  %vm3212_vm12 = vmor %vm3210_vm11, %vm3211_vm10 }
 0x38a   : > { %v4074_v22 = vpack.c.bf16 %v3417_v13, %v3416_v34  ;;  %v3206_v15 = vmul.f32 %v4345_v53, %v3205_v0  ;;  %4346 = vrsqrt.f32 %v3002_v41  ;;  %vm3220_vm14 = vweird.f32 %v3002_v41 }
 0x38b   : > { %v2907_v60 = vsub.f32 %v2843_v32, %v2875_v54  ;;  %v3203_v6 = vsel %vm3202_vm9, %v4343_v25, %v3199_v30  ;;  %v2969_v25 = vsub.f32 %v6538_v46, %v6931_v49 }
 0x38c   : > { %4133 = vst [vmem:[%s6577_s24 + $0x40] sm:$0xff] %v4074_v22   ;;  %v3207_v55 = vmul.f32 0.5, %v3206_v15  ;;  %v3352_v2 = vmul.f32 %v3203_v6, %v2968_v19  ;;  %v2970_v22 = vsub.f32 %v6566_v35, %v6942_v61 }
 0x38d   : > { %v2939_v24 = vmax.f32 %v2907_v60, 0.0 }
 0x38e   : > { %v2675_v37 = vpop.xlane.xlu2 %2674  ;;  %v3208_v36 = vsub.f32 1.5, %v3207_v55  ;;  %v3385_v38 = vmul.f32 %v6949_v11, %v3352_v2 }
 0x38f   : > { %v6967_v3 = vmul.f32 %v2675_v37, %v4910_v43  ;;  %v3003_v14 = vadd.f32 1e-05, %v2939_v24  ;;  %v2971_v37 = vsub.f32 %v6603_v51, %v6954_v31 }
 0x390   : > { %v2803_v27 = vpop.xlane.xlu1 %2802  ;;  %v4347_v12 = vpop.eup %4346  ;;  %v3209_v16 = vmul.f32 %v4345_v53, %v3208_v36  ;;  %v3418_v49 = vadd.f32 %v6956_v40, %v3385_v38 }
 0x391   : > { %v2876_v62 = vmul.f32 %v6967_v3, %v6967_v3  ;;  %v3215_v39 = vmul.f32 %v4347_v12, %v3002_v41  ;;  %4348 = vrsqrt.f32 %v3003_v14  ;;  %v2844_v23 = vmul.f32 %v2803_v27, %v4910_v43 }
 0x392   : > { %v3213_v42 = vsel %vm3212_vm12, %v4345_v53, %v3209_v16  ;;  %vm3221_vm13 = vweird.f32 %v4347_v12  ;;  %vm3230_vm1 = vweird.f32 %v3003_v14 }
 0x393   : > { %v3353_v21 = vmul.f32 %v3213_v42, %v2969_v25  ;;  %v3216_v45 = vmul.f32 %v4347_v12, %v3215_v39  ;;  %v2908_v47 = vsub.f32 %v2844_v23, %v2876_v62  ;;  %vm3222_vm15 = vmor %vm3220_vm14, %vm3221_vm13 }
 0x395   : > { %v3386_v7 = vmul.f32 %v6949_v11, %v3353_v21  ;;  %v3217_v57 = vmul.f32 0.5, %v3216_v45  ;;  %v2940_v63 = vmax.f32 %v2908_v47, 0.0 }
 0x396   : > { %v2677_v4 = vpop.xlane.xlu0 %2676 }
 0x397   : > { %v6977_v59 = vmul.f32 %v2677_v4, %v4910_v43  ;;  %v4349_v46 = vpop.eup %4348  ;;  %v3419_v50 = vadd.f32 %v6956_v40, %v3386_v7  ;;  %v3218_v48 = vsub.f32 1.5, %v3217_v57  ;;  %v3004_v9 = vadd.f32 1e-05, %v2940_v63 }
 0x398   : > { %v2805_v44 = vpop.xlane.xlu2 %2804  ;;  %v3225_v20 = vmul.f32 %v4349_v46, %v3003_v14  ;;  %vm3231_vm0 = vweird.f32 %v4349_v46 }
 0x399   : > { %v2877_v5 = vmul.f32 %v6977_v59, %v6977_v59  ;;  %v4079_v53 = vpack.c.bf16 %v3419_v50, %v3418_v49  ;;  %v3219_v34 = vmul.f32 %v4347_v12, %v3218_v48  ;;  %v2845_v13 = vmul.f32 %v2805_v44, %v4910_v43  ;;  %vm3232_vm2 = vmor %vm3230_vm1, %vm3231_vm0 }
 0x39a   : > { %v3226_v29 = vmul.f32 %v4349_v46, %v3225_v20  ;;  %4350 = vrsqrt.f32 %v3004_v9  ;;  %vm3240_vm4 = vweird.f32 %v3004_v9  ;;  %v2972_v20 = vsub.f32 %v6630_v28, %v6967_v3 }
 0x39b   : > { %4134 = vst [vmem:[%s6577_s24 + $0x48] sm:$0xff] %v4079_v53   ;;  %v2909_v33 = vsub.f32 %v2845_v13, %v2877_v5  ;;  %v3223_v0 = vsel %vm3222_vm15, %v4347_v12, %v3219_v34 }
 0x39c   : > { %v3227_v54 = vmul.f32 0.5, %v3226_v29  ;;  %v3354_v60 = vmul.f32 %v3223_v0, %v2970_v22 }
 0x39d   : > { %v2941_v30 = vmax.f32 %v2909_v33, 0.0 }
 0x39e   : > { %v3228_v32 = vsub.f32 1.5, %v3227_v54  ;;  %v2679_v15 = vpop.xlane.xlu1 %2678  ;;  %v3387_v27 = vmul.f32 %v6949_v11, %v3354_v60 }
 0x39f   : > { %v3005_v6 = vadd.f32 1e-05, %v2941_v30  ;;  %v6988_v55 = vmul.f32 %v2679_v15, %v4910_v43  ;;  %v2973_v30 = vsub.f32 %v6663_v1, %v6977_v59 }
 0x3a0   : > { %v4351_v41 = vpop.eup %4350  ;;  %v3229_v19 = vmul.f32 %v4349_v46, %v3228_v32  ;;  %v2807_v24 = vpop.xlane.xlu0 %2806  ;;  %v3420_v23 = vadd.f32 %v6956_v40, %v3387_v27 }
 0x3a1   : > { %v3235_v36 = vmul.f32 %v4351_v41, %v3004_v9  ;;  %4352 = vrsqrt.f32 %v3005_v6  ;;  %v2878_v61 = vmul.f32 %v6988_v55, %v6988_v55  ;;  %v2846_v2 = vmul.f32 %v2807_v24, %v4910_v43 }
 0x3a2   : > { %v3233_v35 = vsel %vm3232_vm2, %v4349_v46, %v3229_v19  ;;  %vm3241_vm3 = vweird.f32 %v4351_v41  ;;  %vm3250_vm7 = vweird.f32 %v3005_v6 }
 0x3a3   : > { %v3355_v12 = vmul.f32 %v3233_v35, %v2971_v37  ;;  %v3236_v16 = vmul.f32 %v4351_v41, %v3235_v36  ;;  %v2910_v62 = vsub.f32 %v2846_v2, %v2878_v61  ;;  %vm3242_vm5 = vmor %vm3240_vm4, %vm3241_vm3 }
 0x3a5   : > { %v3388_v14 = vmul.f32 %v6949_v11, %v3355_v12  ;;  %v3237_v25 = vmul.f32 0.5, %v3236_v16  ;;  %v2942_v42 = vmax.f32 %v2910_v62, 0.0 }
 0x3a6   : > { %v2681_v39 = vpop.xlane.xlu2 %2680 }
 0x3a7   : > { %v6998_v51 = vmul.f32 %v2681_v39, %v4910_v43  ;;  %v4353_v31 = vpop.eup %4352  ;;  %v3421_v38 = vadd.f32 %v6956_v40, %v3388_v14  ;;  %v3238_v21 = vsub.f32 1.5, %v3237_v25  ;;  %v3006_v47 = vadd.f32 1e-05, %v2942_v42 }
 0x3a8   : > { %v3245_v45 = vmul.f32 %v4353_v31, %v3005_v6  ;;  %v2809_v57 = vpop.xlane.xlu1 %2808  ;;  %vm3251_vm6 = vweird.f32 %v4353_v31 }
 0x3a9   : > { %v2879_v7 = vmul.f32 %v6998_v51, %v6998_v51  ;;  %v4084_v4 = vpack.c.bf16 %v3421_v38, %v3420_v23  ;;  %v3239_v63 = vmul.f32 %v4351_v41, %v3238_v21  ;;  %v2847_v46 = vmul.f32 %v2809_v57, %v4910_v43  ;;  %vm3252_vm8 = vmor %vm3250_vm7, %vm3251_vm6 }
 0x3aa   : > { %v3246_v49 = vmul.f32 %v4353_v31, %v3245_v45  ;;  %4354 = vrsqrt.f32 %v3006_v47  ;;  %vm3260_vm10 = vweird.f32 %v3006_v47  ;;  %v2974_v21 = vsub.f32 %v6692_v52, %v6988_v55 }
 0x3ab   : > { %4135 = vst [vmem:[%s6577_s24 + $0x50] sm:$0xff] %v4084_v4   ;;  %v2911_v50 = vsub.f32 %v2847_v46, %v2879_v7  ;;  %v3243_v48 = vsel %vm3242_vm5, %v4351_v41, %v3239_v63 }
 0x3ac   : > { %v3247_v44 = vmul.f32 0.5, %v3246_v49  ;;  %v3356_v29 = vmul.f32 %v3243_v48, %v2972_v20 }
 0x3ad   : > { %v2943_v5 = vmax.f32 %v2911_v50, 0.0 }
 0x3ae   : > { %v2683_v53 = vpop.xlane.xlu0 %2682  ;;  %v3248_v34 = vsub.f32 1.5, %v3247_v44  ;;  %v3389_v15 = vmul.f32 %v6949_v11, %v3356_v29 }
 0x3af   : > { %v7009_v13 = vmul.f32 %v2683_v53, %v4910_v43  ;;  %v3007_v33 = vadd.f32 1e-05, %v2943_v5 }
 0x3b0   : > { %v2811_v9 = vpop.xlane.xlu2 %2810  ;;  %v4355_v0 = vpop.eup %4354  ;;  %v3249_v54 = vmul.f32 %v4353_v31, %v3248_v34  ;;  %v3422_v59 = vadd.f32 %v6956_v40, %v3389_v15 }
 0x3b1   : > { %v2880_v22 = vmul.f32 %v7009_v13, %v7009_v13  ;;  %v3255_v28 = vmul.f32 %v4355_v0, %v3006_v47  ;;  %4356 = vrsqrt.f32 %v3007_v33  ;;  %v2848_v32 = vmul.f32 %v2811_v9, %v4910_v43 }
 0x3b2   : > { %v3253_v3 = vsel %vm3252_vm8, %v4353_v31, %v3249_v54  ;;  %vm3261_vm9 = vweird.f32 %v4355_v0  ;;  %vm3270_vm13 = vweird.f32 %v3007_v33  ;;  %v2975_v47 = vsub.f32 %v6721_v26, %v6998_v51 }
 0x3b3   : > { %v3357_v60 = vmul.f32 %v3253_v3, %v2973_v30  ;;  %v3256_v41 = vmul.f32 %v4355_v0, %v3255_v28  ;;  %v2912_v19 = vsub.f32 %v2848_v32, %v2880_v22  ;;  %vm3262_vm11 = vmor %vm3260_vm10, %vm3261_vm9 }
 0x3b5   : > { %v3390_v24 = vmul.f32 %v6949_v11, %v3357_v60  ;;  %v3257_v6 = vmul.f32 0.5, %v3256_v41  ;;  %v2944_v36 = vmax.f32 %v2912_v19, 0.0  ;;  %v2976_v41 = vsub.f32 %v6748_v58, %v7009_v13 }
 0x3b6   : > { %v2685_v37 = vpop.xlane.xlu1 %2684 }
 0x3b7   : > { %v7019_v35 = vmul.f32 %v2685_v37, %v4910_v43  ;;  %v4357_v1 = vpop.eup %4356  ;;  %v3423_v61 = vadd.f32 %v6956_v40, %v3390_v24  ;;  %v3258_v2 = vsub.f32 1.5, %v3257_v6  ;;  %v3008_v16 = vadd.f32 1e-05, %v2944_v36 }
 0x3b8   : > { %v2813_v27 = vpop.xlane.xlu0 %2812  ;;  %v3265_v12 = vmul.f32 %v4357_v1, %v3007_v33  ;;  %vm3271_vm12 = vweird.f32 %v4357_v1 }
 0x3b9   : > { %v2881_v62 = vmul.f32 %v7019_v35, %v7019_v35  ;;  %v4089_v14 = vpack.c.bf16 %v3423_v61, %v3422_v59  ;;  %v3259_v25 = vmul.f32 %v4355_v0, %v3258_v2  ;;  %v2849_v39 = vmul.f32 %v2813_v27, %v4910_v43  ;;  %vm3272_vm14 = vmor %vm3270_vm13, %vm3271_vm12 }
 0x3ba   : > { %v3266_v42 = vmul.f32 %v4357_v1, %v3265_v12  ;;  %4358 = vrsqrt.f32 %v3008_v16  ;;  %vm3280_vm0 = vweird.f32 %v3008_v16  ;;  %v2977_v2 = vsub.f32 %v6779_v8, %v7019_v35 }
 0x3bb   : > { %4136 = vst [vmem:[%s6577_s24 + $0x58] sm:$0xff] %v4089_v14   ;;  %v2913_v31 = vsub.f32 %v2849_v39, %v2881_v62  ;;  %v3263_v23 = vsel %vm3262_vm11, %v4355_v0, %v3259_v25 }
 0x3bc   : > { %v3267_v38 = vmul.f32 0.5, %v3266_v42  ;;  %v3358_v4 = vmul.f32 %v3263_v23, %v2974_v21 }
 0x3bd   : > { %v2945_v45 = vmax.f32 %v2913_v31, 0.0 }
 0x3be   : > { %v3268_v7 = vsub.f32 1.5, %v3267_v38  ;;  %v2687_v57 = vpop.xlane.xlu2 %2686  ;;  %v3391_v55 = vmul.f32 %v6949_v11, %v3358_v4 }
 0x3bf   : > { %v3009_v63 = vadd.f32 1e-05, %v2945_v45  ;;  %v7032_v48 = vmul.f32 %v2687_v57, %v4910_v43 }
 0x3c0   : > { %v4359_v46 = vpop.eup %4358  ;;  %v3269_v49 = vmul.f32 %v4357_v1, %v3268_v7  ;;  %v2815_v52 = vpop.xlane.xlu1 %2814  ;;  %v3424_v33 = vadd.f32 %v6956_v40, %v3391_v55 }
 0x3c1   : > { %v3275_v50 = vmul.f32 %v4359_v46, %v3008_v16  ;;  %4360 = vrsqrt.f32 %v3009_v63  ;;  %v2882_v29 = vmul.f32 %v7032_v48, %v7032_v48  ;;  %v2850_v26 = vmul.f32 %v2815_v52, %v4910_v43 }
 0x3c2   : > { %v3273_v44 = vsel %vm3272_vm14, %v4357_v1, %v3269_v49  ;;  %vm3281_vm15 = vweird.f32 %v4359_v46  ;;  %vm3290_vm3 = vweird.f32 %v3009_v63 }
 0x3c3   : > { %v3359_v20 = vmul.f32 %v3273_v44, %v2975_v47  ;;  %v3276_v5 = vmul.f32 %v4359_v46, %v3275_v50  ;;  %v2914_v3 = vsub.f32 %v2850_v26, %v2882_v29  ;;  %vm3282_vm1 = vmor %vm3280_vm0, %vm3281_vm15 }
 0x3c5   : > { %v3392_v53 = vmul.f32 %v6949_v11, %v3359_v20  ;;  %v3277_v34 = vmul.f32 0.5, %v3276_v5  ;;  %v2946_v19 = vmax.f32 %v2914_v3, 0.0 }
 0x3c6   : > { %v2689_v22 = vpop.xlane.xlu0 %2688 }
 0x3c7   : > { %v4361_v51 = vpop.eup %4360  ;;  %v3425_v9 = vadd.f32 %v6956_v40, %v3392_v53  ;;  %v3278_v0 = vsub.f32 1.5, %v3277_v34  ;;  %v7051_v27 = vadd.f32 1e-05, %v2946_v19  ;;  %v7063_v4 = vmul.f32 %v2689_v22, %v4910_v43 }
 0x3c8   : > { %v3285_v54 = vmul.f32 %v4361_v51, %v3009_v63  ;;  %vm3291_vm2 = vweird.f32 %v4361_v51 }
 0x3c9   : > { %v4094_v30 = vpack.c.bf16 %v3425_v9, %v3424_v33  ;;  %v3279_v28 = vmul.f32 %v4359_v46, %v3278_v0  ;;  %vm3292_vm4 = vmor %vm3290_vm3, %vm3291_vm2  ;;  %4362 = vrsqrt.f32 %v7051_v27  ;;  %v2883_v52 = vmul.f32 %v7063_v4, %v7063_v4 }
 0x3ca   : > { %v3286_v32 = vmul.f32 %v4361_v51, %v3285_v54  ;;  %vm3300_vm11 = vweird.f32 %v7051_v27 }
 0x3cb   : > { %4137 = vst [vmem:[%s6577_s24 + $0x60] sm:$0xff] %v4094_v30   ;;  %v3283_v15 = vsel %vm3282_vm1, %v4359_v46, %v3279_v28 }
 0x3cc   : > { %v3287_v60 = vmul.f32 0.5, %v3286_v32  ;;  %v3360_v36 = vmul.f32 %v3283_v15, %v2976_v41 }
 0x3ce   : > { %v2691_v24 = vpop.xlane.xlu1 %2690  ;;  %v3288_v6 = vsub.f32 1.5, %v3287_v60  ;;  %v3393_v12 = vmul.f32 %v6949_v11, %v3360_v36 }
 0x3cf   : > { %v7045_v37 = vmul.f32 %v2691_v24, %v4910_v43  ;;  %v4363_v57 = vpop.eup %4362 }
 0x3d0   : > { %v3289_v1 = vmul.f32 %v4361_v51, %v3288_v6  ;;  %v2819_v61 = vpop.xlane.xlu0 %2818  ;;  %v3426_v8 = vadd.f32 %v6956_v40, %v3393_v12  ;;  %v3295_v49 = vmul.f32 %v4363_v57, %v7051_v27  ;;  %vm3301_vm9 = vweird.f32 %v4363_v57 }
 0x3d1   : > { %v2884_v59 = vmul.f32 %v7045_v37, %v7045_v37  ;;  %v2852_v58 = vmul.f32 %v2819_v61, %v4910_v43  ;;  %v2980_v3 = vsub.f32 %v6864_v10, %v7045_v37  ;;  %vm3302_vm13 = vmor %vm3300_vm11, %vm3301_vm9 }
 0x3d2   : > { %v3293_v13 = vsel %vm3292_vm4, %v4361_v51, %v3289_v1  ;;  %v3296_v5 = vmul.f32 %v4363_v57, %v3295_v49 }
 0x3d3   : > { %v3361_v16 = vmul.f32 %v3293_v13, %v2977_v2  ;;  %v2916_v62 = vsub.f32 %v2852_v58, %v2884_v59  ;;  %v2978_v2 = vsub.f32 %v6806_v56, %v7032_v48 }
 0x3d4   : > { %v3297_v33 = vmul.f32 0.5, %v3296_v5 }
 0x3d5   : > { %v3394_v14 = vmul.f32 %v6949_v11, %v3361_v16  ;;  %v2948_v25 = vmax.f32 %v2916_v62, 0.0  ;;  %v2979_v62 = vsub.f32 %v6839_v18, %v7063_v4 }
 0x3d6   : > { %v2693_v39 = vpop.xlane.xlu2 %2692  ;;  %v3298_v22 = vsub.f32 1.5, %v3297_v33 }
 0x3d7   : > { %v2725_v42 = vmul.f32 %v2693_v39, %v4910_v43  ;;  %v3427_v35 = vadd.f32 %v6956_v40, %v3394_v14  ;;  %v3012_v31 = vadd.f32 1e-05, %v2948_v25 }
 0x3d8   : > { %v2821_v23 = vpop.xlane.xlu1 %2820  ;;  %v3299_v60 = vmul.f32 %v4363_v57, %v3298_v22 }
 0x3d9   : > { %v2885_v38 = vmul.f32 %v2725_v42, %v2725_v42  ;;  %v2853_v21 = vmul.f32 %v2821_v23, %v4910_v43  ;;  %v4099_v45 = vpack.c.bf16 %v3427_v35, %v3426_v8  ;;  %4364 = vrsqrt.f32 %v3012_v31 }
 0x3da   : > { %vm3320_vm6 = vweird.f32 %v3012_v31  ;;  %v2981_v6 = vsub.f32 %v6892_v17, %v2725_v42  ;;  %v3303_v59 = vsel %vm3302_vm13, %v4363_v57, %v3299_v60 }
 0x3db   : > { %v2917_v7 = vsub.f32 %v2853_v21, %v2885_v38  ;;  %4138 = vst [vmem:[%s6577_s24 + $0x68] sm:$0xff] %v4099_v45   ;;  %v3362_v27 = vmul.f32 %v3303_v59, %v2978_v2 }
 0x3dd   : > { %v2949_v63 = vmax.f32 %v2917_v7, 0.0  ;;  %v3395_v14 = vmul.f32 %v6949_v11, %v3362_v27 }
 0x3de   : > { %v2817_v46 = vpop.xlane.xlu2 %2816 }
 0x3df   : > { %v3013_v47 = vadd.f32 1e-05, %v2949_v63  ;;  %v2851_v50 = vmul.f32 %v2817_v46, %v4910_v43  ;;  %v4365_v44 = vpop.eup %4364  ;;  %v3428_v18 = vadd.f32 %v6956_v40, %v3395_v14 }
 0x3e0   : > { %v3315_v55 = vmul.f32 %v4365_v44, %v3012_v31  ;;  %vm3321_vm5 = vweird.f32 %v4365_v44 }
 0x3e1   : > { %4366 = vrsqrt.f32 %v3013_v47  ;;  %v2915_v20 = vsub.f32 %v2851_v50, %v2883_v52  ;;  %vm3322_vm7 = vmor %vm3320_vm6, %vm3321_vm5  ;;  %vm3330_vm10 = vweird.f32 %v3013_v47 }
 0x3e2   : > { %v3316_v53 = vmul.f32 %v4365_v44, %v3315_v55 }
 0x3e3   : > { %v2947_v34 = vmax.f32 %v2915_v20, 0.0 }
 0x3e4   : > { %v3317_v29 = vmul.f32 0.5, %v3316_v53 }
 0x3e5   : > { %v3011_v26 = vadd.f32 1e-05, %v2947_v34 }
 0x3e6   : > { %v3318_v9 = vsub.f32 1.5, %v3317_v29 }
 0x3e7   : > { %v4367_v51 = vpop.eup %4366  ;;  %4368 = vrsqrt.f32 %v3011_v26  ;;  %vm3310_vm15 = vweird.f32 %v3011_v26 }
 0x3e8   : > { %v3325_v0 = vmul.f32 %v4367_v51, %v3013_v47  ;;  %v3319_v54 = vmul.f32 %v4365_v44, %v3318_v9  ;;  %vm3331_vm8 = vweird.f32 %v4367_v51 }
 0x3e9   : > { %vm3332_vm12 = vmor %vm3330_vm10, %vm3331_vm8 }
 0x3ea   : > { %v3326_v43 = vmul.f32 %v4367_v51, %v3325_v0  ;;  %v3323_v30 = vsel %vm3322_vm7, %v4365_v44, %v3319_v54 }
 0x3eb   : > { %v3364_v41 = vmul.f32 %v3323_v30, %v2980_v3 }
 0x3ec   : > { %v3327_v28 = vmul.f32 0.5, %v3326_v43 }
 0x3ed   : > { %v4369_v32 = vpop.eup %4368  ;;  %v3397_v10 = vmul.f32 %v6949_v11, %v3364_v41 }
 0x3ee   : > { %v3328_v15 = vsub.f32 1.5, %v3327_v28  ;;  %v3305_v19 = vmul.f32 %v4369_v32, %v3011_v26  ;;  %vm3311_vm14 = vweird.f32 %v4369_v32 }
 0x3ef   : > { %v3430_v17 = vadd.f32 %v6956_v40, %v3397_v10  ;;  %vm3312_vm0 = vmor %vm3310_vm15, %vm3311_vm14 }
 0x3f0   : > { %v3329_v24 = vmul.f32 %v4367_v51, %v3328_v15  ;;  %v3306_v36 = vmul.f32 %v4369_v32, %v3305_v19 }
 0x3f2   : > { %v3333_v1 = vsel %vm3332_vm12, %v4367_v51, %v3329_v24  ;;  %v3307_v61 = vmul.f32 0.5, %v3306_v36 }
 0x3f3   : > { %v3365_v37 = vmul.f32 %v3333_v1, %v2981_v6 }
 0x3f4   : > { %v3308_v13 = vsub.f32 1.5, %v3307_v61 }
 0x3f5   : > { %v3398_v58 = vmul.f32 %v6949_v11, %v3365_v37 }
 0x3f6   : > { %v3309_v16 = vmul.f32 %v4369_v32, %v3308_v13 }
 0x3f7   : > { %v3431_v12 = vadd.f32 %v6956_v40, %v3398_v58 }
 0x3f8   : > { %v3313_v48 = vsel %vm3312_vm0, %v4369_v32, %v3309_v16 }
 0x3f9   : > { %v4109_v56 = vpack.c.bf16 %v3431_v12, %v3430_v17  ;;  %v3363_v25 = vmul.f32 %v3313_v48, %v2979_v62 }
 0x3fb   : > { %4140 = vst [vmem:[%s6577_s24 + $0x78] sm:$0xff] %v4109_v56   ;;  %v3396_v39 = vmul.f32 %v6949_v11, %v3363_v25 }
 0x3fd   : > { %v3429_v42 = vadd.f32 %v6956_v40, %v3396_v39 }
 0x3ff   : > { %v4104_v8 = vpack.c.bf16 %v3429_v42, %v3428_v18 }
 0x401   : > { %4139 = vst [vmem:[%s6577_s24 + $0x70] sm:$0xff] %v4104_v8  }
 0x402   : > { %4552 = shalt.err (!%p4549_p10)
}
 0x403   : > { %s4610_s6 = smov 64   ;;  %s4611_s26 = smov 4  }
 0x404   : > { %4159 = dma.vmem_to_hbm [thread:$0]  (%p4729_p3), %s3510_s22, 2048, %s3512_s10, %s3497_s12, %s4610_s6, %s4610_s6, %s4611_s26  }
 0x405 PF: > { %s3526_s24 = sand.u32 1, %s4587_s18   ;;  %p7279_p12 = scmp.ge.s32.totalorder %s4599_s21, 2 }
 0x406   : > { %s3527_s29 = scalar_lea.sflag [#allocation4], %s3526_s24 }
 0x407   : > { %p4179_p13 = pnand %p7279_p12, %p4677_p6 }
 0x409   : > { %p4180_p0 = pneg %p4179_p13 }
 0x40b   : > { %4582 = dma.done.wait (%p4180_p0), %s3527_s29, 2048  }
 0x40c   : > { %4584 = vsyncadd (%p4180_p0), %s3527_s29, 4294965248  ;;  %p20_p5 = scmp.ge.s32.totalorder %s4719_s11, 4   ;;  %s7280_s18 = smov %s4591_s19 }
 0x40d   : > { %s7281_s19 = smov %s4595_s20  ;;  %s7282_s20 = smov %s4735_s17 }
 0x40e   : > { %s7283_s21 = smov %s4719_s11  ;;  %22 = sbr.rel (!%p20_p5) target bundleno = 7 (0x7), region = 101 }
 0x413   :  { %3533 = vsyncpa [#allocation3], 1 }
 0x414   :  { %3535 = vsyncpa [#allocation3 + $0x1], 1 }
 0x415   :  { %3536 = vsyncpa [#allocation6], 1 }
 0x416   :  { %3537 = vsyncpa [#allocation9], 1 }
 0x417   :  { %3538 = vsyncpa [#allocation4], 1 }
 0x418   :  { %3540 = vsyncpa [#allocation4 + $0x1], 1 }

// kernel: tpu_custom_call.1
= control target key start
LH: loop header
LB: loop body
LE: loop exit
PB: predicated region body
PF: predicated region fallthrough
CT: control target
= control target key end

     0   :  { %10 = vsyncpa [#allocation3], 0  ;;  %s7121_s0 = inlined_call_operand.hbm [shape: bf16[512,128], index: 0, kind: input, shape index: {}]   ;;  %s7122_s1 = inlined_call_operand.hbm [shape: bf16[128,512], index: 1, kind: input, shape index: {}]   ;;  %s7123_s2 = inlined_call_operand.hbm [shape: f32[1,512], index: 2, kind: input, shape index: {}]   ;;  %s7124_s3 = inlined_call_operand.hbm [shape: bf16[512,128], index: 3, kind: input, shape index: {}]   ;;  %s7125_s4 = inlined_call_operand.hbm [shape: f32[5,128], index: 4, kind: input, shape index: {}]   ;;  %s7126_s5 = inlined_call_operand.hbm [shape: bf16[512,128], index: 5, kind: output, shape index: {}]  }
   0x1   :  { %12 = vsyncpa [#allocation3 + $0x1], 0 }
   0x2   :  { %13 = vsyncpa [#allocation6], 0 }
   0x3   :  { %14 = vsyncpa [#allocation9], 0 }
   0x4   :  { %15 = vsyncpa [#allocation4], 0 }
   0x5   :  { %17 = vsyncpa [#allocation4 + $0x1], 0  ;;  %s4642_s18 = smov 0   ;;  %s4644_s19 = smov 0  }
   0x6   :  { %s4646_s20 = smov 0   ;;  %s4648_s21 = smov 0  }
   0x7 LB: > { %s4663_s22 = sadd.s32 4294967295, %s4599_s21   ;;  %s3623_s23 = sadd.s32 4294967294, %s4599_s21   ;;  %s4599_s21 = sphi %s4648_s21, %s7283_s21   ;;  %s4595_s20 = sphi %s4646_s20, %s7282_s20   ;;  %s4591_s19 = sphi %s4644_s19, %s7281_s19   ;;  %s4587_s18 = sphi %s4642_s18, %s7280_s18  }
   0x8   : > { %p43_p0 = scmp.ne.s32.totalorder %s4591_s19, %s4587_s18  ;;  %p44_p1 = scmp.eq.s32.totalorder %s4663_s22, 0 }
   0x9   : > { %p151_p2 = scmp.eq.s32.totalorder %s4663_s22, 1  ;;  %p157_p3 = scmp.eq.s32.totalorder %s3623_s23, 1 }
   0xa   : > { %p4672_p4 = por %p44_p1, %p43_p0  ;;  %p3624_p5 = scmp.ge.s32.totalorder %s4599_s21, 1 }
   0xb   : > { %p4677_p6 = por %p157_p3, %p43_p0  ;;  %p164_p7 = scmp.lt.s32.totalorder %s4599_s21, 3 }
   0xc   : > { %s175_s28 = sshll.u32 %s7122_s1, 4  ;;  %s4601_s30 = smov [#allocation5]   ;;  %s176_s28 = int_to_ptr.hbm [resolvable:$true] %s175_s28 }
   0xd   : > { %p4685_p8 = pnand %p3624_p5, %p164_p7  ;;  %s177_s6 = sshll.u32 %s4601_s30, 4  ;;  %s178_s6 = int_to_ptr.vmem [resolvable:$true] %s177_s6 }
   0xe   : > { %s201_s10 = sshll.u32 %s7124_s3, 4  ;;  %s4602_s11 = smov 256   ;;  %s202_s10 = int_to_ptr.hbm [resolvable:$true] %s201_s10 }
   0xf   : > { %p4161_p9 = pneg %p4685_p8  ;;  %s4603_s12 = smov 16  }
  0x10   : > { %s4604_s13 = smov [#allocation8]   ;;  %s7127_s15 = smov 64  }
  0x11   : > { %p4693_p10 = pnand %p4161_p9, %p44_p1  ;;  %s203_s14 = sshll.u32 %s4604_s13, 4  ;;  %s204_s14 = int_to_ptr.vmem [resolvable:$true] %s203_s14 }
  0x12   : > { %s4606_s16 = smov 4   ;;  %s190_s26 = sshll.u32 %s7123_s2, 4  ;;  %s191_s26 = int_to_ptr.hbm [resolvable:$true] %s190_s26 }
  0x13   : > { %4164 = dma.hbm_to_vmem [thread:$0]  (!%p4693_p10), %s176_s28, 4096, %s178_s6, [#allocation6], %s4602_s11, %s4602_s11, %s4603_s12  }
  0x14   : > { %4170 = dma.hbm_to_vmem [thread:$0]  (!%p4693_p10), %s202_s10, 4096, %s204_s14, [#allocation9], %s7127_s15, %s7127_s15, %s4606_s16  }
  0x15   : > { %s4607_s27 = smov [#allocation7]   ;;  %s216_s8 = sshll.u32 %s7125_s4, 4  ;;  %s217_s8 = int_to_ptr.hbm [resolvable:$true] %s216_s8 }
  0x16   : > { %s192_s28 = sshll.u32 %s4607_s27, 4  ;;  %s4608_s9 = smov [#allocation10]   ;;  %s193_s28 = int_to_ptr.vmem [resolvable:$true] %s192_s28 }
  0x17   : > { %4167 = dma.hbm_to_vmem [thread:$0]  (!%p4693_p10), %s191_s26, 64, %s193_s28, [#allocation6]  }
  0x18   : > { %s218_s10 = sshll.u32 %s4608_s9, 4  ;;  %s4719_s11 = sadd.s32 1, %s4599_s21   ;;  %s219_s10 = int_to_ptr.vmem [resolvable:$true] %s218_s10 }
  0x19   : > { %4173 = dma.hbm_to_vmem [thread:$0]  (!%p4693_p10), %s217_s8, 128, %s219_s10, [#allocation9]  }
  0x1a   : > { %s30_s12 = sadd.s32 1, %s4595_s20  ;;  %s27_s13 = ssub.s32 %s4599_s21, %s4719_s11 }
  0x1b   : > { %p37_p12 = scmp.ne.s32.totalorder %s4595_s20, %s4591_s19  ;;  %p28_p13 = scmp.eq.s32.totalorder %s27_s13, 0 }
  0x1c   : > { %p38_p0 = scmp.eq.s32.totalorder %s4599_s21, 0  ;;  %p4186_p5 = scmp.lt.s32.totalorder %s4599_s21, 2 }
  0x1d   : > { %p4729_p3 = por %p151_p2, %p37_p12  ;;  %s229_s23 = sand.u32 1, %s4595_s20  }
  0x1e   : > { %s4735_s17 = scalar_select %p28_p13, %s4595_s20, %s30_s12  }
  0x1f   : > { %p39_p7 = por %p38_p0, %p37_p12  ;;  %s3630_s7 = sshll.u32 %s229_s23, 7 }
  0x20   : > { %s3901_s26 = sshll.u32 %s4599_s21, 7  ;;  %s233_s6 = scalar_lea.vmem [#allocation2], %s3630_s7 }
  0x21   : > { %s238_s30 = scalar_lea.hbm %s7121_s0, %s3901_s26  ;;  %s241_s8 = sshll.u32 %s233_s6, 4  ;;  %s242_s8 = int_to_ptr.vmem [resolvable:$true] %s241_s8 }
  0x22   : > { %s239_s9 = sshll.u32 %s238_s30, 4  ;;  %p4742_p2 = pnand %p4186_p5, %p39_p7  ;;  %s240_s9 = int_to_ptr.hbm [resolvable:$true] %s239_s9 }
  0x23   : > { %s230_s12 = scalar_lea.sflag [#allocation3], %s229_s23  ;;  %s4495_s13 = sshra.s32 %s240_s9, 4  ;;  %s4496_s13 = int_to_ptr.hbm [resolvable:$true] %s4495_s13 }
  0x24   : > { %s4497_s15 = scalar_lea.hbm %s4496_s13, 128  ;;  %p4499_p10 = pneg %p4742_p2 }
  0x25   : > { %p4498_p9 = scmp.ne.s32.totalorder %s4496_s13, %s4497_s15  ;;  %s4502_s27 = scalar_lea.hbm %s7121_s0, 256 }
  0x26   : > { %p4503_p0 = scmp.lt.s32.totalorder %s4496_s13, %s7121_s0  ;;  %p4504_p5 = scmp.lt.s32.totalorder %s4502_s27, %s4497_s15 }
  0x27   : > { %p4500_p12 = pnand %p4499_p10, %p4498_p9 }
  0x28   : > { %p4505_p7 = por %p4504_p5, %p4503_p0 }
  0x29   : > { %p4501_p13 = pneg %p4500_p12 }
  0x2b   : > { %p4506_p11 = pnand %p4505_p7, %p4501_p13 }
  0x2d   : > { %4509 = shalt.err (!%p4506_p11)
}
  0x2e   : > { %s7156_s23 = smov 64   ;;  %253 = sbr.rel (%p4685_p8) target bundleno = 1029 (0x405), region = 40 }
  0x2f   : > { %4177 = dma.hbm_to_vmem [thread:$0]  (!%p4742_p2), %s240_s9, 2048, %s242_s8, %s230_s12, %s7156_s23, %s7156_s23, %s4606_s16  }
  0x33   : > { %s4762_s6 = sand.u32 1, %s4591_s19  }
  0x34   : > { %s3634_s15 = sshll.u32 %s4762_s6, 7  ;;  %s256_s13 = scalar_lea.sflag [#allocation3], %s4762_s6 }
  0x35   : > { %s4768_s26 = scalar_lea.vmem [#allocation2], %s3634_s15 }
  0x36   : > { %4570 = dma.done.wait (%p4672_p4), %s256_s13, 2048  }
  0x37   : > { %4572 = vsyncadd (%p4672_p4), %s256_s13, 4294965248 }
  0x38   : > { %4574 = dma.done.wait (%p44_p1), [#allocation6], 4160  }
  0x39   : > { %4576 = vsyncadd (%p44_p1), [#allocation6], 4294963136 }
  0x3a   : > { %4578 = dma.done.wait (%p44_p1), [#allocation9], 4224  }
  0x3b   : > { %4580 = vsyncadd (%p44_p1), [#allocation9], 4294963072  ;;  %v3968_v0 = vld [vmem:[%s4768_s26] sm:$0xff]   ;;  %v4111_v1 = vld [vmem:[%s4768_s26 + $0x8] sm:$0xff]   ;;  %s6577_s24 = scalar_lea.vmem [#allocation11], %s3634_s15  ;;  %s3966_s29 = sshll.u32 %s4663_s22, 7 }
  0x3c   : > { %v3969_v2 = vunpack.c.l.bf16 %v3968_v0  ;;  %v3973_v3 = vunpack.c.l.bf16 %v4111_v1  ;;  %v3970_v6 = vunpack.c.h.bf16 %v3968_v0  ;;  %v3974_v8 = vunpack.c.h.bf16 %v4111_v1  ;;  %v4112_v11 = vld [vmem:[%s4768_s26 + $0x10] sm:$0xff]   ;;  %v4113_v19 = vld [vmem:[%s4768_s26 + $0x18] sm:$0xff]   ;;  %v4114_v27 = vld [vmem:[%s4768_s26 + $0x20] sm:$0xff]   ;;  %s3508_s9 = scalar_lea.hbm %s7126_s5, %s3966_s29  ;;  %s3509_s22 = sshll.u32 %s6577_s24, 4  ;;  %s3510_s22 = int_to_ptr.vmem [resolvable:$true] %s3509_s22 }
  0x3d   : > { %v3977_v13 = vunpack.c.l.bf16 %v4112_v11  ;;  %v3978_v16 = vunpack.c.h.bf16 %v4112_v11  ;;  %v3981_v21 = vunpack.c.l.bf16 %v4113_v19  ;;  %v3982_v24 = vunpack.c.h.bf16 %v4113_v19  ;;  %v4115_v32 = vld [vmem:[%s4768_s26 + $0x28] sm:$0xff]   ;;  %v4116_v40 = vld [vmem:[%s4768_s26 + $0x30] sm:$0xff]   ;;  %v4117_v48 = vld [vmem:[%s4768_s26 + $0x38] sm:$0xff]   ;;  %s3511_s10 = sshll.u32 %s3508_s9, 4  ;;  %s3497_s12 = scalar_lea.sflag [#allocation4], %s4762_s6  ;;  %s3512_s10 = int_to_ptr.hbm [resolvable:$true] %s3511_s10 }
  0x3e   : > { %v4784_v4 = vadd.f32 %v3969_v2, %v3969_v2  ;;  %v4786_v5 = vadd.f32 %v3973_v3, %v3973_v3  ;;  %v4792_v9 = vadd.f32 %v3970_v6, %v3970_v6  ;;  %v4794_v10 = vadd.f32 %v3974_v8, %v3974_v8  ;;  %v4118_v53 = vld [vmem:[%s4768_s26 + $0x40] sm:$0xff]   ;;  %v4119_v61 = vld [vmem:[%s4768_s26 + $0x48] sm:$0xff]   ;;  %v3933_v19 = vld [vmem:[#allocation5 + $0xf4] sm:$0xf0]  ;;  %s4539_s7 = sshra.s32 %s3512_s10, 4  ;;  %s4545_s23 = scalar_lea.hbm %s7126_s5, 256  ;;  %s4540_s7 = int_to_ptr.hbm [resolvable:$true] %s4539_s7 }
  0x3f   : > { %v4803_v15 = vadd.f32 %v3977_v13, %v3977_v13  ;;  %v4808_v18 = vadd.f32 %v3978_v16, %v3978_v16  ;;  %v4816_v23 = vadd.f32 %v3981_v21, %v3981_v21  ;;  %v4820_v26 = vadd.f32 %v3982_v24, %v3982_v24  ;;  %v3754_v11 = vld [vmem:[#allocation5 + $0xe0] sm:$0xf]  ;;  %v3930_v13 = vld [vmem:[#allocation5 + $0xe4] sm:$0xf]  ;;  %v3756_v16 = vld [vmem:[#allocation5 + $0xf0] sm:$0xf0]  ;;  %p4546_p11 = scmp.lt.s32.totalorder %s4540_s7, %s7126_s5 }
  0x40   : > { %407 = vadd.xlane.f32.xlu0 %v4784_v4  ;;  %411 = vadd.xlane.f32.xlu2 %v4786_v5  ;;  %v510_v7 = vmul.f32 %v4784_v4, %v4784_v4  ;;  %v511_v12 = vmul.f32 %v4792_v9, %v4792_v9  ;;  %v512_v14 = vmul.f32 %v4786_v5, %v4786_v5  ;;  %v3986_v28 = vunpack.c.h.bf16 %v4114_v27  ;;  %v3931_v24 = vld [vmem:[#allocation5 + $0xec] sm:$0xf]  ;;  %s4541_s27 = scalar_lea.hbm %s4540_s7, 128 }
  0x41   : > { %v513_v17 = vmul.f32 %v4794_v10, %v4794_v10  ;;  %v515_v20 = vmul.f32 %v4808_v18, %v4808_v18  ;;  %v514_v22 = vmul.f32 %v4803_v15, %v4803_v15  ;;  %v516_v25 = vmul.f32 %v4816_v23, %v4816_v23  ;;  %p4542_p1 = scmp.ne.s32.totalorder %s4540_s7, %s4541_s27  ;;  %p4547_p2 = scmp.lt.s32.totalorder %s4545_s23, %s4541_s27 }
  0x42   : > { %542 = vadd.xlane.f32.xlu1 %v510_v7  ;;  %v3985_v29 = vunpack.c.l.bf16 %v4114_v27  ;;  %v517_v30 = vmul.f32 %v4820_v26, %v4820_v26  ;;  %v4827_v31 = vadd.f32 %v3986_v28, %v3986_v28  ;;  %v3989_v34 = vunpack.c.l.bf16 %v4115_v32  ;;  %v4120_v27 = vld [vmem:[%s4768_s26 + $0x50] sm:$0xff]  }
  0x43   : > { %v3990_v37 = vunpack.c.h.bf16 %v4115_v32  ;;  %v3993_v43 = vunpack.c.l.bf16 %v4116_v40  ;;  %v3994_v45 = vunpack.c.h.bf16 %v4116_v40  ;;  %v3998_v49 = vunpack.c.h.bf16 %v4117_v48  ;;  %v3928_v32 = vld [vmem:[#allocation5 + $0xcc] sm:$0xf0]  ;;  %v3746_v40 = vld [vmem:[#allocation5 + $0xc8] sm:$0xf]  ;;  %p4543_p4 = pnand %p4542_p1, %p4729_p3  ;;  %p4548_p9 = por %p4547_p2, %p4546_p11 }
  0x44   : > { %v4830_v33 = vadd.f32 %v3985_v29, %v3985_v29  ;;  %v4836_v36 = vadd.f32 %v3989_v34, %v3989_v34  ;;  %v519_v38 = vmul.f32 %v4827_v31, %v4827_v31  ;;  %v3997_v50 = vunpack.c.l.bf16 %v4117_v48  ;;  %v3926_v34 = vld [vmem:[#allocation5 + $0xc4] sm:$0xf]  ;;  %v3748_v48 = vld [vmem:[#allocation5 + $0xd8] sm:$0xf0] }
  0x45   : > { %v4841_v39 = vadd.f32 %v3990_v37, %v3990_v37  ;;  %v4849_v44 = vadd.f32 %v3993_v43, %v3993_v43  ;;  %v4853_v47 = vadd.f32 %v3994_v45, %v3994_v45  ;;  %v4860_v52 = vadd.f32 %v3998_v49, %v3998_v49  ;;  %p4544_p8 = pneg %p4543_p4 }
  0x46   : > { %v518_v35 = vmul.f32 %v4830_v33, %v4830_v33  ;;  %v520_v42 = vmul.f32 %v4836_v36, %v4836_v36  ;;  %v4863_v54 = vadd.f32 %v3997_v50, %v3997_v50  ;;  %v4001_v55 = vunpack.c.l.bf16 %v4118_v53 }
  0x47   : > { %v521_v41 = vmul.f32 %v4841_v39, %v4841_v39  ;;  %v522_v46 = vmul.f32 %v4849_v44, %v4849_v44  ;;  %v523_v51 = vmul.f32 %v4853_v47, %v4853_v47  ;;  %v4002_v58 = vunpack.c.h.bf16 %v4118_v53  ;;  %v3924_v53 = vld [vmem:[#allocation5 + $0xac] sm:$0xf0]  ;;  %p4549_p10 = pnand %p4548_p9, %p4544_p8 }
  0x48   : > { %409 = vadd.xlane.f32.xlu0 %v4792_v9  ;;  %413 = vadd.xlane.f32.xlu2 %v4794_v10  ;;  %v524_v56 = vmul.f32 %v4863_v54, %v4863_v54  ;;  %v4869_v57 = vadd.f32 %v4001_v55, %v4001_v55  ;;  %v525_v59 = vmul.f32 %v4860_v52, %v4860_v52  ;;  %v4005_v0 = vunpack.c.l.bf16 %v4119_v61  ;;  %v3922_v55 = vld [vmem:[#allocation5 + $0xa4] sm:$0xf] }
  0x49   : > { %v4874_v60 = vadd.f32 %v4002_v58, %v4002_v58  ;;  %v4609_v1 = vmov 128.0   ;;  %v4006_v3 = vunpack.c.h.bf16 %v4119_v61  ;;  %v3759_v21 = vor.u32 %v3930_v13, %v3756_v16  ;;  %v3730_v61 = vld [vmem:[#allocation5 + $0xa8] sm:$0xf]  ;;  %v3706_v13 = vld [vmem:[#allocation5 + $0x80] sm:$0xf] }
  0x4a   : > { %544 = vadd.xlane.f32.xlu1 %v511_v12  ;;  %v526_v63 = vmul.f32 %v4869_v57, %v4869_v57  ;;  %4240 = vrcp.f32 %v4609_v1  ;;  %v4882_v2 = vadd.f32 %v4005_v0, %v4005_v0  ;;  %v3932_v12 = vld [vmem:[#allocation5 + $0xec] sm:$0xf0]  ;;  %v4009_v29 = vunpack.c.l.bf16 %v4120_v27  ;;  %v3918_v16 = vld [vmem:[#allocation5 + $0x84] sm:$0xf] }
  0x4b   : > { %v527_v62 = vmul.f32 %v4874_v60, %v4874_v60  ;;  %v4888_v8 = vadd.f32 %v4006_v3, %v4006_v3  ;;  %1523 = vmatpush.bf16.msra.mxu1 %v3759_v21  ;;  %v3923_v3 = vld [vmem:[#allocation5 + $0xac] sm:$0xf]  ;;  %v3714_v21 = vld [vmem:[#allocation5 + $0x88] sm:$0xf] }
  0x4c   : > { %v528_v6 = vmul.f32 %v4882_v2, %v4882_v2  ;;  %v4896_v49 = vadd.f32 %v4009_v29, %v4009_v29  ;;  %v3716_v29 = vld [vmem:[#allocation5 + $0x98] sm:$0xf0] }
  0x50   : > { %546 = vadd.xlane.f32.xlu0 %v512_v14  ;;  %415 = vadd.xlane.f32.xlu2 %v4803_v15  ;;  %v4886_v7 = vpop.eup %4240  ;;  %v3755_v14 = vor.u32 %v3932_v12, %v3754_v11 }
  0x51   : > { %vm476_vm0 = vweird.f32 %v4886_v7 }
  0x52   : > { %548 = vadd.xlane.f32.xlu1 %v513_v17  ;;  %v3762_v17 = vld [vmem:[#allocation5 + $0xe8] sm:$0xf]  ;;  %1434 = vmatpush.bf16.msra.mxu0 %v3755_v14  ;;  %v3920_v14 = vld [vmem:[#allocation5 + $0x8c] sm:$0xf0] }
  0x58   : > { %417 = vadd.xlane.f32.xlu0 %v4808_v18  ;;  %552 = vadd.xlane.f32.xlu2 %v515_v20  ;;  %v472_v20 = vmul.f32 128.0, %v4886_v7 }
  0x5a   : > { %550 = vadd.xlane.f32.xlu1 %v514_v22  ;;  %v3763_v22 = vor.u32 %v3933_v19, %v3762_v17  ;;  %v530_v17 = vmul.f32 %v4896_v49, %v4896_v49  ;;  %v3707_v19 = vor.u32 %v3920_v14, %v3706_v13  ;;  %v3911_v14 = vld [vmem:[#allocation5 + $0x4c] sm:$0xf] }
  0x5c   : > { %1612 = vmatpush.bf16.msra.mxu2 %v3763_v22  ;;  %v3921_v22 = vld [vmem:[#allocation5 + $0x94] sm:$0xf0] }
  0x60   : > { %419 = vadd.xlane.f32.xlu0 %v4816_v23  ;;  %554 = vadd.xlane.f32.xlu2 %v516_v25  ;;  %v3764_v25 = vld [vmem:[#allocation5 + $0xf8] sm:$0xf0] }
  0x61   : > { %v3767_v28 = vor.u32 %v3931_v24, %v3764_v25 }
  0x62   : > { %421 = vadd.xlane.f32.xlu1 %v4820_v26 }
  0x63   : > { %1701 = vmatpush.bf16.msra.mxu3 %v3767_v28  ;;  %v3919_v28 = vld [vmem:[#allocation5 + $0x8c] sm:$0xf] }
  0x68   : > { %556 = vadd.xlane.f32.xlu0 %v517_v30  ;;  %425 = vadd.xlane.f32.xlu2 %v4827_v31  ;;  %v3738_v30 = vld [vmem:[#allocation5 + $0xc0] sm:$0xf] }
  0x69   : > { %v3739_v37 = vor.u32 %v3928_v32, %v3738_v30  ;;  %v3719_v32 = vor.u32 %v3919_v28, %v3716_v29 }
  0x6a   : > { %423 = vadd.xlane.f32.xlu1 %v4830_v33 }
  0x6b   : > { %1435 = vmatpush.bf16.msra.mxu0 %v3739_v37  ;;  %v3914_v37 = vld [vmem:[#allocation5 + $0x64] sm:$0xf] }
  0x70   : > { %558 = vadd.xlane.f32.xlu0 %v518_v35  ;;  %427 = vadd.xlane.f32.xlu2 %v4836_v36  ;;  %v529_v35 = vmul.f32 %v4888_v8, %v4888_v8 }
  0x72   : > { %560 = vadd.xlane.f32.xlu1 %v519_v38  ;;  %v3740_v38 = vld [vmem:[#allocation5 + $0xd0] sm:$0xf0] }
  0x73   : > { %v3743_v43 = vor.u32 %v3926_v34, %v3740_v38  ;;  %v3690_v34 = vld [vmem:[#allocation5 + $0x60] sm:$0xf] }
  0x75   : > { %1524 = vmatpush.bf16.msra.mxu1 %v3743_v43 }
  0x78   : > { %429 = vadd.xlane.f32.xlu0 %v4841_v39  ;;  %564 = vadd.xlane.f32.xlu2 %v521_v41  ;;  %v3929_v41 = vld [vmem:[#allocation5 + $0xd4] sm:$0xf0] }
  0x79   : > { %v3747_v45 = vor.u32 %v3929_v41, %v3746_v40  ;;  %v3692_v40 = vld [vmem:[#allocation5 + $0x70] sm:$0xf0]  ;;  %v3698_v41 = vld [vmem:[#allocation5 + $0x68] sm:$0xf] }
  0x7a   : > { %562 = vadd.xlane.f32.xlu1 %v520_v42  ;;  %v473_v42 = vsub.f32 1.0, %v472_v20  ;;  %v3708_v20 = vld [vmem:[#allocation5 + $0x90] sm:$0xf0] }
  0x7b   : > { %1613 = vmatpush.bf16.msra.mxu2 %v3747_v45  ;;  %v3711_v25 = vor.u32 %v3918_v16, %v3708_v20  ;;  %v3695_v45 = vor.u32 %v3914_v37, %v3692_v40  ;;  %v3684_v16 = vld [vmem:[#allocation5 + $0x58] sm:$0xf0] }
  0x80   : > { %431 = vadd.xlane.f32.xlu0 %v4849_v44  ;;  %566 = vadd.xlane.f32.xlu2 %v522_v46  ;;  %v3927_v46 = vld [vmem:[#allocation5 + $0xcc] sm:$0xf] }
  0x81   : > { %v3751_v50 = vor.u32 %v3927_v46, %v3748_v48  ;;  %v3915_v48 = vld [vmem:[#allocation5 + $0x6c] sm:$0xf] }
  0x82   : > { %433 = vadd.xlane.f32.xlu1 %v4853_v47 }
  0x83   : > { %1702 = vmatpush.bf16.msra.mxu3 %v3751_v50  ;;  %v3700_v50 = vld [vmem:[#allocation5 + $0x78] sm:$0xf0] }
  0x88   : > { %568 = vadd.xlane.f32.xlu0 %v523_v51  ;;  %437 = vadd.xlane.f32.xlu2 %v4860_v52  ;;  %v3722_v51 = vld [vmem:[#allocation5 + $0xa0] sm:$0xf] }
  0x89   : > { %v3723_v58 = vor.u32 %v3924_v53, %v3722_v51  ;;  %v4121_v51 = vld [vmem:[%s4768_s26 + $0x58] sm:$0xff]   ;;  %v3703_v53 = vor.u32 %v3915_v48, %v3700_v50 }
  0x8a   : > { %435 = vadd.xlane.f32.xlu1 %v4863_v54  ;;  %v4014_v28 = vunpack.c.h.bf16 %v4121_v51 }
  0x8b   : > { %1436 = vmatpush.bf16.msra.mxu0 %v3723_v58 }
  0x8f   : > { %1437 = vmatpush.bf16.msra.mxu0 %v3707_v19 }
  0x90   : > { %570 = vadd.xlane.f32.xlu0 %v524_v56  ;;  %439 = vadd.xlane.f32.xlu2 %v4869_v57  ;;  %v4010_v56 = vunpack.c.h.bf16 %v4120_v27  ;;  %v3715_v27 = vor.u32 %v3921_v22, %v3714_v21  ;;  %v3687_v21 = vor.u32 %v3911_v14, %v3684_v16  ;;  %v3905_v14 = vld [vmem:[#allocation5 + $0x14] sm:$0xf0]  ;;  %v3903_v16 = vld [vmem:[#allocation5 + $0xc] sm:$0xf] }
  0x92   : > { %572 = vadd.xlane.f32.xlu1 %v525_v59  ;;  %v3724_v59 = vld [vmem:[#allocation5 + $0xb0] sm:$0xf0]  ;;  %v4899_v11 = vadd.f32 %v4010_v56, %v4010_v56 }
  0x93   : > { %v3727_v0 = vor.u32 %v3922_v55, %v3724_v59  ;;  %v4013_v55 = vunpack.c.l.bf16 %v4121_v51 }
  0x94   : > { %v531_v30 = vmul.f32 %v4899_v11, %v4899_v11 }
  0x95   : > { %1525 = vmatpush.bf16.msra.mxu1 %v3727_v0 }
  0x98   : > { %441 = vadd.xlane.f32.xlu0 %v4874_v60  ;;  %576 = vadd.xlane.f32.xlu2 %v527_v62  ;;  %v3925_v62 = vld [vmem:[#allocation5 + $0xb4] sm:$0xf0] }
  0x99   : > { %v3731_v1 = vor.u32 %v3925_v62, %v3730_v61  ;;  %1526 = vmatpush.bf16.msra.mxu1 %v3711_v25  ;;  %v4916_v61 = vadd.f32 %v4013_v55, %v4013_v55  ;;  %v3912_v62 = vld [vmem:[#allocation5 + $0x4c] sm:$0xf0] }
  0x9a   : > { %574 = vadd.xlane.f32.xlu1 %v526_v63  ;;  %v474_v63 = vmul.f32 %v4886_v7, %v473_v42  ;;  %v3917_v42 = vld [vmem:[#allocation5 + $0x74] sm:$0xf0]  ;;  %v3908_v25 = vld [vmem:[#allocation5 + $0x2c] sm:$0xf0] }
  0x9b   : > { %1614 = vmatpush.bf16.msra.mxu2 %v3731_v1  ;;  %v3699_v46 = vor.u32 %v3917_v42, %v3698_v41  ;;  %v3907_v42 = vld [vmem:[#allocation5 + $0x2c] sm:$0xf] }
  0x9c   : > { %v475_v24 = vadd.f32 %v4886_v7, %v474_v63  ;;  %v3910_v63 = vld [vmem:[#allocation5 + $0x44] sm:$0xf] }
  0x9d   : > { %1527 = vmatpush.bf16.msra.mxu1 %v3695_v45  ;;  %v3668_v45 = vld [vmem:[#allocation5 + $0x38] sm:$0xf0] }
  0x9e   : > { %v4910_v43 = vsel %vm476_vm0, %v4886_v7, %v475_v24  ;;  %v3674_v7 = vld [vmem:[#allocation5 + $0x40] sm:$0xf]  ;;  %v3671_v50 = vor.u32 %v3907_v42, %v3668_v45 }
  0x9f   : > { %1615 = vmatpush.bf16.msra.mxu2 %v3715_v27  ;;  %v3675_v1 = vor.u32 %v3912_v62, %v3674_v7  ;;  %v3658_v24 = vld [vmem:[#allocation5 + $0x20] sm:$0xf]  ;;  %v3906_v27 = vld [vmem:[#allocation5 + $0x24] sm:$0xf]  ;;  %v3904_v62 = vld [vmem:[#allocation5 + $0xc] sm:$0xf0] }
  0xa0   : > { %443 = vadd.xlane.f32.xlu0 %v4882_v2  ;;  %578 = vadd.xlane.f32.xlu2 %v528_v6  ;;  %v3732_v6 = vld [vmem:[#allocation5 + $0xb8] sm:$0xf0]  ;;  %v3659_v29 = vor.u32 %v3908_v25, %v3658_v24  ;;  %v3642_v7 = vld [vmem:[#allocation5] sm:$0xf] }
  0xa1   : > { %v3735_v12 = vor.u32 %v3923_v3, %v3732_v6  ;;  %v3676_v3 = vld [vmem:[#allocation5 + $0x50] sm:$0xf0]  ;;  %v3682_v6 = vld [vmem:[#allocation5 + $0x48] sm:$0xf] }
  0xa2   : > { %445 = vadd.xlane.f32.xlu1 %v4888_v8  ;;  %v3679_v19 = vor.u32 %v3910_v63, %v3676_v3  ;;  %v3644_v3 = vld [vmem:[#allocation5 + $0x10] sm:$0xf0] }
  0xa3   : > { %1703 = vmatpush.bf16.msra.mxu3 %v3735_v12  ;;  %1616 = vmatpush.bf16.msra.mxu2 %v3699_v46  ;;  %v3913_v12 = vld [vmem:[#allocation5 + $0x54] sm:$0xf0]  ;;  %v4922_v46 = vadd.f32 %v4014_v28, %v4014_v28 }
  0xa4   : > { %v3683_v20 = vor.u32 %v3913_v12, %v3682_v6  ;;  %1528 = vmatpush.bf16.msra.mxu1 %v3679_v19  ;;  %v3650_v6 = vld [vmem:[#allocation5 + $0x8] sm:$0xf] }
  0xa5   : > { %v533_v55 = vmul.f32 %v4922_v46, %v4922_v46  ;;  %v3651_v19 = vor.u32 %v3905_v14, %v3650_v6 }
  0xa7   : > { %1704 = vmatpush.bf16.msra.mxu3 %v3719_v32  ;;  %1617 = vmatpush.bf16.msra.mxu2 %v3683_v20  ;;  %v3666_v32 = vld [vmem:[#allocation5 + $0x28] sm:$0xf] }
  0xa8   : > { %580 = vadd.xlane.f32.xlu0 %v529_v35  ;;  %449 = vadd.xlane.f32.xlu2 %v4899_v11  ;;  %v3916_v35 = vld [vmem:[#allocation5 + $0x6c] sm:$0xf0] }
  0xa9   : > { %v3691_v38 = vor.u32 %v3916_v35, %v3690_v34  ;;  %v3909_v34 = vld [vmem:[#allocation5 + $0x34] sm:$0xf0] }
  0xaa   : > { %447 = vadd.xlane.f32.xlu1 %v4896_v49  ;;  %v3667_v41 = vor.u32 %v3909_v34, %v3666_v32 }
  0xab   : > { %1438 = vmatpush.bf16.msra.mxu0 %v3691_v38  ;;  %1705 = vmatpush.bf16.msra.mxu3 %v3703_v53 }
  0xac   : > { %1618 = vmatpush.bf16.msra.mxu2 %v3667_v41 }
  0xaf   : > { %1439 = vmatpush.bf16.msra.mxu0 %v3675_v1  ;;  %1706 = vmatpush.bf16.msra.mxu3 %v3687_v21  ;;  %v3902_v1 = vld [vmem:[#allocation5 + $0x4] sm:$0xf] }
  0xb0   : > { %582 = vadd.xlane.f32.xlu0 %v530_v17  ;;  %451 = vadd.xlane.f32.xlu2 %v4916_v61 }
  0xb1   : > { %1619 = vmatpush.bf16.msra.mxu2 %v3651_v19 }
  0xb2   : > { %584 = vadd.xlane.f32.xlu1 %v531_v30  ;;  %v3660_v30 = vld [vmem:[#allocation5 + $0x30] sm:$0xf0] }
  0xb3   : > { %v408_v56 = vpop.xlane.xlu0 %407  ;;  %v412_v58 = vpop.xlane.xlu2 %411  ;;  %v3663_v40 = vor.u32 %v3906_v27, %v3660_v30  ;;  %1440 = vmatpush.bf16.msra.mxu0 %v3659_v29  ;;  %1707 = vmatpush.bf16.msra.mxu3 %v3671_v50 }
  0xb4   : > { %v4914_v59 = vmul.f32 %v4910_v43, %v408_v56  ;;  %v532_v56 = vmul.f32 %v4916_v61, %v4916_v61  ;;  %v4934_v63 = vmul.f32 %v4910_v43, %v412_v58  ;;  %v3647_v58 = vor.u32 %v3902_v1, %v3644_v3 }
  0xb5   : > { %v543_v0 = vpop.xlane.xlu1 %542  ;;  %1529 = vmatpush.bf16.msra.mxu1 %v3663_v40 }
  0xb6   : > { %v638_v13 = vmul.f32 %v4914_v59, %v4914_v59  ;;  %v606_v17 = vmul.f32 %v543_v0, %v4910_v43  ;;  %v640_v24 = vmul.f32 %v4934_v63, %v4934_v63 }
  0xb8   : > { %v670_v22 = vsub.f32 %v606_v17, %v638_v13  ;;  %453 = vadd.xlane.f32.xlu0 %v4922_v46  ;;  %588 = vadd.xlane.f32.xlu2 %v533_v55  ;;  %v3643_v13 = vor.u32 %v3904_v62, %v3642_v7  ;;  %v3652_v17 = vld [vmem:[#allocation5 + $0x18] sm:$0xf0] }
  0xb9   : > { %v3655_v20 = vor.u32 %v3903_v16, %v3652_v17  ;;  %1530 = vmatpush.bf16.msra.mxu1 %v3647_v58 }
  0xba   : > { %v702_v35 = vmax.f32 %v670_v22, 0.0  ;;  %586 = vadd.xlane.f32.xlu1 %v532_v56  ;;  %1441 = vmatpush.bf16.msra.mxu0 %v3643_v13 }
  0xbb   : > { %v410_v37 = vpop.xlane.xlu0 %409  ;;  %v414_v38 = vpop.xlane.xlu2 %413  ;;  %1708 = vmatpush.bf16.msra.mxu3 %v3655_v20 }
  0xbc   : > { %v4925_v48 = vmul.f32 %v4910_v43, %v410_v37  ;;  %v4927_v51 = vadd.f32 1e-05, %v702_v35  ;;  %v4942_v21 = vmul.f32 %v4910_v43, %v414_v38  ;;  %v4122_v37 = vld [vmem:[%s4768_s26 + $0x60] sm:$0xff]  }
  0xbd   : > { %v545_v53 = vpop.xlane.xlu1 %544  ;;  %v4018_v19 = vunpack.c.h.bf16 %v4122_v37 }
  0xbe   : > { %v639_v0 = vmul.f32 %v4925_v48, %v4925_v48  ;;  %4242 = vrsqrt.f32 %v4927_v51  ;;  %v607_v12 = vmul.f32 %v545_v53, %v4910_v43  ;;  %v641_v32 = vmul.f32 %v4942_v21, %v4942_v21 }
  0xbf   : > { %v4017_v53 = vunpack.c.l.bf16 %v4122_v37  ;;  %vm804_vm2 = vweird.f32 %v4927_v51 }
  0xc0   : > { %v671_v22 = vsub.f32 %v607_v12, %v639_v0 }
  0xc1   : > { %v4964_v62 = vadd.f32 %v4017_v53, %v4017_v53 }
  0xc2   : > { %v703_v25 = vmax.f32 %v671_v22, 0.0 }
  0xc3   : > { %v547_v27 = vpop.xlane.xlu0 %546  ;;  %v416_v28 = vpop.xlane.xlu2 %415  ;;  %455 = vadd.xlane.f32.xlu0 %v4964_v62 }
  0xc4   : > { %v608_v29 = vmul.f32 %v547_v27, %v4910_v43  ;;  %v4947_v30 = vpop.eup %4242  ;;  %v4951_v34 = vadd.f32 1e-05, %v703_v25  ;;  %v4960_v50 = vmul.f32 %v4910_v43, %v416_v28  ;;  %v4981_v28 = vadd.f32 %v4018_v19, %v4018_v19 }
  0xc5   : > { %v549_v35 = vpop.xlane.xlu1 %548  ;;  %v799_v38 = vmul.f32 %v4947_v30, %v4927_v51  ;;  %vm805_vm1 = vweird.f32 %v4947_v30 }
  0xc6   : > { %v672_v40 = vsub.f32 %v608_v29, %v640_v24  ;;  %4244 = vrsqrt.f32 %v4951_v34  ;;  %v609_v41 = vmul.f32 %v549_v35, %v4910_v43  ;;  %v642_v6 = vmul.f32 %v4960_v50, %v4960_v50  ;;  %457 = vadd.xlane.f32.xlu1 %v4981_v28  ;;  %vm4997_vm3 = vmor %vm804_vm2, %vm805_vm1 }
  0xc7   : > { %v800_v42 = vmul.f32 %v4947_v30, %v799_v38  ;;  %v534_v35 = vmul.f32 %v4964_v62, %v4964_v62  ;;  %vm814_vm5 = vweird.f32 %v4951_v34 }
  0xc8   : > { %v704_v45 = vmax.f32 %v672_v40, 0.0  ;;  %v673_v55 = vsub.f32 %v609_v41, %v641_v32  ;;  %v535_v41 = vmul.f32 %v4981_v28, %v4981_v28 }
  0xc9   : > { %v801_v56 = vmul.f32 0.5, %v800_v42  ;;  %590 = vadd.xlane.f32.xlu2 %v534_v35 }
  0xca   : > { %v4962_v7 = vadd.f32 1e-05, %v704_v45  ;;  %v705_v0 = vmax.f32 %v673_v55, 0.0  ;;  %v734_v55 = vsub.f32 %v4784_v4, %v4914_v59 }
  0xcb   : > { %v418_v1 = vpop.xlane.xlu0 %417  ;;  %v553_v3 = vpop.xlane.xlu2 %552  ;;  %v802_v14 = vsub.f32 1.5, %v801_v56  ;;  %592 = vadd.xlane.f32.xlu0 %v535_v41 }
  0xcc   : > { %4246 = vrsqrt.f32 %v4962_v7  ;;  %v4970_v12 = vmul.f32 %v4910_v43, %v418_v1  ;;  %v4245_v13 = vpop.eup %4244  ;;  %v4973_v16 = vadd.f32 1e-05, %v705_v0  ;;  %v611_v17 = vmul.f32 %v553_v3, %v4910_v43 }
  0xcd   : > { %v551_v58 = vpop.xlane.xlu1 %550  ;;  %v809_v20 = vmul.f32 %v4245_v13, %v4951_v34  ;;  %v803_v29 = vmul.f32 %v4947_v30, %v802_v14  ;;  %vm815_vm4 = vweird.f32 %v4245_v13  ;;  %vm824_vm10 = vweird.f32 %v4962_v7 }
  0xce   : > { %v643_v22 = vmul.f32 %v4970_v12, %v4970_v12  ;;  %4248 = vrsqrt.f32 %v4973_v16  ;;  %v610_v24 = vmul.f32 %v551_v58, %v4910_v43  ;;  %vm816_vm6 = vmor %vm814_vm5, %vm815_vm4  ;;  %vm834_vm7 = vweird.f32 %v4973_v16 }
  0xcf   : > { %v810_v25 = vmul.f32 %v4245_v13, %v809_v20  ;;  %v807_v51 = vsel %vm4997_vm3, %v4947_v30, %v803_v29  ;;  %v735_v30 = vsub.f32 %v4792_v9, %v4925_v48  ;;  %v5029_v9 = vld [vmem:[#allocation10 + $0x1] ss:$0 sm:$0xff] }
  0xd0   : > { %v675_v27 = vsub.f32 %v611_v17, %v643_v22  ;;  %v674_v32 = vsub.f32 %v610_v24, %v642_v6  ;;  %v1118_v34 = vmul.f32 %v807_v51, %v734_v55  ;;  %v3957_v24 = vld [vmem:[#allocation8 + $0xb8] sm:$0xff] }
  0xd1   : > { %v811_v38 = vmul.f32 0.5, %v810_v25  ;;  %v3941_v25 = vld [vmem:[#allocation8 + $0x38] sm:$0xff]  ;;  %2418 = vmatpush.bf16.msrb.mxu2 %v3957_v24 }
  0xd2   : > { %v4987_v37 = vpop.eup %4246  ;;  %v707_v40 = vmax.f32 %v675_v27, 0.0  ;;  %v706_v45 = vmax.f32 %v674_v32, 0.0  ;;  %v3965_v27 = vld [vmem:[#allocation8 + $0xf8] sm:$0xff]  ;;  %2240 = vmatpush.bf16.msrb.mxu0 %v3941_v25 }
  0xd3   : > { %v819_v42 = vmul.f32 %v4987_v37, %v4962_v7  ;;  %v420_v53 = vpop.xlane.xlu0 %419  ;;  %v812_v0 = vsub.f32 1.5, %v811_v38  ;;  %v555_v19 = vpop.xlane.xlu2 %554  ;;  %2507 = vmatpush.bf16.msrb.mxu3 %v3965_v27  ;;  %vm825_vm9 = vweird.f32 %v4987_v37 }
  0xd4   : > { %v5001_v1 = vadd.f32 1e-05, %v707_v40  ;;  %v5003_v3 = vpop.eup %4248  ;;  %v5009_v6 = vadd.f32 1e-05, %v706_v45  ;;  %v5012_v4 = vmul.f32 %v4910_v43, %v420_v53  ;;  %v612_v35 = vmul.f32 %v555_v19, %v4910_v43  ;;  %vm5079_vm12 = vmor %vm824_vm10, %vm825_vm9 }
  0xd5   : > { %v422_v59 = vpop.xlane.xlu1 %421  ;;  %v813_v14 = vmul.f32 %v4245_v13, %v812_v0  ;;  %v820_v17 = vmul.f32 %v4987_v37, %v819_v42  ;;  %v829_v58 = vmul.f32 %v5003_v3, %v4973_v16  ;;  %vm835_vm8 = vweird.f32 %v5003_v3 }
  0xd6   : > { %4250 = vrsqrt.f32 %v5001_v1  ;;  %v644_v32 = vmul.f32 %v5012_v4, %v5012_v4  ;;  %v5027_v38 = vmul.f32 %v4910_v43, %v422_v59  ;;  %v1151_v59 = vmul.f32 %v5029_v9, %v1118_v34  ;;  %vm5060_vm11 = vmor %vm834_vm7, %vm835_vm8 }
  0xd7   : > { %4252 = vrsqrt.f32 %v5009_v6  ;;  %v817_v20 = vsel %vm816_vm6, %v4245_v13, %v813_v14  ;;  %v830_v22 = vmul.f32 %v5003_v3, %v829_v58  ;;  %v821_v48 = vmul.f32 0.5, %v820_v17  ;;  %v5040_v14 = vld [vmem:[#allocation10 + $0x2] ss:$0 sm:$0xff] }
  0xd8   : > { %v1119_v29 = vmul.f32 %v817_v20, %v735_v30  ;;  %v645_v13 = vmul.f32 %v5027_v38, %v5027_v38  ;;  %v676_v0 = vsub.f32 %v612_v35, %v644_v32  ;;  %v3949_v20 = vld [vmem:[#allocation8 + $0x78] sm:$0xff]  ;;  %v5053_v27 = vadd.f32 %v5040_v14, %v1151_v59  ;;  %v4124_v35 = vld [vmem:[%s4768_s26 + $0x70] sm:$0xff]  }
  0xd9   : > { %v831_v40 = vmul.f32 0.5, %v830_v22  ;;  %v822_v17 = vsub.f32 1.5, %v821_v48  ;;  %2329 = vmatpush.bf16.msrb.mxu1 %v3949_v20  ;;  %vm854_vm13 = vweird.f32 %v5001_v1  ;;  %vm844_vm15 = vweird.f32 %v5009_v6 }
  0xda   : > { %v1152_v42 = vmul.f32 %v5029_v9, %v1119_v29  ;;  %v708_v25 = vmax.f32 %v676_v0, 0.0  ;;  %7160 = vst [vmem:[#allocation17_spill] sm:$0xff] %v5053_v27 }
  0xdb   : > { %v557_v41 = vpop.xlane.xlu0 %556  ;;  %v832_v53 = vsub.f32 1.5, %v831_v40  ;;  %v426_v58 = vpop.xlane.xlu2 %425  ;;  %v823_v29 = vmul.f32 %v4987_v37, %v822_v17  ;;  %v736_v17 = vsub.f32 %v4786_v5, %v4934_v63 }
  0xdc   : > { %v5034_v45 = vpop.eup %4250  ;;  %v613_v55 = vmul.f32 %v557_v41, %v4910_v43  ;;  %v5044_v30 = vadd.f32 %v5040_v14, %v1152_v42  ;;  %v5065_v48 = vmul.f32 %v4910_v43, %v426_v58  ;;  %v5083_v0 = vadd.f32 1e-05, %v708_v25 }
  0xdd   : > { %v5037_v56 = vpop.eup %4252  ;;  %v424_v51 = vpop.xlane.xlu1 %423  ;;  %v833_v22 = vmul.f32 %v5003_v3, %v832_v53  ;;  %v849_v24 = vmul.f32 %v5034_v45, %v5001_v1  ;;  %v737_v53 = vsub.f32 %v4794_v10, %v4942_v21  ;;  %v827_v58 = vsel %vm5079_vm12, %v4987_v37, %v823_v29 }
  0xde   : > { %v677_v19 = vsub.f32 %v613_v55, %v645_v13  ;;  %7159 = vst [vmem:[#allocation16_spill] sm:$0xff] %v5044_v30  ;;  %v839_v34 = vmul.f32 %v5037_v56, %v5009_v6  ;;  %v1216_v40 = vpack.c.bf16 %v5044_v30, %v5053_v27  ;;  %v4123_v13 = vld [vmem:[%s4768_s26 + $0x68] sm:$0xff]   ;;  %v5086_v59 = vmul.f32 %v4910_v43, %v424_v51 }
  0xdf   : > { %v837_v41 = vsel %vm5060_vm11, %v5003_v3, %v833_v22  ;;  %v850_v42 = vmul.f32 %v5034_v45, %v849_v24  ;;  %v4021_v21 = vunpack.c.l.bf16 %v4123_v13  ;;  %v647_v51 = vmul.f32 %v5065_v48, %v5065_v48 }
  0xe0   : > { %v709_v32 = vmax.f32 %v677_v19, 0.0  ;;  %v840_v7 = vmul.f32 %v5037_v56, %v839_v34  ;;  %1442 = vmatmul.bf16.vlgmr.msra.gmra.mxu0 %v1216_v40  ;;  %1531 = vmatmul.bf16.vlgmr.msra.gmra.mxu1 %v1216_v40  ;;  %v4022_v19 = vunpack.c.h.bf16 %v4123_v13  ;;  %v1121_v20 = vmul.f32 %v837_v41, %v737_v53 }
  0xe1   : > { %1620 = vmatmul.bf16.vlgmr.msra.gmra.mxu2 %v1216_v40  ;;  %1709 = vmatmul.bf16.vlgmr.msra.gmra.mxu3 %v1216_v40  ;;  %v851_v24 = vmul.f32 0.5, %v850_v42  ;;  %v1120_v34 = vmul.f32 %v827_v58, %v736_v17  ;;  %v646_v37 = vmul.f32 %v5086_v59, %v5086_v59  ;;  %v5101_v29 = vadd.f32 %v4021_v21, %v4021_v21 }
  0xe2   : > { %v5075_v16 = vadd.f32 1e-05, %v709_v32  ;;  %v841_v5 = vmul.f32 0.5, %v840_v7  ;;  %v5103_v32 = vadd.f32 %v4022_v19, %v4022_v19  ;;  %v1154_v13 = vmul.f32 %v5029_v9, %v1121_v20 }
  0xe3   : > { %v559_v10 = vpop.xlane.xlu0 %558  ;;  %v428_v63 = vpop.xlane.xlu2 %427  ;;  %v852_v41 = vsub.f32 1.5, %v851_v24  ;;  %459 = vadd.xlane.f32.xlu1 %v5101_v29  ;;  %v536_v7 = vmul.f32 %v5101_v29, %v5101_v29  ;;  %v4025_v17 = vunpack.c.l.bf16 %v4124_v35  ;;  %vm855_vm14 = vweird.f32 %v5034_v45 }
  0xe4   : > { %4254 = vrsqrt.f32 %v5075_v16  ;;  %v614_v25 = vmul.f32 %v559_v10, %v4910_v43  ;;  %v842_v42 = vsub.f32 1.5, %v841_v5  ;;  %461 = vadd.xlane.f32.xlu2 %v5103_v32  ;;  %vm845_vm0 = vweird.f32 %v5037_v56  ;;  %vm5129_vm1 = vmor %vm854_vm13, %vm855_vm14 }
  0xe5   : > { %v561_v3 = vpop.xlane.xlu1 %560  ;;  %4256 = vrsqrt.f32 %v5083_v0  ;;  %594 = vadd.xlane.f32.xlu0 %v536_v7  ;;  %v5121_v19 = vadd.f32 %v5040_v14, %v1154_v13  ;;  %v853_v20 = vmul.f32 %v5034_v45, %v852_v41  ;;  %v5144_v13 = vmul.f32 %v4910_v43, %v428_v63  ;;  %vm5154_vm2 = vmor %vm844_vm15, %vm845_vm0 }
  0xe6   : > { %v615_v22 = vmul.f32 %v561_v3, %v4910_v43  ;;  %v678_v55 = vsub.f32 %v614_v25, %v646_v37  ;;  %v1153_v3 = vmul.f32 %v5029_v9, %v1120_v34  ;;  %v5139_v25 = vadd.f32 %v4025_v17, %v4025_v17 }
  0xe7   : > { %7165 = vst [vmem:[#allocation18_spill] sm:$0xff] %v5121_v19  ;;  %v738_v7 = vsub.f32 %v4803_v15, %v4960_v50  ;;  %v857_v15 = vsel %vm5129_vm1, %v5034_v45, %v853_v20  ;;  %vm874_vm3 = vweird.f32 %v5075_v16  ;;  %vm864_vm5 = vweird.f32 %v5083_v0 }
  0xe8   : > { %v679_v40 = vsub.f32 %v615_v22, %v647_v51  ;;  %v843_v51 = vmul.f32 %v5037_v56, %v842_v42  ;;  %v537_v22 = vmul.f32 %v5103_v32, %v5103_v32  ;;  %v710_v5 = vmax.f32 %v678_v55, 0.0 }
  0xe9   : > { %v5137_v37 = vadd.f32 %v5040_v14, %v1153_v3  ;;  %v4026_v42 = vunpack.c.h.bf16 %v4124_v35  ;;  %v739_v55 = vsub.f32 %v4808_v18, %v4970_v12 }
  0xea   : > { %v5111_v53 = vpop.eup %4254  ;;  %v711_v21 = vmax.f32 %v679_v40, 0.0  ;;  %v847_v18 = vsel %vm5154_vm2, %v5037_v56, %v843_v51  ;;  %v5170_v12 = vadd.f32 1e-05, %v710_v5  ;;  %v648_v56 = vmul.f32 %v5144_v13, %v5144_v13  ;;  %v3956_v51 = vld [vmem:[#allocation8 + $0xb0] sm:$0xff] }
  0xeb   : > { %v430_v58 = vpop.xlane.xlu0 %429  ;;  %v5116_v10 = vpop.eup %4256  ;;  %v869_v1 = vmul.f32 %v5111_v53, %v5075_v16  ;;  %7168 = vst [vmem:[#allocation19_spill] sm:$0xff] %v5137_v37  ;;  %v1217_v35 = vpack.c.bf16 %v5121_v19, %v5137_v37  ;;  %596 = vadd.xlane.f32.xlu1 %v537_v22  ;;  %v3964_v22 = vld [vmem:[#allocation8 + $0xf0] sm:$0xff]  ;;  %v1123_v24 = vmul.f32 %v857_v15, %v739_v55  ;;  %vm875_vm4 = vweird.f32 %v5111_v53 }
  0xec   : > { %v5134_v34 = vmul.f32 %v4910_v43, %v430_v58  ;;  %v859_v40 = vmul.f32 %v5116_v10, %v5083_v0  ;;  %v565_v41 = vpop.xlane.xlu2 %564  ;;  %v5158_v17 = vadd.f32 1e-05, %v711_v21  ;;  %463 = vadd.xlane.f32.xlu2 %v5139_v25  ;;  %v5175_v21 = vadd.f32 %v4026_v42, %v4026_v42  ;;  %2419 = vmatpush.bf16.msrb.mxu2 %v3956_v51  ;;  %vm5207_vm7 = vmor %vm874_vm3, %vm875_vm4 }
  0xed   : > { %v563_v63 = vpop.xlane.xlu1 %562  ;;  %v870_v50 = vmul.f32 %v5111_v53, %v869_v1  ;;  %v617_v58 = vmul.f32 %v565_v41, %v4910_v43  ;;  %v3940_v1 = vld [vmem:[#allocation8 + $0x30] sm:$0xff]  ;;  %v1122_v5 = vmul.f32 %v847_v18, %v738_v7  ;;  %2508 = vmatpush.bf16.msrb.mxu3 %v3964_v22  ;;  %v538_v7 = vmul.f32 %v5139_v25, %v5139_v25 }
  0xee   : > { %v649_v6 = vmul.f32 %v5134_v34, %v5134_v34  ;;  %v860_v45 = vmul.f32 %v5116_v10, %v859_v40  ;;  %v616_v20 = vmul.f32 %v563_v63, %v4910_v43  ;;  %4258 = vrsqrt.f32 %v5158_v17  ;;  %v3948_v41 = vld [vmem:[#allocation8 + $0x70] sm:$0xff]  ;;  %465 = vadd.xlane.f32.xlu0 %v5175_v21  ;;  %2241 = vmatpush.bf16.msrb.mxu0 %v3940_v1 }
  0xef   : > { %v871_v42 = vmul.f32 0.5, %v870_v50  ;;  %4260 = vrsqrt.f32 %v5170_v12  ;;  %2330 = vmatpush.bf16.msrb.mxu1 %v3948_v41  ;;  %v539_v55 = vmul.f32 %v5175_v21, %v5175_v21  ;;  %v1155_v15 = vmul.f32 %v5029_v9, %v1122_v5 }
  0xf0   : > { %1447 = vmatmul.bf16.gmra.mxu0 %v1217_v35  ;;  %1536 = vmatmul.bf16.gmra.mxu1 %v1217_v35  ;;  %v681_v40 = vsub.f32 %v617_v58, %v649_v6  ;;  %v861_v3 = vmul.f32 0.5, %v860_v45  ;;  %v680_v63 = vsub.f32 %v616_v20, %v648_v56  ;;  %v1156_v18 = vmul.f32 %v5029_v9, %v1123_v24 }
  0xf1   : > { %1625 = vmatmul.bf16.gmra.mxu2 %v1217_v35  ;;  %1714 = vmatmul.bf16.gmra.mxu3 %v1217_v35  ;;  %v872_v50 = vsub.f32 1.5, %v871_v42  ;;  %v5197_v20 = vadd.f32 %v5040_v14, %v1155_v15  ;;  %vm865_vm6 = vweird.f32 %v5116_v10  ;;  %vm894_vm9 = vweird.f32 %v5158_v17 }
  0xf2   : > { %v713_v6 = vmax.f32 %v681_v40, 0.0  ;;  %v862_v58 = vsub.f32 1.5, %v861_v3  ;;  %v712_v45 = vmax.f32 %v680_v63, 0.0  ;;  %v5200_v1 = vadd.f32 %v5040_v14, %v1156_v18  ;;  %vm5222_vm8 = vmor %vm864_vm5, %vm865_vm6 }
  0xf3   : > { %v432_v35 = vpop.xlane.xlu0 %431  ;;  %598 = vadd.xlane.f32.xlu1 %v538_v7  ;;  %7171 = vst [vmem:[#allocation20_spill] sm:$0xff] %v5197_v20  ;;  %v873_v22 = vmul.f32 %v5111_v53, %v872_v50  ;;  %v741_v18 = vsub.f32 %v4820_v26, %v5027_v38  ;;  %v740_v26 = vsub.f32 %v4816_v23, %v5012_v4  ;;  %vm884_vm11 = vweird.f32 %v5170_v12 }
  0xf4   : > { %600 = vadd.xlane.f32.xlu2 %v539_v55  ;;  %v5190_v51 = vpop.eup %4258  ;;  %7172 = vst [vmem:[#allocation21_spill] sm:$0xff] %v5200_v1  ;;  %v5211_v41 = vadd.f32 1e-05, %v713_v6  ;;  %v5214_v42 = vmul.f32 %v4910_v43, %v432_v35  ;;  %v863_v40 = vmul.f32 %v5116_v10, %v862_v58  ;;  %v5219_v3 = vadd.f32 1e-05, %v712_v45  ;;  %v567_v63 = vpop.xlane.xlu2 %566  ;;  %v4125_v55 = vld [vmem:[%s4768_s26 + $0x78] sm:$0xff]  }
  0xf5   : > { %v5194_v56 = vpop.eup %4260  ;;  %v889_v16 = vmul.f32 %v5190_v51, %v5158_v17  ;;  %v434_v24 = vpop.xlane.xlu1 %433  ;;  %v1218_v35 = vpack.c.bf16 %v5200_v1, %v5197_v20  ;;  %v877_v50 = vsel %vm5207_vm7, %v5111_v53, %v873_v22  ;;  %v4029_v1 = vunpack.c.l.bf16 %v4125_v55 }
  0xf6   : > { %v879_v0 = vmul.f32 %v5194_v56, %v5170_v12  ;;  %v5227_v15 = vmul.f32 %v4910_v43, %v434_v24  ;;  %4262 = vrsqrt.f32 %v5211_v41  ;;  %v650_v45 = vmul.f32 %v5214_v42, %v5214_v42 }
  0xf7   : > { %v890_v6 = vmul.f32 %v5190_v51, %v889_v16  ;;  %v618_v24 = vmul.f32 %v567_v63, %v4910_v43  ;;  %v867_v38 = vsel %vm5222_vm8, %v5116_v10, %v863_v40  ;;  %4264 = vrsqrt.f32 %v5219_v3  ;;  %v3955_v10 = vld [vmem:[#allocation8 + $0xa8] sm:$0xff] }
  0xf8   : > { %v880_v53 = vmul.f32 %v5194_v56, %v879_v0  ;;  %v1125_v22 = vmul.f32 %v877_v50, %v741_v18  ;;  %v651_v16 = vmul.f32 %v5227_v15, %v5227_v15  ;;  %v5251_v63 = vadd.f32 %v4029_v1, %v4029_v1  ;;  %v3939_v40 = vld [vmem:[#allocation8 + $0x28] sm:$0xff]  ;;  %2420 = vmatpush.bf16.msrb.mxu2 %v3955_v10 }
  0xf9   : > { %v891_v20 = vmul.f32 0.5, %v890_v6  ;;  %v1124_v23 = vmul.f32 %v867_v38, %v740_v26  ;;  %v682_v4 = vsub.f32 %v618_v24, %v650_v45  ;;  %v3963_v0 = vld [vmem:[#allocation8 + $0xe8] sm:$0xff]  ;;  %v4030_v37 = vunpack.c.h.bf16 %v4125_v55  ;;  %2242 = vmatpush.bf16.msrb.mxu0 %v3939_v40 }
  0xfa   : > { %467 = vadd.xlane.f32.xlu0 %v5251_v63  ;;  %v881_v7 = vmul.f32 0.5, %v880_v53  ;;  %v3947_v18 = vld [vmem:[#allocation8 + $0x68] sm:$0xff]  ;;  %v1158_v1 = vmul.f32 %v5029_v9, %v1125_v22  ;;  %2509 = vmatpush.bf16.msrb.mxu3 %v3963_v0  ;;  %vm895_vm10 = vweird.f32 %v5190_v51  ;;  %vm885_vm12 = vweird.f32 %v5194_v56 }
  0xfb   : > { %v569_v58 = vpop.xlane.xlu0 %568  ;;  %v892_v45 = vsub.f32 1.5, %v891_v20  ;;  %v5261_v24 = vadd.f32 %v4030_v37, %v4030_v37  ;;  %v714_v26 = vmax.f32 %v682_v4, 0.0  ;;  %v1157_v55 = vmul.f32 %v5029_v9, %v1124_v23  ;;  %2331 = vmatpush.bf16.msrb.mxu1 %v3947_v18  ;;  %vm5279_vm13 = vmor %vm894_vm9, %vm895_vm10 }
  0xfc   : > { %v619_v5 = vmul.f32 %v569_v58, %v4910_v43  ;;  %v5256_v50 = vpop.eup %4262  ;;  %v882_v38 = vsub.f32 1.5, %v881_v7  ;;  %v438_v20 = vpop.xlane.xlu2 %437  ;;  %v5271_v22 = vadd.f32 %v5040_v14, %v1158_v1  ;;  %v743_v18 = vsub.f32 %v4827_v31, %v5065_v48  ;;  %vm5299_vm14 = vmor %vm884_vm11, %vm885_vm12 }
  0xfd   : > { %v436_v19 = vpop.xlane.xlu1 %435  ;;  %v5259_v6 = vpop.eup %4264  ;;  %469 = vadd.xlane.f32.xlu1 %v5261_v24  ;;  %v541_v53 = vmul.f32 %v5261_v24, %v5261_v24  ;;  %v909_v17 = vmul.f32 %v5256_v50, %v5211_v41  ;;  %v5283_v4 = vadd.f32 1e-05, %v714_v26  ;;  %v5289_v40 = vadd.f32 %v5040_v14, %v1157_v55 }
  0xfe   : > { %v683_v58 = vsub.f32 %v619_v5, %v651_v16  ;;  %7177 = vst [vmem:[#allocation22_spill] sm:$0xff] %v5271_v22  ;;  %v893_v16 = vmul.f32 %v5190_v51, %v892_v45  ;;  %v899_v5 = vmul.f32 %v5259_v6, %v5219_v3  ;;  %v5286_v10 = vmul.f32 %v4910_v43, %v436_v19 }
  0xff   : > { %7180 = vst [vmem:[#allocation23_spill] sm:$0xff] %v5289_v40  ;;  %v883_v0 = vmul.f32 %v5194_v56, %v882_v38  ;;  %v5293_v7 = vmul.f32 %v4910_v43, %v438_v20  ;;  %v1219_v45 = vpack.c.bf16 %v5271_v22, %v5289_v40  ;;  %v910_v55 = vmul.f32 %v5256_v50, %v909_v17 }
 0x100   : > { %1452 = vmatmul.bf16.gmra.mxu0 %v1218_v35  ;;  %1541 = vmatmul.bf16.gmra.mxu1 %v1218_v35  ;;  %v715_v37 = vmax.f32 %v683_v58, 0.0  ;;  %v897_v26 = vsel %vm5279_vm13, %v5190_v51, %v893_v16  ;;  %v900_v31 = vmul.f32 %v5259_v6, %v899_v5  ;;  %4266 = vrsqrt.f32 %v5283_v4 }
 0x101   : > { %1630 = vmatmul.bf16.gmra.mxu2 %v1218_v35  ;;  %1719 = vmatmul.bf16.gmra.mxu3 %v1218_v35  ;;  %v540_v35 = vmul.f32 %v5251_v63, %v5251_v63  ;;  %v652_v48 = vmul.f32 %v5286_v10, %v5286_v10  ;;  %v887_v38 = vsel %vm5299_vm14, %v5194_v56, %v883_v0  ;;  %v911_v16 = vmul.f32 0.5, %v910_v55 }
 0x102   : > { %604 = vadd.xlane.f32.xlu0 %v541_v53  ;;  %v5303_v19 = vadd.f32 1e-05, %v715_v37  ;;  %v653_v51 = vmul.f32 %v5293_v7, %v5293_v7  ;;  %v742_v37 = vsub.f32 %v4830_v33, %v5086_v59  ;;  %v1127_v20 = vmul.f32 %v897_v26, %v743_v18 }
 0x103   : > { %602 = vadd.xlane.f32.xlu2 %v540_v35  ;;  %v571_v35 = vpop.xlane.xlu0 %570  ;;  %v901_v17 = vmul.f32 0.5, %v900_v31  ;;  %v912_v22 = vsub.f32 1.5, %v911_v16  ;;  %vm914_vm15 = vweird.f32 %v5211_v41  ;;  %vm915_vm0 = vweird.f32 %v5256_v50 }
 0x104   : > { %v620_v12 = vmul.f32 %v571_v35, %v4910_v43  ;;  %4268 = vrsqrt.f32 %v5303_v19  ;;  %v1126_v5 = vmul.f32 %v887_v38, %v742_v37  ;;  %v440_v58 = vpop.xlane.xlu2 %439  ;;  %v1160_v0 = vmul.f32 %v5029_v9, %v1127_v20  ;;  %vm5341_vm3 = vmor %vm914_vm15, %vm915_vm0 }
 0x105   : > { %v573_v1 = vpop.xlane.xlu1 %572  ;;  %vm904_vm1 = vweird.f32 %v5219_v3  ;;  %vm905_vm2 = vweird.f32 %v5259_v6  ;;  %v913_v31 = vmul.f32 %v5256_v50, %v912_v22  ;;  %v744_v16 = vsub.f32 %v4836_v36, %v5144_v13 }
 0x106   : > { %v621_v53 = vmul.f32 %v573_v1, %v4910_v43  ;;  %v684_v23 = vsub.f32 %v620_v12, %v652_v48  ;;  %v5325_v56 = vpop.eup %4266  ;;  %v902_v1 = vsub.f32 1.5, %v901_v17  ;;  %v1159_v59 = vmul.f32 %v5029_v9, %v1126_v5  ;;  %vm5348_vm4 = vmor %vm904_vm1, %vm905_vm2 }
 0x107   : > { %v919_v18 = vmul.f32 %v5325_v56, %v5283_v4  ;;  %v5338_v55 = vadd.f32 %v5040_v14, %v1160_v0  ;;  %v745_v17 = vsub.f32 %v4841_v39, %v5134_v34  ;;  %vm924_vm5 = vweird.f32 %v5283_v4 }
 0x108   : > { %v685_v35 = vsub.f32 %v621_v53, %v653_v51  ;;  %v716_v33 = vmax.f32 %v684_v23, 0.0  ;;  %v903_v48 = vmul.f32 %v5259_v6, %v902_v1  ;;  %v5355_v51 = vmul.f32 %v4910_v43, %v440_v58  ;;  %v3938_v1 = vld [vmem:[#allocation8 + $0x20] sm:$0xff] }
 0x109   : > { %7183 = vst [vmem:[#allocation24_spill] sm:$0xff] %v5338_v55  ;;  %v5358_v22 = vadd.f32 %v5040_v14, %v1159_v59  ;;  %v920_v53 = vmul.f32 %v5325_v56, %v919_v18  ;;  %2243 = vmatpush.bf16.msrb.mxu0 %v3938_v1  ;;  %vm925_vm6 = vweird.f32 %v5325_v56  ;;  %vm934_vm7 = vweird.f32 %v5303_v19 }
 0x10a   : > { %v5328_v40 = vpop.eup %4268  ;;  %v5352_v38 = vadd.f32 1e-05, %v716_v33  ;;  %v907_v58 = vsel %vm5348_vm4, %v5259_v6, %v903_v48  ;;  %v654_v39 = vmul.f32 %v5355_v51, %v5355_v51  ;;  %v3962_v6 = vld [vmem:[#allocation8 + $0xe0] sm:$0xff]  ;;  %vm5403_vm9 = vmor %vm924_vm5, %vm925_vm6 }
 0x10b   : > { %v442_v26 = vpop.xlane.xlu0 %441  ;;  %v929_v3 = vmul.f32 %v5328_v40, %v5303_v19  ;;  %7188 = vst [vmem:[#allocation25_spill] sm:$0xff] %v5358_v22  ;;  %v1220_v23 = vpack.c.bf16 %v5338_v55, %v5358_v22  ;;  %v921_v13 = vmul.f32 0.5, %v920_v53  ;;  %v1128_v59 = vmul.f32 %v907_v58, %v744_v16  ;;  %2510 = vmatpush.bf16.msrb.mxu3 %v3962_v6 }
 0x10c   : > { %v5368_v5 = vmul.f32 %v4910_v43, %v442_v26  ;;  %v577_v36 = vpop.xlane.xlu2 %576  ;;  %4270 = vrsqrt.f32 %v5352_v38  ;;  %vm935_vm8 = vweird.f32 %v5328_v40  ;;  %vm944_vm11 = vweird.f32 %v5352_v38 }
 0x10d   : > { %v575_v20 = vpop.xlane.xlu1 %574  ;;  %v930_v0 = vmul.f32 %v5328_v40, %v929_v3  ;;  %v922_v3 = vsub.f32 1.5, %v921_v13  ;;  %vm5423_vm10 = vmor %vm934_vm7, %vm935_vm8 }
 0x10e   : > { %v622_v34 = vmul.f32 %v575_v20, %v4910_v43  ;;  %v655_v18 = vmul.f32 %v5368_v5, %v5368_v5  ;;  %v1161_v20 = vmul.f32 %v5029_v9, %v1128_v59 }
 0x10f   : > { %v931_v41 = vmul.f32 0.5, %v930_v0  ;;  %v923_v0 = vmul.f32 %v5325_v56, %v922_v3 }
 0x110   : > { %1457 = vmatmul.bf16.gmra.mxu0 %v1219_v45  ;;  %1546 = vmatmul.bf16.gmra.mxu1 %v1219_v45  ;;  %v686_v48 = vsub.f32 %v622_v34, %v654_v39  ;;  %v5410_v1 = vadd.f32 %v5040_v14, %v1161_v20 }
 0x111   : > { %1635 = vmatmul.bf16.gmra.mxu2 %v1219_v45  ;;  %1724 = vmatmul.bf16.gmra.mxu3 %v1219_v45  ;;  %v717_v45 = vmax.f32 %v685_v35, 0.0  ;;  %v917_v35 = vsel %vm5341_vm3, %v5256_v50, %v913_v31  ;;  %v3954_v50 = vld [vmem:[#allocation8 + $0xa0] sm:$0xff] }
 0x112   : > { %v1129_v33 = vmul.f32 %v917_v35, %v745_v17  ;;  %v3946_v31 = vld [vmem:[#allocation8 + $0x60] sm:$0xff]  ;;  %2421 = vmatpush.bf16.msrb.mxu2 %v3954_v50  ;;  %v5387_v12 = vpop.eup %4270  ;;  %v718_v35 = vmax.f32 %v686_v48, 0.0  ;;  %7191 = vst [vmem:[#allocation26_spill] sm:$0xff] %v5410_v1  ;;  %v927_v48 = vsel %vm5403_vm9, %v5325_v56, %v923_v0 }
 0x113   : > { %v5361_v37 = vadd.f32 1e-05, %v717_v45  ;;  %v623_v45 = vmul.f32 %v577_v36, %v4910_v43  ;;  %v444_v26 = vpop.xlane.xlu0 %443  ;;  %2332 = vmatpush.bf16.msrb.mxu1 %v3946_v31  ;;  %v939_v36 = vmul.f32 %v5387_v12, %v5352_v38  ;;  %vm945_vm12 = vweird.f32 %v5387_v12 }
 0x114   : > { %v1162_v16 = vmul.f32 %v5029_v9, %v1129_v33  ;;  %v5401_v39 = vmul.f32 %v4910_v43, %v444_v26  ;;  %v579_v50 = vpop.xlane.xlu2 %578  ;;  %v5427_v26 = vadd.f32 1e-05, %v718_v35  ;;  %vm5476_vm15 = vmor %vm944_vm11, %vm945_vm12 }
 0x115   : > { %4272 = vrsqrt.f32 %v5361_v37  ;;  %v687_v53 = vsub.f32 %v623_v45, %v655_v18  ;;  %v446_v58 = vpop.xlane.xlu1 %445  ;;  %v746_v18 = vsub.f32 %v4849_v44, %v5214_v42  ;;  %v624_v44 = vmul.f32 %v579_v50, %v4910_v43 }
 0x116   : > { %v5413_v6 = vadd.f32 %v5040_v14, %v1162_v16  ;;  %v5417_v59 = vmul.f32 %v4910_v43, %v446_v58  ;;  %v656_v3 = vmul.f32 %v5401_v39, %v5401_v39  ;;  %v940_v42 = vmul.f32 %v5387_v12, %v939_v36 }
 0x117   : > { %v719_v13 = vmax.f32 %v687_v53, 0.0  ;;  %4274 = vrsqrt.f32 %v5427_v26  ;;  %v1130_v16 = vmul.f32 %v927_v48, %v746_v18  ;;  %vm954_vm13 = vweird.f32 %v5361_v37 }
 0x118   : > { %7192 = vst [vmem:[#allocation27_spill] sm:$0xff] %v5413_v6  ;;  %v1221_v20 = vpack.c.bf16 %v5413_v6, %v5410_v1  ;;  %v941_v58 = vmul.f32 0.5, %v940_v42  ;;  %vm964_vm1 = vweird.f32 %v5427_v26  ;;  %v3936_v6 = vld [vmem:[#allocation8 + $0x10] sm:$0xff] }
 0x119   : > { %v5439_v53 = vadd.f32 1e-05, %v719_v13  ;;  %v3960_v1 = vld [vmem:[#allocation8 + $0xd0] sm:$0xff] }
 0x11a   : > { %v942_v13 = vsub.f32 1.5, %v941_v58 }
 0x11b   : > { %v5391_v17 = vpop.eup %4272  ;;  %v581_v31 = vpop.xlane.xlu0 %580  ;;  %4276 = vrsqrt.f32 %v5439_v53  ;;  %vm974_vm3 = vweird.f32 %v5439_v53 }
 0x11c   : > { %v949_v4 = vmul.f32 %v5391_v17, %v5361_v37  ;;  %v625_v56 = vmul.f32 %v581_v31, %v4910_v43  ;;  %vm955_vm14 = vweird.f32 %v5391_v17 }
 0x11d   : > { %vm5487_vm0 = vmor %vm954_vm13, %vm955_vm14 }
 0x11e   : > { %v950_v19 = vmul.f32 %v5391_v17, %v949_v4  ;;  %v5451_v4 = vpop.eup %4274 }
 0x11f   : > { %vm965_vm2 = vweird.f32 %v5451_v4 }
 0x120   : > { %1462 = vmatmul.bf16.gmra.mxu0 %v1220_v23  ;;  %1551 = vmatmul.bf16.gmra.mxu1 %v1220_v23  ;;  %v951_v0 = vmul.f32 0.5, %v950_v19  ;;  %v943_v19 = vmul.f32 %v5387_v12, %v942_v13  ;;  %vm5551_vm5 = vmor %vm964_vm1, %vm965_vm2 }
 0x121   : > { %1640 = vmatmul.bf16.gmra.mxu2 %v1220_v23  ;;  %1729 = vmatmul.bf16.gmra.mxu3 %v1220_v23  ;;  %v932_v23 = vsub.f32 1.5, %v931_v41  ;;  %v747_v41 = vsub.f32 %v4853_v47, %v5227_v15  ;;  %v657_v15 = vmul.f32 %v5417_v59, %v5417_v59  ;;  %v5458_v48 = vpop.eup %4276 }
 0x122   : > { %v952_v50 = vsub.f32 1.5, %v951_v0  ;;  %v969_v37 = vmul.f32 %v5458_v48, %v5439_v53  ;;  %v748_v0 = vsub.f32 %v4863_v54, %v5286_v10  ;;  %v947_v13 = vsel %vm5476_vm15, %v5387_v12, %v943_v19 }
 0x123   : > { %v933_v33 = vmul.f32 %v5328_v40, %v932_v23  ;;  %v688_v23 = vsub.f32 %v624_v44, %v656_v3  ;;  %v689_v36 = vsub.f32 %v625_v56, %v657_v15  ;;  %v583_v3 = vpop.xlane.xlu0 %582  ;;  %v959_v44 = vmul.f32 %v5451_v4, %v5427_v26 }
 0x124   : > { %v970_v54 = vmul.f32 %v5458_v48, %v969_v37  ;;  %v1132_v12 = vmul.f32 %v947_v13, %v748_v0  ;;  %vm975_vm4 = vweird.f32 %v5458_v48  ;;  %v750_v26 = vsub.f32 %v4869_v57, %v5355_v51 }
 0x125   : > { %v937_v47 = vsel %vm5423_vm10, %v5328_v40, %v933_v33  ;;  %v448_v40 = vpop.xlane.xlu1 %447  ;;  %v720_v34 = vmax.f32 %v688_v23, 0.0  ;;  %v1163_v33 = vmul.f32 %v5029_v9, %v1130_v16  ;;  %v721_v18 = vmax.f32 %v689_v36, 0.0  ;;  %vm5556_vm6 = vmor %vm974_vm3, %vm975_vm4 }
 0x126   : > { %v1131_v35 = vmul.f32 %v937_v47, %v747_v41  ;;  %v5456_v31 = vmul.f32 %v4910_v43, %v448_v40  ;;  %v450_v41 = vpop.xlane.xlu2 %449  ;;  %v626_v23 = vmul.f32 %v583_v3, %v4910_v43  ;;  %v960_v36 = vmul.f32 %v5451_v4, %v959_v44  ;;  %v3937_v3 = vld [vmem:[#allocation8 + $0x18] sm:$0xff] }
 0x127   : > { %v5466_v42 = vadd.f32 1e-05, %v720_v34  ;;  %v5471_v47 = vadd.f32 %v5040_v14, %v1163_v33  ;;  %v5482_v56 = vadd.f32 1e-05, %v721_v18  ;;  %v5492_v58 = vmul.f32 %v4910_v43, %v450_v41  ;;  %v3953_v41 = vld [vmem:[#allocation8 + $0x98] sm:$0xff]  ;;  %2244 = vmatpush.bf16.msrb.mxu0 %v3937_v3 }
 0x128   : > { %v1164_v45 = vmul.f32 %v5029_v9, %v1131_v35  ;;  %v658_v16 = vmul.f32 %v5456_v31, %v5456_v31  ;;  %v749_v34 = vsub.f32 %v4860_v52, %v5293_v7  ;;  %v961_v18 = vmul.f32 0.5, %v960_v36  ;;  %2422 = vmatpush.bf16.msrb.mxu2 %v3953_v41 }
 0x129   : > { %7195 = vst [vmem:[#allocation28_spill] sm:$0xff] %v5471_v47  ;;  %4278 = vrsqrt.f32 %v5466_v42  ;;  %v659_v52 = vmul.f32 %v5492_v58, %v5492_v58  ;;  %v1165_v0 = vmul.f32 %v5029_v9, %v1132_v12  ;;  %vm984_vm7 = vweird.f32 %v5466_v42 }
 0x12a   : > { %v5474_v38 = vadd.f32 %v5040_v14, %v1164_v45  ;;  %4280 = vrsqrt.f32 %v5482_v56  ;;  %v690_v10 = vsub.f32 %v626_v23, %v658_v16  ;;  %v962_v23 = vsub.f32 1.5, %v961_v18 }
 0x12b   : > { %v454_v35 = vpop.xlane.xlu0 %453  ;;  %v5537_v18 = vadd.f32 %v5040_v14, %v1165_v0  ;;  %vm994_vm9 = vweird.f32 %v5482_v56  ;;  %2245 = vmatpush.bf16.msrb.mxu0 %v3936_v6 }
 0x12c   : > { %7196 = vst [vmem:[#allocation29_spill] sm:$0xff] %v5474_v38  ;;  %v722_v15 = vmax.f32 %v690_v10, 0.0 }
 0x12d   : > { %v585_v40 = vpop.xlane.xlu1 %584  ;;  %7201 = vst [vmem:[#allocation30_spill] sm:$0xff] %v5537_v18 }
 0x12e   : > { %v452_v45 = vpop.xlane.xlu2 %451  ;;  %v627_v7 = vmul.f32 %v585_v40, %v4910_v43 }
 0x12f   : > { %v5513_v19 = vpop.eup %4278  ;;  %v5521_v40 = vmul.f32 %v4910_v43, %v452_v45  ;;  %v963_v45 = vmul.f32 %v5451_v4, %v962_v23 }
 0x130   : > { %1467 = vmatmul.bf16.gmra.mxu0 %v1221_v20  ;;  %1556 = vmatmul.bf16.gmra.mxu1 %v1221_v20  ;;  %v691_v37 = vsub.f32 %v627_v7, %v659_v52  ;;  %v5515_v16 = vpop.eup %4280  ;;  %v979_v36 = vmul.f32 %v5513_v19, %v5466_v42  ;;  %v5531_v7 = vmul.f32 %v4910_v43, %v454_v35  ;;  %vm985_vm8 = vweird.f32 %v5513_v19 }
 0x131   : > { %1645 = vmatmul.bf16.gmra.mxu2 %v1221_v20  ;;  %1734 = vmatmul.bf16.gmra.mxu3 %v1221_v20  ;;  %v953_v20 = vmul.f32 %v5391_v17, %v952_v50  ;;  %v1222_v50 = vpack.c.bf16 %v5474_v38, %v5471_v47  ;;  %v989_v10 = vmul.f32 %v5515_v16, %v5482_v56  ;;  %vm995_vm10 = vweird.f32 %v5515_v16  ;;  %vm5594_vm11 = vmor %vm984_vm7, %vm985_vm8  ;;  %v3952_v47 = vld [vmem:[#allocation8 + $0x90] sm:$0xff] }
 0x132   : > { %v723_v52 = vmax.f32 %v691_v37, 0.0  ;;  %v980_v41 = vmul.f32 %v5513_v19, %v979_v36  ;;  %v660_v3 = vmul.f32 %v5521_v40, %v5521_v40  ;;  %v661_v35 = vmul.f32 %v5531_v7, %v5531_v7  ;;  %vm5609_vm12 = vmor %vm994_vm9, %vm995_vm10  ;;  %2423 = vmatpush.bf16.msrb.mxu2 %v3952_v47 }
 0x133   : > { %v957_v33 = vsel %vm5487_vm0, %v5391_v17, %v953_v20  ;;  %v3961_v17 = vld [vmem:[#allocation8 + $0xd8] sm:$0xff]  ;;  %v971_v20 = vmul.f32 0.5, %v970_v54  ;;  %v990_v37 = vmul.f32 %v5515_v16, %v989_v10  ;;  %v751_v36 = vsub.f32 %v4874_v60, %v5368_v5 }
 0x134   : > { %v1133_v44 = vmul.f32 %v957_v33, %v749_v34  ;;  %2511 = vmatpush.bf16.msrb.mxu3 %v3961_v17  ;;  %v3945_v54 = vld [vmem:[#allocation8 + $0x58] sm:$0xff]  ;;  %v5561_v23 = vadd.f32 1e-05, %v723_v52  ;;  %v753_v56 = vsub.f32 %v4888_v8, %v5417_v59 }
 0x135   : > { %v972_v13 = vsub.f32 1.5, %v971_v20  ;;  %v587_v33 = vpop.xlane.xlu1 %586  ;;  %2333 = vmatpush.bf16.msrb.mxu1 %v3945_v54  ;;  %v991_v52 = vmul.f32 0.5, %v990_v37 }
 0x136   : > { %v1166_v34 = vmul.f32 %v5029_v9, %v1133_v44  ;;  %v589_v12 = vpop.xlane.xlu2 %588  ;;  %v628_v17 = vmul.f32 %v587_v33, %v4910_v43  ;;  %v456_v60 = vpop.xlane.xlu0 %455  ;;  %vm1014_vm14 = vweird.f32 %v5561_v23 }
 0x137   : > { %v973_v53 = vmul.f32 %v5458_v48, %v972_v13  ;;  %v629_v0 = vmul.f32 %v589_v12, %v4910_v43  ;;  %v981_v13 = vmul.f32 0.5, %v980_v41 }
 0x138   : > { %v5544_v44 = vadd.f32 %v5040_v14, %v1166_v34  ;;  %v967_v34 = vsel %vm5551_vm5, %v5451_v4, %v963_v45  ;;  %v692_v33 = vsub.f32 %v628_v17, %v660_v3  ;;  %2512 = vmatpush.bf16.msrb.mxu3 %v3960_v1 }
 0x139   : > { %v977_v10 = vsel %vm5556_vm6, %v5458_v48, %v973_v53  ;;  %v693_v57 = vsub.f32 %v629_v0, %v661_v35  ;;  %v1134_v5 = vmul.f32 %v967_v34, %v750_v26  ;;  %v982_v45 = vsub.f32 1.5, %v981_v13 }
 0x13a   : > { %7202 = vst [vmem:[#allocation31_spill] sm:$0xff] %v5544_v44  ;;  %v1223_v54 = vpack.c.bf16 %v5544_v44, %v5537_v18  ;;  %v1135_v4 = vmul.f32 %v977_v10, %v751_v36  ;;  %v724_v12 = vmax.f32 %v692_v33, 0.0  ;;  %v992_v48 = vsub.f32 1.5, %v991_v52 }
 0x13b   : > { %v725_v3 = vmax.f32 %v693_v57, 0.0  ;;  %v1167_v17 = vmul.f32 %v5029_v9, %v1134_v5  ;;  %v983_v20 = vmul.f32 %v5513_v19, %v982_v45  ;;  %v5599_v0 = vmul.f32 %v4910_v43, %v456_v60 }
 0x13c   : > { %v1168_v37 = vmul.f32 %v5029_v9, %v1135_v4  ;;  %v993_v26 = vmul.f32 %v5515_v16, %v992_v48  ;;  %v752_v33 = vsub.f32 %v4882_v2, %v5401_v39 }
 0x13d   : > { %v458_v42 = vpop.xlane.xlu1 %457  ;;  %v5603_v34 = vadd.f32 1e-05, %v725_v3  ;;  %v987_v52 = vsel %vm5594_vm11, %v5513_v19, %v983_v20  ;;  %v5623_v2 = vadd.f32 %v5040_v14, %v1167_v17  ;;  %v662_v60 = vmul.f32 %v5599_v0, %v5599_v0 }
 0x13e   : > { %v591_v13 = vpop.xlane.xlu2 %590  ;;  %v5616_v10 = vmul.f32 %v4910_v43, %v458_v42  ;;  %v593_v57 = vpop.xlane.xlu0 %592  ;;  %v5626_v39 = vadd.f32 %v5040_v14, %v1168_v37  ;;  %v997_v19 = vsel %vm5609_vm12, %v5515_v16, %v993_v26  ;;  %v1136_v45 = vmul.f32 %v987_v52, %v752_v33  ;;  %v1264_v14 = vld [vmem:[#allocation7] sm:$0xf]  ;;  %v5649_v33 = vld [vmem:[#allocation10 + $0x1] ss:$0 sm:$0xff] }
 0x13f   : > { %7211 = vst [vmem:[#allocation32_spill] sm:$0xff] %v5623_v2  ;;  %v630_v5 = vmul.f32 %v591_v13, %v4910_v43  ;;  %v631_v59 = vmul.f32 %v593_v57, %v4910_v43  ;;  %v1137_v17 = vmul.f32 %v997_v19, %v753_v56  ;;  %v5645_v37 = vperm.slane %v1264_v14, 0 }
 0x140   : > { %1472 = vmatmul.bf16.gmra.mxu0 %v1222_v50  ;;  %1561 = vmatmul.bf16.gmra.mxu1 %v1222_v50  ;;  %7212 = vst [vmem:[#allocation33_spill] sm:$0xff] %v5626_v39  ;;  %v663_v8 = vmul.f32 %v5616_v10, %v5616_v10  ;;  %v1224_v3 = vpack.c.bf16 %v5626_v39, %v5623_v2  ;;  %v5647_v35 = vperm.slane %v1264_v14, 1  ;;  %v5668_v39 = vld [vmem:[#allocation10 + $0x2] ss:$0 sm:$0xff]  ;;  %v5683_v18 = vperm.slane %v1264_v14, 3 }
 0x141   : > { %1650 = vmatmul.bf16.gmra.mxu2 %v1222_v50  ;;  %1739 = vmatmul.bf16.gmra.mxu3 %v1222_v50  ;;  %v5525_v50 = vadd.f32 1e-05, %v722_v15  ;;  %v5591_v15 = vadd.f32 1e-05, %v724_v12  ;;  %v694_v20 = vsub.f32 %v630_v5, %v662_v60  ;;  %v1169_v9 = vmul.f32 %v5649_v33, %v1136_v45 }
 0x142   : > { %v695_v13 = vsub.f32 %v631_v59, %v663_v8  ;;  %v1170_v56 = vmul.f32 %v5649_v33, %v1137_v17  ;;  %vm1034_vm4 = vweird.f32 %v5603_v34 }
 0x143   : > { %4282 = vrsqrt.f32 %v5525_v50  ;;  %vm1004_vm13 = vweird.f32 %v5525_v50  ;;  %v726_v57 = vmax.f32 %v694_v20, 0.0  ;;  %v5671_v17 = vadd.f32 %v5668_v39, %v1169_v9 }
 0x144   : > { %4284 = vrsqrt.f32 %v5561_v23  ;;  %v727_v59 = vmax.f32 %v695_v13, 0.0  ;;  %v5686_v9 = vadd.f32 %v5668_v39, %v1170_v56  ;;  %vm1024_vm3 = vweird.f32 %v5591_v15 }
 0x145   : > { %4286 = vrsqrt.f32 %v5591_v15  ;;  %7213 = vst [vmem:[#allocation34_spill] sm:$0xff] %v5671_v17  ;;  %v5681_v13 = vadd.f32 1e-05, %v726_v57 }
 0x146   : > { %4288 = vrsqrt.f32 %v5603_v34  ;;  %7214 = vst [vmem:[#allocation35_spill] sm:$0xff] %v5686_v9  ;;  %v5698_v56 = vadd.f32 1e-05, %v727_v59  ;;  %v1225_v47 = vpack.c.bf16 %v5686_v9, %v5671_v17 }
 0x147   : > { %4290 = vrsqrt.f32 %v5681_v13  ;;  %vm1044_vm9 = vweird.f32 %v5681_v13 }
 0x148   : > { %4292 = vrsqrt.f32 %v5698_v56  ;;  %vm1054_vm10 = vweird.f32 %v5698_v56 }
 0x149   : > { %v5579_v51 = vpop.eup %4282 }
 0x14a   : > { %v999_v41 = vmul.f32 %v5579_v51, %v5525_v50  ;;  %v5587_v53 = vpop.eup %4284  ;;  %vm1005_vm15 = vweird.f32 %v5579_v51 }
 0x14b   : > { %v5643_v16 = vpop.eup %4286  ;;  %vm1015_vm0 = vweird.f32 %v5587_v53  ;;  %vm5692_vm1 = vmor %vm1004_vm13, %vm1005_vm15 }
 0x14c   : > { %v1000_v36 = vmul.f32 %v5579_v51, %v999_v41  ;;  %v1019_v52 = vmul.f32 %v5643_v16, %v5591_v15  ;;  %vm5718_vm2 = vmor %vm1014_vm14, %vm1015_vm0  ;;  %vm1025_vm5 = vweird.f32 %v5643_v16 }
 0x14d   : > { %vm5766_vm7 = vmor %vm1024_vm3, %vm1025_vm5 }
 0x14e   : > { %v1001_v4 = vmul.f32 0.5, %v1000_v36  ;;  %v1020_v44 = vmul.f32 %v5643_v16, %v1019_v52 }
 0x150   : > { %1477 = vmatmul.bf16.gmra.mxu0 %v1223_v54  ;;  %1566 = vmatmul.bf16.gmra.mxu1 %v1223_v54  ;;  %v1002_v42 = vsub.f32 1.5, %v1001_v4  ;;  %v1021_v1 = vmul.f32 0.5, %v1020_v44 }
 0x151   : > { %1655 = vmatmul.bf16.gmra.mxu2 %v1223_v54  ;;  %1744 = vmatmul.bf16.gmra.mxu3 %v1223_v54  ;;  %v1009_v54 = vmul.f32 %v5587_v53, %v5561_v23 }
 0x152   : > { %v5661_v60 = vmul.f32 %v5579_v51, %v1002_v42  ;;  %v5673_v42 = vperm.slane %v1264_v14, 2 }
 0x153   : > { %v1010_v12 = vmul.f32 %v5587_v53, %v1009_v54  ;;  %v5652_v54 = vpop.eup %4288 }
 0x154   : > { %v1029_v8 = vmul.f32 %v5652_v54, %v5603_v34  ;;  %vm1035_vm6 = vweird.f32 %v5652_v54 }
 0x155   : > { %v1011_v36 = vmul.f32 0.5, %v1010_v12  ;;  %vm5783_vm8 = vmor %vm1034_vm4, %vm1035_vm6 }
 0x156   : > { %v460_v26 = vpop.xlane.xlu1 %459  ;;  %v1030_v57 = vmul.f32 %v5652_v54, %v1029_v8  ;;  %v755_v8 = vsub.f32 %v4899_v11, %v5492_v58 }
 0x157   : > { %v1012_v12 = vsub.f32 1.5, %v1011_v36  ;;  %v5678_v2 = vmul.f32 %v4910_v43, %v460_v26  ;;  %v462_v36 = vpop.xlane.xlu2 %461  ;;  %v3944_v26 = vld [vmem:[#allocation8 + $0x50] sm:$0xff] }
 0x158   : > { %v595_v38 = vpop.xlane.xlu0 %594  ;;  %2334 = vmatpush.bf16.msrb.mxu1 %v3944_v26 }
 0x159   : > { %v1013_v14 = vmul.f32 %v5587_v53, %v1012_v12  ;;  %v664_v50 = vmul.f32 %v5678_v2, %v5678_v2  ;;  %v754_v12 = vsub.f32 %v4896_v49, %v5456_v31  ;;  %v1007_v49 = vsel %vm5692_vm1, %v5579_v51, %v5661_v60 }
 0x15a   : > { %v1031_v51 = vmul.f32 0.5, %v1030_v57 }
 0x15b   : > { %v1017_v44 = vsel %vm5718_vm2, %v5587_v53, %v1013_v14  ;;  %v1138_v52 = vmul.f32 %v1007_v49, %v754_v12  ;;  %v5744_v53 = vpop.eup %4290 }
 0x15c   : > { %v1139_v14 = vmul.f32 %v1017_v44, %v755_v8  ;;  %v1032_v57 = vsub.f32 1.5, %v1031_v51  ;;  %v5747_v12 = vpop.eup %4292  ;;  %vm1045_vm11 = vweird.f32 %v5744_v53 }
 0x15d   : > { %v1443_v48 = vpop.f32.mrf.mxu0  ;;  %v1532_v41 = vpop.f32.mrf.mxu1  ;;  %v1049_v51 = vmul.f32 %v5747_v12, %v5698_v56  ;;  %vm1055_vm12 = vweird.f32 %v5747_v12  ;;  %vm5860_vm13 = vmor %vm1044_vm9, %vm1045_vm11 }
 0x15e   : > { %v1444_v5 = vadd.f32 %v1443_v48, %v5645_v37  ;;  %v1533_v19 = vadd.f32 %v1532_v41, %v5647_v35  ;;  %v597_v30 = vpop.xlane.xlu1 %596  ;;  %vm5874_vm14 = vmor %vm1054_vm10, %vm1055_vm12 }
 0x15f   : > { %v633_v59 = vmul.f32 %v597_v30, %v4910_v43 }
 0x160   : > { %1482 = vmatmul.bf16.gmra.mxu0 %v1224_v3  ;;  %1571 = vmatmul.bf16.gmra.mxu1 %v1224_v3  ;;  %v1791_v55 = vmax.f32 %v1533_v19, 0.0 }
 0x161   : > { %1660 = vmatmul.bf16.gmra.mxu2 %v1224_v3  ;;  %1749 = vmatmul.bf16.gmra.mxu3 %v1224_v3 }
 0x164   : > { %v1621_v4 = vpop.f32.mrf.mxu2  ;;  %v1710_v45 = vpop.f32.mrf.mxu3 }
 0x165   : > { %v1445_v3 = vpop.f32.mrf.mxu0  ;;  %v1534_v20 = vpop.f32.mrf.mxu1  ;;  %v1711_v6 = vadd.f32 %v1710_v45, %v5683_v18 }
 0x166   : > { %v1446_v48 = vadd.f32 %v1445_v3, %v5645_v37  ;;  %v1535_v41 = vadd.f32 %v1534_v20, %v5647_v35  ;;  %v1790_v3 = vmax.f32 %v1444_v5, 0.0  ;;  %v5701_v5 = vmul.f32 %v4910_v43, %v462_v36 }
 0x168   : > { %v1794_v20 = vmax.f32 %v1446_v48, 0.0  ;;  %v1795_v22 = vmax.f32 %v1535_v41, 0.0  ;;  %v632_v41 = vmul.f32 %v595_v38, %v4910_v43  ;;  %v665_v23 = vmul.f32 %v5701_v5, %v5701_v5 }
 0x16a   : > { %v5703_v19 = vpack.c.bf16 %v1794_v20, %v1790_v3  ;;  %v5705_v48 = vpack.c.bf16 %v1795_v22, %v1791_v55  ;;  %v1622_v22 = vadd.f32 %v1621_v4, %v5673_v42  ;;  %v696_v60 = vsub.f32 %v632_v41, %v664_v50  ;;  %v466_v41 = vpop.xlane.xlu0 %465 }
 0x16b   : > { %v1793_v3 = vmax.f32 %v1711_v6, 0.0  ;;  %v697_v17 = vsub.f32 %v633_v59, %v665_v23  ;;  %v1033_v23 = vmul.f32 %v5652_v54, %v1032_v57 }
 0x16c   : > { %v1623_v11 = vpop.f32.mrf.mxu2  ;;  %v1712_v31 = vpop.f32.mrf.mxu3  ;;  %v1792_v36 = vmax.f32 %v1622_v22, 0.0  ;;  %v728_v50 = vmax.f32 %v696_v60, 0.0 }
 0x16d   : > { %v1624_v38 = vadd.f32 %v1623_v11, %v5673_v42  ;;  %v1713_v58 = vadd.f32 %v1712_v31, %v5683_v18  ;;  %v1448_v4 = vpop.f32.mrf.mxu0  ;;  %v1537_v45 = vpop.f32.mrf.mxu1  ;;  %v1022_v31 = vsub.f32 1.5, %v1021_v1  ;;  %v729_v1 = vmax.f32 %v697_v17, 0.0 }
 0x16e   : > { %v464_v11 = vpop.xlane.xlu2 %463  ;;  %v1449_v55 = vadd.f32 %v1448_v4, %v5645_v37  ;;  %v1538_v22 = vadd.f32 %v1537_v45, %v5647_v35  ;;  %v1172_v45 = vmul.f32 %v5649_v33, %v1139_v14  ;;  %v1039_v17 = vmul.f32 %v5744_v53, %v5681_v13 }
 0x16f   : > { %v1796_v20 = vmax.f32 %v1624_v38, 0.0  ;;  %v1797_v26 = vmax.f32 %v1713_v58, 0.0  ;;  %v1023_v8 = vmul.f32 %v5643_v16, %v1022_v31  ;;  %v1171_v58 = vmul.f32 %v5649_v33, %v1138_v52 }
 0x170   : > { %1487 = vmatmul.bf16.gmra.mxu0 %v1225_v47  ;;  %1576 = vmatmul.bf16.gmra.mxu1 %v1225_v47  ;;  %v5774_v60 = vadd.f32 1e-05, %v728_v50  ;;  %v756_v31 = vsub.f32 %v4916_v61, %v5521_v40  ;;  %v757_v14 = vsub.f32 %v4922_v46, %v5531_v7  ;;  %v5791_v57 = vadd.f32 1e-05, %v729_v1 }
 0x171   : > { %v5740_v9 = vpack.c.bf16 %v1796_v20, %v1792_v36  ;;  %v5742_v30 = vpack.c.bf16 %v1797_v26, %v1793_v3  ;;  %1665 = vmatmul.bf16.gmra.mxu2 %v1225_v47  ;;  %1754 = vmatmul.bf16.gmra.mxu3 %v1225_v47  ;;  %v5777_v36 = vmul.f32 %v4910_v43, %v466_v41  ;;  %v1798_v3 = vmax.f32 %v1449_v55, 0.0 }
 0x172   : > { %v1799_v20 = vmax.f32 %v1538_v22, 0.0  ;;  %v5794_v41 = vadd.f32 %v5668_v39, %v1171_v58  ;;  %v5797_v34 = vadd.f32 %v5668_v39, %v1172_v45  ;;  %v1037_v61 = vsel %vm5783_vm8, %v5652_v54, %v1033_v23  ;;  %v599_v22 = vpop.xlane.xlu1 %598 }
 0x173   : > { %v1027_v46 = vsel %vm5766_vm7, %v5643_v16, %v1023_v8  ;;  %v1040_v40 = vmul.f32 %v5744_v53, %v1039_v17  ;;  %v5811_v7 = vmul.f32 %v4910_v43, %v464_v11  ;;  %v1050_v1 = vmul.f32 %v5747_v12, %v1049_v51 }
 0x174   : > { %v1626_v6 = vpop.f32.mrf.mxu2  ;;  %v5753_v49 = vpop.f32.mrf.mxu3  ;;  %7223 = vst [vmem:[#allocation36_spill] sm:$0xff] %v5794_v41  ;;  %4294 = vrsqrt.f32 %v5774_v60  ;;  %v1140_v45 = vmul.f32 %v1027_v46, %v756_v31  ;;  %v1226_v44 = vpack.c.bf16 %v5797_v34, %v5794_v41  ;;  %v3951_v31 = vld [vmem:[#allocation8 + $0x88] sm:$0xff]  ;;  %vm1064_vm15 = vweird.f32 %v5774_v60 }
 0x175   : > { %v1450_v47 = vpop.f32.mrf.mxu0  ;;  %v1539_v38 = vpop.f32.mrf.mxu1  ;;  %7224 = vst [vmem:[#allocation37_spill] sm:$0xff] %v5797_v34  ;;  %4296 = vrsqrt.f32 %v5791_v57  ;;  %v1627_v54 = vadd.f32 %v1626_v6, %v5673_v42  ;;  %v1041_v17 = vmul.f32 0.5, %v1040_v40  ;;  %v666_v51 = vmul.f32 %v5811_v7, %v5811_v7  ;;  %2424 = vmatpush.bf16.msrb.mxu2 %v3951_v31 }
 0x176   : > { %v1451_v59 = vadd.f32 %v1450_v47, %v5645_v37  ;;  %v1540_v4 = vadd.f32 %v1539_v38, %v5647_v35  ;;  %v601_v50 = vpop.xlane.xlu2 %600  ;;  %v1051_v6 = vmul.f32 0.5, %v1050_v1  ;;  %v1173_v46 = vmul.f32 %v5649_v33, %v1140_v45 }
 0x177   : > { %v635_v11 = vmul.f32 %v601_v50, %v4910_v43  ;;  %v3959_v50 = vld [vmem:[#allocation8 + $0xc8] sm:$0xff]  ;;  %v1042_v1 = vsub.f32 1.5, %v1041_v17  ;;  %vm1074_vm1 = vweird.f32 %v5791_v57 }
 0x178   : > { %v1802_v26 = vmax.f32 %v1451_v59, 0.0  ;;  %v1803_v52 = vmax.f32 %v1540_v4, 0.0  ;;  %v667_v59 = vmul.f32 %v5777_v36, %v5777_v36  ;;  %v1141_v4 = vmul.f32 %v1037_v61, %v757_v14  ;;  %v3935_v14 = vld [vmem:[#allocation8 + $0x8] sm:$0xff]  ;;  %2513 = vmatpush.bf16.msrb.mxu3 %v3959_v50 }
 0x179   : > { %2246 = vmatpush.bf16.msrb.mxu0 %v3935_v14  ;;  %v1043_v14 = vmul.f32 %v5744_v53, %v1042_v1 }
 0x17a   : > { %v5799_v47 = vpack.c.bf16 %v1802_v26, %v1798_v3  ;;  %v5801_v55 = vpack.c.bf16 %v1803_v52, %v1799_v20  ;;  %v634_v3 = vmul.f32 %v599_v22, %v4910_v43  ;;  %v1800_v20 = vmax.f32 %v1627_v54, 0.0  ;;  %v5827_v61 = vpop.eup %4294 }
 0x17b   : > { %v699_v52 = vsub.f32 %v635_v11, %v667_v59  ;;  %v1174_v40 = vmul.f32 %v5649_v33, %v1141_v4  ;;  %v5833_v22 = vpop.eup %4296  ;;  %v468_v59 = vpop.xlane.xlu0 %467  ;;  %vm1065_vm0 = vweird.f32 %v5827_v61 }
 0x17c   : > { %v1628_v38 = vpop.f32.mrf.mxu2  ;;  %v1717_v58 = vpop.f32.mrf.mxu3  ;;  %vm1075_vm2 = vweird.f32 %v5833_v22  ;;  %vm5941_vm3 = vmor %vm1064_vm15, %vm1065_vm0 }
 0x17d   : > { %v1629_v16 = vadd.f32 %v1628_v38, %v5673_v42  ;;  %v1453_v8 = vpop.f32.mrf.mxu0  ;;  %v1542_v23 = vpop.f32.mrf.mxu1  ;;  %v1718_v26 = vadd.f32 %v1717_v58, %v5683_v18  ;;  %v1716_v38 = vadd.f32 %v5753_v49, %v5683_v18  ;;  %v698_v58 = vsub.f32 %v634_v3, %v666_v51  ;;  %vm5945_vm4 = vmor %vm1074_vm1, %vm1075_vm2 }
 0x17e   : > { %v1543_v11 = vadd.f32 %v1542_v23, %v5647_v35  ;;  %v1059_v49 = vmul.f32 %v5827_v61, %v5774_v60  ;;  %v731_v51 = vmax.f32 %v699_v52, 0.0  ;;  %v5850_v23 = vadd.f32 %v5668_v39, %v1173_v46 }
 0x17f   : > { %v1804_v15 = vmax.f32 %v1629_v16, 0.0  ;;  %v1454_v16 = vadd.f32 %v1453_v8, %v5645_v37  ;;  %v1805_v17 = vmax.f32 %v1718_v26, 0.0  ;;  %v730_v50 = vmax.f32 %v698_v58, 0.0  ;;  %v3943_v26 = vld [vmem:[#allocation8 + $0x48] sm:$0xff] }
 0x180   : > { %1492 = vmatmul.bf16.gmra.mxu0 %v1226_v44  ;;  %1581 = vmatmul.bf16.gmra.mxu1 %v1226_v44  ;;  %v5854_v34 = vadd.f32 %v5668_v39, %v1174_v40  ;;  %v1807_v41 = vmax.f32 %v1543_v11, 0.0  ;;  %v1060_v1 = vmul.f32 %v5827_v61, %v1059_v49  ;;  %v470_v40 = vpop.xlane.xlu1 %469  ;;  %v5880_v11 = vmul.f32 %v4910_v43, %v468_v59 }
 0x181   : > { %1670 = vmatmul.bf16.gmra.mxu2 %v1226_v44  ;;  %1759 = vmatmul.bf16.gmra.mxu3 %v1226_v44  ;;  %v5837_v54 = vpack.c.bf16 %v1804_v15, %v1800_v20  ;;  %v1052_v44 = vsub.f32 1.5, %v1051_v6  ;;  %v1069_v20 = vmul.f32 %v5833_v22, %v5791_v57  ;;  %v1801_v6 = vmax.f32 %v1716_v38, 0.0 }
 0x182   : > { %v1806_v52 = vmax.f32 %v1454_v16, 0.0  ;;  %v5866_v38 = vadd.f32 1e-05, %v731_v51  ;;  %2335 = vmatpush.bf16.msrb.mxu1 %v3943_v26  ;;  %v759_v51 = vsub.f32 %v4981_v28, %v5616_v10  ;;  %v1047_v59 = vsel %vm5860_vm13, %v5744_v53, %v1043_v14 }
 0x183   : > { %7225 = vst [vmem:[#allocation38_spill] sm:$0xff] %v5837_v54  ;;  %v1053_v46 = vmul.f32 %v5747_v12, %v1052_v44  ;;  %v5868_v58 = vpack.c.bf16 %v1805_v17, %v1801_v6  ;;  %v1070_v16 = vmul.f32 %v5833_v22, %v1069_v20  ;;  %v758_v17 = vsub.f32 %v4964_v62, %v5599_v0 }
 0x184   : > { %v1631_v4 = vpop.f32.mrf.mxu2  ;;  %v1720_v45 = vpop.f32.mrf.mxu3  ;;  %v5895_v20 = vadd.f32 1e-05, %v730_v50  ;;  %v1227_v62 = vpack.c.bf16 %v5854_v34, %v5850_v23  ;;  %v1061_v0 = vmul.f32 0.5, %v1060_v1  ;;  %4298 = vrsqrt.f32 %v5866_v38 }
 0x185   : > { %v1455_v3 = vpop.f32.mrf.mxu0  ;;  %v1544_v15 = vpop.f32.mrf.mxu1  ;;  %v1632_v56 = vadd.f32 %v1631_v4, %v5673_v42  ;;  %v1057_v28 = vsel %vm5874_vm14, %v5747_v12, %v1053_v46  ;;  %v668_v14 = vmul.f32 %v5880_v11, %v5880_v11  ;;  %v1142_v46 = vmul.f32 %v1047_v59, %v758_v17 }
 0x186   : > { %v1456_v31 = vadd.f32 %v1455_v3, %v5645_v37  ;;  %v1545_v8 = vadd.f32 %v1544_v15, %v5647_v35  ;;  %v1721_v15 = vadd.f32 %v1720_v45, %v5683_v18  ;;  %v605_v50 = vpop.xlane.xlu0 %604  ;;  %v1143_v1 = vmul.f32 %v1057_v28, %v759_v51 }
 0x187   : > { %v1808_v26 = vmax.f32 %v1632_v56, 0.0  ;;  %4300 = vrsqrt.f32 %v5895_v20  ;;  %v637_v13 = vmul.f32 %v605_v50, %v4910_v43  ;;  %v1062_v56 = vsub.f32 1.5, %v1061_v0 }
 0x188   : > { %v1810_v27 = vmax.f32 %v1456_v31, 0.0  ;;  %v1811_v54 = vmax.f32 %v1545_v8, 0.0  ;;  %v603_v31 = vpop.xlane.xlu2 %602  ;;  %v1071_v8 = vmul.f32 0.5, %v1070_v16  ;;  %v1175_v50 = vmul.f32 %v5649_v33, %v1142_v46 }
 0x189   : > { %v636_v6 = vmul.f32 %v603_v31, %v4910_v43  ;;  %v1176_v0 = vmul.f32 %v5649_v33, %v1143_v1  ;;  %vm1094_vm5 = vweird.f32 %v5866_v38  ;;  %vm1084_vm7 = vweird.f32 %v5895_v20 }
 0x18a   : > { %v5882_v44 = vpack.c.bf16 %v1810_v27, %v1806_v52  ;;  %v5884_v49 = vpack.c.bf16 %v1811_v54, %v1807_v41  ;;  %v5898_v54 = vmul.f32 %v4910_v43, %v470_v40  ;;  %v1809_v52 = vmax.f32 %v1721_v15, 0.0  ;;  %v5919_v17 = vpop.eup %4298 }
 0x18b   : > { %v1072_v15 = vsub.f32 1.5, %v1071_v8  ;;  %v5955_v60 = vadd.f32 %v5668_v39, %v1176_v0  ;;  %vm1095_vm6 = vweird.f32 %v5919_v17 }
 0x18c   : > { %v1633_v27 = vpop.f32.mrf.mxu2  ;;  %v1722_v41 = vpop.f32.mrf.mxu3  ;;  %v669_v40 = vmul.f32 %v5898_v54, %v5898_v54  ;;  %vm6011_vm9 = vmor %vm1094_vm5, %vm1095_vm6 }
 0x18d   : > { %v1634_v10 = vadd.f32 %v1633_v27, %v5673_v42  ;;  %v1723_v4 = vadd.f32 %v1722_v41, %v5683_v18  ;;  %v1458_v53 = vpop.f32.mrf.mxu0  ;;  %v1547_v45 = vpop.f32.mrf.mxu1  ;;  %v700_v27 = vsub.f32 %v636_v6, %v668_v14  ;;  %v1063_v14 = vmul.f32 %v5827_v61, %v1062_v56 }
 0x18e   : > { %v1459_v51 = vadd.f32 %v1458_v53, %v5645_v37  ;;  %v1548_v59 = vadd.f32 %v1547_v45, %v5647_v35  ;;  %v5927_v8 = vpop.eup %4300  ;;  %v1073_v6 = vmul.f32 %v5833_v22, %v1072_v15  ;;  %v5952_v15 = vadd.f32 %v5668_v39, %v1175_v50 }
 0x18f   : > { %v1812_v3 = vmax.f32 %v1634_v10, 0.0  ;;  %v1813_v12 = vmax.f32 %v1723_v4, 0.0  ;;  %v1067_v50 = vsel %vm5941_vm3, %v5827_v61, %v1063_v14  ;;  %vm1085_vm8 = vweird.f32 %v5927_v8 }
 0x190   : > { %1497 = vmatmul.bf16.gmra.mxu0 %v1227_v62  ;;  %1586 = vmatmul.bf16.gmra.mxu1 %v1227_v62  ;;  %v1077_v0 = vsel %vm5945_vm4, %v5833_v22, %v1073_v6  ;;  %v1228_v14 = vpack.c.bf16 %v5955_v60, %v5952_v15  ;;  %vm6027_vm10 = vmor %vm1084_vm7, %vm1085_vm8 }
 0x191   : > { %1675 = vmatmul.bf16.gmra.mxu2 %v1227_v62  ;;  %1764 = vmatmul.bf16.gmra.mxu3 %v1227_v62  ;;  %v5915_v16 = vpack.c.bf16 %v1812_v3, %v1808_v26  ;;  %v5917_v31 = vpack.c.bf16 %v1813_v12, %v1809_v52  ;;  %v701_v62 = vsub.f32 %v637_v13, %v669_v40  ;;  %v732_v52 = vmax.f32 %v700_v27, 0.0  ;;  %v3950_v40 = vld [vmem:[#allocation8 + $0x80] sm:$0xff] }
 0x192   : > { %v1089_v26 = vmul.f32 %v5919_v17, %v5866_v38  ;;  %v1814_v3 = vmax.f32 %v1459_v51, 0.0  ;;  %v1815_v12 = vmax.f32 %v1548_v59, 0.0  ;;  %v1079_v13 = vmul.f32 %v5927_v8, %v5895_v20  ;;  %2425 = vmatpush.bf16.msrb.mxu2 %v3950_v40 }
 0x193   : > { %v733_v56 = vmax.f32 %v701_v62, 0.0  ;;  %v760_v59 = vsub.f32 %v5101_v29, %v5678_v2 }
 0x194   : > { %v1636_v41 = vpop.f32.mrf.mxu2  ;;  %v1725_v28 = vpop.f32.mrf.mxu3 }
 0x195   : > { %v1460_v10 = vpop.f32.mrf.mxu0  ;;  %v1549_v4 = vpop.f32.mrf.mxu1  ;;  %v1726_v62 = vadd.f32 %v1725_v28, %v5683_v18 }
 0x196   : > { %v1461_v53 = vadd.f32 %v1460_v10, %v5645_v37  ;;  %v1550_v45 = vadd.f32 %v1549_v4, %v5647_v35  ;;  %v761_v10 = vsub.f32 %v5103_v32, %v5701_v5  ;;  %v1637_v4 = vadd.f32 %v1636_v41, %v5673_v42 }
 0x197   : > { %v1080_v32 = vmul.f32 %v5927_v8, %v1079_v13  ;;  %v5977_v5 = vadd.f32 1e-05, %v733_v56  ;;  %v1817_v6 = vmax.f32 %v1726_v62, 0.0  ;;  %v3934_v13 = vld [vmem:[#allocation8] sm:$0xff] }
 0x198   : > { %v1818_v46 = vmax.f32 %v1461_v53, 0.0  ;;  %v1819_v1 = vmax.f32 %v1550_v45, 0.0  ;;  %v1090_v53 = vmul.f32 %v5919_v17, %v1089_v26  ;;  %v5974_v45 = vadd.f32 1e-05, %v732_v52  ;;  %v3958_v56 = vld [vmem:[#allocation8 + $0xc0] sm:$0xff]  ;;  %2247 = vmatpush.bf16.msrb.mxu0 %v3934_v13 }
 0x199   : > { %v1816_v22 = vmax.f32 %v1637_v4, 0.0  ;;  %2514 = vmatpush.bf16.msrb.mxu3 %v3958_v56  ;;  %vm1114_vm13 = vweird.f32 %v5977_v5 }
 0x19a   : > { %v5957_v27 = vpack.c.bf16 %v1818_v46, %v1814_v3  ;;  %v5959_v51 = vpack.c.bf16 %v1819_v1, %v1815_v12  ;;  %v1144_v3 = vmul.f32 %v1067_v50, %v760_v59  ;;  %v1145_v12 = vmul.f32 %v1077_v0, %v761_v10 }
 0x19b   : > { %v1091_v46 = vmul.f32 0.5, %v1090_v53  ;;  %4302 = vrsqrt.f32 %v5974_v45  ;;  %v1081_v1 = vmul.f32 0.5, %v1080_v32  ;;  %vm1104_vm11 = vweird.f32 %v5974_v45 }
 0x19c   : > { %v1638_v29 = vpop.f32.mrf.mxu2  ;;  %v1727_v2 = vpop.f32.mrf.mxu3  ;;  %4304 = vrsqrt.f32 %v5977_v5 }
 0x19d   : > { %v1639_v41 = vadd.f32 %v1638_v29, %v5673_v42  ;;  %v1728_v28 = vadd.f32 %v1727_v2, %v5683_v18  ;;  %v1463_v57 = vpop.f32.mrf.mxu0  ;;  %v1552_v61 = vpop.f32.mrf.mxu1  ;;  %v1092_v0 = vsub.f32 1.5, %v1091_v46  ;;  %v1082_v53 = vsub.f32 1.5, %v1081_v1 }
 0x19e   : > { %v1464_v59 = vadd.f32 %v1463_v57, %v5645_v37  ;;  %v1553_v10 = vadd.f32 %v1552_v61, %v5647_v35  ;;  %v3942_v61 = vld [vmem:[#allocation8 + $0x40] sm:$0xff] }
 0x19f   : > { %v1820_v26 = vmax.f32 %v1639_v41, 0.0  ;;  %v1821_v52 = vmax.f32 %v1728_v28, 0.0  ;;  %v1177_v41 = vmul.f32 %v5649_v33, %v1144_v3  ;;  %v1178_v28 = vmul.f32 %v5649_v33, %v1145_v12  ;;  %2336 = vmatpush.bf16.msrb.mxu1 %v3942_v61 }
 0x1a0   : > { %1502 = vmatmul.bf16.gmra.mxu0 %v1228_v14  ;;  %1591 = vmatmul.bf16.gmra.mxu1 %v1228_v14  ;;  %v1093_v46 = vmul.f32 %v5919_v17, %v1092_v0  ;;  %v1083_v1 = vmul.f32 %v5927_v8, %v1082_v53 }
 0x1a1   : > { %1680 = vmatmul.bf16.gmra.mxu2 %v1228_v14  ;;  %1769 = vmatmul.bf16.gmra.mxu3 %v1228_v14  ;;  %v5985_v29 = vpack.c.bf16 %v1820_v26, %v1816_v22  ;;  %v5987_v4 = vpack.c.bf16 %v1821_v52, %v1817_v6  ;;  %v5993_v14 = vpop.eup %4302  ;;  %v1822_v26 = vmax.f32 %v1464_v59, 0.0  ;;  %v1823_v52 = vmax.f32 %v1553_v10, 0.0 }
 0x1a2   : > { %v5997_v57 = vpop.eup %4304  ;;  %v6006_v40 = vadd.f32 %v5668_v39, %v1177_v41  ;;  %v6009_v38 = vadd.f32 %v5668_v39, %v1178_v28  ;;  %v1099_v56 = vmul.f32 %v5993_v14, %v5974_v45  ;;  %v763_v41 = vsub.f32 %v5175_v21, %v5777_v36 }
 0x1a3   : > { %v1109_v59 = vmul.f32 %v5997_v57, %v5977_v5  ;;  %v1097_v20 = vsel %vm6011_vm9, %v5919_v17, %v1093_v46  ;;  %vm1105_vm12 = vweird.f32 %v5993_v14  ;;  %vm1115_vm14 = vweird.f32 %v5997_v57 }
 0x1a4   : > { %v1641_v62 = vpop.f32.mrf.mxu2  ;;  %v1730_v50 = vpop.f32.mrf.mxu3  ;;  %v1100_v21 = vmul.f32 %v5993_v14, %v1099_v56  ;;  %v1147_v46 = vmul.f32 %v1097_v20, %v763_v41  ;;  %vm6070_vm15 = vmor %vm1104_vm11, %vm1105_vm12 }
 0x1a5   : > { %v1465_v2 = vpop.f32.mrf.mxu0  ;;  %v1554_v32 = vpop.f32.mrf.mxu1  ;;  %v1110_v36 = vmul.f32 %v5997_v57, %v1109_v59  ;;  %vm6079_vm0 = vmor %vm1114_vm13, %vm1115_vm14 }
 0x1a6   : > { %v1466_v22 = vadd.f32 %v1465_v2, %v5645_v37  ;;  %v1555_v6 = vadd.f32 %v1554_v32, %v5647_v35  ;;  %v1642_v2 = vadd.f32 %v1641_v62, %v5673_v42  ;;  %v1731_v32 = vadd.f32 %v1730_v50, %v5683_v18 }
 0x1a7   : > { %v1087_v50 = vsel %vm6027_vm10, %v5927_v8, %v1083_v1  ;;  %v1101_v1 = vmul.f32 0.5, %v1100_v21  ;;  %v1111_v56 = vmul.f32 0.5, %v1110_v36 }
 0x1a8   : > { %v1826_v3 = vmax.f32 %v1466_v22, 0.0  ;;  %v1827_v12 = vmax.f32 %v1555_v6, 0.0  ;;  %v762_v6 = vsub.f32 %v5139_v25, %v5811_v7  ;;  %v1229_v25 = vpack.c.bf16 %v6009_v38, %v6006_v40 }
 0x1a9   : > { %v1824_v7 = vmax.f32 %v1642_v2, 0.0  ;;  %v1102_v20 = vsub.f32 1.5, %v1101_v1 }
 0x1aa   : > { %v6019_v10 = vpack.c.bf16 %v1826_v3, %v1822_v26  ;;  %v6021_v0 = vpack.c.bf16 %v1827_v12, %v1823_v52  ;;  %v1825_v3 = vmax.f32 %v1731_v32, 0.0  ;;  %v1146_v13 = vmul.f32 %v1087_v50, %v762_v6 }
 0x1ab   : > { %v1180_v6 = vmul.f32 %v5649_v33, %v1147_v46 }
 0x1ac   : > { %v1643_v28 = vpop.f32.mrf.mxu2  ;;  %v1732_v22 = vpop.f32.mrf.mxu3  ;;  %v1179_v41 = vmul.f32 %v5649_v33, %v1146_v13 }
 0x1ad   : > { %v1644_v61 = vadd.f32 %v1643_v28, %v5673_v42  ;;  %v1733_v26 = vadd.f32 %v1732_v22, %v5683_v18  ;;  %v1468_v52 = vpop.f32.mrf.mxu0  ;;  %v1557_v62 = vpop.f32.mrf.mxu1 }
 0x1ae   : > { %v1469_v59 = vadd.f32 %v1468_v52, %v5645_v37  ;;  %v1558_v53 = vadd.f32 %v1557_v62, %v5647_v35 }
 0x1af   : > { %v1828_v17 = vmax.f32 %v1644_v61, 0.0  ;;  %v1829_v12 = vmax.f32 %v1733_v26, 0.0  ;;  %v1112_v26 = vsub.f32 1.5, %v1111_v56 }
 0x1b0   : > { %1507 = vmatmul.bf16.gmra.mxu0 %v1229_v25  ;;  %1596 = vmatmul.bf16.gmra.mxu1 %v1229_v25  ;;  %v1830_v52 = vmax.f32 %v1469_v59, 0.0  ;;  %v1831_v62 = vmax.f32 %v1558_v53, 0.0 }
 0x1b1   : > { %1685 = vmatmul.bf16.gmra.mxu2 %v1229_v25  ;;  %1774 = vmatmul.bf16.gmra.mxu3 %v1229_v25  ;;  %v6049_v28 = vpack.c.bf16 %v1828_v17, %v1824_v7  ;;  %v6051_v8 = vpack.c.bf16 %v1829_v12, %v1825_v3  ;;  %v6064_v7 = vadd.f32 %v5668_v39, %v1179_v41 }
 0x1b2   : > { %v6067_v3 = vadd.f32 %v5668_v39, %v1180_v6  ;;  %v1103_v17 = vmul.f32 %v5993_v14, %v1102_v20  ;;  %v1113_v5 = vmul.f32 %v5997_v57, %v1112_v26  ;;  %v765_v26 = vsub.f32 %v5261_v24, %v5898_v54 }
 0x1b4   : > { %v1646_v2 = vpop.f32.mrf.mxu2  ;;  %v1735_v32 = vpop.f32.mrf.mxu3 }
 0x1b5   : > { %v1470_v22 = vpop.f32.mrf.mxu0  ;;  %v1559_v61 = vpop.f32.mrf.mxu1  ;;  %v1647_v1 = vadd.f32 %v1646_v2, %v5673_v42  ;;  %v1736_v56 = vadd.f32 %v1735_v32, %v5683_v18  ;;  %v1107_v2 = vsel %vm6070_vm15, %v5993_v14, %v1103_v17  ;;  %v1117_v32 = vsel %vm6079_vm0, %v5997_v57, %v1113_v5 }
 0x1b6   : > { %v1471_v50 = vadd.f32 %v1470_v22, %v5645_v37  ;;  %v1560_v25 = vadd.f32 %v1559_v61, %v5647_v35  ;;  %v764_v22 = vsub.f32 %v5251_v63, %v5880_v11  ;;  %v1230_v63 = vpack.c.bf16 %v6067_v3, %v6064_v7 }
 0x1b7   : > { %v1832_v11 = vmax.f32 %v1647_v1, 0.0 }
 0x1b8   : > { %v1834_v21 = vmax.f32 %v1471_v50, 0.0  ;;  %v1835_v36 = vmax.f32 %v1560_v25, 0.0  ;;  %v1833_v50 = vmax.f32 %v1736_v56, 0.0  ;;  %v1148_v14 = vmul.f32 %v1107_v2, %v764_v22 }
 0x1ba   : > { %v6075_v12 = vpack.c.bf16 %v1834_v21, %v1830_v52  ;;  %v6077_v46 = vpack.c.bf16 %v1835_v36, %v1831_v62  ;;  %v1149_v62 = vmul.f32 %v1117_v32, %v765_v26  ;;  %v1181_v56 = vmul.f32 %v5649_v33, %v1148_v14 }
 0x1bc   : > { %v1648_v59 = vpop.f32.mrf.mxu2  ;;  %v1737_v53 = vpop.f32.mrf.mxu3 }
 0x1bd   : > { %v1649_v61 = vadd.f32 %v1648_v59, %v5673_v42  ;;  %v1738_v41 = vadd.f32 %v1737_v53, %v5683_v18  ;;  %v1473_v6 = vpop.f32.mrf.mxu0  ;;  %v1562_v20 = vpop.f32.mrf.mxu1  ;;  %v1182_v59 = vmul.f32 %v5649_v33, %v1149_v62 }
 0x1be   : > { %v1474_v21 = vadd.f32 %v1473_v6, %v5645_v37  ;;  %v1563_v57 = vadd.f32 %v1562_v20, %v5647_v35  ;;  %v6110_v6 = vadd.f32 %v5668_v39, %v1181_v56 }
 0x1bf   : > { %v1836_v25 = vmax.f32 %v1649_v61, 0.0  ;;  %v1837_v52 = vmax.f32 %v1738_v41, 0.0  ;;  %v6113_v20 = vadd.f32 %v5668_v39, %v1182_v59 }
 0x1c0   : > { %1512 = vmatmul.bf16.gmra.mxu0 %v1230_v63  ;;  %1601 = vmatmul.bf16.gmra.mxu1 %v1230_v63  ;;  %v1838_v53 = vmax.f32 %v1474_v21, 0.0  ;;  %v1839_v61 = vmax.f32 %v1563_v57, 0.0 }
 0x1c1   : > { %1690 = vmatmul.bf16.gmra.mxu2 %v1230_v63  ;;  %1779 = vmatmul.bf16.gmra.mxu3 %v1230_v63  ;;  %v6099_v24 = vpack.c.bf16 %v1836_v25, %v1832_v11  ;;  %v6101_v54 = vpack.c.bf16 %v1837_v52, %v1833_v50  ;;  %v1231_v39 = vpack.c.bf16 %v6113_v20, %v6110_v6 }
 0x1c4   : > { %v1651_v36 = vpop.f32.mrf.mxu2  ;;  %v1740_v17 = vpop.f32.mrf.mxu3 }
 0x1c5   : > { %v1475_v45 = vpop.f32.mrf.mxu0  ;;  %v1564_v5 = vpop.f32.mrf.mxu1  ;;  %v1652_v32 = vadd.f32 %v1651_v36, %v5673_v42  ;;  %v1741_v63 = vadd.f32 %v1740_v17, %v5683_v18 }
 0x1c6   : > { %v1476_v13 = vadd.f32 %v1475_v45, %v5645_v37  ;;  %v1565_v1 = vadd.f32 %v1564_v5, %v5647_v35 }
 0x1c7   : > { %v1840_v62 = vmax.f32 %v1652_v32, 0.0  ;;  %v1841_v21 = vmax.f32 %v1741_v63, 0.0 }
 0x1c8   : > { %v1842_v22 = vmax.f32 %v1476_v13, 0.0  ;;  %v1843_v41 = vmax.f32 %v1565_v1, 0.0 }
 0x1ca   : > { %v6115_v26 = vpack.c.bf16 %v1842_v22, %v1838_v53  ;;  %v6117_v2 = vpack.c.bf16 %v1843_v41, %v1839_v61 }
 0x1cc   : > { %v1653_v11 = vpop.f32.mrf.mxu2  ;;  %v1742_v33 = vpop.f32.mrf.mxu3 }
 0x1cd   : > { %v1654_v50 = vadd.f32 %v1653_v11, %v5673_v42  ;;  %v1743_v25 = vadd.f32 %v1742_v33, %v5683_v18  ;;  %v1478_v52 = vpop.f32.mrf.mxu0  ;;  %v1567_v14 = vpop.f32.mrf.mxu1 }
 0x1ce   : > { %v1479_v5 = vadd.f32 %v1478_v52, %v5645_v37  ;;  %v1568_v13 = vadd.f32 %v1567_v14, %v5647_v35 }
 0x1cf   : > { %v1844_v57 = vmax.f32 %v1654_v50, 0.0  ;;  %v1845_v45 = vmax.f32 %v1743_v25, 0.0 }
 0x1d0   : > { %1517 = vmatmul.bf16.gmra.mxu0 %v1231_v39  ;;  %1606 = vmatmul.bf16.gmra.mxu1 %v1231_v39  ;;  %v1846_v41 = vmax.f32 %v1479_v5, 0.0  ;;  %v1847_v32 = vmax.f32 %v1568_v13, 0.0 }
 0x1d1   : > { %1695 = vmatmul.bf16.gmra.mxu2 %v1231_v39  ;;  %1784 = vmatmul.bf16.gmra.mxu3 %v1231_v39  ;;  %v6125_v36 = vpack.c.bf16 %v1844_v57, %v1840_v62  ;;  %v6127_v17 = vpack.c.bf16 %v1845_v45, %v1841_v21 }
 0x1d4   : > { %v1656_v1 = vpop.f32.mrf.mxu2  ;;  %v1745_v56 = vpop.f32.mrf.mxu3 }
 0x1d5   : > { %v1480_v59 = vpop.f32.mrf.mxu0  ;;  %v1569_v53 = vpop.f32.mrf.mxu1  ;;  %v1657_v25 = vadd.f32 %v1656_v1, %v5673_v42  ;;  %v1746_v52 = vadd.f32 %v1745_v56, %v5683_v18 }
 0x1d6   : > { %v1481_v61 = vadd.f32 %v1480_v59, %v5645_v37  ;;  %v1570_v22 = vadd.f32 %v1569_v53, %v5647_v35 }
 0x1d7   : > { %v1848_v5 = vmax.f32 %v1657_v25, 0.0  ;;  %v1849_v13 = vmax.f32 %v1746_v52, 0.0 }
 0x1d8   : > { %v1850_v63 = vmax.f32 %v1481_v61, 0.0  ;;  %v1851_v11 = vmax.f32 %v1570_v22, 0.0 }
 0x1da   : > { %v6133_v33 = vpack.c.bf16 %v1850_v63, %v1846_v41  ;;  %v6135_v50 = vpack.c.bf16 %v1851_v11, %v1847_v32 }
 0x1dc   : > { %v1658_v14 = vpop.f32.mrf.mxu2  ;;  %v1747_v39 = vpop.f32.mrf.mxu3 }
 0x1dd   : > { %v1659_v62 = vadd.f32 %v1658_v14, %v5673_v42  ;;  %v1748_v21 = vadd.f32 %v1747_v39, %v5683_v18  ;;  %v1483_v57 = vpop.f32.mrf.mxu0  ;;  %v1572_v45 = vpop.f32.mrf.mxu1 }
 0x1de   : > { %v1484_v61 = vadd.f32 %v1483_v57, %v5645_v37  ;;  %v1573_v22 = vadd.f32 %v1572_v45, %v5647_v35 }
 0x1df   : > { %v1852_v59 = vmax.f32 %v1659_v62, 0.0  ;;  %v1853_v53 = vmax.f32 %v1748_v21, 0.0 }
 0x1e0   : > { %2248 = vmatmul.bf16.vlgmr.msrb.gmra.mxu0 %v5703_v19  ;;  %2337 = vmatmul.bf16.vlgmr.msrb.gmra.mxu1 %v5705_v48  ;;  %v1854_v25 = vmax.f32 %v1484_v61, 0.0 }
 0x1e1   : > { %2426 = vmatmul.bf16.vlgmr.msrb.gmra.mxu2 %v5740_v9  ;;  %2515 = vmatmul.bf16.vlgmr.msrb.gmra.mxu3 %v5742_v30  ;;  %v6145_v1 = vpack.c.bf16 %v1852_v59, %v1848_v5  ;;  %v6147_v56 = vpack.c.bf16 %v1853_v53, %v1849_v13  ;;  %v1855_v9 = vmax.f32 %v1573_v22, 0.0 }
 0x1e4   : > { %v1661_v41 = vpop.f32.mrf.mxu2  ;;  %v1750_v32 = vpop.f32.mrf.mxu3 }
 0x1e5   : > { %v1485_v63 = vpop.f32.mrf.mxu0  ;;  %v1574_v11 = vpop.f32.mrf.mxu1  ;;  %v1662_v62 = vadd.f32 %v1661_v41, %v5673_v42  ;;  %v1751_v21 = vadd.f32 %v1750_v32, %v5683_v18 }
 0x1e6   : > { %v1486_v19 = vadd.f32 %v1485_v63, %v5645_v37  ;;  %v1575_v48 = vadd.f32 %v1574_v11, %v5647_v35 }
 0x1e7   : > { %v1856_v61 = vmax.f32 %v1662_v62, 0.0  ;;  %v1857_v22 = vmax.f32 %v1751_v21, 0.0 }
 0x1e8   : > { %v1858_v52 = vmax.f32 %v1486_v19, 0.0  ;;  %v1859_v30 = vmax.f32 %v1575_v48, 0.0  ;;  %v7242_v19 = vld [vmem:[#allocation38_spill] sm:$0xff] }
 0x1ea   : > { %v6153_v14 = vpack.c.bf16 %v1858_v52, %v1854_v25  ;;  %v6155_v39 = vpack.c.bf16 %v1859_v30, %v1855_v9 }
 0x1ec   : > { %v1663_v57 = vpop.f32.mrf.mxu2  ;;  %v1752_v45 = vpop.f32.mrf.mxu3 }
 0x1ed   : > { %v1664_v5 = vadd.f32 %v1663_v57, %v5673_v42  ;;  %v1753_v13 = vadd.f32 %v1752_v45, %v5683_v18  ;;  %v1488_v59 = vpop.f32.mrf.mxu0  ;;  %v1577_v53 = vpop.f32.mrf.mxu1 }
 0x1ee   : > { %v1489_v48 = vadd.f32 %v1488_v59, %v5645_v37  ;;  %v1578_v25 = vadd.f32 %v1577_v53, %v5647_v35 }
 0x1ef   : > { %v1860_v63 = vmax.f32 %v1664_v5, 0.0  ;;  %v1861_v11 = vmax.f32 %v1753_v13, 0.0 }
 0x1f0   : > { %2253 = vmatmul.bf16.gmra.mxu0 %v5799_v47  ;;  %2342 = vmatmul.bf16.gmra.mxu1 %v5801_v55  ;;  %v1862_v21 = vmax.f32 %v1489_v48, 0.0  ;;  %v1863_v57 = vmax.f32 %v1578_v25, 0.0 }
 0x1f1   : > { %2431 = vmatmul.bf16.gmra.mxu2 %v7242_v19  ;;  %2520 = vmatmul.bf16.gmra.mxu3 %v5868_v58  ;;  %v6165_v41 = vpack.c.bf16 %v1860_v63, %v1856_v61  ;;  %v6167_v32 = vpack.c.bf16 %v1861_v11, %v1857_v22 }
 0x1f4   : > { %v1666_v9 = vpop.f32.mrf.mxu2  ;;  %v1755_v52 = vpop.f32.mrf.mxu3 }
 0x1f5   : > { %v1490_v30 = vpop.f32.mrf.mxu0  ;;  %v1579_v62 = vpop.f32.mrf.mxu1  ;;  %v1667_v59 = vadd.f32 %v1666_v9, %v5673_v42  ;;  %v1756_v53 = vadd.f32 %v1755_v52, %v5683_v18 }
 0x1f6   : > { %v1491_v47 = vadd.f32 %v1490_v30, %v5645_v37  ;;  %v1580_v55 = vadd.f32 %v1579_v62, %v5647_v35 }
 0x1f7   : > { %v1864_v48 = vmax.f32 %v1667_v59, 0.0  ;;  %v1865_v25 = vmax.f32 %v1756_v53, 0.0 }
 0x1f8   : > { %v1866_v45 = vmax.f32 %v1491_v47, 0.0  ;;  %v1867_v58 = vmax.f32 %v1580_v55, 0.0 }
 0x1fa   : > { %v6173_v5 = vpack.c.bf16 %v1866_v45, %v1862_v21  ;;  %v6175_v13 = vpack.c.bf16 %v1867_v58, %v1863_v57 }
 0x1fc   : > { %v1668_v61 = vpop.f32.mrf.mxu2  ;;  %v1757_v22 = vpop.f32.mrf.mxu3 }
 0x1fd   : > { %v1669_v63 = vadd.f32 %v1668_v61, %v5673_v42  ;;  %v1758_v11 = vadd.f32 %v1757_v22, %v5683_v18  ;;  %v1493_v19 = vpop.f32.mrf.mxu0  ;;  %v1582_v30 = vpop.f32.mrf.mxu1 }
 0x1fe   : > { %v1494_v55 = vadd.f32 %v1493_v19, %v5645_v37  ;;  %v1583_v21 = vadd.f32 %v1582_v30, %v5647_v35 }
 0x1ff   : > { %v1868_v62 = vmax.f32 %v1669_v63, 0.0  ;;  %v1869_v47 = vmax.f32 %v1758_v11, 0.0 }
 0x200   : > { %2258 = vmatmul.bf16.gmra.mxu0 %v5882_v44  ;;  %2347 = vmatmul.bf16.gmra.mxu1 %v5884_v49  ;;  %v1870_v53 = vmax.f32 %v1494_v55, 0.0 }
 0x201   : > { %2436 = vmatmul.bf16.gmra.mxu2 %v5915_v16  ;;  %2525 = vmatmul.bf16.gmra.mxu3 %v5917_v31  ;;  %v6185_v9 = vpack.c.bf16 %v1868_v62, %v1864_v48  ;;  %v6187_v52 = vpack.c.bf16 %v1869_v47, %v1865_v25  ;;  %v1871_v16 = vmax.f32 %v1583_v21, 0.0 }
 0x204   : > { %v1671_v57 = vpop.f32.mrf.mxu2  ;;  %v1760_v45 = vpop.f32.mrf.mxu3 }
 0x205   : > { %v1495_v58 = vpop.f32.mrf.mxu0  ;;  %v1584_v59 = vpop.f32.mrf.mxu1  ;;  %v1672_v11 = vadd.f32 %v1671_v57, %v5673_v42  ;;  %v1761_v19 = vadd.f32 %v1760_v45, %v5683_v18 }
 0x206   : > { %v1496_v44 = vadd.f32 %v1495_v58, %v5645_v37  ;;  %v1585_v49 = vadd.f32 %v1584_v59, %v5647_v35 }
 0x207   : > { %v1872_v55 = vmax.f32 %v1672_v11, 0.0  ;;  %v1873_v21 = vmax.f32 %v1761_v19, 0.0 }
 0x208   : > { %v1874_v61 = vmax.f32 %v1496_v44, 0.0  ;;  %v1875_v31 = vmax.f32 %v1585_v49, 0.0 }
 0x20a   : > { %v6193_v22 = vpack.c.bf16 %v1874_v61, %v1870_v53  ;;  %v6195_v63 = vpack.c.bf16 %v1875_v31, %v1871_v16 }
 0x20c   : > { %v1673_v30 = vpop.f32.mrf.mxu2  ;;  %v1762_v48 = vpop.f32.mrf.mxu3 }
 0x20d   : > { %v1674_v25 = vadd.f32 %v1673_v30, %v5673_v42  ;;  %v1763_v62 = vadd.f32 %v1762_v48, %v5683_v18  ;;  %v1498_v47 = vpop.f32.mrf.mxu0  ;;  %v1587_v58 = vpop.f32.mrf.mxu1 }
 0x20e   : > { %v1499_v49 = vadd.f32 %v1498_v47, %v5645_v37  ;;  %v1588_v53 = vadd.f32 %v1587_v58, %v5647_v35 }
 0x20f   : > { %v1876_v59 = vmax.f32 %v1674_v25, 0.0  ;;  %v1877_v44 = vmax.f32 %v1763_v62, 0.0 }
 0x210   : > { %2263 = vmatmul.bf16.gmra.mxu0 %v5957_v27  ;;  %2352 = vmatmul.bf16.gmra.mxu1 %v5959_v51  ;;  %v1878_v19 = vmax.f32 %v1499_v49, 0.0 }
 0x211   : > { %2441 = vmatmul.bf16.gmra.mxu2 %v5985_v29  ;;  %2530 = vmatmul.bf16.gmra.mxu3 %v5987_v4  ;;  %v6205_v57 = vpack.c.bf16 %v1876_v59, %v1872_v55  ;;  %v6207_v45 = vpack.c.bf16 %v1877_v44, %v1873_v21  ;;  %v1879_v29 = vmax.f32 %v1588_v53, 0.0 }
 0x214   : > { %v1676_v16 = vpop.f32.mrf.mxu2  ;;  %v1765_v61 = vpop.f32.mrf.mxu3 }
 0x215   : > { %v1500_v31 = vpop.f32.mrf.mxu0  ;;  %v1589_v11 = vpop.f32.mrf.mxu1  ;;  %v1677_v62 = vadd.f32 %v1676_v16, %v5673_v42  ;;  %v1766_v47 = vadd.f32 %v1765_v61, %v5683_v18 }
 0x216   : > { %v1501_v27 = vadd.f32 %v1500_v31, %v5645_v37  ;;  %v1590_v51 = vadd.f32 %v1589_v11, %v5647_v35 }
 0x217   : > { %v1880_v49 = vmax.f32 %v1677_v62, 0.0  ;;  %v1881_v53 = vmax.f32 %v1766_v47, 0.0 }
 0x218   : > { %v1882_v30 = vmax.f32 %v1501_v27, 0.0  ;;  %v1883_v4 = vmax.f32 %v1590_v51, 0.0 }
 0x21a   : > { %v6213_v48 = vpack.c.bf16 %v1882_v30, %v1878_v19  ;;  %v6215_v25 = vpack.c.bf16 %v1883_v4, %v1879_v29 }
 0x21c   : > { %v1678_v58 = vpop.f32.mrf.mxu2  ;;  %v1767_v55 = vpop.f32.mrf.mxu3 }
 0x21d   : > { %v1679_v21 = vadd.f32 %v1678_v58, %v5673_v42  ;;  %v1768_v59 = vadd.f32 %v1767_v55, %v5683_v18  ;;  %v1503_v44 = vpop.f32.mrf.mxu0  ;;  %v1592_v31 = vpop.f32.mrf.mxu1 }
 0x21e   : > { %v1504_v51 = vadd.f32 %v1503_v44, %v5645_v37  ;;  %v1593_v19 = vadd.f32 %v1592_v31, %v5647_v35 }
 0x21f   : > { %v1884_v11 = vmax.f32 %v1679_v21, 0.0  ;;  %v1885_v27 = vmax.f32 %v1768_v59, 0.0 }
 0x220   : > { %2268 = vmatmul.bf16.gmra.mxu0 %v6019_v10  ;;  %2357 = vmatmul.bf16.gmra.mxu1 %v6021_v0  ;;  %v1886_v47 = vmax.f32 %v1504_v51, 0.0 }
 0x221   : > { %2446 = vmatmul.bf16.gmra.mxu2 %v6049_v28  ;;  %2535 = vmatmul.bf16.gmra.mxu3 %v6051_v8  ;;  %v6225_v16 = vpack.c.bf16 %v1884_v11, %v1880_v49  ;;  %v6227_v61 = vpack.c.bf16 %v1885_v27, %v1881_v53  ;;  %v1887_v28 = vmax.f32 %v1593_v19, 0.0 }
 0x224   : > { %v1681_v29 = vpop.f32.mrf.mxu2  ;;  %v1770_v30 = vpop.f32.mrf.mxu3 }
 0x225   : > { %v1505_v4 = vpop.f32.mrf.mxu0  ;;  %v1594_v62 = vpop.f32.mrf.mxu1  ;;  %v1682_v59 = vadd.f32 %v1681_v29, %v5673_v42  ;;  %v1771_v44 = vadd.f32 %v1770_v30, %v5683_v18 }
 0x226   : > { %v1506_v10 = vadd.f32 %v1505_v4, %v5645_v37  ;;  %v1595_v0 = vadd.f32 %v1594_v62, %v5647_v35 }
 0x227   : > { %v1888_v51 = vmax.f32 %v1682_v59, 0.0  ;;  %v1889_v19 = vmax.f32 %v1771_v44, 0.0 }
 0x228   : > { %v1890_v58 = vmax.f32 %v1506_v10, 0.0  ;;  %v1891_v8 = vmax.f32 %v1595_v0, 0.0 }
 0x22a   : > { %v6233_v55 = vpack.c.bf16 %v1890_v58, %v1886_v47  ;;  %v6235_v21 = vpack.c.bf16 %v1891_v8, %v1887_v28 }
 0x22c   : > { %v1683_v31 = vpop.f32.mrf.mxu2  ;;  %v1772_v49 = vpop.f32.mrf.mxu3 }
 0x22d   : > { %v1684_v53 = vadd.f32 %v1683_v31, %v5673_v42  ;;  %v1773_v11 = vadd.f32 %v1772_v49, %v5683_v18  ;;  %v1508_v27 = vpop.f32.mrf.mxu0  ;;  %v1597_v4 = vpop.f32.mrf.mxu1 }
 0x22e   : > { %v1509_v0 = vadd.f32 %v1508_v27, %v5645_v37  ;;  %v1598_v47 = vadd.f32 %v1597_v4, %v5647_v35 }
 0x22f   : > { %v1892_v62 = vmax.f32 %v1684_v53, 0.0  ;;  %v1893_v10 = vmax.f32 %v1773_v11, 0.0 }
 0x230   : > { %2273 = vmatmul.bf16.gmra.mxu0 %v6075_v12  ;;  %2362 = vmatmul.bf16.gmra.mxu1 %v6077_v46  ;;  %v1894_v44 = vmax.f32 %v1509_v0, 0.0 }
 0x231   : > { %2451 = vmatmul.bf16.gmra.mxu2 %v6099_v24  ;;  %2540 = vmatmul.bf16.gmra.mxu3 %v6101_v54  ;;  %v6245_v29 = vpack.c.bf16 %v1892_v62, %v1888_v51  ;;  %v6247_v30 = vpack.c.bf16 %v1893_v10, %v1889_v19  ;;  %v1895_v24 = vmax.f32 %v1598_v47, 0.0 }
 0x234   : > { %v1686_v28 = vpop.f32.mrf.mxu2  ;;  %v1775_v58 = vpop.f32.mrf.mxu3 }
 0x235   : > { %v1510_v8 = vpop.f32.mrf.mxu0  ;;  %v1599_v59 = vpop.f32.mrf.mxu1  ;;  %v1687_v11 = vadd.f32 %v1686_v28, %v5673_v42  ;;  %v1776_v27 = vadd.f32 %v1775_v58, %v5683_v18 }
 0x236   : > { %v1511_v12 = vadd.f32 %v1510_v8, %v5645_v37  ;;  %v1600_v46 = vadd.f32 %v1599_v59, %v5647_v35 }
 0x237   : > { %v1896_v0 = vmax.f32 %v1687_v11, 0.0  ;;  %v1897_v47 = vmax.f32 %v1776_v27, 0.0 }
 0x238   : > { %v1898_v31 = vmax.f32 %v1511_v12, 0.0  ;;  %v1899_v54 = vmax.f32 %v1600_v46, 0.0 }
 0x23a   : > { %v6253_v49 = vpack.c.bf16 %v1898_v31, %v1894_v44  ;;  %v6255_v53 = vpack.c.bf16 %v1899_v54, %v1895_v24 }
 0x23c   : > { %v1688_v4 = vpop.f32.mrf.mxu2  ;;  %v1777_v51 = vpop.f32.mrf.mxu3 }
 0x23d   : > { %v1689_v19 = vadd.f32 %v1688_v4, %v5673_v42  ;;  %v1778_v62 = vadd.f32 %v1777_v51, %v5683_v18  ;;  %v1513_v10 = vpop.f32.mrf.mxu0  ;;  %v1602_v8 = vpop.f32.mrf.mxu1 }
 0x23e   : > { %v1514_v46 = vadd.f32 %v1513_v10, %v5645_v37  ;;  %v1603_v44 = vadd.f32 %v1602_v8, %v5647_v35 }
 0x23f   : > { %v1900_v59 = vmax.f32 %v1689_v19, 0.0  ;;  %v1901_v12 = vmax.f32 %v1778_v62, 0.0 }
 0x240   : > { %2278 = vmatmul.bf16.gmra.mxu0 %v6115_v26  ;;  %2367 = vmatmul.bf16.gmra.mxu1 %v6117_v2  ;;  %v1902_v27 = vmax.f32 %v1514_v46, 0.0 }
 0x241   : > { %2456 = vmatmul.bf16.gmra.mxu2 %v6125_v36  ;;  %2545 = vmatmul.bf16.gmra.mxu3 %v6127_v17  ;;  %v6265_v28 = vpack.c.bf16 %v1900_v59, %v1896_v0  ;;  %v6267_v58 = vpack.c.bf16 %v1901_v12, %v1897_v47  ;;  %v1903_v36 = vmax.f32 %v1603_v44, 0.0 }
 0x244   : > { %v1691_v24 = vpop.f32.mrf.mxu2  ;;  %v1780_v31 = vpop.f32.mrf.mxu3 }
 0x245   : > { %v1515_v54 = vpop.f32.mrf.mxu0  ;;  %v1604_v11 = vpop.f32.mrf.mxu1  ;;  %v1692_v62 = vadd.f32 %v1691_v24, %v5673_v42  ;;  %v1781_v10 = vadd.f32 %v1780_v31, %v5683_v18 }
 0x246   : > { %v1516_v26 = vadd.f32 %v1515_v54, %v5645_v37  ;;  %v1605_v2 = vadd.f32 %v1604_v11, %v5647_v35 }
 0x247   : > { %v1904_v46 = vmax.f32 %v1692_v62, 0.0  ;;  %v1905_v44 = vmax.f32 %v1781_v10, 0.0 }
 0x248   : > { %v1906_v4 = vmax.f32 %v1516_v26, 0.0  ;;  %v1907_v17 = vmax.f32 %v1605_v2, 0.0 }
 0x24a   : > { %v6273_v51 = vpack.c.bf16 %v1906_v4, %v1902_v27  ;;  %v6275_v19 = vpack.c.bf16 %v1907_v17, %v1903_v36 }
 0x24c   : > { %v1693_v8 = vpop.f32.mrf.mxu2  ;;  %v1782_v0 = vpop.f32.mrf.mxu3 }
 0x24d   : > { %v1694_v47 = vadd.f32 %v1693_v8, %v5673_v42  ;;  %v1783_v59 = vadd.f32 %v1782_v0, %v5683_v18  ;;  %v1518_v12 = vpop.f32.mrf.mxu0  ;;  %v1607_v54 = vpop.f32.mrf.mxu1 }
 0x24e   : > { %v1519_v2 = vadd.f32 %v1518_v12, %v5645_v37  ;;  %v1608_v27 = vadd.f32 %v1607_v54, %v5647_v35  ;;  %v6299_v54 = vld [vmem:[#allocation10] ss:$0 sm:$0xff] }
 0x24f   : > { %v1908_v11 = vmax.f32 %v1694_v47, 0.0  ;;  %v1909_v26 = vmax.f32 %v1783_v59, 0.0 }
 0x250   : > { %2283 = vmatmul.bf16.gmra.mxu0 %v6133_v33  ;;  %2372 = vmatmul.bf16.gmra.mxu1 %v6135_v50  ;;  %v1910_v10 = vmax.f32 %v1519_v2, 0.0 }
 0x251   : > { %2461 = vmatmul.bf16.gmra.mxu2 %v6145_v1  ;;  %2550 = vmatmul.bf16.gmra.mxu3 %v6147_v56  ;;  %v6285_v24 = vpack.c.bf16 %v1908_v11, %v1904_v46  ;;  %v6287_v31 = vpack.c.bf16 %v1909_v26, %v1905_v44  ;;  %v1911_v1 = vmax.f32 %v1608_v27, 0.0 }
 0x254   : > { %v1696_v36 = vpop.f32.mrf.mxu2  ;;  %v1785_v4 = vpop.f32.mrf.mxu3 }
 0x255   : > { %v1520_v17 = vpop.f32.mrf.mxu0  ;;  %v1609_v62 = vpop.f32.mrf.mxu1  ;;  %v1697_v0 = vadd.f32 %v1696_v36, %v5673_v42  ;;  %v1786_v12 = vadd.f32 %v1785_v4, %v5683_v18 }
 0x256   : > { %v1521_v33 = vadd.f32 %v1520_v17, %v5645_v37  ;;  %v1610_v50 = vadd.f32 %v1609_v62, %v5647_v35 }
 0x257   : > { %v1912_v2 = vmax.f32 %v1697_v0, 0.0  ;;  %v1913_v27 = vmax.f32 %v1786_v12, 0.0 }
 0x258   : > { %v1914_v8 = vmax.f32 %v1521_v33, 0.0  ;;  %v1915_v56 = vmax.f32 %v1610_v50, 0.0 }
 0x25a   : > { %v6294_v47 = vpack.c.bf16 %v1914_v8, %v1910_v10  ;;  %v6296_v59 = vpack.c.bf16 %v1915_v56, %v1911_v1 }
 0x25c   : > { %v1698_v46 = vpop.f32.mrf.mxu2  ;;  %v1787_v44 = vpop.f32.mrf.mxu3 }
 0x25d   : > { %v1699_v37 = vadd.f32 %v1698_v46, %v5673_v42  ;;  %v1788_v35 = vadd.f32 %v1787_v44, %v5683_v18  ;;  %v2249_v11 = vpop.f32.mrf.mxu0  ;;  %v2338_v26 = vpop.f32.mrf.mxu1 }
 0x25e   : > { %v2250_v62 = vadd.f32 %v6299_v54, %v2249_v11 }
 0x25f   : > { %v1916_v17 = vmax.f32 %v1699_v37, 0.0  ;;  %v1917_v36 = vmax.f32 %v1788_v35, 0.0 }
 0x260   : > { %2288 = vmatmul.bf16.gmra.mxu0 %v6153_v14  ;;  %2377 = vmatmul.bf16.gmra.mxu1 %v6155_v39  ;;  %v2339_v18 = vadd.f32 %v2338_v26, %v2250_v62  ;;  %v7243_v14 = vld [vmem:[#allocation17_spill] sm:$0xff] }
 0x261   : > { %2466 = vmatmul.bf16.gmra.mxu2 %v6165_v41  ;;  %2555 = vmatmul.bf16.gmra.mxu3 %v6167_v32  ;;  %v6308_v4 = vpack.c.bf16 %v1916_v17, %v1912_v2  ;;  %v6310_v42 = vpack.c.bf16 %v1917_v36, %v1913_v27  ;;  %v7244_v2 = vld [vmem:[#allocation16_spill] sm:$0xff] }
 0x264   : > { %v2427_v33 = vpop.f32.mrf.mxu2  ;;  %v2516_v50 = vpop.f32.mrf.mxu3 }
 0x265   : > { %v2428_v10 = vadd.f32 %v2427_v33, %v2339_v18  ;;  %v2251_v1 = vpop.f32.mrf.mxu0  ;;  %v2340_v8 = vpop.f32.mrf.mxu1 }
 0x266   : > { %v2252_v0 = vadd.f32 %v6299_v54, %v2251_v1  ;;  %v7245_v1 = vld [vmem:[#allocation19_spill] sm:$0xff] }
 0x267   : > { %v2517_v56 = vadd.f32 %v2516_v50, %v2428_v10 }
 0x268   : > { %v2341_v39 = vadd.f32 %v2340_v8, %v2252_v0 }
 0x269   : > { %v6314_v12 = vadd.f32 %v2517_v56, %v7243_v14 }
 0x26b   : > { %2630 = vadd.xlane.f32.xlu1 %v6314_v12  ;;  %v2726_v41 = vmul.f32 %v6314_v12, %v6314_v12 }
 0x26c   : > { %v2429_v32 = vpop.f32.mrf.mxu2  ;;  %v2518_v46 = vpop.f32.mrf.mxu3 }
 0x26d   : > { %v2430_v44 = vadd.f32 %v2429_v32, %v2341_v39  ;;  %2758 = vadd.xlane.f32.xlu0 %v2726_v41  ;;  %v2254_v37 = vpop.f32.mrf.mxu0  ;;  %v2343_v35 = vpop.f32.mrf.mxu1 }
 0x26e   : > { %v2255_v26 = vadd.f32 %v6299_v54, %v2254_v37 }
 0x26f   : > { %v2519_v11 = vadd.f32 %v2518_v46, %v2430_v44  ;;  %v7246_v44 = vld [vmem:[#allocation18_spill] sm:$0xff] }
 0x270   : > { %2293 = vmatmul.bf16.gmra.mxu0 %v6173_v5  ;;  %2382 = vmatmul.bf16.gmra.mxu1 %v6175_v13  ;;  %v2344_v17 = vadd.f32 %v2343_v35, %v2255_v26 }
 0x271   : > { %v6323_v27 = vadd.f32 %v2519_v11, %v7244_v2  ;;  %2471 = vmatmul.bf16.gmra.mxu2 %v6185_v9  ;;  %2560 = vmatmul.bf16.gmra.mxu3 %v6187_v52 }
 0x273   : > { %2632 = vadd.xlane.f32.xlu2 %v6323_v27  ;;  %v2727_v36 = vmul.f32 %v6323_v27, %v6323_v27 }
 0x274   : > { %v2432_v62 = vpop.f32.mrf.mxu2  ;;  %v2521_v18 = vpop.f32.mrf.mxu3 }
 0x275   : > { %v2433_v33 = vadd.f32 %v2432_v62, %v2344_v17  ;;  %2760 = vadd.xlane.f32.xlu1 %v2727_v36  ;;  %v2256_v5 = vpop.f32.mrf.mxu0  ;;  %v2345_v50 = vpop.f32.mrf.mxu1 }
 0x276   : > { %v2257_v10 = vadd.f32 %v6299_v54, %v2256_v5 }
 0x277   : > { %v2522_v13 = vadd.f32 %v2521_v18, %v2433_v33  ;;  %v7247_v18 = vld [vmem:[#allocation20_spill] sm:$0xff] }
 0x278   : > { %v2346_v9 = vadd.f32 %v2345_v50, %v2257_v10 }
 0x279   : > { %v6332_v8 = vadd.f32 %v2522_v13, %v7245_v1 }
 0x27b   : > { %2634 = vadd.xlane.f32.xlu0 %v6332_v8  ;;  %v2728_v52 = vmul.f32 %v6332_v8, %v6332_v8 }
 0x27c   : > { %v2434_v56 = vpop.f32.mrf.mxu2  ;;  %v2523_v0 = vpop.f32.mrf.mxu3 }
 0x27d   : > { %v2435_v14 = vadd.f32 %v2434_v56, %v2346_v9  ;;  %2762 = vadd.xlane.f32.xlu2 %v2728_v52  ;;  %v2259_v39 = vpop.f32.mrf.mxu0  ;;  %v2348_v41 = vpop.f32.mrf.mxu1  ;;  %v7248_v56 = vld [vmem:[#allocation21_spill] sm:$0xff] }
 0x27e   : > { %v2260_v46 = vadd.f32 %v6299_v54, %v2259_v39 }
 0x27f   : > { %v2524_v32 = vadd.f32 %v2523_v0, %v2435_v14 }
 0x280   : > { %2298 = vmatmul.bf16.gmra.mxu0 %v6193_v22  ;;  %2387 = vmatmul.bf16.gmra.mxu1 %v6195_v63  ;;  %v2349_v35 = vadd.f32 %v2348_v41, %v2260_v46 }
 0x281   : > { %v6341_v37 = vadd.f32 %v2524_v32, %v7246_v44  ;;  %2476 = vmatmul.bf16.gmra.mxu2 %v6205_v57  ;;  %2565 = vmatmul.bf16.gmra.mxu3 %v6207_v45 }
 0x283   : > { %2636 = vadd.xlane.f32.xlu1 %v6341_v37  ;;  %v2729_v11 = vmul.f32 %v6341_v37, %v6341_v37 }
 0x284   : > { %v2437_v26 = vpop.f32.mrf.mxu2  ;;  %v2526_v2 = vpop.f32.mrf.mxu3 }
 0x285   : > { %v2438_v17 = vadd.f32 %v2437_v26, %v2349_v35  ;;  %2764 = vadd.xlane.f32.xlu0 %v2729_v11  ;;  %v2261_v22 = vpop.f32.mrf.mxu0  ;;  %v2350_v36 = vpop.f32.mrf.mxu1  ;;  %v7249_v11 = vld [vmem:[#allocation23_spill] sm:$0xff] }
 0x286   : > { %v2262_v62 = vadd.f32 %v6299_v54, %v2261_v22 }
 0x287   : > { %v2527_v63 = vadd.f32 %v2526_v2, %v2438_v17 }
 0x288   : > { %v2351_v57 = vadd.f32 %v2350_v36, %v2262_v62 }
 0x289   : > { %v6350_v33 = vadd.f32 %v2527_v63, %v7247_v18 }
 0x28b   : > { %2638 = vadd.xlane.f32.xlu2 %v6350_v33  ;;  %v2730_v45 = vmul.f32 %v6350_v33, %v6350_v33 }
 0x28c   : > { %v2439_v5 = vpop.f32.mrf.mxu2  ;;  %v2528_v50 = vpop.f32.mrf.mxu3 }
 0x28d   : > { %v2440_v13 = vadd.f32 %v2439_v5, %v2351_v57  ;;  %2766 = vadd.xlane.f32.xlu1 %v2730_v45  ;;  %v2264_v10 = vpop.f32.mrf.mxu0  ;;  %v2353_v1 = vpop.f32.mrf.mxu1  ;;  %v7250_v57 = vld [vmem:[#allocation22_spill] sm:$0xff] }
 0x28e   : > { %v2265_v52 = vadd.f32 %v6299_v54, %v2264_v10 }
 0x28f   : > { %v2529_v9 = vadd.f32 %v2528_v50, %v2440_v13 }
 0x290   : > { %2303 = vmatmul.bf16.gmra.mxu0 %v6213_v48  ;;  %2392 = vmatmul.bf16.gmra.mxu1 %v6215_v25  ;;  %v2354_v14 = vadd.f32 %v2353_v1, %v2265_v52 }
 0x291   : > { %v6359_v0 = vadd.f32 %v2529_v9, %v7248_v56  ;;  %2481 = vmatmul.bf16.gmra.mxu2 %v6225_v16  ;;  %2570 = vmatmul.bf16.gmra.mxu3 %v6227_v61  ;;  %v7251_v56 = vld [vmem:[#allocation25_spill] sm:$0xff] }
 0x293   : > { %2640 = vadd.xlane.f32.xlu0 %v6359_v0  ;;  %v2731_v39 = vmul.f32 %v6359_v0, %v6359_v0 }
 0x294   : > { %v2442_v41 = vpop.f32.mrf.mxu2  ;;  %v2531_v32 = vpop.f32.mrf.mxu3 }
 0x295   : > { %v2443_v46 = vadd.f32 %v2442_v41, %v2354_v14  ;;  %2768 = vadd.xlane.f32.xlu2 %v2731_v39  ;;  %v2266_v48 = vpop.f32.mrf.mxu0  ;;  %v2355_v44 = vpop.f32.mrf.mxu1 }
 0x296   : > { %v2267_v35 = vadd.f32 %v6299_v54, %v2266_v48 }
 0x297   : > { %v2532_v25 = vadd.f32 %v2531_v32, %v2443_v46 }
 0x298   : > { %v2356_v16 = vadd.f32 %v2355_v44, %v2267_v35  ;;  %v7252_v35 = vld [vmem:[#allocation24_spill] sm:$0xff] }
 0x299   : > { %v6368_v26 = vadd.f32 %v2532_v25, %v7249_v11 }
 0x29b   : > { %2642 = vadd.xlane.f32.xlu1 %v6368_v26  ;;  %v2732_v61 = vmul.f32 %v6368_v26, %v6368_v26 }
 0x29c   : > { %v2444_v2 = vpop.f32.mrf.mxu2  ;;  %v2533_v17 = vpop.f32.mrf.mxu3 }
 0x29d   : > { %v2445_v22 = vadd.f32 %v2444_v2, %v2356_v16  ;;  %2770 = vadd.xlane.f32.xlu0 %v2732_v61  ;;  %v2269_v36 = vpop.f32.mrf.mxu0  ;;  %v2358_v63 = vpop.f32.mrf.mxu1 }
 0x29e   : > { %v2270_v18 = vadd.f32 %v6299_v54, %v2269_v36 }
 0x29f   : > { %v2534_v62 = vadd.f32 %v2533_v17, %v2445_v22 }
 0x2a0   : > { %2308 = vmatmul.bf16.gmra.mxu0 %v6233_v55  ;;  %2397 = vmatmul.bf16.gmra.mxu1 %v6235_v21  ;;  %v2359_v5 = vadd.f32 %v2358_v63, %v2270_v18 }
 0x2a1   : > { %v6377_v45 = vadd.f32 %v2534_v62, %v7250_v57  ;;  %2486 = vmatmul.bf16.gmra.mxu2 %v6245_v29  ;;  %2575 = vmatmul.bf16.gmra.mxu3 %v6247_v30  ;;  %v7253_v62 = vld [vmem:[#allocation26_spill] sm:$0xff] }
 0x2a3   : > { %2644 = vadd.xlane.f32.xlu2 %v6377_v45  ;;  %v2733_v50 = vmul.f32 %v6377_v45, %v6377_v45 }
 0x2a4   : > { %v2447_v13 = vpop.f32.mrf.mxu2  ;;  %v2536_v10 = vpop.f32.mrf.mxu3 }
 0x2a5   : > { %v2448_v1 = vadd.f32 %v2447_v13, %v2359_v5  ;;  %2772 = vadd.xlane.f32.xlu1 %v2733_v50  ;;  %v2271_v55 = vpop.f32.mrf.mxu0  ;;  %v2360_v9 = vpop.f32.mrf.mxu1 }
 0x2a6   : > { %v2272_v52 = vadd.f32 %v6299_v54, %v2271_v55 }
 0x2a7   : > { %v2537_v21 = vadd.f32 %v2536_v10, %v2448_v1 }
 0x2a8   : > { %v2361_v29 = vadd.f32 %v2360_v9, %v2272_v52  ;;  %v7254_v9 = vld [vmem:[#allocation27_spill] sm:$0xff] }
 0x2a9   : > { %v6386_v14 = vadd.f32 %v2537_v21, %v7251_v56 }
 0x2ab   : > { %2646 = vadd.xlane.f32.xlu0 %v6386_v14  ;;  %v2734_v30 = vmul.f32 %v6386_v14, %v6386_v14 }
 0x2ac   : > { %v2449_v39 = vpop.f32.mrf.mxu2  ;;  %v2538_v41 = vpop.f32.mrf.mxu3 }
 0x2ad   : > { %v2450_v32 = vadd.f32 %v2449_v39, %v2361_v29  ;;  %2774 = vadd.xlane.f32.xlu2 %v2734_v30  ;;  %v2274_v46 = vpop.f32.mrf.mxu0  ;;  %v2363_v48 = vpop.f32.mrf.mxu1 }
 0x2ae   : > { %v2275_v25 = vadd.f32 %v6299_v54, %v2274_v46  ;;  %v7255_v46 = vld [vmem:[#allocation28_spill] sm:$0xff] }
 0x2af   : > { %v2539_v44 = vadd.f32 %v2538_v41, %v2450_v32 }
 0x2b0   : > { %2313 = vmatmul.bf16.gmra.mxu0 %v6253_v49  ;;  %2402 = vmatmul.bf16.gmra.mxu1 %v6255_v53  ;;  %v2364_v16 = vadd.f32 %v2363_v48, %v2275_v25 }
 0x2b1   : > { %v6395_v11 = vadd.f32 %v2539_v44, %v7252_v35  ;;  %2491 = vmatmul.bf16.gmra.mxu2 %v6265_v28  ;;  %2580 = vmatmul.bf16.gmra.mxu3 %v6267_v58 }
 0x2b3   : > { %2648 = vadd.xlane.f32.xlu1 %v6395_v11  ;;  %v2735_v61 = vmul.f32 %v6395_v11, %v6395_v11 }
 0x2b4   : > { %v2452_v2 = vpop.f32.mrf.mxu2  ;;  %v2541_v17 = vpop.f32.mrf.mxu3 }
 0x2b5   : > { %v2453_v22 = vadd.f32 %v2452_v2, %v2364_v16  ;;  %2776 = vadd.xlane.f32.xlu0 %v2735_v61  ;;  %v2276_v49 = vpop.f32.mrf.mxu0  ;;  %v2365_v36 = vpop.f32.mrf.mxu1 }
 0x2b6   : > { %v2277_v63 = vadd.f32 %v6299_v54, %v2276_v49 }
 0x2b7   : > { %v2542_v53 = vadd.f32 %v2541_v17, %v2453_v22  ;;  %v7256_v22 = vld [vmem:[#allocation29_spill] sm:$0xff] }
 0x2b8   : > { %v2366_v28 = vadd.f32 %v2365_v36, %v2277_v63 }
 0x2b9   : > { %v6404_v18 = vadd.f32 %v2542_v53, %v7253_v62 }
 0x2bb   : > { %2650 = vadd.xlane.f32.xlu2 %v6404_v18  ;;  %v2736_v58 = vmul.f32 %v6404_v18, %v6404_v18 }
 0x2bc   : > { %v2454_v57 = vpop.f32.mrf.mxu2  ;;  %v2543_v5 = vpop.f32.mrf.mxu3 }
 0x2bd   : > { %v2455_v50 = vadd.f32 %v2454_v57, %v2366_v28  ;;  %2778 = vadd.xlane.f32.xlu1 %v2736_v58  ;;  %v2279_v13 = vpop.f32.mrf.mxu0  ;;  %v2368_v10 = vpop.f32.mrf.mxu1 }
 0x2be   : > { %v2280_v55 = vadd.f32 %v6299_v54, %v2279_v13 }
 0x2bf   : > { %v2544_v1 = vadd.f32 %v2543_v5, %v2455_v50  ;;  %v7257_v5 = vld [vmem:[#allocation30_spill] sm:$0xff] }
 0x2c0   : > { %2318 = vmatmul.bf16.gmra.mxu0 %v6273_v51  ;;  %2407 = vmatmul.bf16.gmra.mxu1 %v6275_v19  ;;  %v2369_v52 = vadd.f32 %v2368_v10, %v2280_v55 }
 0x2c1   : > { %v6413_v21 = vadd.f32 %v2544_v1, %v7254_v9  ;;  %2496 = vmatmul.bf16.gmra.mxu2 %v6285_v24  ;;  %2585 = vmatmul.bf16.gmra.mxu3 %v6287_v31 }
 0x2c3   : > { %2652 = vadd.xlane.f32.xlu0 %v6413_v21  ;;  %v2737_v56 = vmul.f32 %v6413_v21, %v6413_v21 }
 0x2c4   : > { %v2457_v29 = vpop.f32.mrf.mxu2  ;;  %v2546_v30 = vpop.f32.mrf.mxu3 }
 0x2c5   : > { %v2458_v39 = vadd.f32 %v2457_v29, %v2369_v52  ;;  %2780 = vadd.xlane.f32.xlu2 %v2737_v56  ;;  %v2281_v51 = vpop.f32.mrf.mxu0  ;;  %v2370_v41 = vpop.f32.mrf.mxu1 }
 0x2c6   : > { %v2282_v32 = vadd.f32 %v6299_v54, %v2281_v51  ;;  %v7258_v51 = vld [vmem:[#allocation31_spill] sm:$0xff] }
 0x2c7   : > { %v2547_v19 = vadd.f32 %v2546_v30, %v2458_v39 }
 0x2c8   : > { %v2371_v24 = vadd.f32 %v2370_v41, %v2282_v32 }
 0x2c9   : > { %v6422_v48 = vadd.f32 %v2547_v19, %v7255_v46 }
 0x2cb   : > { %2654 = vadd.xlane.f32.xlu1 %v6422_v48  ;;  %v2738_v31 = vmul.f32 %v6422_v48, %v6422_v48 }
 0x2cc   : > { %v2459_v44 = vpop.f32.mrf.mxu2  ;;  %v2548_v25 = vpop.f32.mrf.mxu3 }
 0x2cd   : > { %v2460_v35 = vadd.f32 %v2459_v44, %v2371_v24  ;;  %2782 = vadd.xlane.f32.xlu0 %v2738_v31  ;;  %v2284_v16 = vpop.f32.mrf.mxu0  ;;  %v2373_v61 = vpop.f32.mrf.mxu1 }
 0x2ce   : > { %v2285_v17 = vadd.f32 %v6299_v54, %v2284_v16 }
 0x2cf   : > { %v2549_v2 = vadd.f32 %v2548_v25, %v2460_v35 }
 0x2d0   : > { %2323 = vmatmul.bf16.gmra.mxu0 %v6294_v47  ;;  %2412 = vmatmul.bf16.gmra.mxu1 %v6296_v59  ;;  %v2374_v36 = vadd.f32 %v2373_v61, %v2285_v17 }
 0x2d1   : > { %v6431_v49 = vadd.f32 %v2549_v2, %v7256_v22  ;;  %2501 = vmatmul.bf16.gmra.mxu2 %v6308_v4  ;;  %2590 = vmatmul.bf16.gmra.mxu3 %v6310_v42 }
 0x2d3   : > { %2656 = vadd.xlane.f32.xlu2 %v6431_v49  ;;  %v2739_v53 = vmul.f32 %v6431_v49, %v6431_v49 }
 0x2d4   : > { %v2462_v63 = vpop.f32.mrf.mxu2  ;;  %v2551_v62 = vpop.f32.mrf.mxu3 }
 0x2d5   : > { %v2463_v28 = vadd.f32 %v2462_v63, %v2374_v36  ;;  %2784 = vadd.xlane.f32.xlu1 %v2739_v53  ;;  %v2286_v47 = vpop.f32.mrf.mxu0  ;;  %v2375_v58 = vpop.f32.mrf.mxu1 }
 0x2d6   : > { %v2287_v57 = vadd.f32 %v6299_v54, %v2286_v47 }
 0x2d7   : > { %v2552_v59 = vadd.f32 %v2551_v62, %v2463_v28  ;;  %v7259_v28 = vld [vmem:[#allocation32_spill] sm:$0xff] }
 0x2d8   : > { %v2376_v4 = vadd.f32 %v2375_v58, %v2287_v57 }
 0x2d9   : > { %v6440_v50 = vadd.f32 %v2552_v59, %v7257_v5 }
 0x2db   : > { %2658 = vadd.xlane.f32.xlu0 %v6440_v50  ;;  %v2740_v42 = vmul.f32 %v6440_v50, %v6440_v50 }
 0x2dc   : > { %v2464_v13 = vpop.f32.mrf.mxu2  ;;  %v2553_v10 = vpop.f32.mrf.mxu3 }
 0x2dd   : > { %v2465_v1 = vadd.f32 %v2464_v13, %v2376_v4  ;;  %2786 = vadd.xlane.f32.xlu2 %v2740_v42  ;;  %v2289_v55 = vpop.f32.mrf.mxu0  ;;  %v2378_v9 = vpop.f32.mrf.mxu1 }
 0x2de   : > { %v2631_v52 = vpop.xlane.xlu1 %2630  ;;  %v2290_v29 = vadd.f32 %v6299_v54, %v2289_v55 }
 0x2df   : > { %v2554_v56 = vadd.f32 %v2553_v10, %v2465_v1  ;;  %v6447_v30 = vmul.f32 %v2631_v52, %v4910_v43 }
 0x2e0   : > { %v2759_v39 = vpop.xlane.xlu0 %2758  ;;  %v2379_v46 = vadd.f32 %v2378_v9, %v2290_v29 }
 0x2e1   : > { %v6450_v41 = vadd.f32 %v2554_v56, %v7258_v51  ;;  %v2854_v19 = vmul.f32 %v6447_v30, %v6447_v30  ;;  %v2822_v32 = vmul.f32 %v2759_v39, %v4910_v43 }
 0x2e3   : > { %v2886_v24 = vsub.f32 %v2822_v32, %v2854_v19  ;;  %2660 = vadd.xlane.f32.xlu1 %v6450_v41  ;;  %v2741_v31 = vmul.f32 %v6450_v41, %v6450_v41 }
 0x2e4   : > { %v2467_v44 = vpop.f32.mrf.mxu2  ;;  %v2556_v25 = vpop.f32.mrf.mxu3 }
 0x2e5   : > { %v2918_v35 = vmax.f32 %v2886_v24, 0.0  ;;  %v2468_v16 = vadd.f32 %v2467_v44, %v2379_v46  ;;  %2788 = vadd.xlane.f32.xlu0 %v2741_v31  ;;  %v2291_v61 = vpop.f32.mrf.mxu0  ;;  %v2380_v2 = vpop.f32.mrf.mxu1  ;;  %v7260_v24 = vld [vmem:[#allocation33_spill] sm:$0xff] }
 0x2e6   : > { %v2633_v17 = vpop.xlane.xlu2 %2632  ;;  %v2292_v53 = vadd.f32 %v6299_v54, %v2291_v61 }
 0x2e7   : > { %v6458_v22 = vadd.f32 1e-05, %v2918_v35  ;;  %v2557_v36 = vadd.f32 %v2556_v25, %v2468_v16  ;;  %v6462_v63 = vmul.f32 %v2633_v17, %v4910_v43 }
 0x2e8   : > { %v2761_v62 = vpop.xlane.xlu1 %2760  ;;  %v2381_v57 = vadd.f32 %v2380_v2, %v2292_v53 }
 0x2e9   : > { %4306 = vrsqrt.f32 %v6458_v22  ;;  %v6466_v47 = vadd.f32 %v2557_v36, %v7259_v28  ;;  %v2855_v58 = vmul.f32 %v6462_v63, %v6462_v63  ;;  %v2823_v59 = vmul.f32 %v2761_v62, %v4910_v43 }
 0x2ea   : > { %vm3020_vm2 = vweird.f32 %v6458_v22 }
 0x2eb   : > { %2662 = vadd.xlane.f32.xlu2 %v6466_v47  ;;  %v2742_v5 = vmul.f32 %v6466_v47, %v6466_v47  ;;  %v2887_v4 = vsub.f32 %v2823_v59, %v2855_v58 }
 0x2ec   : > { %v2469_v42 = vpop.f32.mrf.mxu2  ;;  %v2558_v13 = vpop.f32.mrf.mxu3 }
 0x2ed   : > { %v2470_v10 = vadd.f32 %v2469_v42, %v2381_v57  ;;  %2790 = vadd.xlane.f32.xlu1 %v2742_v5  ;;  %v2294_v1 = vpop.f32.mrf.mxu0  ;;  %v2383_v55 = vpop.f32.mrf.mxu1  ;;  %v2919_v9 = vmax.f32 %v2887_v4, 0.0 }
 0x2ee   : > { %v2635_v52 = vpop.xlane.xlu0 %2634  ;;  %v2295_v39 = vadd.f32 %v6299_v54, %v2294_v1 }
 0x2ef   : > { %v6474_v56 = vpop.eup %4306  ;;  %v2559_v29 = vadd.f32 %v2558_v13, %v2470_v10  ;;  %v6478_v51 = vmul.f32 %v2635_v52, %v4910_v43  ;;  %v6482_v32 = vadd.f32 1e-05, %v2919_v9 }
 0x2f0   : > { %v3015_v19 = vmul.f32 %v6474_v56, %v6458_v22  ;;  %v2763_v46 = vpop.xlane.xlu2 %2762  ;;  %v2384_v16 = vadd.f32 %v2383_v55, %v2295_v39  ;;  %vm3021_vm1 = vweird.f32 %v6474_v56 }
 0x2f1   : > { %v6485_v31 = vadd.f32 %v2559_v29, %v7260_v24  ;;  %v2856_v44 = vmul.f32 %v6478_v51, %v6478_v51  ;;  %v2824_v25 = vmul.f32 %v2763_v46, %v4910_v43  ;;  %4308 = vrsqrt.f32 %v6482_v32  ;;  %v7261_v29 = vld [vmem:[#allocation34_spill] sm:$0xff]  ;;  %vm6512_vm3 = vmor %vm3020_vm2, %vm3021_vm1 }
 0x2f2   : > { %v3016_v35 = vmul.f32 %v6474_v56, %v3015_v19  ;;  %vm3030_vm5 = vweird.f32 %v6482_v32 }
 0x2f3   : > { %v2888_v61 = vsub.f32 %v2824_v25, %v2856_v44  ;;  %2664 = vadd.xlane.f32.xlu0 %v6485_v31  ;;  %v2743_v2 = vmul.f32 %v6485_v31, %v6485_v31 }
 0x2f4   : > { %v3017_v17 = vmul.f32 0.5, %v3016_v35  ;;  %v2472_v36 = vpop.f32.mrf.mxu2  ;;  %v2561_v53 = vpop.f32.mrf.mxu3 }
 0x2f5   : > { %v2920_v62 = vmax.f32 %v2888_v61, 0.0  ;;  %v2473_v28 = vadd.f32 %v2472_v36, %v2384_v16  ;;  %2792 = vadd.xlane.f32.xlu2 %v2743_v2  ;;  %v2296_v58 = vpop.f32.mrf.mxu0  ;;  %v2385_v59 = vpop.f32.mrf.mxu1 }
 0x2f6   : > { %v3018_v57 = vsub.f32 1.5, %v3017_v17  ;;  %v2637_v5 = vpop.xlane.xlu1 %2636  ;;  %v2297_v13 = vadd.f32 %v6299_v54, %v2296_v58 }
 0x2f7   : > { %v6495_v4 = vadd.f32 1e-05, %v2920_v62  ;;  %v2562_v42 = vadd.f32 %v2561_v53, %v2473_v28  ;;  %v6499_v10 = vmul.f32 %v2637_v5, %v4910_v43  ;;  %v4309_v1 = vpop.eup %4308  ;;  %v2950_v28 = vsub.f32 %v6314_v12, %v6447_v30 }
 0x2f8   : > { %v2765_v55 = vpop.xlane.xlu0 %2764  ;;  %v3019_v9 = vmul.f32 %v6474_v56, %v3018_v57  ;;  %v3025_v52 = vmul.f32 %v4309_v1, %v6482_v32  ;;  %v2386_v24 = vadd.f32 %v2385_v59, %v2297_v13  ;;  %vm3031_vm4 = vweird.f32 %v4309_v1 }
 0x2f9   : > { %4310 = vrsqrt.f32 %v6495_v4  ;;  %v6506_v39 = vadd.f32 %v2562_v42, %v7261_v29  ;;  %v2857_v19 = vmul.f32 %v6499_v10, %v6499_v10  ;;  %v2825_v44 = vmul.f32 %v2765_v55, %v4910_v43  ;;  %v6527_v55 = vld [vmem:[#allocation10 + $0x3] ss:$0 sm:$0xff]  ;;  %vm3032_vm6 = vmor %vm3030_vm5, %vm3031_vm4 }
 0x2fa   : > { %v3026_v46 = vmul.f32 %v4309_v1, %v3025_v52  ;;  %v3023_v2 = vsel %vm6512_vm3, %v6474_v56, %v3019_v9  ;;  %vm3040_vm8 = vweird.f32 %v6495_v4 }
 0x2fb   : > { %2666 = vadd.xlane.f32.xlu1 %v6506_v39  ;;  %v2744_v61 = vmul.f32 %v6506_v39, %v6506_v39  ;;  %v2889_v17 = vsub.f32 %v2825_v44, %v2857_v19  ;;  %v3334_v56 = vmul.f32 %v3023_v2, %v2950_v28  ;;  %v7264_v19 = vld [vmem:[#allocation35_spill] sm:$0xff]  ;;  %v2951_v44 = vsub.f32 %v6323_v27, %v6462_v63 }
 0x2fc   : > { %v2474_v35 = vpop.f32.mrf.mxu2  ;;  %v2563_v16 = vpop.f32.mrf.mxu3  ;;  %v3027_v22 = vmul.f32 0.5, %v3026_v46  ;;  %v6551_v2 = vld [vmem:[#allocation10 + $0x4] ss:$0 sm:$0xff] }
 0x2fd   : > { %v2475_v36 = vadd.f32 %v2474_v35, %v2386_v24  ;;  %v2299_v53 = vpop.f32.mrf.mxu0  ;;  %v2388_v62 = vpop.f32.mrf.mxu1  ;;  %2794 = vadd.xlane.f32.xlu0 %v2744_v61  ;;  %v2921_v5 = vmax.f32 %v2889_v17, 0.0  ;;  %v3367_v27 = vmul.f32 %v6527_v55, %v3334_v56 }
 0x2fe   : > { %v2639_v58 = vpop.xlane.xlu2 %2638  ;;  %v3028_v57 = vsub.f32 1.5, %v3027_v22  ;;  %v2300_v13 = vadd.f32 %v6299_v54, %v2299_v53 }
 0x2ff   : > { %v6524_v59 = vpop.eup %4310  ;;  %v2564_v42 = vadd.f32 %v2563_v16, %v2475_v36  ;;  %v6533_v12 = vmul.f32 %v2639_v58, %v4910_v43  ;;  %v6535_v29 = vadd.f32 1e-05, %v2921_v5  ;;  %v3400_v56 = vadd.f32 %v6551_v2, %v3367_v27 }
 0x300   : > { %v3035_v9 = vmul.f32 %v6524_v59, %v6495_v4  ;;  %v2767_v30 = vpop.xlane.xlu1 %2766  ;;  %v3029_v52 = vmul.f32 %v4309_v1, %v3028_v57  ;;  %v2389_v16 = vadd.f32 %v2388_v62, %v2300_v13  ;;  %vm3041_vm7 = vweird.f32 %v6524_v59 }
 0x301   : > { %v6538_v46 = vadd.f32 %v2564_v42, %v7264_v19  ;;  %v2826_v24 = vmul.f32 %v2767_v30, %v4910_v43  ;;  %v2858_v25 = vmul.f32 %v6533_v12, %v6533_v12  ;;  %4312 = vrsqrt.f32 %v6535_v29  ;;  %vm6582_vm9 = vmor %vm3040_vm8, %vm3041_vm7 }
 0x302   : > { %v3036_v32 = vmul.f32 %v6524_v59, %v3035_v9  ;;  %v3033_v35 = vsel %vm3032_vm6, %v4309_v1, %v3029_v52  ;;  %vm3050_vm11 = vweird.f32 %v6535_v29 }
 0x303   : > { %2668 = vadd.xlane.f32.xlu2 %v6538_v46  ;;  %v2745_v61 = vmul.f32 %v6538_v46, %v6538_v46  ;;  %v3335_v63 = vmul.f32 %v3033_v35, %v2951_v44  ;;  %v2890_v17 = vsub.f32 %v2826_v24, %v2858_v25  ;;  %v7265_v25 = vld [vmem:[#allocation36_spill] sm:$0xff] }
 0x304   : > { %v3037_v22 = vmul.f32 0.5, %v3036_v32  ;;  %v2477_v36 = vpop.f32.mrf.mxu2  ;;  %v2566_v53 = vpop.f32.mrf.mxu3 }
 0x305   : > { %v2478_v28 = vadd.f32 %v2477_v36, %v2389_v16  ;;  %2796 = vadd.xlane.f32.xlu1 %v2745_v61  ;;  %v2301_v1 = vpop.f32.mrf.mxu0  ;;  %v2390_v58 = vpop.f32.mrf.mxu1  ;;  %v3368_v62 = vmul.f32 %v6527_v55, %v3335_v63  ;;  %v2922_v5 = vmax.f32 %v2890_v17, 0.0  ;;  %v2953_v36 = vsub.f32 %v6341_v37, %v6499_v10 }
 0x306   : > { %v3038_v57 = vsub.f32 1.5, %v3037_v22  ;;  %v2641_v42 = vpop.xlane.xlu0 %2640  ;;  %v2302_v9 = vadd.f32 %v6299_v54, %v2301_v1 }
 0x307   : > { %v2567_v13 = vadd.f32 %v2566_v53, %v2478_v28  ;;  %v6557_v30 = vmul.f32 %v2641_v42, %v4910_v43  ;;  %v3401_v52 = vadd.f32 %v6551_v2, %v3368_v62  ;;  %v6562_v19 = vadd.f32 1e-05, %v2922_v5  ;;  %v4313_v44 = vpop.eup %4312 }
 0x308   : > { %v2769_v24 = vpop.xlane.xlu2 %2768  ;;  %v3039_v32 = vmul.f32 %v6524_v59, %v3038_v57  ;;  %v3045_v63 = vmul.f32 %v4313_v44, %v6535_v29  ;;  %v2391_v22 = vadd.f32 %v2390_v58, %v2302_v9  ;;  %vm3051_vm10 = vweird.f32 %v4313_v44 }
 0x309   : > { %v6566_v35 = vadd.f32 %v2567_v13, %v7265_v25  ;;  %v2859_v16 = vmul.f32 %v6557_v30, %v6557_v30  ;;  %v2827_v61 = vmul.f32 %v2769_v24, %v4910_v43  ;;  %v4034_v27 = vpack.c.bf16 %v3401_v52, %v3400_v56  ;;  %vm3052_vm12 = vmor %vm3050_vm11, %vm3051_vm10 }
 0x30a   : > { %4314 = vrsqrt.f32 %v6562_v19  ;;  %v3046_v53 = vmul.f32 %v4313_v44, %v3045_v63  ;;  %v3043_v58 = vsel %vm6582_vm9, %v6524_v59, %v3039_v32  ;;  %v2952_v13 = vsub.f32 %v6332_v8, %v6478_v51  ;;  %v7268_v8 = vld [vmem:[#allocation37_spill] sm:$0xff] }
 0x30b   : > { %v2891_v17 = vsub.f32 %v2827_v61, %v2859_v16  ;;  %2670 = vadd.xlane.f32.xlu0 %v6566_v35  ;;  %4035 = vst [vmem:[%s6577_s24] sm:$0xff] %v4034_v27   ;;  %v2746_v1 = vmul.f32 %v6566_v35, %v6566_v35  ;;  %vm3060_vm14 = vweird.f32 %v6562_v19 }
 0x30c   : > { %v2479_v28 = vpop.f32.mrf.mxu2  ;;  %v2568_v4 = vpop.f32.mrf.mxu3  ;;  %v3047_v9 = vmul.f32 0.5, %v3046_v53  ;;  %v3336_v61 = vmul.f32 %v3043_v58, %v2952_v13 }
 0x30d   : > { %v2923_v62 = vmax.f32 %v2891_v17, 0.0  ;;  %v2480_v57 = vadd.f32 %v2479_v28, %v2391_v22  ;;  %v2304_v5 = vpop.f32.mrf.mxu0  ;;  %v2393_v42 = vpop.f32.mrf.mxu1  ;;  %2798 = vadd.xlane.f32.xlu2 %v2746_v1 }
 0x30e   : > { %v2643_v56 = vpop.xlane.xlu1 %2642  ;;  %v2305_v25 = vadd.f32 %v6299_v54, %v2304_v5  ;;  %v3048_v59 = vsub.f32 1.5, %v3047_v9  ;;  %v3369_v1 = vmul.f32 %v6527_v55, %v3336_v61 }
 0x30f   : > { %v6593_v52 = vadd.f32 1e-05, %v2923_v62  ;;  %v2569_v24 = vadd.f32 %v2568_v4, %v2480_v57  ;;  %v6597_v16 = vmul.f32 %v2643_v56, %v4910_v43 }
 0x310   : > { %v2771_v32 = vpop.xlane.xlu0 %2770  ;;  %v6599_v27 = vpop.eup %4314  ;;  %v3049_v22 = vmul.f32 %v4313_v44, %v3048_v59  ;;  %v2394_v53 = vadd.f32 %v2393_v42, %v2305_v25 }
 0x311   : > { %4316 = vrsqrt.f32 %v6593_v52  ;;  %v6603_v51 = vadd.f32 %v2569_v24, %v7268_v8  ;;  %v2860_v63 = vmul.f32 %v6597_v16, %v6597_v16  ;;  %v3055_v17 = vmul.f32 %v6599_v27, %v6562_v19 }
 0x312   : > { %v2828_v28 = vmul.f32 %v2771_v32, %v4910_v43  ;;  %v3053_v58 = vsel %vm3052_vm12, %v4313_v44, %v3049_v22  ;;  %v3402_v8 = vadd.f32 %v6551_v2, %v3369_v1  ;;  %vm3061_vm13 = vweird.f32 %v6599_v27 }
 0x313   : > { %2672 = vadd.xlane.f32.xlu1 %v6603_v51  ;;  %v2747_v4 = vmul.f32 %v6603_v51, %v6603_v51  ;;  %v3056_v29 = vmul.f32 %v6599_v27, %v3055_v17  ;;  %v3337_v5 = vmul.f32 %v3053_v58, %v2953_v36  ;;  %vm6637_vm15 = vmor %vm3060_vm14, %vm3061_vm13  ;;  %vm3070_vm1 = vweird.f32 %v6593_v52 }
 0x314   : > { %v2482_v62 = vpop.f32.mrf.mxu2  ;;  %v2571_v57 = vpop.f32.mrf.mxu3  ;;  %v2892_v13 = vsub.f32 %v2828_v28, %v2860_v63 }
 0x315   : > { %v2483_v9 = vadd.f32 %v2482_v62, %v2394_v53  ;;  %2800 = vadd.xlane.f32.xlu0 %v2747_v4  ;;  %v2306_v37 = vpop.f32.mrf.mxu0  ;;  %v2395_v10 = vpop.f32.mrf.mxu1  ;;  %v3057_v42 = vmul.f32 0.5, %v3056_v29  ;;  %v3370_v59 = vmul.f32 %v6527_v55, %v3337_v5 }
 0x316   : > { %v2307_v56 = vadd.f32 %v6299_v54, %v2306_v37  ;;  %v2645_v24 = vpop.xlane.xlu2 %2644  ;;  %v2924_v32 = vmax.f32 %v2892_v13, 0.0  ;;  %v2954_v13 = vsub.f32 %v6350_v33, %v6533_v12 }
 0x317   : > { %v4317_v25 = vpop.eup %4316  ;;  %v2572_v61 = vadd.f32 %v2571_v57, %v2483_v9  ;;  %v6621_v44 = vmul.f32 %v2645_v24, %v4910_v43  ;;  %v3058_v22 = vsub.f32 1.5, %v3057_v42  ;;  %v3403_v36 = vadd.f32 %v6551_v2, %v3370_v59 }
 0x318   : > { %v3065_v63 = vmul.f32 %v4317_v25, %v6593_v52  ;;  %v2773_v17 = vpop.xlane.xlu1 %2772  ;;  %v6627_v53 = vadd.f32 1e-05, %v2924_v32  ;;  %vm3071_vm0 = vweird.f32 %v4317_v25 }
 0x319   : > { %v6630_v28 = vadd.f32 %v2572_v61, %v5850_v23  ;;  %v2861_v4 = vmul.f32 %v6621_v44, %v6621_v44  ;;  %v3059_v58 = vmul.f32 %v6599_v27, %v3058_v22  ;;  %v2829_v29 = vmul.f32 %v2773_v17, %v4910_v43  ;;  %vm3072_vm2 = vmor %vm3070_vm1, %vm3071_vm0 }
 0x31a   : > { %v3066_v1 = vmul.f32 %v4317_v25, %v3065_v63  ;;  %v4039_v62 = vpack.c.bf16 %v3403_v36, %v3402_v8  ;;  %4318 = vrsqrt.f32 %v6627_v53  ;;  %v2396_v23 = vadd.f32 %v2395_v10, %v2307_v56 }
 0x31b   : > { %2674 = vadd.xlane.f32.xlu2 %v6630_v28  ;;  %v2748_v5 = vmul.f32 %v6630_v28, %v6630_v28  ;;  %v3063_v19 = vsel %vm6637_vm15, %v6599_v27, %v3059_v58  ;;  %v2893_v37 = vsub.f32 %v2829_v29, %v2861_v4  ;;  %v2955_v58 = vsub.f32 %v6359_v0, %v6557_v30 }
 0x31c   : > { %v3067_v9 = vmul.f32 0.5, %v3066_v1  ;;  %v2484_v42 = vpop.f32.mrf.mxu2  ;;  %v2573_v24 = vpop.f32.mrf.mxu3  ;;  %4126 = vst [vmem:[%s6577_s24 + $0x8] sm:$0xff] %v4039_v62   ;;  %v3338_v32 = vmul.f32 %v3063_v19, %v2954_v13  ;;  %vm3080_vm4 = vweird.f32 %v6627_v53 }
 0x31d   : > { %v2485_v59 = vadd.f32 %v2484_v42, %v2396_v23  ;;  %2802 = vadd.xlane.f32.xlu1 %v2748_v5  ;;  %v2309_v10 = vpop.f32.mrf.mxu0  ;;  %v2398_v56 = vpop.f32.mrf.mxu1  ;;  %v2925_v8 = vmax.f32 %v2893_v37, 0.0 }
 0x31e   : > { %v3068_v61 = vsub.f32 1.5, %v3067_v9  ;;  %v2647_v22 = vpop.xlane.xlu0 %2646  ;;  %v2310_v33 = vadd.f32 %v6299_v54, %v2309_v10  ;;  %v3371_v29 = vmul.f32 %v6527_v55, %v3338_v32  ;;  %v6678_v10 = vld [vmem:[#allocation10] ss:$0 sm:$0xff] }
 0x31f   : > { %v2574_v63 = vadd.f32 %v2573_v24, %v2485_v59  ;;  %v6653_v12 = vmul.f32 %v2647_v22, %v4910_v43  ;;  %v6656_v17 = vadd.f32 1e-05, %v2925_v8 }
 0x320   : > { %v3069_v27 = vmul.f32 %v4317_v25, %v3068_v61  ;;  %v2775_v36 = vpop.xlane.xlu2 %2774  ;;  %v6658_v4 = vpop.eup %4318  ;;  %v2399_v23 = vadd.f32 %v2398_v56, %v2310_v33  ;;  %v3404_v24 = vadd.f32 %v6551_v2, %v3371_v29 }
 0x321   : > { %v6663_v1 = vadd.f32 %v2574_v63, %v5854_v34  ;;  %v2862_v54 = vmul.f32 %v6653_v12, %v6653_v12  ;;  %v3075_v52 = vmul.f32 %v6658_v4, %v6627_v53  ;;  %4320 = vrsqrt.f32 %v6656_v17 }
 0x322   : > { %v3073_v62 = vsel %vm3072_vm2, %v4317_v25, %v3069_v27  ;;  %v2830_v5 = vmul.f32 %v2775_v36, %v4910_v43  ;;  %vm3081_vm3 = vweird.f32 %v6658_v4  ;;  %vm3090_vm7 = vweird.f32 %v6656_v17 }
 0x323   : > { %v3339_v57 = vmul.f32 %v3073_v62, %v2955_v58  ;;  %2676 = vadd.xlane.f32.xlu0 %v6663_v1  ;;  %v2749_v34 = vmul.f32 %v6663_v1, %v6663_v1  ;;  %v3076_v0 = vmul.f32 %v6658_v4, %v3075_v52  ;;  %vm6699_vm5 = vmor %vm3080_vm4, %vm3081_vm3 }
 0x324   : > { %v2487_v30 = vpop.f32.mrf.mxu2  ;;  %v2576_v13 = vpop.f32.mrf.mxu3  ;;  %v2894_v19 = vsub.f32 %v2830_v5, %v2862_v54 }
 0x325   : > { %v3372_v25 = vmul.f32 %v6527_v55, %v3339_v57  ;;  %v2488_v9 = vadd.f32 %v2487_v30, %v2399_v23  ;;  %2804 = vadd.xlane.f32.xlu2 %v2749_v34  ;;  %v2311_v37 = vpop.f32.mrf.mxu0  ;;  %v2400_v42 = vpop.f32.mrf.mxu1  ;;  %v3077_v59 = vmul.f32 0.5, %v3076_v0 }
 0x326   : > { %v2312_v56 = vadd.f32 %v6678_v10, %v2311_v37  ;;  %v2649_v32 = vpop.xlane.xlu1 %2648  ;;  %v2926_v8 = vmax.f32 %v2894_v19, 0.0 }
 0x327   : > { %v3405_v61 = vadd.f32 %v6551_v2, %v3372_v25  ;;  %v2577_v22 = vadd.f32 %v2576_v13, %v2488_v9  ;;  %v6683_v63 = vmul.f32 %v2649_v32, %v4910_v43  ;;  %v4321_v33 = vpop.eup %4320  ;;  %v3078_v27 = vsub.f32 1.5, %v3077_v59 }
 0x328   : > { %v2777_v36 = vpop.xlane.xlu0 %2776  ;;  %v3085_v54 = vmul.f32 %v4321_v33, %v6656_v17  ;;  %v6687_v29 = vadd.f32 1e-05, %v2926_v8  ;;  %v2401_v5 = vadd.f32 %v2400_v42, %v2312_v56  ;;  %vm3091_vm6 = vweird.f32 %v4321_v33 }
 0x329   : > { %v4044_v58 = vpack.c.bf16 %v3405_v61, %v3404_v24  ;;  %v3079_v62 = vmul.f32 %v6658_v4, %v3078_v27  ;;  %v6692_v52 = vadd.f32 %v2577_v22, %v5952_v15  ;;  %v2863_v57 = vmul.f32 %v6683_v63, %v6683_v63  ;;  %vm3092_vm8 = vmor %vm3090_vm7, %vm3091_vm6 }
 0x32a   : > { %v3086_v23 = vmul.f32 %v4321_v33, %v3085_v54  ;;  %4322 = vrsqrt.f32 %v6687_v29  ;;  %v2831_v34 = vmul.f32 %v2777_v36, %v4910_v43  ;;  %v2956_v24 = vsub.f32 %v6368_v26, %v6597_v16 }
 0x32b   : > { %4127 = vst [vmem:[%s6577_s24 + $0x10] sm:$0xff] %v4044_v58   ;;  %2678 = vadd.xlane.f32.xlu1 %v6692_v52  ;;  %v2750_v15 = vmul.f32 %v6692_v52, %v6692_v52  ;;  %v3083_v13 = vsel %vm6699_vm5, %v6658_v4, %v3079_v62  ;;  %v2957_v16 = vsub.f32 %v6377_v45, %v6621_v44  ;;  %vm3100_vm10 = vweird.f32 %v6687_v29 }
 0x32c   : > { %v2489_v53 = vpop.f32.mrf.mxu2  ;;  %v2578_v30 = vpop.f32.mrf.mxu3  ;;  %v3087_v25 = vmul.f32 0.5, %v3086_v23  ;;  %v2895_v19 = vsub.f32 %v2831_v34, %v2863_v57  ;;  %v3340_v22 = vmul.f32 %v3083_v13, %v2956_v24 }
 0x32d   : > { %v2490_v9 = vadd.f32 %v2489_v53, %v2401_v5  ;;  %v2314_v37 = vpop.f32.mrf.mxu0  ;;  %v2403_v42 = vpop.f32.mrf.mxu1  ;;  %2806 = vadd.xlane.f32.xlu0 %v2750_v15 }
 0x32e   : > { %v2651_v59 = vpop.xlane.xlu2 %2650  ;;  %v3088_v56 = vsub.f32 1.5, %v3087_v25  ;;  %v2927_v32 = vmax.f32 %v2895_v19, 0.0  ;;  %v2315_v8 = vadd.f32 %v6678_v10, %v2314_v37 }
 0x32f   : > { %v2579_v61 = vadd.f32 %v2578_v30, %v2490_v9  ;;  %v6713_v27 = vmul.f32 %v2651_v59, %v4910_v43 }
 0x330   : > { %v2779_v4 = vpop.xlane.xlu1 %2778  ;;  %v6715_v36 = vpop.eup %4322  ;;  %v3089_v58 = vmul.f32 %v4321_v33, %v3088_v56  ;;  %v6718_v54 = vadd.f32 1e-05, %v2927_v32  ;;  %v2404_v17 = vadd.f32 %v2403_v42, %v2315_v8 }
 0x331   : > { %v6721_v26 = vadd.f32 %v2579_v61, %v5955_v60  ;;  %v3095_v62 = vmul.f32 %v6715_v36, %v6687_v29  ;;  %v2864_v57 = vmul.f32 %v6713_v27, %v6713_v27  ;;  %v2832_v5 = vmul.f32 %v2779_v4, %v4910_v43 }
 0x332   : > { %v3093_v23 = vsel %vm3092_vm8, %v4321_v33, %v3089_v58  ;;  %4324 = vrsqrt.f32 %v6718_v54  ;;  %v3373_v60 = vmul.f32 %v6527_v55, %v3340_v22  ;;  %vm3101_vm9 = vweird.f32 %v6715_v36 }
 0x333   : > { %2680 = vadd.xlane.f32.xlu2 %v6721_v26  ;;  %v3341_v34 = vmul.f32 %v3093_v23, %v2957_v16  ;;  %v3096_v45 = vmul.f32 %v6715_v36, %v3095_v62  ;;  %v2751_v53 = vmul.f32 %v6721_v26, %v6721_v26  ;;  %v2896_v30 = vsub.f32 %v2832_v5, %v2864_v57  ;;  %vm6761_vm11 = vmor %vm3100_vm10, %vm3101_vm9 }
 0x334   : > { %v2492_v44 = vpop.f32.mrf.mxu2  ;;  %v2581_v0 = vpop.f32.mrf.mxu3  ;;  %v3406_v56 = vadd.f32 %v6551_v2, %v3373_v60  ;;  %vm3110_vm13 = vweird.f32 %v6718_v54 }
 0x335   : > { %v2493_v15 = vadd.f32 %v2492_v44, %v2404_v17  ;;  %v2316_v33 = vpop.f32.mrf.mxu0  ;;  %v2405_v13 = vpop.f32.mrf.mxu1  ;;  %v3374_v25 = vmul.f32 %v6527_v55, %v3341_v34  ;;  %v3097_v19 = vmul.f32 0.5, %v3096_v45  ;;  %2808 = vadd.xlane.f32.xlu1 %v2751_v53  ;;  %v2928_v37 = vmax.f32 %v2896_v30, 0.0 }
 0x336   : > { %v2653_v9 = vpop.xlane.xlu0 %2652  ;;  %v2317_v24 = vadd.f32 %v6678_v10, %v2316_v33  ;;  %v2958_v33 = vsub.f32 %v6386_v14, %v6653_v12  ;;  %v2959_v12 = vsub.f32 %v6395_v11, %v6683_v63 }
 0x337   : > { %v2582_v42 = vadd.f32 %v2581_v0, %v2493_v15  ;;  %v6740_v59 = vmul.f32 %v2653_v9, %v4910_v43  ;;  %v3407_v32 = vadd.f32 %v6551_v2, %v3374_v25  ;;  %v3098_v61 = vsub.f32 1.5, %v3097_v19 }
 0x338   : > { %v2781_v8 = vpop.xlane.xlu2 %2780  ;;  %v4325_v22 = vpop.eup %4324  ;;  %v6745_v4 = vadd.f32 1e-05, %v2928_v37  ;;  %v2406_v17 = vadd.f32 %v2405_v13, %v2317_v24 }
 0x339   : > { %v6748_v58 = vadd.f32 %v2582_v42, %v6006_v40  ;;  %v2865_v16 = vmul.f32 %v6740_v59, %v6740_v59  ;;  %v4049_v62 = vpack.c.bf16 %v3407_v32, %v3406_v56  ;;  %v3099_v57 = vmul.f32 %v6715_v36, %v3098_v61 }
 0x33a   : > { %v3105_v23 = vmul.f32 %v4325_v22, %v6718_v54  ;;  %4326 = vrsqrt.f32 %v6745_v4  ;;  %v2833_v5 = vmul.f32 %v2781_v8, %v4910_v43  ;;  %vm3111_vm12 = vweird.f32 %v4325_v22 }
 0x33b   : > { %2682 = vadd.xlane.f32.xlu0 %v6748_v58  ;;  %v2752_v40 = vmul.f32 %v6748_v58, %v6748_v58  ;;  %4128 = vst [vmem:[%s6577_s24 + $0x18] sm:$0xff] %v4049_v62   ;;  %v3103_v44 = vsel %vm6761_vm11, %v6715_v36, %v3099_v57  ;;  %vm3112_vm14 = vmor %vm3110_vm13, %vm3111_vm12  ;;  %vm3120_vm0 = vweird.f32 %v6745_v4 }
 0x33c   : > { %v3106_v34 = vmul.f32 %v4325_v22, %v3105_v23  ;;  %v2494_v45 = vpop.f32.mrf.mxu2  ;;  %v2583_v29 = vpop.f32.mrf.mxu3  ;;  %v2897_v0 = vsub.f32 %v2833_v5, %v2865_v16  ;;  %v3342_v24 = vmul.f32 %v3103_v44, %v2958_v33 }
 0x33d   : > { %v2495_v53 = vadd.f32 %v2494_v45, %v2406_v17  ;;  %2810 = vadd.xlane.f32.xlu2 %v2752_v40  ;;  %v2319_v30 = vpop.f32.mrf.mxu0  ;;  %v2408_v15 = vpop.f32.mrf.mxu1 }
 0x33e   : > { %v3107_v13 = vmul.f32 0.5, %v3106_v34  ;;  %v2655_v25 = vpop.xlane.xlu1 %2654  ;;  %v2929_v19 = vmax.f32 %v2897_v0, 0.0  ;;  %v2320_v37 = vadd.f32 %v6678_v10, %v2319_v30  ;;  %v3375_v17 = vmul.f32 %v6527_v55, %v3342_v24 }
 0x33f   : > { %v2584_v9 = vadd.f32 %v2583_v29, %v2495_v53  ;;  %v6772_v42 = vmul.f32 %v2655_v25, %v4910_v43 }
 0x340   : > { %v3108_v56 = vsub.f32 1.5, %v3107_v13  ;;  %v2783_v36 = vpop.xlane.xlu0 %2782  ;;  %v6774_v32 = vpop.eup %4326  ;;  %v6776_v61 = vadd.f32 1e-05, %v2929_v19  ;;  %v2409_v57 = vadd.f32 %v2408_v15, %v2320_v37  ;;  %v3408_v13 = vadd.f32 %v6551_v2, %v3375_v17 }
 0x341   : > { %v6779_v8 = vadd.f32 %v2584_v9, %v6009_v38  ;;  %v2866_v14 = vmul.f32 %v6772_v42, %v6772_v42  ;;  %v3115_v62 = vmul.f32 %v6774_v32, %v6745_v4  ;;  %v2834_v23 = vmul.f32 %v2783_v36, %v4910_v43 }
 0x342   : > { %v3109_v16 = vmul.f32 %v4325_v22, %v3108_v56  ;;  %4328 = vrsqrt.f32 %v6776_v61  ;;  %vm3121_vm15 = vweird.f32 %v6774_v32  ;;  %vm3130_vm3 = vweird.f32 %v6776_v61 }
 0x343   : > { %2684 = vadd.xlane.f32.xlu1 %v6779_v8  ;;  %v2753_v38 = vmul.f32 %v6779_v8, %v6779_v8  ;;  %v3116_v63 = vmul.f32 %v6774_v32, %v3115_v62  ;;  %v2898_v60 = vsub.f32 %v2834_v23, %v2866_v14  ;;  %vm6818_vm1 = vmor %vm3120_vm0, %vm3121_vm15 }
 0x344   : > { %v3113_v11 = vsel %vm3112_vm14, %v4325_v22, %v3109_v16  ;;  %v2497_v54 = vpop.f32.mrf.mxu2  ;;  %v2586_v5 = vpop.f32.mrf.mxu3 }
 0x345   : > { %v3343_v40 = vmul.f32 %v3113_v11, %v2959_v12  ;;  %v2498_v34 = vadd.f32 %v2497_v54, %v2409_v57  ;;  %2812 = vadd.xlane.f32.xlu0 %v2753_v38  ;;  %v2321_v45 = vpop.f32.mrf.mxu0  ;;  %v3117_v29 = vmul.f32 0.5, %v3116_v63  ;;  %v2410_v0 = vpop.f32.mrf.mxu1  ;;  %v2930_v15 = vmax.f32 %v2898_v60, 0.0 }
 0x346   : > { %v2322_v44 = vadd.f32 %v6678_v10, %v2321_v45  ;;  %v2657_v53 = vpop.xlane.xlu2 %2656 }
 0x347   : > { %v3376_v30 = vmul.f32 %v6527_v55, %v3343_v40  ;;  %v2587_v33 = vadd.f32 %v2586_v5, %v2498_v34  ;;  %v6798_v22 = vmul.f32 %v2657_v53, %v4910_v43  ;;  %v3118_v25 = vsub.f32 1.5, %v3117_v29 }
 0x348   : > { %v2785_v19 = vpop.xlane.xlu1 %2784  ;;  %v4329_v9 = vpop.eup %4328  ;;  %v6803_v24 = vadd.f32 1e-05, %v2930_v15  ;;  %v2411_v62 = vadd.f32 %v2410_v0, %v2322_v44  ;;  %v2960_v40 = vsub.f32 %v6404_v18, %v6713_v27 }
 0x349   : > { %v3409_v37 = vadd.f32 %v6551_v2, %v3376_v30  ;;  %v6806_v56 = vadd.f32 %v2587_v33, %v6064_v7  ;;  %v2867_v36 = vmul.f32 %v6798_v22, %v6798_v22  ;;  %v3119_v14 = vmul.f32 %v6774_v32, %v3118_v25 }
 0x34a   : > { %v3125_v12 = vmul.f32 %v4329_v9, %v6776_v61  ;;  %4330 = vrsqrt.f32 %v6803_v24  ;;  %v2835_v57 = vmul.f32 %v2785_v19, %v4910_v43  ;;  %vm3131_vm2 = vweird.f32 %v4329_v9 }
 0x34b   : > { %v4054_v16 = vpack.c.bf16 %v3409_v37, %v3408_v13  ;;  %2686 = vadd.xlane.f32.xlu2 %v6806_v56  ;;  %v2754_v4 = vmul.f32 %v6806_v56, %v6806_v56  ;;  %v3123_v11 = vsel %vm6818_vm1, %v6774_v32, %v3119_v14  ;;  %v2961_v37 = vsub.f32 %v6413_v21, %v6740_v59  ;;  %vm3132_vm4 = vmor %vm3130_vm3, %vm3131_vm2 }
 0x34c   : > { %v3126_v23 = vmul.f32 %v4329_v9, %v3125_v12  ;;  %v2499_v38 = vpop.f32.mrf.mxu2  ;;  %v2588_v17 = vpop.f32.mrf.mxu3  ;;  %v2899_v63 = vsub.f32 %v2835_v57, %v2867_v36  ;;  %v3344_v53 = vmul.f32 %v3123_v11, %v2960_v40  ;;  %vm3140_vm6 = vweird.f32 %v6803_v24 }
 0x34d   : > { %4129 = vst [vmem:[%s6577_s24 + $0x20] sm:$0xff] %v4054_v16   ;;  %v2500_v54 = vadd.f32 %v2499_v38, %v2411_v62  ;;  %v2324_v5 = vpop.f32.mrf.mxu0  ;;  %2814 = vadd.xlane.f32.xlu1 %v2754_v4  ;;  %v2413_v32 = vpop.f32.mrf.mxu1 }
 0x34e   : > { %v3127_v60 = vmul.f32 0.5, %v3126_v23  ;;  %v2659_v34 = vpop.xlane.xlu0 %2658  ;;  %v2931_v45 = vmax.f32 %v2899_v63, 0.0  ;;  %v2325_v0 = vadd.f32 %v6678_v10, %v2324_v5  ;;  %v3377_v14 = vmul.f32 %v6527_v55, %v3344_v53 }
 0x34f   : > { %v2589_v29 = vadd.f32 %v2588_v17, %v2500_v54  ;;  %v6831_v44 = vmul.f32 %v2659_v34, %v4910_v43 }
 0x350   : > { %v3128_v30 = vsub.f32 1.5, %v3127_v60  ;;  %v2787_v15 = vpop.xlane.xlu2 %2786  ;;  %v6834_v33 = vpop.eup %4330  ;;  %v6836_v13 = vadd.f32 1e-05, %v2931_v45 }
 0x351   : > { %v6839_v18 = vadd.f32 %v2589_v29, %v6067_v3  ;;  %v2868_v27 = vmul.f32 %v6831_v44, %v6831_v44  ;;  %v3135_v19 = vmul.f32 %v6834_v33, %v6803_v24  ;;  %v2836_v36 = vmul.f32 %v2787_v15, %v4910_v43 }
 0x352   : > { %v3129_v25 = vmul.f32 %v4329_v9, %v3128_v30  ;;  %4332 = vrsqrt.f32 %v6836_v13  ;;  %v2414_v3 = vadd.f32 %v2413_v32, %v2325_v0  ;;  %vm3141_vm5 = vweird.f32 %v6834_v33 }
 0x353   : > { %2688 = vadd.xlane.f32.xlu0 %v6839_v18  ;;  %v3136_v16 = vmul.f32 %v6834_v33, %v3135_v19  ;;  %v2900_v7 = vsub.f32 %v2836_v36, %v2868_v27  ;;  %vm6876_vm7 = vmor %vm3140_vm6, %vm3141_vm5  ;;  %vm3150_vm9 = vweird.f32 %v6836_v13 }
 0x354   : > { %v3133_v12 = vsel %vm3132_vm4, %v4329_v9, %v3129_v25  ;;  %v2502_v61 = vpop.f32.mrf.mxu2  ;;  %v2591_v62 = vpop.f32.mrf.mxu3  ;;  %v3410_v9 = vadd.f32 %v6551_v2, %v3377_v14  ;;  %v2962_v14 = vsub.f32 %v6422_v48, %v6772_v42 }
 0x355   : > { %v3345_v57 = vmul.f32 %v3133_v12, %v2961_v37  ;;  %v2503_v23 = vadd.f32 %v2502_v61, %v2414_v3  ;;  %v2326_v38 = vpop.f32.mrf.mxu0  ;;  %v3137_v21 = vmul.f32 0.5, %v3136_v16  ;;  %v2932_v11 = vmax.f32 %v2900_v7, 0.0  ;;  %v2415_v30 = vpop.f32.mrf.mxu1 }
 0x356   : > { %v2661_v59 = vpop.xlane.xlu1 %2660  ;;  %v2327_v17 = vadd.f32 %v6678_v10, %v2326_v38 }
 0x357   : > { %v3378_v4 = vmul.f32 %v6527_v55, %v3345_v57  ;;  %v2592_v63 = vadd.f32 %v2591_v62, %v2503_v23  ;;  %v6856_v54 = vmul.f32 %v2661_v59, %v4910_v43  ;;  %v3138_v5 = vsub.f32 1.5, %v3137_v21 }
 0x358   : > { %v2789_v40 = vpop.xlane.xlu0 %2788  ;;  %v4333_v60 = vpop.eup %4332  ;;  %v6861_v45 = vadd.f32 1e-05, %v2932_v11  ;;  %v2416_v27 = vadd.f32 %v2415_v30, %v2327_v17  ;;  %v2963_v11 = vsub.f32 %v6431_v49, %v6798_v22 }
 0x359   : > { %v3411_v34 = vadd.f32 %v6551_v2, %v3378_v4  ;;  %v6864_v10 = vadd.f32 %v2592_v63, %v6110_v6  ;;  %v2869_v29 = vmul.f32 %v6856_v54, %v6856_v54  ;;  %v3139_v0 = vmul.f32 %v6834_v33, %v3138_v5 }
 0x35a   : > { %v3145_v53 = vmul.f32 %v4333_v60, %v6836_v13  ;;  %4334 = vrsqrt.f32 %v6861_v45  ;;  %v2837_v15 = vmul.f32 %v2789_v40, %v4910_v43  ;;  %vm3151_vm8 = vweird.f32 %v4333_v60 }
 0x35b   : > { %v4059_v32 = vpack.c.bf16 %v3411_v34, %v3410_v9  ;;  %2690 = vadd.xlane.f32.xlu1 %v6864_v10  ;;  %v2756_v24 = vmul.f32 %v6864_v10, %v6864_v10  ;;  %v3143_v37 = vsel %vm6876_vm7, %v6834_v33, %v3139_v0  ;;  %vm3152_vm10 = vmor %vm3150_vm9, %vm3151_vm8  ;;  %vm3160_vm12 = vweird.f32 %v6861_v45 }
 0x35c   : > { %v3146_v25 = vmul.f32 %v4333_v60, %v3145_v53  ;;  %v2504_v19 = vpop.f32.mrf.mxu2  ;;  %v2901_v36 = vsub.f32 %v2837_v15, %v2869_v29  ;;  %v2593_v16 = vpop.f32.mrf.mxu3  ;;  %v3346_v23 = vmul.f32 %v3143_v37, %v2962_v14 }
 0x35d   : > { %4130 = vst [vmem:[%s6577_s24 + $0x28] sm:$0xff] %v4059_v32   ;;  %v2505_v3 = vadd.f32 %v2504_v19, %v2416_v27  ;;  %2818 = vadd.xlane.f32.xlu0 %v2756_v24  ;;  %v2755_v27 = vmul.f32 %v6839_v18, %v6839_v18 }
 0x35e   : > { %v3147_v12 = vmul.f32 0.5, %v3146_v25  ;;  %v2663_v61 = vpop.xlane.xlu2 %2662  ;;  %v2933_v62 = vmax.f32 %v2901_v36, 0.0  ;;  %v3379_v9 = vmul.f32 %v6527_v55, %v3346_v23 }
 0x35f   : > { %v2594_v57 = vadd.f32 %v2593_v16, %v2505_v3  ;;  %v6889_v7 = vmul.f32 %v2663_v61, %v4910_v43  ;;  %v2964_v61 = vsub.f32 %v6440_v50, %v6831_v44 }
 0x360   : > { %v3148_v38 = vsub.f32 1.5, %v3147_v12  ;;  %v2791_v21 = vpop.xlane.xlu1 %2790  ;;  %v4335_v59 = vpop.eup %4334  ;;  %v2997_v33 = vadd.f32 1e-05, %v2933_v62  ;;  %v3412_v30 = vadd.f32 %v6551_v2, %v3379_v9 }
 0x361   : > { %v6892_v17 = vadd.f32 %v2594_v57, %v6113_v20  ;;  %v2870_v48 = vmul.f32 %v6889_v7, %v6889_v7  ;;  %v3155_v4 = vmul.f32 %v4335_v59, %v6861_v45  ;;  %v2838_v63 = vmul.f32 %v2791_v21, %v4910_v43 }
 0x362   : > { %v3149_v42 = vmul.f32 %v4333_v60, %v3148_v38  ;;  %4336 = vrsqrt.f32 %v2997_v33  ;;  %vm3161_vm11 = vweird.f32 %v4335_v59  ;;  %vm3170_vm15 = vweird.f32 %v2997_v33 }
 0x363   : > { %2692 = vadd.xlane.f32.xlu2 %v6892_v17  ;;  %v2757_v20 = vmul.f32 %v6892_v17, %v6892_v17  ;;  %v3156_v40 = vmul.f32 %v4335_v59, %v3155_v4  ;;  %v2902_v13 = vsub.f32 %v2838_v63, %v2870_v48  ;;  %vm3162_vm13 = vmor %vm3160_vm12, %vm3161_vm11 }
 0x364   : > { %v3153_v5 = vsel %vm3152_vm10, %v4333_v60, %v3149_v42 }
 0x365   : > { %v3347_v34 = vmul.f32 %v3153_v5, %v2963_v11  ;;  %2820 = vadd.xlane.f32.xlu1 %v2757_v20  ;;  %v3157_v29 = vmul.f32 0.5, %v3156_v40  ;;  %v2934_v22 = vmax.f32 %v2902_v13, 0.0 }
 0x366   : > { %v2665_v0 = vpop.xlane.xlu0 %2664 }
 0x367   : > { %v3380_v49 = vmul.f32 %v6527_v55, %v3347_v34  ;;  %v6907_v53 = vmul.f32 %v2665_v0, %v4910_v43  ;;  %v3158_v32 = vsub.f32 1.5, %v3157_v29  ;;  %v2998_v25 = vadd.f32 1e-05, %v2934_v22 }
 0x368   : > { %v2793_v15 = vpop.xlane.xlu2 %2792  ;;  %v4337_v60 = vpop.eup %4336 }
 0x369   : > { %v3413_v6 = vadd.f32 %v6551_v2, %v3380_v49  ;;  %v2871_v19 = vmul.f32 %v6907_v53, %v6907_v53  ;;  %v3159_v24 = vmul.f32 %v4335_v59, %v3158_v32  ;;  %v3165_v37 = vmul.f32 %v4337_v60, %v2997_v33 }
 0x36a   : > { %v2839_v36 = vmul.f32 %v2793_v15, %v4910_v43  ;;  %4338 = vrsqrt.f32 %v2998_v25  ;;  %vm3171_vm14 = vweird.f32 %v4337_v60  ;;  %vm3180_vm2 = vweird.f32 %v2998_v25 }
 0x36b   : > { %v4064_v3 = vpack.c.bf16 %v3413_v6, %v3412_v30  ;;  %2816 = vadd.xlane.f32.xlu2 %v2755_v27  ;;  %v3166_v14 = vmul.f32 %v4337_v60, %v3165_v37  ;;  %v3163_v16 = vsel %vm3162_vm13, %v4335_v59, %v3159_v24  ;;  %v2965_v59 = vsub.f32 %v6450_v41, %v6856_v54  ;;  %vm3172_vm0 = vmor %vm3170_vm15, %vm3171_vm14 }
 0x36c   : > { %v2903_v12 = vsub.f32 %v2839_v36, %v2871_v19  ;;  %v3348_v38 = vmul.f32 %v3163_v16, %v2964_v61 }
 0x36d   : > { %4131 = vst [vmem:[%s6577_s24 + $0x30] sm:$0xff] %v4064_v3   ;;  %v3167_v62 = vmul.f32 0.5, %v3166_v14 }
 0x36e   : > { %v2935_v57 = vmax.f32 %v2903_v12, 0.0  ;;  %v2667_v23 = vpop.xlane.xlu1 %2666  ;;  %v3381_v20 = vmul.f32 %v6527_v55, %v3348_v38 }
 0x36f   : > { %v3168_v21 = vsub.f32 1.5, %v3167_v62  ;;  %v6921_v42 = vmul.f32 %v2667_v23, %v4910_v43 }
 0x370   : > { %v2999_v48 = vadd.f32 1e-05, %v2935_v57  ;;  %v4339_v45 = vpop.eup %4338  ;;  %v2795_v4 = vpop.xlane.xlu0 %2794  ;;  %v3414_v54 = vadd.f32 %v6551_v2, %v3381_v20 }
 0x371   : > { %v3169_v11 = vmul.f32 %v4337_v60, %v3168_v21  ;;  %v3175_v63 = vmul.f32 %v4339_v45, %v2998_v25  ;;  %v2872_v50 = vmul.f32 %v6921_v42, %v6921_v42  ;;  %v2840_v44 = vmul.f32 %v2795_v4, %v4910_v43 }
 0x372   : > { %4340 = vrsqrt.f32 %v2999_v48  ;;  %vm3181_vm1 = vweird.f32 %v4339_v45  ;;  %vm3190_vm5 = vweird.f32 %v2999_v48 }
 0x373   : > { %v3173_v9 = vsel %vm3172_vm0, %v4337_v60, %v3169_v11  ;;  %v3176_v5 = vmul.f32 %v4339_v45, %v3175_v63  ;;  %v2904_v34 = vsub.f32 %v2840_v44, %v2872_v50  ;;  %vm3182_vm3 = vmor %vm3180_vm2, %vm3181_vm1  ;;  %v6949_v11 = vld [vmem:[#allocation10 + $0x3] ss:$0 sm:$0xff] }
 0x374   : > { %v3349_v40 = vmul.f32 %v3173_v9, %v2965_v59 }
 0x375   : > { %v3177_v13 = vmul.f32 0.5, %v3176_v5  ;;  %v2936_v0 = vmax.f32 %v2904_v34, 0.0 }
 0x376   : > { %v2669_v29 = vpop.xlane.xlu2 %2668  ;;  %v3382_v33 = vmul.f32 %v6527_v55, %v3349_v40  ;;  %v6956_v40 = vld [vmem:[#allocation10 + $0x4] ss:$0 sm:$0xff] }
 0x377   : > { %v6931_v49 = vmul.f32 %v2669_v29, %v4910_v43  ;;  %v3178_v22 = vsub.f32 1.5, %v3177_v13  ;;  %v3000_v27 = vadd.f32 1e-05, %v2936_v0 }
 0x378   : > { %v4341_v41 = vpop.eup %4340  ;;  %v2797_v30 = vpop.xlane.xlu1 %2796  ;;  %v3415_v32 = vadd.f32 %v6551_v2, %v3382_v33  ;;  %v2966_v2 = vsub.f32 %v6466_v47, %v6889_v7 }
 0x379   : > { %v3185_v15 = vmul.f32 %v4341_v41, %v2999_v48  ;;  %v3179_v60 = vmul.f32 %v4339_v45, %v3178_v22  ;;  %v2873_v6 = vmul.f32 %v6931_v49, %v6931_v49  ;;  %v2841_v55 = vmul.f32 %v2797_v30, %v4910_v43 }
 0x37a   : > { %v4069_v19 = vpack.c.bf16 %v3415_v32, %v3414_v54  ;;  %4342 = vrsqrt.f32 %v3000_v27  ;;  %vm3191_vm4 = vweird.f32 %v4341_v41  ;;  %vm3200_vm8 = vweird.f32 %v3000_v27 }
 0x37b   : > { %v3186_v24 = vmul.f32 %v4341_v41, %v3185_v15  ;;  %v2905_v37 = vsub.f32 %v2841_v55, %v2873_v6  ;;  %v3183_v36 = vsel %vm3182_vm3, %v4339_v45, %v3179_v60  ;;  %v2967_v45 = vsub.f32 %v6485_v31, %v6907_v53  ;;  %vm3192_vm6 = vmor %vm3190_vm5, %vm3191_vm4 }
 0x37c   : > { %4132 = vst [vmem:[%s6577_s24 + $0x38] sm:$0xff] %v4069_v19   ;;  %v3350_v62 = vmul.f32 %v3183_v36, %v2966_v2  ;;  %v2968_v19 = vsub.f32 %v6506_v39, %v6921_v42 }
 0x37d   : > { %v3187_v3 = vmul.f32 0.5, %v3186_v24  ;;  %v2937_v14 = vmax.f32 %v2905_v37, 0.0 }
 0x37e   : > { %v2671_v12 = vpop.xlane.xlu0 %2670  ;;  %v3383_v63 = vmul.f32 %v6949_v11, %v3350_v62 }
 0x37f   : > { %v3188_v16 = vsub.f32 1.5, %v3187_v3  ;;  %v6942_v61 = vmul.f32 %v2671_v12, %v4910_v43  ;;  %v3001_v57 = vadd.f32 1e-05, %v2937_v14 }
 0x380   : > { %v4343_v25 = vpop.eup %4342  ;;  %v2799_v21 = vpop.xlane.xlu2 %2798  ;;  %v3416_v34 = vadd.f32 %v6956_v40, %v3383_v63 }
 0x381   : > { %v3189_v23 = vmul.f32 %v4341_v41, %v3188_v16  ;;  %v2874_v38 = vmul.f32 %v6942_v61, %v6942_v61  ;;  %v3195_v47 = vmul.f32 %v4343_v25, %v3000_v27  ;;  %4344 = vrsqrt.f32 %v3001_v57 }
 0x382   : > { %v2842_v4 = vmul.f32 %v2799_v21, %v4910_v43  ;;  %vm3201_vm7 = vweird.f32 %v4343_v25  ;;  %vm3210_vm11 = vweird.f32 %v3001_v57 }
 0x383   : > { %v3193_v7 = vsel %vm3192_vm6, %v4341_v41, %v3189_v23  ;;  %v3196_v50 = vmul.f32 %v4343_v25, %v3195_v47  ;;  %vm3202_vm9 = vmor %vm3200_vm8, %vm3201_vm7 }
 0x384   : > { %v3351_v59 = vmul.f32 %v3193_v7, %v2967_v45  ;;  %v2906_v48 = vsub.f32 %v2842_v4, %v2874_v38 }
 0x385   : > { %v3197_v20 = vmul.f32 0.5, %v3196_v50 }
 0x386   : > { %v3384_v44 = vmul.f32 %v6949_v11, %v3351_v59  ;;  %v2673_v9 = vpop.xlane.xlu1 %2672  ;;  %v2938_v5 = vmax.f32 %v2906_v48, 0.0 }
 0x387   : > { %v6954_v31 = vmul.f32 %v2673_v9, %v4910_v43  ;;  %v4345_v53 = vpop.eup %4344  ;;  %v3198_v29 = vsub.f32 1.5, %v3197_v20 }
 0x388   : > { %v3417_v13 = vadd.f32 %v6956_v40, %v3384_v44  ;;  %v2801_v33 = vpop.xlane.xlu0 %2800  ;;  %v3205_v0 = vmul.f32 %v4345_v53, %v3001_v57  ;;  %v3002_v41 = vadd.f32 1e-05, %v2938_v5  ;;  %vm3211_vm10 = vweird.f32 %v4345_v53 }
 0x389   : > { %v2875_v54 = vmul.f32 %v6954_v31, %v6954_v31  ;;  %v3199_v30 = vmul.f32 %v4343_v25, %v3198_v29  ;;  %v2843_v32 = vmul.f32 %v2801_v33, %v4910_v43  ;;  %vm3212_vm12 = vmor %vm3210_vm11, %vm3211_vm10 }
 0x38a   : > { %v4074_v22 = vpack.c.bf16 %v3417_v13, %v3416_v34  ;;  %v3206_v15 = vmul.f32 %v4345_v53, %v3205_v0  ;;  %4346 = vrsqrt.f32 %v3002_v41  ;;  %vm3220_vm14 = vweird.f32 %v3002_v41 }
 0x38b   : > { %v2907_v60 = vsub.f32 %v2843_v32, %v2875_v54  ;;  %v3203_v6 = vsel %vm3202_vm9, %v4343_v25, %v3199_v30  ;;  %v2969_v25 = vsub.f32 %v6538_v46, %v6931_v49 }
 0x38c   : > { %4133 = vst [vmem:[%s6577_s24 + $0x40] sm:$0xff] %v4074_v22   ;;  %v3207_v55 = vmul.f32 0.5, %v3206_v15  ;;  %v3352_v2 = vmul.f32 %v3203_v6, %v2968_v19  ;;  %v2970_v22 = vsub.f32 %v6566_v35, %v6942_v61 }
 0x38d   : > { %v2939_v24 = vmax.f32 %v2907_v60, 0.0 }
 0x38e   : > { %v2675_v37 = vpop.xlane.xlu2 %2674  ;;  %v3208_v36 = vsub.f32 1.5, %v3207_v55  ;;  %v3385_v38 = vmul.f32 %v6949_v11, %v3352_v2 }
 0x38f   : > { %v6967_v3 = vmul.f32 %v2675_v37, %v4910_v43  ;;  %v3003_v14 = vadd.f32 1e-05, %v2939_v24  ;;  %v2971_v37 = vsub.f32 %v6603_v51, %v6954_v31 }
 0x390   : > { %v2803_v27 = vpop.xlane.xlu1 %2802  ;;  %v4347_v12 = vpop.eup %4346  ;;  %v3209_v16 = vmul.f32 %v4345_v53, %v3208_v36  ;;  %v3418_v49 = vadd.f32 %v6956_v40, %v3385_v38 }
 0x391   : > { %v2876_v62 = vmul.f32 %v6967_v3, %v6967_v3  ;;  %v3215_v39 = vmul.f32 %v4347_v12, %v3002_v41  ;;  %4348 = vrsqrt.f32 %v3003_v14  ;;  %v2844_v23 = vmul.f32 %v2803_v27, %v4910_v43 }
 0x392   : > { %v3213_v42 = vsel %vm3212_vm12, %v4345_v53, %v3209_v16  ;;  %vm3221_vm13 = vweird.f32 %v4347_v12  ;;  %vm3230_vm1 = vweird.f32 %v3003_v14 }
 0x393   : > { %v3353_v21 = vmul.f32 %v3213_v42, %v2969_v25  ;;  %v3216_v45 = vmul.f32 %v4347_v12, %v3215_v39  ;;  %v2908_v47 = vsub.f32 %v2844_v23, %v2876_v62  ;;  %vm3222_vm15 = vmor %vm3220_vm14, %vm3221_vm13 }
 0x395   : > { %v3386_v7 = vmul.f32 %v6949_v11, %v3353_v21  ;;  %v3217_v57 = vmul.f32 0.5, %v3216_v45  ;;  %v2940_v63 = vmax.f32 %v2908_v47, 0.0 }
 0x396   : > { %v2677_v4 = vpop.xlane.xlu0 %2676 }
 0x397   : > { %v6977_v59 = vmul.f32 %v2677_v4, %v4910_v43  ;;  %v4349_v46 = vpop.eup %4348  ;;  %v3419_v50 = vadd.f32 %v6956_v40, %v3386_v7  ;;  %v3218_v48 = vsub.f32 1.5, %v3217_v57  ;;  %v3004_v9 = vadd.f32 1e-05, %v2940_v63 }
 0x398   : > { %v2805_v44 = vpop.xlane.xlu2 %2804  ;;  %v3225_v20 = vmul.f32 %v4349_v46, %v3003_v14  ;;  %vm3231_vm0 = vweird.f32 %v4349_v46 }
 0x399   : > { %v2877_v5 = vmul.f32 %v6977_v59, %v6977_v59  ;;  %v4079_v53 = vpack.c.bf16 %v3419_v50, %v3418_v49  ;;  %v3219_v34 = vmul.f32 %v4347_v12, %v3218_v48  ;;  %v2845_v13 = vmul.f32 %v2805_v44, %v4910_v43  ;;  %vm3232_vm2 = vmor %vm3230_vm1, %vm3231_vm0 }
 0x39a   : > { %v3226_v29 = vmul.f32 %v4349_v46, %v3225_v20  ;;  %4350 = vrsqrt.f32 %v3004_v9  ;;  %vm3240_vm4 = vweird.f32 %v3004_v9  ;;  %v2972_v20 = vsub.f32 %v6630_v28, %v6967_v3 }
 0x39b   : > { %4134 = vst [vmem:[%s6577_s24 + $0x48] sm:$0xff] %v4079_v53   ;;  %v2909_v33 = vsub.f32 %v2845_v13, %v2877_v5  ;;  %v3223_v0 = vsel %vm3222_vm15, %v4347_v12, %v3219_v34 }
 0x39c   : > { %v3227_v54 = vmul.f32 0.5, %v3226_v29  ;;  %v3354_v60 = vmul.f32 %v3223_v0, %v2970_v22 }
 0x39d   : > { %v2941_v30 = vmax.f32 %v2909_v33, 0.0 }
 0x39e   : > { %v3228_v32 = vsub.f32 1.5, %v3227_v54  ;;  %v2679_v15 = vpop.xlane.xlu1 %2678  ;;  %v3387_v27 = vmul.f32 %v6949_v11, %v3354_v60 }
 0x39f   : > { %v3005_v6 = vadd.f32 1e-05, %v2941_v30  ;;  %v6988_v55 = vmul.f32 %v2679_v15, %v4910_v43  ;;  %v2973_v30 = vsub.f32 %v6663_v1, %v6977_v59 }
 0x3a0   : > { %v4351_v41 = vpop.eup %4350  ;;  %v3229_v19 = vmul.f32 %v4349_v46, %v3228_v32  ;;  %v2807_v24 = vpop.xlane.xlu0 %2806  ;;  %v3420_v23 = vadd.f32 %v6956_v40, %v3387_v27 }
 0x3a1   : > { %v3235_v36 = vmul.f32 %v4351_v41, %v3004_v9  ;;  %4352 = vrsqrt.f32 %v3005_v6  ;;  %v2878_v61 = vmul.f32 %v6988_v55, %v6988_v55  ;;  %v2846_v2 = vmul.f32 %v2807_v24, %v4910_v43 }
 0x3a2   : > { %v3233_v35 = vsel %vm3232_vm2, %v4349_v46, %v3229_v19  ;;  %vm3241_vm3 = vweird.f32 %v4351_v41  ;;  %vm3250_vm7 = vweird.f32 %v3005_v6 }
 0x3a3   : > { %v3355_v12 = vmul.f32 %v3233_v35, %v2971_v37  ;;  %v3236_v16 = vmul.f32 %v4351_v41, %v3235_v36  ;;  %v2910_v62 = vsub.f32 %v2846_v2, %v2878_v61  ;;  %vm3242_vm5 = vmor %vm3240_vm4, %vm3241_vm3 }
 0x3a5   : > { %v3388_v14 = vmul.f32 %v6949_v11, %v3355_v12  ;;  %v3237_v25 = vmul.f32 0.5, %v3236_v16  ;;  %v2942_v42 = vmax.f32 %v2910_v62, 0.0 }
 0x3a6   : > { %v2681_v39 = vpop.xlane.xlu2 %2680 }
 0x3a7   : > { %v6998_v51 = vmul.f32 %v2681_v39, %v4910_v43  ;;  %v4353_v31 = vpop.eup %4352  ;;  %v3421_v38 = vadd.f32 %v6956_v40, %v3388_v14  ;;  %v3238_v21 = vsub.f32 1.5, %v3237_v25  ;;  %v3006_v47 = vadd.f32 1e-05, %v2942_v42 }
 0x3a8   : > { %v3245_v45 = vmul.f32 %v4353_v31, %v3005_v6  ;;  %v2809_v57 = vpop.xlane.xlu1 %2808  ;;  %vm3251_vm6 = vweird.f32 %v4353_v31 }
 0x3a9   : > { %v2879_v7 = vmul.f32 %v6998_v51, %v6998_v51  ;;  %v4084_v4 = vpack.c.bf16 %v3421_v38, %v3420_v23  ;;  %v3239_v63 = vmul.f32 %v4351_v41, %v3238_v21  ;;  %v2847_v46 = vmul.f32 %v2809_v57, %v4910_v43  ;;  %vm3252_vm8 = vmor %vm3250_vm7, %vm3251_vm6 }
 0x3aa   : > { %v3246_v49 = vmul.f32 %v4353_v31, %v3245_v45  ;;  %4354 = vrsqrt.f32 %v3006_v47  ;;  %vm3260_vm10 = vweird.f32 %v3006_v47  ;;  %v2974_v21 = vsub.f32 %v6692_v52, %v6988_v55 }
 0x3ab   : > { %4135 = vst [vmem:[%s6577_s24 + $0x50] sm:$0xff] %v4084_v4   ;;  %v2911_v50 = vsub.f32 %v2847_v46, %v2879_v7  ;;  %v3243_v48 = vsel %vm3242_vm5, %v4351_v41, %v3239_v63 }
 0x3ac   : > { %v3247_v44 = vmul.f32 0.5, %v3246_v49  ;;  %v3356_v29 = vmul.f32 %v3243_v48, %v2972_v20 }
 0x3ad   : > { %v2943_v5 = vmax.f32 %v2911_v50, 0.0 }
 0x3ae   : > { %v2683_v53 = vpop.xlane.xlu0 %2682  ;;  %v3248_v34 = vsub.f32 1.5, %v3247_v44  ;;  %v3389_v15 = vmul.f32 %v6949_v11, %v3356_v29 }
 0x3af   : > { %v7009_v13 = vmul.f32 %v2683_v53, %v4910_v43  ;;  %v3007_v33 = vadd.f32 1e-05, %v2943_v5 }
 0x3b0   : > { %v2811_v9 = vpop.xlane.xlu2 %2810  ;;  %v4355_v0 = vpop.eup %4354  ;;  %v3249_v54 = vmul.f32 %v4353_v31, %v3248_v34  ;;  %v3422_v59 = vadd.f32 %v6956_v40, %v3389_v15 }
 0x3b1   : > { %v2880_v22 = vmul.f32 %v7009_v13, %v7009_v13  ;;  %v3255_v28 = vmul.f32 %v4355_v0, %v3006_v47  ;;  %4356 = vrsqrt.f32 %v3007_v33  ;;  %v2848_v32 = vmul.f32 %v2811_v9, %v4910_v43 }
 0x3b2   : > { %v3253_v3 = vsel %vm3252_vm8, %v4353_v31, %v3249_v54  ;;  %vm3261_vm9 = vweird.f32 %v4355_v0  ;;  %vm3270_vm13 = vweird.f32 %v3007_v33  ;;  %v2975_v47 = vsub.f32 %v6721_v26, %v6998_v51 }
 0x3b3   : > { %v3357_v60 = vmul.f32 %v3253_v3, %v2973_v30  ;;  %v3256_v41 = vmul.f32 %v4355_v0, %v3255_v28  ;;  %v2912_v19 = vsub.f32 %v2848_v32, %v2880_v22  ;;  %vm3262_vm11 = vmor %vm3260_vm10, %vm3261_vm9 }
 0x3b5   : > { %v3390_v24 = vmul.f32 %v6949_v11, %v3357_v60  ;;  %v3257_v6 = vmul.f32 0.5, %v3256_v41  ;;  %v2944_v36 = vmax.f32 %v2912_v19, 0.0  ;;  %v2976_v41 = vsub.f32 %v6748_v58, %v7009_v13 }
 0x3b6   : > { %v2685_v37 = vpop.xlane.xlu1 %2684 }
 0x3b7   : > { %v7019_v35 = vmul.f32 %v2685_v37, %v4910_v43  ;;  %v4357_v1 = vpop.eup %4356  ;;  %v3423_v61 = vadd.f32 %v6956_v40, %v3390_v24  ;;  %v3258_v2 = vsub.f32 1.5, %v3257_v6  ;;  %v3008_v16 = vadd.f32 1e-05, %v2944_v36 }
 0x3b8   : > { %v2813_v27 = vpop.xlane.xlu0 %2812  ;;  %v3265_v12 = vmul.f32 %v4357_v1, %v3007_v33  ;;  %vm3271_vm12 = vweird.f32 %v4357_v1 }
 0x3b9   : > { %v2881_v62 = vmul.f32 %v7019_v35, %v7019_v35  ;;  %v4089_v14 = vpack.c.bf16 %v3423_v61, %v3422_v59  ;;  %v3259_v25 = vmul.f32 %v4355_v0, %v3258_v2  ;;  %v2849_v39 = vmul.f32 %v2813_v27, %v4910_v43  ;;  %vm3272_vm14 = vmor %vm3270_vm13, %vm3271_vm12 }
 0x3ba   : > { %v3266_v42 = vmul.f32 %v4357_v1, %v3265_v12  ;;  %4358 = vrsqrt.f32 %v3008_v16  ;;  %vm3280_vm0 = vweird.f32 %v3008_v16  ;;  %v2977_v2 = vsub.f32 %v6779_v8, %v7019_v35 }
 0x3bb   : > { %4136 = vst [vmem:[%s6577_s24 + $0x58] sm:$0xff] %v4089_v14   ;;  %v2913_v31 = vsub.f32 %v2849_v39, %v2881_v62  ;;  %v3263_v23 = vsel %vm3262_vm11, %v4355_v0, %v3259_v25 }
 0x3bc   : > { %v3267_v38 = vmul.f32 0.5, %v3266_v42  ;;  %v3358_v4 = vmul.f32 %v3263_v23, %v2974_v21 }
 0x3bd   : > { %v2945_v45 = vmax.f32 %v2913_v31, 0.0 }
 0x3be   : > { %v3268_v7 = vsub.f32 1.5, %v3267_v38  ;;  %v2687_v57 = vpop.xlane.xlu2 %2686  ;;  %v3391_v55 = vmul.f32 %v6949_v11, %v3358_v4 }
 0x3bf   : > { %v3009_v63 = vadd.f32 1e-05, %v2945_v45  ;;  %v7032_v48 = vmul.f32 %v2687_v57, %v4910_v43 }
 0x3c0   : > { %v4359_v46 = vpop.eup %4358  ;;  %v3269_v49 = vmul.f32 %v4357_v1, %v3268_v7  ;;  %v2815_v52 = vpop.xlane.xlu1 %2814  ;;  %v3424_v33 = vadd.f32 %v6956_v40, %v3391_v55 }
 0x3c1   : > { %v3275_v50 = vmul.f32 %v4359_v46, %v3008_v16  ;;  %4360 = vrsqrt.f32 %v3009_v63  ;;  %v2882_v29 = vmul.f32 %v7032_v48, %v7032_v48  ;;  %v2850_v26 = vmul.f32 %v2815_v52, %v4910_v43 }
 0x3c2   : > { %v3273_v44 = vsel %vm3272_vm14, %v4357_v1, %v3269_v49  ;;  %vm3281_vm15 = vweird.f32 %v4359_v46  ;;  %vm3290_vm3 = vweird.f32 %v3009_v63 }
 0x3c3   : > { %v3359_v20 = vmul.f32 %v3273_v44, %v2975_v47  ;;  %v3276_v5 = vmul.f32 %v4359_v46, %v3275_v50  ;;  %v2914_v3 = vsub.f32 %v2850_v26, %v2882_v29  ;;  %vm3282_vm1 = vmor %vm3280_vm0, %vm3281_vm15 }
 0x3c5   : > { %v3392_v53 = vmul.f32 %v6949_v11, %v3359_v20  ;;  %v3277_v34 = vmul.f32 0.5, %v3276_v5  ;;  %v2946_v19 = vmax.f32 %v2914_v3, 0.0 }
 0x3c6   : > { %v2689_v22 = vpop.xlane.xlu0 %2688 }
 0x3c7   : > { %v4361_v51 = vpop.eup %4360  ;;  %v3425_v9 = vadd.f32 %v6956_v40, %v3392_v53  ;;  %v3278_v0 = vsub.f32 1.5, %v3277_v34  ;;  %v7051_v27 = vadd.f32 1e-05, %v2946_v19  ;;  %v7063_v4 = vmul.f32 %v2689_v22, %v4910_v43 }
 0x3c8   : > { %v3285_v54 = vmul.f32 %v4361_v51, %v3009_v63  ;;  %vm3291_vm2 = vweird.f32 %v4361_v51 }
 0x3c9   : > { %v4094_v30 = vpack.c.bf16 %v3425_v9, %v3424_v33  ;;  %v3279_v28 = vmul.f32 %v4359_v46, %v3278_v0  ;;  %vm3292_vm4 = vmor %vm3290_vm3, %vm3291_vm2  ;;  %4362 = vrsqrt.f32 %v7051_v27  ;;  %v2883_v52 = vmul.f32 %v7063_v4, %v7063_v4 }
 0x3ca   : > { %v3286_v32 = vmul.f32 %v4361_v51, %v3285_v54  ;;  %vm3300_vm11 = vweird.f32 %v7051_v27 }
 0x3cb   : > { %4137 = vst [vmem:[%s6577_s24 + $0x60] sm:$0xff] %v4094_v30   ;;  %v3283_v15 = vsel %vm3282_vm1, %v4359_v46, %v3279_v28 }
 0x3cc   : > { %v3287_v60 = vmul.f32 0.5, %v3286_v32  ;;  %v3360_v36 = vmul.f32 %v3283_v15, %v2976_v41 }
 0x3ce   : > { %v2691_v24 = vpop.xlane.xlu1 %2690  ;;  %v3288_v6 = vsub.f32 1.5, %v3287_v60  ;;  %v3393_v12 = vmul.f32 %v6949_v11, %v3360_v36 }
 0x3cf   : > { %v7045_v37 = vmul.f32 %v2691_v24, %v4910_v43  ;;  %v4363_v57 = vpop.eup %4362 }
 0x3d0   : > { %v3289_v1 = vmul.f32 %v4361_v51, %v3288_v6  ;;  %v2819_v61 = vpop.xlane.xlu0 %2818  ;;  %v3426_v8 = vadd.f32 %v6956_v40, %v3393_v12  ;;  %v3295_v49 = vmul.f32 %v4363_v57, %v7051_v27  ;;  %vm3301_vm9 = vweird.f32 %v4363_v57 }
 0x3d1   : > { %v2884_v59 = vmul.f32 %v7045_v37, %v7045_v37  ;;  %v2852_v58 = vmul.f32 %v2819_v61, %v4910_v43  ;;  %v2980_v3 = vsub.f32 %v6864_v10, %v7045_v37  ;;  %vm3302_vm13 = vmor %vm3300_vm11, %vm3301_vm9 }
 0x3d2   : > { %v3293_v13 = vsel %vm3292_vm4, %v4361_v51, %v3289_v1  ;;  %v3296_v5 = vmul.f32 %v4363_v57, %v3295_v49 }
 0x3d3   : > { %v3361_v16 = vmul.f32 %v3293_v13, %v2977_v2  ;;  %v2916_v62 = vsub.f32 %v2852_v58, %v2884_v59  ;;  %v2978_v2 = vsub.f32 %v6806_v56, %v7032_v48 }
 0x3d4   : > { %v3297_v33 = vmul.f32 0.5, %v3296_v5 }
 0x3d5   : > { %v3394_v14 = vmul.f32 %v6949_v11, %v3361_v16  ;;  %v2948_v25 = vmax.f32 %v2916_v62, 0.0  ;;  %v2979_v62 = vsub.f32 %v6839_v18, %v7063_v4 }
 0x3d6   : > { %v2693_v39 = vpop.xlane.xlu2 %2692  ;;  %v3298_v22 = vsub.f32 1.5, %v3297_v33 }
 0x3d7   : > { %v2725_v42 = vmul.f32 %v2693_v39, %v4910_v43  ;;  %v3427_v35 = vadd.f32 %v6956_v40, %v3394_v14  ;;  %v3012_v31 = vadd.f32 1e-05, %v2948_v25 }
 0x3d8   : > { %v2821_v23 = vpop.xlane.xlu1 %2820  ;;  %v3299_v60 = vmul.f32 %v4363_v57, %v3298_v22 }
 0x3d9   : > { %v2885_v38 = vmul.f32 %v2725_v42, %v2725_v42  ;;  %v2853_v21 = vmul.f32 %v2821_v23, %v4910_v43  ;;  %v4099_v45 = vpack.c.bf16 %v3427_v35, %v3426_v8  ;;  %4364 = vrsqrt.f32 %v3012_v31 }
 0x3da   : > { %vm3320_vm6 = vweird.f32 %v3012_v31  ;;  %v2981_v6 = vsub.f32 %v6892_v17, %v2725_v42  ;;  %v3303_v59 = vsel %vm3302_vm13, %v4363_v57, %v3299_v60 }
 0x3db   : > { %v2917_v7 = vsub.f32 %v2853_v21, %v2885_v38  ;;  %4138 = vst [vmem:[%s6577_s24 + $0x68] sm:$0xff] %v4099_v45   ;;  %v3362_v27 = vmul.f32 %v3303_v59, %v2978_v2 }
 0x3dd   : > { %v2949_v63 = vmax.f32 %v2917_v7, 0.0  ;;  %v3395_v14 = vmul.f32 %v6949_v11, %v3362_v27 }
 0x3de   : > { %v2817_v46 = vpop.xlane.xlu2 %2816 }
 0x3df   : > { %v3013_v47 = vadd.f32 1e-05, %v2949_v63  ;;  %v2851_v50 = vmul.f32 %v2817_v46, %v4910_v43  ;;  %v4365_v44 = vpop.eup %4364  ;;  %v3428_v18 = vadd.f32 %v6956_v40, %v3395_v14 }
 0x3e0   : > { %v3315_v55 = vmul.f32 %v4365_v44, %v3012_v31  ;;  %vm3321_vm5 = vweird.f32 %v4365_v44 }
 0x3e1   : > { %4366 = vrsqrt.f32 %v3013_v47  ;;  %v2915_v20 = vsub.f32 %v2851_v50, %v2883_v52  ;;  %vm3322_vm7 = vmor %vm3320_vm6, %vm3321_vm5  ;;  %vm3330_vm10 = vweird.f32 %v3013_v47 }
 0x3e2   : > { %v3316_v53 = vmul.f32 %v4365_v44, %v3315_v55 }
 0x3e3   : > { %v2947_v34 = vmax.f32 %v2915_v20, 0.0 }
 0x3e4   : > { %v3317_v29 = vmul.f32 0.5, %v3316_v53 }
 0x3e5   : > { %v3011_v26 = vadd.f32 1e-05, %v2947_v34 }
 0x3e6   : > { %v3318_v9 = vsub.f32 1.5, %v3317_v29 }
 0x3e7   : > { %v4367_v51 = vpop.eup %4366  ;;  %4368 = vrsqrt.f32 %v3011_v26  ;;  %vm3310_vm15 = vweird.f32 %v3011_v26 }
 0x3e8   : > { %v3325_v0 = vmul.f32 %v4367_v51, %v3013_v47  ;;  %v3319_v54 = vmul.f32 %v4365_v44, %v3318_v9  ;;  %vm3331_vm8 = vweird.f32 %v4367_v51 }
 0x3e9   : > { %vm3332_vm12 = vmor %vm3330_vm10, %vm3331_vm8 }
 0x3ea   : > { %v3326_v43 = vmul.f32 %v4367_v51, %v3325_v0  ;;  %v3323_v30 = vsel %vm3322_vm7, %v4365_v44, %v3319_v54 }
 0x3eb   : > { %v3364_v41 = vmul.f32 %v3323_v30, %v2980_v3 }
 0x3ec   : > { %v3327_v28 = vmul.f32 0.5, %v3326_v43 }
 0x3ed   : > { %v4369_v32 = vpop.eup %4368  ;;  %v3397_v10 = vmul.f32 %v6949_v11, %v3364_v41 }
 0x3ee   : > { %v3328_v15 = vsub.f32 1.5, %v3327_v28  ;;  %v3305_v19 = vmul.f32 %v4369_v32, %v3011_v26  ;;  %vm3311_vm14 = vweird.f32 %v4369_v32 }
 0x3ef   : > { %v3430_v17 = vadd.f32 %v6956_v40, %v3397_v10  ;;  %vm3312_vm0 = vmor %vm3310_vm15, %vm3311_vm14 }
 0x3f0   : > { %v3329_v24 = vmul.f32 %v4367_v51, %v3328_v15  ;;  %v3306_v36 = vmul.f32 %v4369_v32, %v3305_v19 }
 0x3f2   : > { %v3333_v1 = vsel %vm3332_vm12, %v4367_v51, %v3329_v24  ;;  %v3307_v61 = vmul.f32 0.5, %v3306_v36 }
 0x3f3   : > { %v3365_v37 = vmul.f32 %v3333_v1, %v2981_v6 }
 0x3f4   : > { %v3308_v13 = vsub.f32 1.5, %v3307_v61 }
 0x3f5   : > { %v3398_v58 = vmul.f32 %v6949_v11, %v3365_v37 }
 0x3f6   : > { %v3309_v16 = vmul.f32 %v4369_v32, %v3308_v13 }
 0x3f7   : > { %v3431_v12 = vadd.f32 %v6956_v40, %v3398_v58 }
 0x3f8   : > { %v3313_v48 = vsel %vm3312_vm0, %v4369_v32, %v3309_v16 }
 0x3f9   : > { %v4109_v56 = vpack.c.bf16 %v3431_v12, %v3430_v17  ;;  %v3363_v25 = vmul.f32 %v3313_v48, %v2979_v62 }
 0x3fb   : > { %4140 = vst [vmem:[%s6577_s24 + $0x78] sm:$0xff] %v4109_v56   ;;  %v3396_v39 = vmul.f32 %v6949_v11, %v3363_v25 }
 0x3fd   : > { %v3429_v42 = vadd.f32 %v6956_v40, %v3396_v39 }
 0x3ff   : > { %v4104_v8 = vpack.c.bf16 %v3429_v42, %v3428_v18 }
 0x401   : > { %4139 = vst [vmem:[%s6577_s24 + $0x70] sm:$0xff] %v4104_v8  }
 0x402   : > { %4552 = shalt.err (!%p4549_p10)
}
 0x403   : > { %s4610_s6 = smov 64   ;;  %s4611_s26 = smov 4  }
 0x404   : > { %4159 = dma.vmem_to_hbm [thread:$0]  (%p4729_p3), %s3510_s22, 2048, %s3512_s10, %s3497_s12, %s4610_s6, %s4610_s6, %s4611_s26  }
 0x405 PF: > { %s3526_s24 = sand.u32 1, %s4587_s18   ;;  %p7279_p12 = scmp.ge.s32.totalorder %s4599_s21, 2 }
 0x406   : > { %s3527_s29 = scalar_lea.sflag [#allocation4], %s3526_s24 }
 0x407   : > { %p4179_p13 = pnand %p7279_p12, %p4677_p6 }
 0x409   : > { %p4180_p0 = pneg %p4179_p13 }
 0x40b   : > { %4582 = dma.done.wait (%p4180_p0), %s3527_s29, 2048  }
 0x40c   : > { %4584 = vsyncadd (%p4180_p0), %s3527_s29, 4294965248  ;;  %p20_p5 = scmp.ge.s32.totalorder %s4719_s11, 4   ;;  %s7280_s18 = smov %s4591_s19 }
 0x40d   : > { %s7281_s19 = smov %s4595_s20  ;;  %s7282_s20 = smov %s4735_s17 }
 0x40e   : > { %s7283_s21 = smov %s4719_s11  ;;  %22 = sbr.rel (!%p20_p5) target bundleno = 7 (0x7), region = 101 }
 0x413   :  { %3533 = vsyncpa [#allocation3], 1 }
 0x414   :  { %3535 = vsyncpa [#allocation3 + $0x1], 1 }
 0x415   :  { %3536 = vsyncpa [#allocation6], 1 }
 0x416   :  { %3537 = vsyncpa [#allocation9], 1 }
 0x417   :  { %3538 = vsyncpa [#allocation4], 1 }
 0x418   :  { %3540 = vsyncpa [#allocation4 + $0x1], 1 }

</bundles_post_ra>
